<compile_context>
chip_gen: v6e
topology: v6e:2x2x1
jax: 0.10.0
libtpu: 0.0.40
codegen_flags: <defaults>
</compile_context>

<pallas_src>
import jax
import jax.numpy as jnp
from jax.experimental import pallas as pl
from jax.experimental.pallas import tpu as pltpu


# Left spatial pad of the VMEM scratch buffers.  8 (one sublane tile) keeps the
# large interior stores sublane-aligned; the convs only need 1 / 2 columns of
# zeros on the left, the remaining columns are simply never read.
_LPAD = 8


# ---------------------------------------------------------------------------
# Fused kernel factory: conv1 + conv2(dilated) + concat + conv3 + residual.
# ---------------------------------------------------------------------------
def _make_kernel(C, H, W, approx_recip):
    HW = H * W

    def bn_mish(y, b_ref):
        # y: (HW, C) f32 conv result (BN scale already folded into weights);
        # b_ref: (1, C) f32 folded-BN shift.
        y = y + b_ref[...]
        # Mish via the single-exp identity (one exp + one divide instead of
        # exp + log1p + tanh).  Clamp at 20: tanh(softplus(20)) == 1.0 in f32.
        u = jnp.exp(jnp.minimum(y, 20.0))
        s = u * (u + 2.0)                      # (1+u)^2 - 1
        if approx_recip:
            t = s * pl.reciprocal(s + 2.0, approx=True)
        else:
            t = s / (s + 2.0)                  # tanh(softplus(y))
        return y * t

    def conv3x3_acc(src_ref, w_ref, cin, dil, row0, col0):
        # Per-tap accumulation: 9 matmuls of K = cin each, f32 accumulator.
        # No im2col patch is materialized (no extra vst traffic, no big
        # scratch).  Weight rows are laid out (ky*3 + kx)*cin + ci.
        acc = jnp.zeros((HW, C), jnp.float32)
        for ky in range(3):
            for kx in range(3):
                t = ky * 3 + kx
                win = src_ref[row0 + ky * dil: row0 + ky * dil + H,
                              col0 + kx * dil: col0 + kx * dil + W, :]
                acc = acc + jnp.dot(win.reshape(HW, cin),
                                    w_ref[t * cin:(t + 1) * cin, :],
                                    preferred_element_type=jnp.float32)
        return acc

    def kernel(x_ref, w1_ref, b1_ref, w2_ref, b2_ref, w3_ref, b3_ref,
               out_ref, xp_ref, xcp_ref):
        cdt = xp_ref.dtype
        Wp = W + _LPAD + 2          # padded-input scratch width
        Wc = W + _LPAD + 1          # padded-concat scratch width

        # Load the image once: channel-major (C, H*W), lane dim = H*W.
        x_cm = x_ref[...]                               # (C, HW) f32
        x_t = x_cm.T                                    # (HW, C) one transpose

        # ---- border-only zeroing (interior is fully overwritten below) ----
        # Input scratch: convs read rows [0, H+4) and cols [LPAD-2, LPAD+W+2).
        xp_ref[0:2, :, :] = jnp.zeros((2, Wp, C), cdt)
        xp_ref[2 + H:, :, :] = jnp.zeros((2, Wp, C), cdt)
        xp_ref[2:2 + H, _LPAD - 2:_LPAD, :] = jnp.zeros((H, 2, C), cdt)
        xp_ref[2:2 + H, _LPAD + W:, :] = jnp.zeros((H, 2, C), cdt)
        # Concat scratch: conv3 reads rows [0, H+2) and cols [LPAD-1, LPAD+W+1).
        xcp_ref[0:1, :, :] = jnp.zeros((1, Wc, 2 * C), cdt)
        xcp_ref[1 + H:, :, :] = jnp.zeros((1, Wc, 2 * C), cdt)
        xcp_ref[1:1 + H, _LPAD - 1:_LPAD, :] = jnp.zeros((H, 1, 2 * C), cdt)
        xcp_ref[1:1 + H, _LPAD + W:, :] = jnp.zeros((H, 1, 2 * C), cdt)

        # Input, zero-padded by 2 (shared by the d=1 and d=2 convs),
        # sublane-aligned interior store.
        xp_ref[2:2 + H, _LPAD:_LPAD + W, :] = x_t.reshape(H, W, C).astype(cdt)

        # conv1: 3x3, dilation 1, pad 1  (padded-image origin = (1, LPAD-1)).
        x1 = bn_mish(conv3x3_acc(xp_ref, w1_ref, C, 1, 1, _LPAD - 1), b1_ref)
        # Write x1 into the concat scratch right away (its stores can overlap
        # conv2's matmuls; also lowers live VMEM).
        xcp_ref[1:1 + H, _LPAD:_LPAD + W, 0:C] = x1.reshape(H, W, C).astype(cdt)

        # conv2: 3x3, dilation 2, pad 2  (origin = (0, LPAD-2)).
        x2 = bn_mish(conv3x3_acc(xp_ref, w2_ref, C, 2, 0, _LPAD - 2), b2_ref)
        xcp_ref[1:1 + H, _LPAD:_LPAD + W, C:2 * C] = x2.reshape(H, W, C).astype(cdt)

        # conv3: 3x3, dilation 1, pad 1 on concat([x1, x2]) (2C input channels).
        y3 = bn_mish(conv3x3_acc(xcp_ref, w3_ref, 2 * C, 1, 0, _LPAD - 1), b3_ref)

        # Residual add + single output transpose -> lane-dense (C, H*W) store.
        out_ref[...] = (y3 + x_t).T.astype(out_ref.dtype)

    return kernel


# ---------------------------------------------------------------------------
# Host-side parameter prep + wrapper
# ---------------------------------------------------------------------------
def _fold_bn(w_pt, bn, eps=1e-5):
    """PyTorch conv weight (Cout, Cin, 3, 3) + eval-mode BatchNorm ->
    per-tap weight matrix (9*Cin, Cout) with the BN scale folded in, plus a
    (1, Cout) shift.  Row index is (ky*3 + kx)*Cin + ci."""
    gamma, beta, mean, var = bn
    cout, cin = w_pt.shape[0], w_pt.shape[1]
    inv_std = 1.0 / jnp.sqrt(var + eps)
    scale = gamma * inv_std                                    # (Cout,)
    shift = beta - mean * scale                                # (Cout,)
    wmat = jnp.transpose(w_pt, (2, 3, 1, 0)).reshape(9 * cin, cout)
    wmat = wmat * scale[None, :]
    return wmat.astype(jnp.float32), shift.reshape(1, cout).astype(jnp.float32)


def res_block_dilation_bottleneck(x_nchw, params, use_bf16=True):
    """Forward of ResBlock_DilationBottleNeck.  Input/output are NCHW."""
    N, C, H, W = x_nchw.shape
    HW = H * W
    cdt = jnp.bfloat16 if use_bf16 else jnp.float32
    itemsize = 2 if use_bf16 else 4

    w1, b1 = _fold_bn(params["w1"], params["bn1"])
    w2, b2 = _fold_bn(params["w2"], params["bn2"])
    w3, b3 = _fold_bn(params["w3"], params["bn3"])
    w1, w2, w3 = (w.astype(cdt) for w in (w1, w2, w3))

    x2d = x_nchw.reshape(N, C, HW)           # free view of NCHW, lanes = H*W

    kernel = _make_kernel(C, H, W, approx_recip=use_bf16)

    # Explicit scoped-VMEM budget (defaults are 16 MiB v5e / 32 MiB v6e,v7x).
    scratch_bytes = ((H + 4) * (W + _LPAD + 2) * C
                     + (H + 2) * (W + _LPAD + 1) * 2 * C) * itemsize
    io_bytes = 2 * 2 * C * HW * x_nchw.dtype.itemsize        # in+out, 2-buffered
    wt_bytes = 2 * (36 * C * C * itemsize + 3 * C * 4)       # weights, 2-buffered
    needed = 2 * (scratch_bytes + io_bytes + wt_bytes) + (8 << 20)
    vmem_limit = int(min(64 << 20, max(32 << 20, needed)))

    flops = 72 * N * HW * C * C                 # conv1 + conv2 + conv3 (2C in)
    transcendentals = 6 * N * HW * C            # exp + reciprocal of 3 Mish
    bytes_accessed = (2 * N * C * HW * x_nchw.dtype.itemsize
                      + 36 * C * C * itemsize + 3 * C * 4)

    out2d = pl.pallas_call(
        kernel,
        out_shape=jax.ShapeDtypeStruct((N, C, HW), x_nchw.dtype),
        grid=(N,),
        in_specs=[
            pl.BlockSpec((None, C, HW), lambda n: (n, 0, 0)),   # x -> (C, H*W)
            pl.BlockSpec((9 * C, C), lambda n: (0, 0)),         # w1 (BN-folded)
            pl.BlockSpec((1, C), lambda n: (0, 0)),             # b1
            pl.BlockSpec((9 * C, C), lambda n: (0, 0)),         # w2
            pl.BlockSpec((1, C), lambda n: (0, 0)),             # b2
            pl.BlockSpec((18 * C, C), lambda n: (0, 0)),        # w3
            pl.BlockSpec((1, C), lambda n: (0, 0)),             # b3
        ],
        out_specs=pl.BlockSpec((None, C, HW), lambda n: (n, 0, 0)),
        scratch_shapes=[
            pltpu.VMEM((H + 4, W + _LPAD + 2, C), cdt),        # pad-2 input
            pltpu.VMEM((H + 2, W + _LPAD + 1, 2 * C), cdt),    # pad-1 concat
        ],
        compiler_params=pltpu.CompilerParams(
            dimension_semantics=("parallel",),
            vmem_limit_bytes=vmem_limit),
        cost_estimate=pl.CostEstimate(flops=int(flops),
                                      transcendentals=int(transcendentals),
                                      bytes_accessed=int(bytes_accessed)),
    )(x2d, w1, b1, w2, b2, w3, b3)

    # (N, C, H*W) -> (N, C, H, W): pure reshape, no data movement.
    return out2d.reshape(N, C, H, W)


# ----------------------------- parameter init ------------------------------
def _init_conv_w(key, cout, cin):
    fan_in = cin * 9
    bound = 1.0 / (fan_in ** 0.5)
    return jax.random.uniform(key, (cout, cin, 3, 3), jnp.float32, -bound, bound)


def _init_bn(key, c):
    k1, k2, k3, k4 = jax.random.split(key, 4)
    gamma = jax.random.uniform(k1, (c,), jnp.float32, 0.5, 1.5)
    beta = 0.1 * jax.random.normal(k2, (c,), jnp.float32)
    mean = 0.1 * jax.random.normal(k3, (c,), jnp.float32)
    var = jax.random.uniform(k4, (c,), jnp.float32, 0.5, 1.5)
    return gamma, beta, mean, var


def init_params(key, in_ch):
    k1, k2, k3, k4, k5, k6 = jax.random.split(key, 6)
    return {
        "w1": _init_conv_w(k1, in_ch, in_ch),
        "bn1": _init_bn(k2, in_ch),
        "w2": _init_conv_w(k3, in_ch, in_ch),
        "bn2": _init_bn(k4, in_ch),
        "w3": _init_conv_w(k5, in_ch, 2 * in_ch),
        "bn3": _init_bn(k6, in_ch),
    }


# --------------------------- pure-JAX reference ----------------------------
def _ref_conv_bn_mish(x_nchw, w, bn, dilation, residual=None):
    gamma, beta, mean, var = bn
    y = jax.lax.conv_general_dilated(
        x_nchw, w, window_strides=(1, 1),
        padding=((dilation, dilation), (dilation, dilation)),
        rhs_dilation=(dilation, dilation),
        dimension_numbers=("NCHW", "OIHW", "NCHW"))
    y = (y - mean[None, :, None, None]) / jnp.sqrt(var[None, :, None, None] + 1e-5)
    y = y * gamma[None, :, None, None] + beta[None, :, None, None]
    y = y * jnp.tanh(jax.nn.softplus(y))
    if residual is not None:
        y = y + residual
    return y


def _ref_forward(x, params):
    x1 = _ref_conv_bn_mish(x, params["w1"], params["bn1"], 1)
    x2 = _ref_conv_bn_mish(x, params["w2"], params["bn2"], 2)
    xc = jnp.concatenate([x1, x2], axis=1)
    return _ref_conv_bn_mish(xc, params["w3"], params["bn3"], 1, residual=x)


if __name__ == "__main__":
    key = jax.random.PRNGKey(0)
    kx, kp = jax.random.split(key)

    N, C, H, W = 2, 4, 16, 16
    x = jax.random.normal(kx, (N, C, H, W), jnp.float32)
    params = init_params(kp, C)

    ref = jax.block_until_ready(_ref_forward(x, params))

    # Strict-f32 configuration (exact-path correctness check).
    fwd_f32 = jax.jit(lambda xx, pp: res_block_dilation_bottleneck(xx, pp, use_bf16=False))
    out_f32 = jax.block_until_ready(fwd_f32(x, params))
    assert out_f32.shape == (N, C, H, W)
    assert jnp.allclose(out_f32, ref, rtol=1e-4, atol=1e-4), "f32 mismatch vs JAX reference"

    # Default bf16-MXU configuration (f32 accumulate), looser tolerance.
    fwd_bf16 = jax.jit(lambda xx, pp: res_block_dilation_bottleneck(xx, pp))
    out_bf16 = jax.block_until_ready(fwd_bf16(x, params))
    assert out_bf16.shape == (N, C, H, W)
    assert jnp.allclose(out_bf16, ref, rtol=5e-2, atol=5e-2), "bf16 mismatch vs JAX reference"

    print("KERNEL_OK")
</pallas_src>

<mosaic_0001>
module attributes {stable_mosaic.version = 11 : i64} {
  func.func @kernel(%arg0: i32, %arg1: memref<1x4x256xf32, #tpu.memory_space<vmem>>, %arg2: memref<36x4xf32, #tpu.memory_space<vmem>>, %arg3: memref<1x4xf32, #tpu.memory_space<vmem>>, %arg4: memref<36x4xf32, #tpu.memory_space<vmem>>, %arg5: memref<1x4xf32, #tpu.memory_space<vmem>>, %arg6: memref<72x4xf32, #tpu.memory_space<vmem>>, %arg7: memref<1x4xf32, #tpu.memory_space<vmem>>, %arg8: memref<1x4x256xf32, #tpu.memory_space<vmem>>, %arg9: memref<20x26x4xf32, #tpu.memory_space<vmem>>, %arg10: memref<18x25x8xf32, #tpu.memory_space<vmem>>) attributes {dimension_semantics = [#tpu.dimension_semantics<parallel>], iteration_bounds = array<i64: 2>, scalar_prefetch = 0 : i64, scratch_operands = 2 : i64, tpu.core_type = #tpu.core_type<tc>, window_params = [{transform_indices = @transform_0, window_bounds = array<i64: 1, 4, 256>}, {pipeline_mode = #tpu.pipeline_mode<synchronous>, transform_indices = @transform_1, window_bounds = array<i64: 36, 4>}, {pipeline_mode = #tpu.pipeline_mode<synchronous>, transform_indices = @transform_2, window_bounds = array<i64: 1, 4>}, {pipeline_mode = #tpu.pipeline_mode<synchronous>, transform_indices = @transform_3, window_bounds = array<i64: 36, 4>}, {pipeline_mode = #tpu.pipeline_mode<synchronous>, transform_indices = @transform_4, window_bounds = array<i64: 1, 4>}, {pipeline_mode = #tpu.pipeline_mode<synchronous>, transform_indices = @transform_5, window_bounds = array<i64: 72, 4>}, {pipeline_mode = #tpu.pipeline_mode<synchronous>, transform_indices = @transform_6, window_bounds = array<i64: 1, 4>}, {transform_indices = @transform_7, window_bounds = array<i64: 1, 4, 256>}]} {
    %c0 = arith.constant 0 : index
    %c0_0 = arith.constant 0 : index
    %c0_1 = arith.constant 0 : index
    %0 = vector.load %arg1[%c0, %c0_0, %c0_1] : memref<1x4x256xf32, #tpu.memory_space<vmem>>, vector<1x4x256xf32>
    %1 = vector.shape_cast %0 : vector<1x4x256xf32> to vector<4x256xf32>
    %2 = tpu.transpose %1, [1, 0] : vector<4x256xf32> -> vector<256x4xf32>
    %cst = arith.constant 0.000000e+00 : f32
    %3 = vector.broadcast %cst : f32 to vector<2x26x4xf32>
    %c0_2 = arith.constant 0 : index
    %c0_3 = arith.constant 0 : index
    %c0_4 = arith.constant 0 : index
    %4 = vector.load %arg9[%c0_2, %c0_3, %c0_4] : memref<20x26x4xf32, #tpu.memory_space<vmem>>, vector<2x26x4xf32>
    tpu.vector_store %arg9[%c0_2, %c0_3, %c0_4], %3 {strides = array<i32>} : memref<20x26x4xf32, #tpu.memory_space<vmem>>, vector<2x26x4xf32>,
    %cst_5 = arith.constant 0.000000e+00 : f32
    %5 = vector.broadcast %cst_5 : f32 to vector<2x26x4xf32>
    %c18 = arith.constant 18 : index
    %c0_6 = arith.constant 0 : index
    %c0_7 = arith.constant 0 : index
    %6 = vector.load %arg9[%c18, %c0_6, %c0_7] : memref<20x26x4xf32, #tpu.memory_space<vmem>>, vector<2x26x4xf32>
    tpu.vector_store %arg9[%c18, %c0_6, %c0_7], %5 {strides = array<i32>} : memref<20x26x4xf32, #tpu.memory_space<vmem>>, vector<2x26x4xf32>,
    %cst_8 = arith.constant 0.000000e+00 : f32
    %7 = vector.broadcast %cst_8 : f32 to vector<16x2x4xf32>
    %c2 = arith.constant 2 : index
    %c6 = arith.constant 6 : index
    %c0_9 = arith.constant 0 : index
    %8 = vector.load %arg9[%c2, %c6, %c0_9] : memref<20x26x4xf32, #tpu.memory_space<vmem>>, vector<16x2x4xf32>
    tpu.vector_store %arg9[%c2, %c6, %c0_9], %7 {strides = array<i32>} : memref<20x26x4xf32, #tpu.memory_space<vmem>>, vector<16x2x4xf32>,
    %cst_10 = arith.constant 0.000000e+00 : f32
    %9 = vector.broadcast %cst_10 : f32 to vector<16x2x4xf32>
    %c2_11 = arith.constant 2 : index
    %c24 = arith.constant 24 : index
    %c0_12 = arith.constant 0 : index
    %10 = vector.load %arg9[%c2_11, %c24, %c0_12] : memref<20x26x4xf32, #tpu.memory_space<vmem>>, vector<16x2x4xf32>
    tpu.vector_store %arg9[%c2_11, %c24, %c0_12], %9 {strides = array<i32>} : memref<20x26x4xf32, #tpu.memory_space<vmem>>, vector<16x2x4xf32>,
    %cst_13 = arith.constant 0.000000e+00 : f32
    %11 = vector.broadcast %cst_13 : f32 to vector<1x25x8xf32>
    %c0_14 = arith.constant 0 : index
    %c0_15 = arith.constant 0 : index
    %c0_16 = arith.constant 0 : index
    %12 = vector.load %arg10[%c0_14, %c0_15, %c0_16] : memref<18x25x8xf32, #tpu.memory_space<vmem>>, vector<1x25x8xf32>
    tpu.vector_store %arg10[%c0_14, %c0_15, %c0_16], %11 {strides = array<i32>} : memref<18x25x8xf32, #tpu.memory_space<vmem>>, vector<1x25x8xf32>,
    %cst_17 = arith.constant 0.000000e+00 : f32
    %13 = vector.broadcast %cst_17 : f32 to vector<1x25x8xf32>
    %c17 = arith.constant 17 : index
    %c0_18 = arith.constant 0 : index
    %c0_19 = arith.constant 0 : index
    %14 = vector.load %arg10[%c17, %c0_18, %c0_19] : memref<18x25x8xf32, #tpu.memory_space<vmem>>, vector<1x25x8xf32>
    tpu.vector_store %arg10[%c17, %c0_18, %c0_19], %13 {strides = array<i32>} : memref<18x25x8xf32, #tpu.memory_space<vmem>>, vector<1x25x8xf32>,
    %cst_20 = arith.constant 0.000000e+00 : f32
    %15 = vector.broadcast %cst_20 : f32 to vector<16x1x8xf32>
    %c1 = arith.constant 1 : index
    %c7 = arith.constant 7 : index
    %c0_21 = arith.constant 0 : index
    %16 = vector.load %arg10[%c1, %c7, %c0_21] : memref<18x25x8xf32, #tpu.memory_space<vmem>>, vector<16x1x8xf32>
    tpu.vector_store %arg10[%c1, %c7, %c0_21], %15 {strides = array<i32>} : memref<18x25x8xf32, #tpu.memory_space<vmem>>, vector<16x1x8xf32>,
    %cst_22 = arith.constant 0.000000e+00 : f32
    %17 = vector.broadcast %cst_22 : f32 to vector<16x1x8xf32>
    %c1_23 = arith.constant 1 : index
    %c24_24 = arith.constant 24 : index
    %c0_25 = arith.constant 0 : index
    %18 = vector.load %arg10[%c1_23, %c24_24, %c0_25] : memref<18x25x8xf32, #tpu.memory_space<vmem>>, vector<16x1x8xf32>
    tpu.vector_store %arg10[%c1_23, %c24_24, %c0_25], %17 {strides = array<i32>} : memref<18x25x8xf32, #tpu.memory_space<vmem>>, vector<16x1x8xf32>,
    %19 = vector.shape_cast %2 : vector<256x4xf32> to vector<16x16x4xf32>
    %c2_26 = arith.constant 2 : index
    %c8 = arith.constant 8 : index
    %c0_27 = arith.constant 0 : index
    %20 = vector.load %arg9[%c2_26, %c8, %c0_27] : memref<20x26x4xf32, #tpu.memory_space<vmem>>, vector<16x16x4xf32>
    tpu.vector_store %arg9[%c2_26, %c8, %c0_27], %19 {strides = array<i32>} : memref<20x26x4xf32, #tpu.memory_space<vmem>>, vector<16x16x4xf32>,
    %cst_28 = arith.constant 0.000000e+00 : f32
    %21 = vector.broadcast %cst_28 : f32 to vector<256x4xf32>
    %c1_29 = arith.constant 1 : index
    %c7_30 = arith.constant 7 : index
    %c0_31 = arith.constant 0 : index
    %22 = vector.load %arg9[%c1_29, %c7_30, %c0_31] : memref<20x26x4xf32, #tpu.memory_space<vmem>>, vector<16x16x4xf32>
    %23 = vector.shape_cast %22 : vector<16x16x4xf32> to vector<256x4xf32>
    %c0_32 = arith.constant 0 : index
    %c0_33 = arith.constant 0 : index
    %24 = vector.load %arg2[%c0_32, %c0_33] : memref<36x4xf32, #tpu.memory_space<vmem>>, vector<4x4xf32>
    %cst_34 = arith.constant dense<0.000000e+00> : vector<256x4xf32>
    %25 = tpu.matmul %23, %24, %cst_34 {dimension_numbers = #tpu.dot_dimension_numbers<[1], [0], [0], [1], [0, 0, 1, 1], [], []>} : vector<256x4xf32>, vector<4x4xf32>, vector<256x4xf32> -> vector<256x4xf32>
    %26 = arith.addf %21, %25 : vector<256x4xf32>
    %c1_35 = arith.constant 1 : index
    %c8_36 = arith.constant 8 : index
    %c0_37 = arith.constant 0 : index
    %27 = vector.load %arg9[%c1_35, %c8_36, %c0_37] : memref<20x26x4xf32, #tpu.memory_space<vmem>>, vector<16x16x4xf32>
    %28 = vector.shape_cast %27 : vector<16x16x4xf32> to vector<256x4xf32>
    %c4 = arith.constant 4 : index
    %c0_38 = arith.constant 0 : index
    %29 = vector.load %arg2[%c4, %c0_38] : memref<36x4xf32, #tpu.memory_space<vmem>>, vector<4x4xf32>
    %cst_39 = arith.constant dense<0.000000e+00> : vector<256x4xf32>
    %30 = tpu.matmul %28, %29, %cst_39 {dimension_numbers = #tpu.dot_dimension_numbers<[1], [0], [0], [1], [0, 0, 1, 1], [], []>} : vector<256x4xf32>, vector<4x4xf32>, vector<256x4xf32> -> vector<256x4xf32>
    %31 = arith.addf %26, %30 : vector<256x4xf32>
    %c1_40 = arith.constant 1 : index
    %c9 = arith.constant 9 : index
    %c0_41 = arith.constant 0 : index
    %32 = vector.load %arg9[%c1_40, %c9, %c0_41] : memref<20x26x4xf32, #tpu.memory_space<vmem>>, vector<16x16x4xf32>
    %33 = vector.shape_cast %32 : vector<16x16x4xf32> to vector<256x4xf32>
    %c8_42 = arith.constant 8 : index
    %c0_43 = arith.constant 0 : index
    %34 = vector.load %arg2[%c8_42, %c0_43] : memref<36x4xf32, #tpu.memory_space<vmem>>, vector<4x4xf32>
    %cst_44 = arith.constant dense<0.000000e+00> : vector<256x4xf32>
    %35 = tpu.matmul %33, %34, %cst_44 {dimension_numbers = #tpu.dot_dimension_numbers<[1], [0], [0], [1], [0, 0, 1, 1], [], []>} : vector<256x4xf32>, vector<4x4xf32>, vector<256x4xf32> -> vector<256x4xf32>
    %36 = arith.addf %31, %35 : vector<256x4xf32>
    %c2_45 = arith.constant 2 : index
    %c7_46 = arith.constant 7 : index
    %c0_47 = arith.constant 0 : index
    %37 = vector.load %arg9[%c2_45, %c7_46, %c0_47] : memref<20x26x4xf32, #tpu.memory_space<vmem>>, vector<16x16x4xf32>
    %38 = vector.shape_cast %37 : vector<16x16x4xf32> to vector<256x4xf32>
    %c12 = arith.constant 12 : index
    %c0_48 = arith.constant 0 : index
    %39 = vector.load %arg2[%c12, %c0_48] : memref<36x4xf32, #tpu.memory_space<vmem>>, vector<4x4xf32>
    %cst_49 = arith.constant dense<0.000000e+00> : vector<256x4xf32>
    %40 = tpu.matmul %38, %39, %cst_49 {dimension_numbers = #tpu.dot_dimension_numbers<[1], [0], [0], [1], [0, 0, 1, 1], [], []>} : vector<256x4xf32>, vector<4x4xf32>, vector<256x4xf32> -> vector<256x4xf32>
    %41 = arith.addf %36, %40 : vector<256x4xf32>
    %c2_50 = arith.constant 2 : index
    %c8_51 = arith.constant 8 : index
    %c0_52 = arith.constant 0 : index
    %42 = vector.load %arg9[%c2_50, %c8_51, %c0_52] : memref<20x26x4xf32, #tpu.memory_space<vmem>>, vector<16x16x4xf32>
    %43 = vector.shape_cast %42 : vector<16x16x4xf32> to vector<256x4xf32>
    %c16 = arith.constant 16 : index
    %c0_53 = arith.constant 0 : index
    %44 = vector.load %arg2[%c16, %c0_53] : memref<36x4xf32, #tpu.memory_space<vmem>>, vector<4x4xf32>
    %cst_54 = arith.constant dense<0.000000e+00> : vector<256x4xf32>
    %45 = tpu.matmul %43, %44, %cst_54 {dimension_numbers = #tpu.dot_dimension_numbers<[1], [0], [0], [1], [0, 0, 1, 1], [], []>} : vector<256x4xf32>, vector<4x4xf32>, vector<256x4xf32> -> vector<256x4xf32>
    %46 = arith.addf %41, %45 : vector<256x4xf32>
    %c2_55 = arith.constant 2 : index
    %c9_56 = arith.constant 9 : index
    %c0_57 = arith.constant 0 : index
    %47 = vector.load %arg9[%c2_55, %c9_56, %c0_57] : memref<20x26x4xf32, #tpu.memory_space<vmem>>, vector<16x16x4xf32>
    %48 = vector.shape_cast %47 : vector<16x16x4xf32> to vector<256x4xf32>
    %c20 = arith.constant 20 : index
    %c0_58 = arith.constant 0 : index
    %49 = vector.load %arg2[%c20, %c0_58] : memref<36x4xf32, #tpu.memory_space<vmem>>, vector<4x4xf32>
    %cst_59 = arith.constant dense<0.000000e+00> : vector<256x4xf32>
    %50 = tpu.matmul %48, %49, %cst_59 {dimension_numbers = #tpu.dot_dimension_numbers<[1], [0], [0], [1], [0, 0, 1, 1], [], []>} : vector<256x4xf32>, vector<4x4xf32>, vector<256x4xf32> -> vector<256x4xf32>
    %51 = arith.addf %46, %50 : vector<256x4xf32>
    %c3 = arith.constant 3 : index
    %c7_60 = arith.constant 7 : index
    %c0_61 = arith.constant 0 : index
    %52 = vector.load %arg9[%c3, %c7_60, %c0_61] : memref<20x26x4xf32, #tpu.memory_space<vmem>>, vector<16x16x4xf32>
    %53 = vector.shape_cast %52 : vector<16x16x4xf32> to vector<256x4xf32>
    %c24_62 = arith.constant 24 : index
    %c0_63 = arith.constant 0 : index
    %54 = vector.load %arg2[%c24_62, %c0_63] : memref<36x4xf32, #tpu.memory_space<vmem>>, vector<4x4xf32>
    %cst_64 = arith.constant dense<0.000000e+00> : vector<256x4xf32>
    %55 = tpu.matmul %53, %54, %cst_64 {dimension_numbers = #tpu.dot_dimension_numbers<[1], [0], [0], [1], [0, 0, 1, 1], [], []>} : vector<256x4xf32>, vector<4x4xf32>, vector<256x4xf32> -> vector<256x4xf32>
    %56 = arith.addf %51, %55 : vector<256x4xf32>
    %c3_65 = arith.constant 3 : index
    %c8_66 = arith.constant 8 : index
    %c0_67 = arith.constant 0 : index
    %57 = vector.load %arg9[%c3_65, %c8_66, %c0_67] : memref<20x26x4xf32, #tpu.memory_space<vmem>>, vector<16x16x4xf32>
    %58 = vector.shape_cast %57 : vector<16x16x4xf32> to vector<256x4xf32>
    %c28 = arith.constant 28 : index
    %c0_68 = arith.constant 0 : index
    %59 = vector.load %arg2[%c28, %c0_68] : memref<36x4xf32, #tpu.memory_space<vmem>>, vector<4x4xf32>
    %cst_69 = arith.constant dense<0.000000e+00> : vector<256x4xf32>
    %60 = tpu.matmul %58, %59, %cst_69 {dimension_numbers = #tpu.dot_dimension_numbers<[1], [0], [0], [1], [0, 0, 1, 1], [], []>} : vector<256x4xf32>, vector<4x4xf32>, vector<256x4xf32> -> vector<256x4xf32>
    %61 = arith.addf %56, %60 : vector<256x4xf32>
    %c3_70 = arith.constant 3 : index
    %c9_71 = arith.constant 9 : index
    %c0_72 = arith.constant 0 : index
    %62 = vector.load %arg9[%c3_70, %c9_71, %c0_72] : memref<20x26x4xf32, #tpu.memory_space<vmem>>, vector<16x16x4xf32>
    %63 = vector.shape_cast %62 : vector<16x16x4xf32> to vector<256x4xf32>
    %c32 = arith.constant 32 : index
    %c0_73 = arith.constant 0 : index
    %64 = vector.load %arg2[%c32, %c0_73] : memref<36x4xf32, #tpu.memory_space<vmem>>, vector<4x4xf32>
    %cst_74 = arith.constant dense<0.000000e+00> : vector<256x4xf32>
    %65 = tpu.matmul %63, %64, %cst_74 {dimension_numbers = #tpu.dot_dimension_numbers<[1], [0], [0], [1], [0, 0, 1, 1], [], []>} : vector<256x4xf32>, vector<4x4xf32>, vector<256x4xf32> -> vector<256x4xf32>
    %66 = arith.addf %61, %65 : vector<256x4xf32>
    %c0_75 = arith.constant 0 : index
    %c0_76 = arith.constant 0 : index
    %67 = vector.load %arg3[%c0_75, %c0_76] : memref<1x4xf32, #tpu.memory_space<vmem>>, vector<1x4xf32>
    %68 = vector.broadcast %67 : vector<1x4xf32> to vector<256x4xf32>
    %69 = arith.addf %66, %68 : vector<256x4xf32>
    %cst_77 = arith.constant 2.000000e+01 : f32
    %70 = vector.broadcast %cst_77 : f32 to vector<256x4xf32>
    %71 = arith.minimumf %69, %70 : vector<256x4xf32>
    %72 = math.exp %71 : vector<256x4xf32>
    %cst_78 = arith.constant 2.000000e+00 : f32
    %73 = vector.broadcast %cst_78 : f32 to vector<256x4xf32>
    %74 = arith.addf %72, %73 : vector<256x4xf32>
    %75 = arith.mulf %72, %74 : vector<256x4xf32>
    %cst_79 = arith.constant 2.000000e+00 : f32
    %76 = vector.broadcast %cst_79 : f32 to vector<256x4xf32>
    %77 = arith.addf %75, %76 : vector<256x4xf32>
    %78 = arith.divf %75, %77 : vector<256x4xf32>
    %79 = arith.mulf %69, %78 : vector<256x4xf32>
    %80 = vector.shape_cast %79 : vector<256x4xf32> to vector<16x16x4xf32>
    %c1_80 = arith.constant 1 : index
    %c8_81 = arith.constant 8 : index
    %c0_82 = arith.constant 0 : index
    %81 = vector.load %arg10[%c1_80, %c8_81, %c0_82] : memref<18x25x8xf32, #tpu.memory_space<vmem>>, vector<16x16x4xf32>
    tpu.vector_store %arg10[%c1_80, %c8_81, %c0_82], %80 {strides = array<i32>} : memref<18x25x8xf32, #tpu.memory_space<vmem>>, vector<16x16x4xf32>,
    %cst_83 = arith.constant 0.000000e+00 : f32
    %82 = vector.broadcast %cst_83 : f32 to vector<256x4xf32>
    %c0_84 = arith.constant 0 : index
    %c6_85 = arith.constant 6 : index
    %c0_86 = arith.constant 0 : index
    %83 = vector.load %arg9[%c0_84, %c6_85, %c0_86] : memref<20x26x4xf32, #tpu.memory_space<vmem>>, vector<16x16x4xf32>
    %84 = vector.shape_cast %83 : vector<16x16x4xf32> to vector<256x4xf32>
    %c0_87 = arith.constant 0 : index
    %c0_88 = arith.constant 0 : index
    %85 = vector.load %arg4[%c0_87, %c0_88] : memref<36x4xf32, #tpu.memory_space<vmem>>, vector<4x4xf32>
    %cst_89 = arith.constant dense<0.000000e+00> : vector<256x4xf32>
    %86 = tpu.matmul %84, %85, %cst_89 {dimension_numbers = #tpu.dot_dimension_numbers<[1], [0], [0], [1], [0, 0, 1, 1], [], []>} : vector<256x4xf32>, vector<4x4xf32>, vector<256x4xf32> -> vector<256x4xf32>
    %87 = arith.addf %82, %86 : vector<256x4xf32>
    %c0_90 = arith.constant 0 : index
    %c8_91 = arith.constant 8 : index
    %c0_92 = arith.constant 0 : index
    %88 = vector.load %arg9[%c0_90, %c8_91, %c0_92] : memref<20x26x4xf32, #tpu.memory_space<vmem>>, vector<16x16x4xf32>
    %89 = vector.shape_cast %88 : vector<16x16x4xf32> to vector<256x4xf32>
    %c4_93 = arith.constant 4 : index
    %c0_94 = arith.constant 0 : index
    %90 = vector.load %arg4[%c4_93, %c0_94] : memref<36x4xf32, #tpu.memory_space<vmem>>, vector<4x4xf32>
    %cst_95 = arith.constant dense<0.000000e+00> : vector<256x4xf32>
    %91 = tpu.matmul %89, %90, %cst_95 {dimension_numbers = #tpu.dot_dimension_numbers<[1], [0], [0], [1], [0, 0, 1, 1], [], []>} : vector<256x4xf32>, vector<4x4xf32>, vector<256x4xf32> -> vector<256x4xf32>
    %92 = arith.addf %87, %91 : vector<256x4xf32>
    %c0_96 = arith.constant 0 : index
    %c10 = arith.constant 10 : index
    %c0_97 = arith.constant 0 : index
    %93 = vector.load %arg9[%c0_96, %c10, %c0_97] : memref<20x26x4xf32, #tpu.memory_space<vmem>>, vector<16x16x4xf32>
    %94 = vector.shape_cast %93 : vector<16x16x4xf32> to vector<256x4xf32>
    %c8_98 = arith.constant 8 : index
    %c0_99 = arith.constant 0 : index
    %95 = vector.load %arg4[%c8_98, %c0_99] : memref<36x4xf32, #tpu.memory_space<vmem>>, vector<4x4xf32>
    %cst_100 = arith.constant dense<0.000000e+00> : vector<256x4xf32>
    %96 = tpu.matmul %94, %95, %cst_100 {dimension_numbers = #tpu.dot_dimension_numbers<[1], [0], [0], [1], [0, 0, 1, 1], [], []>} : vector<256x4xf32>, vector<4x4xf32>, vector<256x4xf32> -> vector<256x4xf32>
    %97 = arith.addf %92, %96 : vector<256x4xf32>
    %c2_101 = arith.constant 2 : index
    %c6_102 = arith.constant 6 : index
    %c0_103 = arith.constant 0 : index
    %98 = vector.load %arg9[%c2_101, %c6_102, %c0_103] : memref<20x26x4xf32, #tpu.memory_space<vmem>>, vector<16x16x4xf32>
    %99 = vector.shape_cast %98 : vector<16x16x4xf32> to vector<256x4xf32>
    %c12_104 = arith.constant 12 : index
    %c0_105 = arith.constant 0 : index
    %100 = vector.load %arg4[%c12_104, %c0_105] : memref<36x4xf32, #tpu.memory_space<vmem>>, vector<4x4xf32>
    %cst_106 = arith.constant dense<0.000000e+00> : vector<256x4xf32>
    %101 = tpu.matmul %99, %100, %cst_106 {dimension_numbers = #tpu.dot_dimension_numbers<[1], [0], [0], [1], [0, 0, 1, 1], [], []>} : vector<256x4xf32>, vector<4x4xf32>, vector<256x4xf32> -> vector<256x4xf32>
    %102 = arith.addf %97, %101 : vector<256x4xf32>
    %c2_107 = arith.constant 2 : index
    %c8_108 = arith.constant 8 : index
    %c0_109 = arith.constant 0 : index
    %103 = vector.load %arg9[%c2_107, %c8_108, %c0_109] : memref<20x26x4xf32, #tpu.memory_space<vmem>>, vector<16x16x4xf32>
    %104 = vector.shape_cast %103 : vector<16x16x4xf32> to vector<256x4xf32>
    %c16_110 = arith.constant 16 : index
    %c0_111 = arith.constant 0 : index
    %105 = vector.load %arg4[%c16_110, %c0_111] : memref<36x4xf32, #tpu.memory_space<vmem>>, vector<4x4xf32>
    %cst_112 = arith.constant dense<0.000000e+00> : vector<256x4xf32>
    %106 = tpu.matmul %104, %105, %cst_112 {dimension_numbers = #tpu.dot_dimension_numbers<[1], [0], [0], [1], [0, 0, 1, 1], [], []>} : vector<256x4xf32>, vector<4x4xf32>, vector<256x4xf32> -> vector<256x4xf32>
    %107 = arith.addf %102, %106 : vector<256x4xf32>
    %c2_113 = arith.constant 2 : index
    %c10_114 = arith.constant 10 : index
    %c0_115 = arith.constant 0 : index
    %108 = vector.load %arg9[%c2_113, %c10_114, %c0_115] : memref<20x26x4xf32, #tpu.memory_space<vmem>>, vector<16x16x4xf32>
    %109 = vector.shape_cast %108 : vector<16x16x4xf32> to vector<256x4xf32>
    %c20_116 = arith.constant 20 : index
    %c0_117 = arith.constant 0 : index
    %110 = vector.load %arg4[%c20_116, %c0_117] : memref<36x4xf32, #tpu.memory_space<vmem>>, vector<4x4xf32>
    %cst_118 = arith.constant dense<0.000000e+00> : vector<256x4xf32>
    %111 = tpu.matmul %109, %110, %cst_118 {dimension_numbers = #tpu.dot_dimension_numbers<[1], [0], [0], [1], [0, 0, 1, 1], [], []>} : vector<256x4xf32>, vector<4x4xf32>, vector<256x4xf32> -> vector<256x4xf32>
    %112 = arith.addf %107, %111 : vector<256x4xf32>
    %c4_119 = arith.constant 4 : index
    %c6_120 = arith.constant 6 : index
    %c0_121 = arith.constant 0 : index
    %113 = vector.load %arg9[%c4_119, %c6_120, %c0_121] : memref<20x26x4xf32, #tpu.memory_space<vmem>>, vector<16x16x4xf32>
    %114 = vector.shape_cast %113 : vector<16x16x4xf32> to vector<256x4xf32>
    %c24_122 = arith.constant 24 : index
    %c0_123 = arith.constant 0 : index
    %115 = vector.load %arg4[%c24_122, %c0_123] : memref<36x4xf32, #tpu.memory_space<vmem>>, vector<4x4xf32>
    %cst_124 = arith.constant dense<0.000000e+00> : vector<256x4xf32>
    %116 = tpu.matmul %114, %115, %cst_124 {dimension_numbers = #tpu.dot_dimension_numbers<[1], [0], [0], [1], [0, 0, 1, 1], [], []>} : vector<256x4xf32>, vector<4x4xf32>, vector<256x4xf32> -> vector<256x4xf32>
    %117 = arith.addf %112, %116 : vector<256x4xf32>
    %c4_125 = arith.constant 4 : index
    %c8_126 = arith.constant 8 : index
    %c0_127 = arith.constant 0 : index
    %118 = vector.load %arg9[%c4_125, %c8_126, %c0_127] : memref<20x26x4xf32, #tpu.memory_space<vmem>>, vector<16x16x4xf32>
    %119 = vector.shape_cast %118 : vector<16x16x4xf32> to vector<256x4xf32>
    %c28_128 = arith.constant 28 : index
    %c0_129 = arith.constant 0 : index
    %120 = vector.load %arg4[%c28_128, %c0_129] : memref<36x4xf32, #tpu.memory_space<vmem>>, vector<4x4xf32>
    %cst_130 = arith.constant dense<0.000000e+00> : vector<256x4xf32>
    %121 = tpu.matmul %119, %120, %cst_130 {dimension_numbers = #tpu.dot_dimension_numbers<[1], [0], [0], [1], [0, 0, 1, 1], [], []>} : vector<256x4xf32>, vector<4x4xf32>, vector<256x4xf32> -> vector<256x4xf32>
    %122 = arith.addf %117, %121 : vector<256x4xf32>
    %c4_131 = arith.constant 4 : index
    %c10_132 = arith.constant 10 : index
    %c0_133 = arith.constant 0 : index
    %123 = vector.load %arg9[%c4_131, %c10_132, %c0_133] : memref<20x26x4xf32, #tpu.memory_space<vmem>>, vector<16x16x4xf32>
    %124 = vector.shape_cast %123 : vector<16x16x4xf32> to vector<256x4xf32>
    %c32_134 = arith.constant 32 : index
    %c0_135 = arith.constant 0 : index
    %125 = vector.load %arg4[%c32_134, %c0_135] : memref<36x4xf32, #tpu.memory_space<vmem>>, vector<4x4xf32>
    %cst_136 = arith.constant dense<0.000000e+00> : vector<256x4xf32>
    %126 = tpu.matmul %124, %125, %cst_136 {dimension_numbers = #tpu.dot_dimension_numbers<[1], [0], [0], [1], [0, 0, 1, 1], [], []>} : vector<256x4xf32>, vector<4x4xf32>, vector<256x4xf32> -> vector<256x4xf32>
    %127 = arith.addf %122, %126 : vector<256x4xf32>
    %c0_137 = arith.constant 0 : index
    %c0_138 = arith.constant 0 : index
    %128 = vector.load %arg5[%c0_137, %c0_138] : memref<1x4xf32, #tpu.memory_space<vmem>>, vector<1x4xf32>
    %129 = vector.broadcast %128 : vector<1x4xf32> to vector<256x4xf32>
    %130 = arith.addf %127, %129 : vector<256x4xf32>
    %cst_139 = arith.constant 2.000000e+01 : f32
    %131 = vector.broadcast %cst_139 : f32 to vector<256x4xf32>
    %132 = arith.minimumf %130, %131 : vector<256x4xf32>
    %133 = math.exp %132 : vector<256x4xf32>
    %cst_140 = arith.constant 2.000000e+00 : f32
    %134 = vector.broadcast %cst_140 : f32 to vector<256x4xf32>
    %135 = arith.addf %133, %134 : vector<256x4xf32>
    %136 = arith.mulf %133, %135 : vector<256x4xf32>
    %cst_141 = arith.constant 2.000000e+00 : f32
    %137 = vector.broadcast %cst_141 : f32 to vector<256x4xf32>
    %138 = arith.addf %136, %137 : vector<256x4xf32>
    %139 = arith.divf %136, %138 : vector<256x4xf32>
    %140 = arith.mulf %130, %139 : vector<256x4xf32>
    %141 = vector.shape_cast %140 : vector<256x4xf32> to vector<16x16x4xf32>
    %c1_142 = arith.constant 1 : index
    %c8_143 = arith.constant 8 : index
    %c4_144 = arith.constant 4 : index
    %142 = vector.load %arg10[%c1_142, %c8_143, %c4_144] : memref<18x25x8xf32, #tpu.memory_space<vmem>>, vector<16x16x4xf32>
    tpu.vector_store %arg10[%c1_142, %c8_143, %c4_144], %141 {strides = array<i32>} : memref<18x25x8xf32, #tpu.memory_space<vmem>>, vector<16x16x4xf32>,
    %cst_145 = arith.constant 0.000000e+00 : f32
    %143 = vector.broadcast %cst_145 : f32 to vector<256x4xf32>
    %c0_146 = arith.constant 0 : index
    %c7_147 = arith.constant 7 : index
    %c0_148 = arith.constant 0 : index
    %144 = vector.load %arg10[%c0_146, %c7_147, %c0_148] : memref<18x25x8xf32, #tpu.memory_space<vmem>>, vector<16x16x8xf32>
    %145 = vector.shape_cast %144 : vector<16x16x8xf32> to vector<256x8xf32>
    %c0_149 = arith.constant 0 : index
    %c0_150 = arith.constant 0 : index
    %146 = vector.load %arg6[%c0_149, %c0_150] : memref<72x4xf32, #tpu.memory_space<vmem>>, vector<8x4xf32>
    %cst_151 = arith.constant dense<0.000000e+00> : vector<256x4xf32>
    %147 = tpu.matmul %145, %146, %cst_151 {dimension_numbers = #tpu.dot_dimension_numbers<[1], [0], [0], [1], [0, 0, 1, 1], [], []>} : vector<256x8xf32>, vector<8x4xf32>, vector<256x4xf32> -> vector<256x4xf32>
    %148 = arith.addf %143, %147 : vector<256x4xf32>
    %c0_152 = arith.constant 0 : index
    %c8_153 = arith.constant 8 : index
    %c0_154 = arith.constant 0 : index
    %149 = vector.load %arg10[%c0_152, %c8_153, %c0_154] : memref<18x25x8xf32, #tpu.memory_space<vmem>>, vector<16x16x8xf32>
    %150 = vector.shape_cast %149 : vector<16x16x8xf32> to vector<256x8xf32>
    %c8_155 = arith.constant 8 : index
    %c0_156 = arith.constant 0 : index
    %151 = vector.load %arg6[%c8_155, %c0_156] : memref<72x4xf32, #tpu.memory_space<vmem>>, vector<8x4xf32>
    %cst_157 = arith.constant dense<0.000000e+00> : vector<256x4xf32>
    %152 = tpu.matmul %150, %151, %cst_157 {dimension_numbers = #tpu.dot_dimension_numbers<[1], [0], [0], [1], [0, 0, 1, 1], [], []>} : vector<256x8xf32>, vector<8x4xf32>, vector<256x4xf32> -> vector<256x4xf32>
    %153 = arith.addf %148, %152 : vector<256x4xf32>
    %c0_158 = arith.constant 0 : index
    %c9_159 = arith.constant 9 : index
    %c0_160 = arith.constant 0 : index
    %154 = vector.load %arg10[%c0_158, %c9_159, %c0_160] : memref<18x25x8xf32, #tpu.memory_space<vmem>>, vector<16x16x8xf32>
    %155 = vector.shape_cast %154 : vector<16x16x8xf32> to vector<256x8xf32>
    %c16_161 = arith.constant 16 : index
    %c0_162 = arith.constant 0 : index
    %156 = vector.load %arg6[%c16_161, %c0_162] : memref<72x4xf32, #tpu.memory_space<vmem>>, vector<8x4xf32>
    %cst_163 = arith.constant dense<0.000000e+00> : vector<256x4xf32>
    %157 = tpu.matmul %155, %156, %cst_163 {dimension_numbers = #tpu.dot_dimension_numbers<[1], [0], [0], [1], [0, 0, 1, 1], [], []>} : vector<256x8xf32>, vector<8x4xf32>, vector<256x4xf32> -> vector<256x4xf32>
    %158 = arith.addf %153, %157 : vector<256x4xf32>
    %c1_164 = arith.constant 1 : index
    %c7_165 = arith.constant 7 : index
    %c0_166 = arith.constant 0 : index
    %159 = vector.load %arg10[%c1_164, %c7_165, %c0_166] : memref<18x25x8xf32, #tpu.memory_space<vmem>>, vector<16x16x8xf32>
    %160 = vector.shape_cast %159 : vector<16x16x8xf32> to vector<256x8xf32>
    %c24_167 = arith.constant 24 : index
    %c0_168 = arith.constant 0 : index
    %161 = vector.load %arg6[%c24_167, %c0_168] : memref<72x4xf32, #tpu.memory_space<vmem>>, vector<8x4xf32>
    %cst_169 = arith.constant dense<0.000000e+00> : vector<256x4xf32>
    %162 = tpu.matmul %160, %161, %cst_169 {dimension_numbers = #tpu.dot_dimension_numbers<[1], [0], [0], [1], [0, 0, 1, 1], [], []>} : vector<256x8xf32>, vector<8x4xf32>, vector<256x4xf32> -> vector<256x4xf32>
    %163 = arith.addf %158, %162 : vector<256x4xf32>
    %c1_170 = arith.constant 1 : index
    %c8_171 = arith.constant 8 : index
    %c0_172 = arith.constant 0 : index
    %164 = vector.load %arg10[%c1_170, %c8_171, %c0_172] : memref<18x25x8xf32, #tpu.memory_space<vmem>>, vector<16x16x8xf32>
    %165 = vector.shape_cast %164 : vector<16x16x8xf32> to vector<256x8xf32>
    %c32_173 = arith.constant 32 : index
    %c0_174 = arith.constant 0 : index
    %166 = vector.load %arg6[%c32_173, %c0_174] : memref<72x4xf32, #tpu.memory_space<vmem>>, vector<8x4xf32>
    %cst_175 = arith.constant dense<0.000000e+00> : vector<256x4xf32>
    %167 = tpu.matmul %165, %166, %cst_175 {dimension_numbers = #tpu.dot_dimension_numbers<[1], [0], [0], [1], [0, 0, 1, 1], [], []>} : vector<256x8xf32>, vector<8x4xf32>, vector<256x4xf32> -> vector<256x4xf32>
    %168 = arith.addf %163, %167 : vector<256x4xf32>
    %c1_176 = arith.constant 1 : index
    %c9_177 = arith.constant 9 : index
    %c0_178 = arith.constant 0 : index
    %169 = vector.load %arg10[%c1_176, %c9_177, %c0_178] : memref<18x25x8xf32, #tpu.memory_space<vmem>>, vector<16x16x8xf32>
    %170 = vector.shape_cast %169 : vector<16x16x8xf32> to vector<256x8xf32>
    %c40 = arith.constant 40 : index
    %c0_179 = arith.constant 0 : index
    %171 = vector.load %arg6[%c40, %c0_179] : memref<72x4xf32, #tpu.memory_space<vmem>>, vector<8x4xf32>
    %cst_180 = arith.constant dense<0.000000e+00> : vector<256x4xf32>
    %172 = tpu.matmul %170, %171, %cst_180 {dimension_numbers = #tpu.dot_dimension_numbers<[1], [0], [0], [1], [0, 0, 1, 1], [], []>} : vector<256x8xf32>, vector<8x4xf32>, vector<256x4xf32> -> vector<256x4xf32>
    %173 = arith.addf %168, %172 : vector<256x4xf32>
    %c2_181 = arith.constant 2 : index
    %c7_182 = arith.constant 7 : index
    %c0_183 = arith.constant 0 : index
    %174 = vector.load %arg10[%c2_181, %c7_182, %c0_183] : memref<18x25x8xf32, #tpu.memory_space<vmem>>, vector<16x16x8xf32>
    %175 = vector.shape_cast %174 : vector<16x16x8xf32> to vector<256x8xf32>
    %c48 = arith.constant 48 : index
    %c0_184 = arith.constant 0 : index
    %176 = vector.load %arg6[%c48, %c0_184] : memref<72x4xf32, #tpu.memory_space<vmem>>, vector<8x4xf32>
    %cst_185 = arith.constant dense<0.000000e+00> : vector<256x4xf32>
    %177 = tpu.matmul %175, %176, %cst_185 {dimension_numbers = #tpu.dot_dimension_numbers<[1], [0], [0], [1], [0, 0, 1, 1], [], []>} : vector<256x8xf32>, vector<8x4xf32>, vector<256x4xf32> -> vector<256x4xf32>
    %178 = arith.addf %173, %177 : vector<256x4xf32>
    %c2_186 = arith.constant 2 : index
    %c8_187 = arith.constant 8 : index
    %c0_188 = arith.constant 0 : index
    %179 = vector.load %arg10[%c2_186, %c8_187, %c0_188] : memref<18x25x8xf32, #tpu.memory_space<vmem>>, vector<16x16x8xf32>
    %180 = vector.shape_cast %179 : vector<16x16x8xf32> to vector<256x8xf32>
    %c56 = arith.constant 56 : index
    %c0_189 = arith.constant 0 : index
    %181 = vector.load %arg6[%c56, %c0_189] : memref<72x4xf32, #tpu.memory_space<vmem>>, vector<8x4xf32>
    %cst_190 = arith.constant dense<0.000000e+00> : vector<256x4xf32>
    %182 = tpu.matmul %180, %181, %cst_190 {dimension_numbers = #tpu.dot_dimension_numbers<[1], [0], [0], [1], [0, 0, 1, 1], [], []>} : vector<256x8xf32>, vector<8x4xf32>, vector<256x4xf32> -> vector<256x4xf32>
    %183 = arith.addf %178, %182 : vector<256x4xf32>
    %c2_191 = arith.constant 2 : index
    %c9_192 = arith.constant 9 : index
    %c0_193 = arith.constant 0 : index
    %184 = vector.load %arg10[%c2_191, %c9_192, %c0_193] : memref<18x25x8xf32, #tpu.memory_space<vmem>>, vector<16x16x8xf32>
    %185 = vector.shape_cast %184 : vector<16x16x8xf32> to vector<256x8xf32>
    %c64 = arith.constant 64 : index
    %c0_194 = arith.constant 0 : index
    %186 = vector.load %arg6[%c64, %c0_194] : memref<72x4xf32, #tpu.memory_space<vmem>>, vector<8x4xf32>
    %cst_195 = arith.constant dense<0.000000e+00> : vector<256x4xf32>
    %187 = tpu.matmul %185, %186, %cst_195 {dimension_numbers = #tpu.dot_dimension_numbers<[1], [0], [0], [1], [0, 0, 1, 1], [], []>} : vector<256x8xf32>, vector<8x4xf32>, vector<256x4xf32> -> vector<256x4xf32>
    %188 = arith.addf %183, %187 : vector<256x4xf32>
    %c0_196 = arith.constant 0 : index
    %c0_197 = arith.constant 0 : index
    %189 = vector.load %arg7[%c0_196, %c0_197] : memref<1x4xf32, #tpu.memory_space<vmem>>, vector<1x4xf32>
    %190 = vector.broadcast %189 : vector<1x4xf32> to vector<256x4xf32>
    %191 = arith.addf %188, %190 : vector<256x4xf32>
    %cst_198 = arith.constant 2.000000e+01 : f32
    %192 = vector.broadcast %cst_198 : f32 to vector<256x4xf32>
    %193 = arith.minimumf %191, %192 : vector<256x4xf32>
    %194 = math.exp %193 : vector<256x4xf32>
    %cst_199 = arith.constant 2.000000e+00 : f32
    %195 = vector.broadcast %cst_199 : f32 to vector<256x4xf32>
    %196 = arith.addf %194, %195 : vector<256x4xf32>
    %197 = arith.mulf %194, %196 : vector<256x4xf32>
    %cst_200 = arith.constant 2.000000e+00 : f32
    %198 = vector.broadcast %cst_200 : f32 to vector<256x4xf32>
    %199 = arith.addf %197, %198 : vector<256x4xf32>
    %200 = arith.divf %197, %199 : vector<256x4xf32>
    %201 = arith.mulf %191, %200 : vector<256x4xf32>
    %202 = arith.addf %201, %2 : vector<256x4xf32>
    %203 = tpu.transpose %202, [1, 0] : vector<256x4xf32> -> vector<4x256xf32>
    %c0_201 = arith.constant 0 : index
    %c0_202 = arith.constant 0 : index
    %c0_203 = arith.constant 0 : index
    %204 = vector.load %arg8[%c0_201, %c0_202, %c0_203] : memref<1x4x256xf32, #tpu.memory_space<vmem>>, vector<1x4x256xf32>
    %205 = vector.shape_cast %204 : vector<1x4x256xf32> to vector<4x256xf32>
    %206 = vector.shape_cast %203 : vector<4x256xf32> to vector<1x4x256xf32>
    tpu.vector_store %arg8[%c0_201, %c0_202, %c0_203], %206 {strides = array<i32>} : memref<1x4x256xf32, #tpu.memory_space<vmem>>, vector<1x4x256xf32>,
    return
  }
  func.func @transform_0(%arg0: i32) -> (i32, i32, i32) {
    %c0_i32 = arith.constant 0 : i32
    %c0_i32_0 = arith.constant 0 : i32
    %c0_i32_1 = arith.constant 0 : i32
    return %arg0, %c0_i32, %c0_i32_0 : i32, i32, i32
  }
  func.func @transform_1(%arg0: i32) -> (i32, i32) {
    %c0_i32 = arith.constant 0 : i32
    %c0_i32_0 = arith.constant 0 : i32
    %c0_i32_1 = arith.constant 0 : i32
    return %c0_i32, %c0_i32_0 : i32, i32
  }
  func.func @transform_2(%arg0: i32) -> (i32, i32) {
    %c0_i32 = arith.constant 0 : i32
    %c0_i32_0 = arith.constant 0 : i32
    %c0_i32_1 = arith.constant 0 : i32
    return %c0_i32, %c0_i32_0 : i32, i32
  }
  func.func @transform_3(%arg0: i32) -> (i32, i32) {
    %c0_i32 = arith.constant 0 : i32
    %c0_i32_0 = arith.constant 0 : i32
    %c0_i32_1 = arith.constant 0 : i32
    return %c0_i32, %c0_i32_0 : i32, i32
  }
  func.func @transform_4(%arg0: i32) -> (i32, i32) {
    %c0_i32 = arith.constant 0 : i32
    %c0_i32_0 = arith.constant 0 : i32
    %c0_i32_1 = arith.constant 0 : i32
    return %c0_i32, %c0_i32_0 : i32, i32
  }
  func.func @transform_5(%arg0: i32) -> (i32, i32) {
    %c0_i32 = arith.constant 0 : i32
    %c0_i32_0 = arith.constant 0 : i32
    %c0_i32_1 = arith.constant 0 : i32
    return %c0_i32, %c0_i32_0 : i32, i32
  }
  func.func @transform_6(%arg0: i32) -> (i32, i32) {
    %c0_i32 = arith.constant 0 : i32
    %c0_i32_0 = arith.constant 0 : i32
    %c0_i32_1 = arith.constant 0 : i32
    return %c0_i32, %c0_i32_0 : i32, i32
  }
  func.func @transform_7(%arg0: i32) -> (i32, i32, i32) {
    %c0_i32 = arith.constant 0 : i32
    %c0_i32_0 = arith.constant 0 : i32
    %c0_i32_1 = arith.constant 0 : i32
    return %arg0, %c0_i32, %c0_i32_0 : i32, i32, i32
  }
}

</mosaic_0001>

<bundles_post_ra>
// kernel: _lambda_.1
= control target key start
LH: loop header
LB: loop body
LE: loop exit
PB: predicated region body
PF: predicated region fallthrough
CT: control target
= control target key end

     0   :  { %s15680_s24 = smov 0   ;;  %s21343_s0 = inlined_call_operand.vmem [shape: f32[2,4,256], index: 0, kind: input, shape index: {}]   ;;  %s21344_s1 = inlined_call_operand.vmem [shape: f32[36,4], index: 1, kind: input, shape index: {}]   ;;  %s21345_s2 = inlined_call_operand.vmem [shape: f32[1,4], index: 2, kind: input, shape index: {}]   ;;  %s21346_s3 = inlined_call_operand.vmem [shape: f32[36,4], index: 3, kind: input, shape index: {}]   ;;  %s21347_s4 = inlined_call_operand.vmem [shape: f32[1,4], index: 4, kind: input, shape index: {}]   ;;  %s21348_s5 = inlined_call_operand.vmem [shape: f32[72,4], index: 5, kind: input, shape index: {}]   ;;  %s21349_s6 = inlined_call_operand.vmem [shape: f32[1,4], index: 6, kind: input, shape index: {}]   ;;  %s21350_s7 = inlined_call_operand.vmem [shape: f32[2,4,256], index: 7, kind: output, shape index: {}]  }
   0x1 LB: > { %s12094_s25 = sadd.s32 4294967295, %s15636_s24   ;;  %p12098_p0 = scmp.ge.s32.totalorder %s15636_s24, 1  ;;  %s15636_s24 = sphi %s15680_s24, %s17_s24  }
   0x2   : > { %p237_p1 = scmp.lt.s32.totalorder %s15636_s24, 3 }
   0x4   : > { %p238_p2 = pnand %p12098_p0, %p237_p1 }
   0x6   : > { %241 = sbr.rel (%p238_p2) target bundleno = 1860 (0x744), region = 48 }
   0xb   : > { %p269_p3 = scmp.lt.s32.totalorder %s12094_s25, 1  ;;  %vm347_vm0 = vcmask 31744   ;;  %v21351_v0 = vmov 0.0   ;;  %vm351_vm1 = vcmask 25600   ;;  %v541_v2 = vld [vmem:[%s21344_s1 + $0x4] sm:$0xf] }
   0xc   : > { %354 = vst.msk [vmem:[#allocation2 + $0x28] sm:$0xff] %vm347_vm0, %v21351_v0  ;;  %348 = vst.msk [vmem:[#allocation2] sm:$0xff] %vm347_vm0, %v21351_v0  ;;  %vm638_vm2 = vcmask 1043456   ;;  %v1223_v6 = vld [vmem:[%s21344_s1 + $0x8] sm:$0xf]  ;;  %s15639_s11 = smov 4  }
   0xd   : > { %s22190_s25 = smov (!%p269_p3, %s12094_s25), 1  ;;  %349 = vst.msk [vmem:[#allocation2 + $0x8] sm:$0xff] %vm347_vm0, %v21351_v0  ;;  %350 = vst.msk [vmem:[#allocation2 + $0x10] sm:$0xff] %vm347_vm0, %v21351_v0  ;;  %13883 = vmatprep.subr.msk.mxu0 %vm638_vm2, %v541_v2  ;;  %15233 = vmatprep.subr.msk.mxu1 %vm638_vm2, %v541_v2  ;;  %v15809_v7 = vld [vmem:[%s21344_s1] sm:$0xf]  ;;  %vm399_vm3 = vcmask 64512  }
   0xe   : > { %353 = vst.msk [vmem:[#allocation2 + $0x20] sm:$0xff] %vm347_vm0, %v21351_v0  ;;  %355 = vst.msk [vmem:[#allocation2 + $0x30] sm:$0xff] %vm347_vm0, %v21351_v0  ;;  %s12990_s26 = sshll.u32 %s22190_s25, 3  ;;  %13884 = vmatpush3.msk.msra.mxu0 %vm638_vm2, %v541_v2  ;;  %15234 = vmatpush3.msk.msra.mxu1 %vm638_vm2, %v541_v2  ;;  %v15816_v8 = vld [vmem:[%s21344_s1 + $0x10] sm:$0xf]  ;;  %vm403_vm4 = vcmask 57344  }
   0xf   : > { %358 = vst.msk [vmem:[#allocation2 + $0x240] sm:$0xff] %vm347_vm0, %v21351_v0  ;;  %359 = vst.msk [vmem:[#allocation2 + $0x248] sm:$0xff] %vm347_vm0, %v21351_v0  ;;  %s273_s29 = scalar_lea.vmem %s21343_s0, %s12990_s26  ;;  %13983 = vmatprep.subr.msk.mxu0 %vm638_vm2, %v1223_v6  ;;  %13933 = vmatprep.subr.msk.mxu1 %vm638_vm2, %v15809_v7  ;;  %v15955_v44 = vld [vmem:[%s21344_s1 + $0x18] sm:$0xf]  ;;  %v15972_v48 = vld [vmem:[%s21344_s1 + $0xc] sm:$0xf]  ;;  %s278_s10 = scalar_lea.vmem %s21350_s7, %s12990_s26 }
  0x10   : > { %360 = vst.msk [vmem:[#allocation2 + $0x250] sm:$0xff] %vm347_vm0, %v21351_v0  ;;  %362 = vst.msk [vmem:[#allocation2 + $0x260] sm:$0xff] %vm347_vm0, %v21351_v0  ;;  %v279_v1 = vld [vmem:[%s273_s29] sm:$0xff]  ;;  %vm8167_vm5 = vcmask 64544  }
  0x11   : > { %363 = vst.msk [vmem:[#allocation2 + $0x268] sm:$0xff] %vm347_vm0, %v21351_v0  ;;  %364 = vst.msk [vmem:[#allocation2 + $0x270] sm:$0xff] %vm347_vm0, %v21351_v0  ;;  %283 = vxpose.xlu0.b32.start.end [1/1] (short) %v279_v1, 128  ;;  %v281_v5 = vcombine.high %v279_v1, %v279_v1 }
  0x12   : > { %356 = vst.msk [vmem:[#allocation2 + $0x38] sm:$0x3] %vm351_vm1, %v21351_v0  ;;  %352 = vst.msk [vmem:[#allocation2 + $0x18] sm:$0x3] %vm351_vm1, %v21351_v0 }
  0x13   : > { %361 = vst.msk [vmem:[#allocation2 + $0x258] sm:$0x3] %vm351_vm1, %v21351_v0  ;;  %365 = vst.msk [vmem:[#allocation2 + $0x278] sm:$0x3] %vm351_vm1, %v21351_v0  ;;  %v509_v3 = vld [vmem:[#allocation2 + $0x28] sm:$0xff] }
  0x14   : > { %367 = vst.msk [vmem:[#allocation2 + $0x46] sm:$0x3] %vm351_vm1, %v21351_v0  ;;  %368 = vst.msk [vmem:[#allocation2 + $0x66] sm:$0x3] %vm351_vm1, %v21351_v0  ;;  %13885 = vmatprep.mubr.msk.f32.mxu0 %vm347_vm0, %v509_v3 }
  0x15   : > { %369 = vst.msk [vmem:[#allocation2 + $0x86] sm:$0x3] %vm351_vm1, %v21351_v0  ;;  %370 = vst.msk [vmem:[#allocation2 + $0xa6] sm:$0x3] %vm351_vm1, %v21351_v0  ;;  %v510_v4 = vld [vmem:[#allocation2 + $0x30] sm:$0xff] }
  0x16   : > { %371 = vst.msk [vmem:[#allocation2 + $0xc6] sm:$0x3] %vm351_vm1, %v21351_v0  ;;  %372 = vst.msk [vmem:[#allocation2 + $0xe6] sm:$0x3] %vm351_vm1, %v21351_v0  ;;  %13886 = vmatmul.mubr.msk.f32.vlgmr.msra.gmra.mxu0 %vm347_vm0, %v510_v4  ;;  %v1191_v37 = vld [vmem:[#allocation2 + $0x29] sm:$0xff] }
  0x17   : > { %373 = vst.msk [vmem:[#allocation2 + $0x106] sm:$0x3] %vm351_vm1, %v21351_v0  ;;  %374 = vst.msk [vmem:[#allocation2 + $0x126] sm:$0x3] %vm351_vm1, %v21351_v0  ;;  %13984 = vmatpush3.msk.msra.mxu0 %vm638_vm2, %v1223_v6 }
  0x18   : > { %375 = vst.msk [vmem:[#allocation2 + $0x146] sm:$0x3] %vm351_vm1, %v21351_v0  ;;  %376 = vst.msk [vmem:[#allocation2 + $0x166] sm:$0x3] %vm351_vm1, %v21351_v0  ;;  %14083 = vmatprep.subr.msk.mxu0 %vm638_vm2, %v15816_v8 }
  0x19   : > { %377 = vst.msk [vmem:[#allocation2 + $0x186] sm:$0x3] %vm351_vm1, %v21351_v0  ;;  %378 = vst.msk [vmem:[#allocation2 + $0x1a6] sm:$0x3] %vm351_vm1, %v21351_v0  ;;  %v1192_v40 = vld [vmem:[#allocation2 + $0x31] sm:$0xff] }
  0x1a   : > { %379 = vst.msk [vmem:[#allocation2 + $0x1c6] sm:$0x3] %vm351_vm1, %v21351_v0  ;;  %380 = vst.msk [vmem:[#allocation2 + $0x1e6] sm:$0x3] %vm351_vm1, %v21351_v0 }
  0x1b   : > { %381 = vst.msk [vmem:[#allocation2 + $0x206] sm:$0x3] %vm351_vm1, %v21351_v0  ;;  %382 = vst.msk [vmem:[#allocation2 + $0x226] sm:$0x3] %vm351_vm1, %v21351_v0 }
  0x1c   : > { %383 = vst.msk [vmem:[#allocation2 + $0x58] sm:$0x3] %vm351_vm1, %v21351_v0  ;;  %384 = vst.msk [vmem:[#allocation2 + $0x78] sm:$0x3] %vm351_vm1, %v21351_v0 }
  0x1d   : > { %385 = vst.msk [vmem:[#allocation2 + $0x98] sm:$0x3] %vm351_vm1, %v21351_v0  ;;  %386 = vst.msk [vmem:[#allocation2 + $0xb8] sm:$0x3] %vm351_vm1, %v21351_v0 }
  0x1e   : > { %387 = vst.msk [vmem:[#allocation2 + $0xd8] sm:$0x3] %vm351_vm1, %v21351_v0  ;;  %388 = vst.msk [vmem:[#allocation2 + $0xf8] sm:$0x3] %vm351_vm1, %v21351_v0 }
  0x1f   : > { %389 = vst.msk [vmem:[#allocation2 + $0x118] sm:$0x3] %vm351_vm1, %v21351_v0  ;;  %390 = vst.msk [vmem:[#allocation2 + $0x138] sm:$0x3] %vm351_vm1, %v21351_v0 }
  0x20   : > { %391 = vst.msk [vmem:[#allocation2 + $0x158] sm:$0x3] %vm351_vm1, %v21351_v0  ;;  %392 = vst.msk [vmem:[#allocation2 + $0x178] sm:$0x3] %vm351_vm1, %v21351_v0 }
  0x21   : > { %393 = vst.msk [vmem:[#allocation2 + $0x198] sm:$0x3] %vm351_vm1, %v21351_v0  ;;  %394 = vst.msk [vmem:[#allocation2 + $0x1b8] sm:$0x3] %vm351_vm1, %v21351_v0 }
  0x22   : > { %395 = vst.msk [vmem:[#allocation2 + $0x1d8] sm:$0x3] %vm351_vm1, %v21351_v0  ;;  %396 = vst.msk [vmem:[#allocation2 + $0x1f8] sm:$0x3] %vm351_vm1, %v21351_v0 }
  0x23   : > { %397 = vst.msk [vmem:[#allocation2 + $0x218] sm:$0x3] %vm351_vm1, %v21351_v0  ;;  %398 = vst.msk [vmem:[#allocation2 + $0x238] sm:$0x3] %vm351_vm1, %v21351_v0 }
  0x4e   : > { %315 = vxpose.xlu0.b32.start.end [1/1] (short) %v281_v5, 128 }
  0x8d   : > { %v15818_v9 = vpop.trf.xlu0 }
  0x8e   : > { %21480 = vst [vmem:[#allocation4_spill] sm:$0xff] %v15818_v9  ;;  %443 = vst.msk [vmem:[#allocation2 + $0x48] sm:$0xff] %vm347_vm0, %v15818_v9 }
  0x91   : > { %v15824_v10 = vpop.trf.xlu0 }
  0x92   : > { %21481 = vst [vmem:[#allocation5_spill] sm:$0xff] %v15824_v10  ;;  %444 = vst.msk [vmem:[#allocation2 + $0x50] sm:$0xff] %vm347_vm0, %v15824_v10 }
  0x95   : > { %v15828_v11 = vpop.trf.xlu0  ;;  %v15830_v12 = vld [vmem:[#allocation2 + $0x48] sm:$0xff] }
  0x96   : > { %21482 = vst [vmem:[#allocation6_spill] sm:$0xff] %v15828_v11  ;;  %445 = vst.msk [vmem:[#allocation2 + $0x68] sm:$0xff] %vm347_vm0, %v15828_v11  ;;  %13888 = vmatprep.mubr.msk.f32.mxu0 %vm347_vm0, %v15830_v12 }
  0x99   : > { %v15836_v13 = vpop.trf.xlu0  ;;  %v15838_v14 = vld [vmem:[#allocation2 + $0x50] sm:$0xff] }
  0x9a   : > { %21483 = vst [vmem:[#allocation7_spill] sm:$0xff] %v15836_v13  ;;  %446 = vst.msk [vmem:[#allocation2 + $0x70] sm:$0xff] %vm347_vm0, %v15836_v13  ;;  %13889 = vmatmul.mubr.msk.f32.gmra.mxu0 %vm347_vm0, %v15838_v14  ;;  %v15950_v43 = vld [vmem:[#allocation2 + $0x49] sm:$0xff]  ;;  %v15967_v47 = vld [vmem:[#allocation2 + $0x51] sm:$0xff] }
  0x9d   : > { %v15844_v15 = vpop.trf.xlu0  ;;  %v15846_v16 = vld [vmem:[#allocation2 + $0x68] sm:$0xff] }
  0x9e   : > { %21484 = vst [vmem:[#allocation8_spill] sm:$0xff] %v15844_v15  ;;  %447 = vst.msk [vmem:[#allocation2 + $0x88] sm:$0xff] %vm347_vm0, %v15844_v15  ;;  %13891 = vmatprep.mubr.msk.f32.mxu0 %vm347_vm0, %v15846_v16 }
  0xa1   : > { %v15852_v17 = vpop.trf.xlu0  ;;  %v15854_v18 = vld [vmem:[#allocation2 + $0x70] sm:$0xff] }
  0xa2   : > { %21485 = vst [vmem:[#allocation9_spill] sm:$0xff] %v15852_v17  ;;  %448 = vst.msk [vmem:[#allocation2 + $0x90] sm:$0xff] %vm347_vm0, %v15852_v17  ;;  %13892 = vmatmul.mubr.msk.f32.gmra.mxu0 %vm347_vm0, %v15854_v18  ;;  %v15980_v49 = vld [vmem:[#allocation2 + $0x69] sm:$0xff]  ;;  %v15992_v52 = vld [vmem:[#allocation2 + $0x71] sm:$0xff] }
  0xa5   : > { %v15860_v19 = vpop.trf.xlu0  ;;  %v15862_v20 = vld [vmem:[#allocation2 + $0x88] sm:$0xff] }
  0xa6   : > { %21486 = vst [vmem:[#allocation10_spill] sm:$0xff] %v15860_v19  ;;  %449 = vst.msk [vmem:[#allocation2 + $0xa8] sm:$0xff] %vm347_vm0, %v15860_v19  ;;  %13894 = vmatprep.mubr.msk.f32.mxu0 %vm347_vm0, %v15862_v20 }
  0xa9   : > { %v15868_v21 = vpop.trf.xlu0  ;;  %v15870_v22 = vld [vmem:[#allocation2 + $0x90] sm:$0xff] }
  0xaa   : > { %21487 = vst [vmem:[#allocation11_spill] sm:$0xff] %v15868_v21  ;;  %450 = vst.msk [vmem:[#allocation2 + $0xb0] sm:$0xff] %vm347_vm0, %v15868_v21  ;;  %13895 = vmatmul.mubr.msk.f32.gmra.mxu0 %vm347_vm0, %v15870_v22  ;;  %v16000_v53 = vld [vmem:[#allocation2 + $0x89] sm:$0xff]  ;;  %v16008_v56 = vld [vmem:[#allocation2 + $0x91] sm:$0xff] }
  0xad   : > { %v15876_v23 = vpop.trf.xlu0  ;;  %v15878_v24 = vld [vmem:[#allocation2 + $0xa8] sm:$0xff] }
  0xae   : > { %21488 = vst [vmem:[#allocation12_spill] sm:$0xff] %v15876_v23  ;;  %451 = vst.msk [vmem:[#allocation2 + $0xc8] sm:$0xff] %vm347_vm0, %v15876_v23  ;;  %13897 = vmatprep.mubr.msk.f32.mxu0 %vm347_vm0, %v15878_v24 }
  0xb1   : > { %v15884_v25 = vpop.trf.xlu0  ;;  %v15886_v26 = vld [vmem:[#allocation2 + $0xb0] sm:$0xff] }
  0xb2   : > { %21489 = vst [vmem:[#allocation13_spill] sm:$0xff] %v15884_v25  ;;  %452 = vst.msk [vmem:[#allocation2 + $0xd0] sm:$0xff] %vm347_vm0, %v15884_v25  ;;  %13898 = vmatmul.mubr.msk.f32.gmra.mxu0 %vm347_vm0, %v15886_v26  ;;  %v16016_v57 = vld [vmem:[#allocation2 + $0xa9] sm:$0xff]  ;;  %v16024_v60 = vld [vmem:[#allocation2 + $0xb1] sm:$0xff] }
  0xb5   : > { %v15892_v27 = vpop.trf.xlu0  ;;  %v15894_v28 = vld [vmem:[#allocation2 + $0xc8] sm:$0xff] }
  0xb6   : > { %21490 = vst [vmem:[#allocation14_spill] sm:$0xff] %v15892_v27  ;;  %453 = vst.msk [vmem:[#allocation2 + $0xe8] sm:$0xff] %vm347_vm0, %v15892_v27  ;;  %13900 = vmatprep.mubr.msk.f32.mxu0 %vm347_vm0, %v15894_v28 }
  0xb9   : > { %v15900_v29 = vpop.trf.xlu0  ;;  %v15902_v30 = vld [vmem:[#allocation2 + $0xd0] sm:$0xff] }
  0xba   : > { %21491 = vst [vmem:[#allocation15_spill] sm:$0xff] %v15900_v29  ;;  %454 = vst.msk [vmem:[#allocation2 + $0xf0] sm:$0xff] %vm347_vm0, %v15900_v29  ;;  %13901 = vmatmul.mubr.msk.f32.gmra.mxu0 %vm347_vm0, %v15902_v30  ;;  %v16032_v61 = vld [vmem:[#allocation2 + $0xc9] sm:$0xff]  ;;  %v16040_v1 = vld [vmem:[#allocation2 + $0xd1] sm:$0xff] }
  0xbd   : > { %v15908_v31 = vpop.trf.xlu0  ;;  %v15910_v32 = vld [vmem:[#allocation2 + $0xe8] sm:$0xff] }
  0xbe   : > { %21492 = vst [vmem:[#allocation16_spill] sm:$0xff] %v15908_v31  ;;  %455 = vst.msk [vmem:[#allocation2 + $0x108] sm:$0xff] %vm347_vm0, %v15908_v31  ;;  %13903 = vmatprep.mubr.msk.f32.mxu0 %vm347_vm0, %v15910_v32 }
  0xc1   : > { %v15916_v33 = vpop.trf.xlu0  ;;  %v15918_v34 = vld [vmem:[#allocation2 + $0xf0] sm:$0xff] }
  0xc2   : > { %21493 = vst [vmem:[#allocation17_spill] sm:$0xff] %v15916_v33  ;;  %456 = vst.msk [vmem:[#allocation2 + $0x110] sm:$0xff] %vm347_vm0, %v15916_v33  ;;  %13904 = vmatmul.mubr.msk.f32.gmra.mxu0 %vm347_vm0, %v15918_v34  ;;  %v16048_v2 = vld [vmem:[#allocation2 + $0xe9] sm:$0xff]  ;;  %v16056_v5 = vld [vmem:[#allocation2 + $0xf1] sm:$0xff] }
  0xc5   : > { %v15924_v35 = vpop.trf.xlu0  ;;  %v15926_v36 = vld [vmem:[#allocation2 + $0x108] sm:$0xff] }
  0xc6   : > { %21494 = vst [vmem:[#allocation18_spill] sm:$0xff] %v15924_v35  ;;  %457 = vst.msk [vmem:[#allocation2 + $0x128] sm:$0xff] %vm347_vm0, %v15924_v35  ;;  %13906 = vmatprep.mubr.msk.f32.mxu0 %vm347_vm0, %v15926_v36 }
  0xc9   : > { %v15932_v38 = vpop.trf.xlu0  ;;  %v15934_v39 = vld [vmem:[#allocation2 + $0x110] sm:$0xff] }
  0xca   : > { %21495 = vst [vmem:[#allocation19_spill] sm:$0xff] %v15932_v38  ;;  %458 = vst.msk [vmem:[#allocation2 + $0x130] sm:$0xff] %vm347_vm0, %v15932_v38  ;;  %13907 = vmatmul.mubr.msk.f32.gmra.mxu0 %vm347_vm0, %v15934_v39  ;;  %v16064_v6 = vld [vmem:[#allocation2 + $0x109] sm:$0xff] }
  0xcb   : > { %13985 = vmatprep.mubr.msk.f32.mxu0 %vm347_vm0, %v1191_v37  ;;  %v16072_v37 = vld [vmem:[#allocation2 + $0x111] sm:$0xff] }
  0xcd   : > { %v15941_v41 = vpop.trf.xlu0  ;;  %v15943_v42 = vld [vmem:[#allocation2 + $0x128] sm:$0xff] }
  0xce   : > { %21496 = vst [vmem:[#allocation20_spill] sm:$0xff] %v15941_v41  ;;  %459 = vst.msk [vmem:[#allocation2 + $0x148] sm:$0xff] %vm347_vm0, %v15941_v41  ;;  %13909 = vmatprep.mubr.msk.f32.mxu1 %vm347_vm0, %v15943_v42  ;;  %13986 = vmatmul.mubr.msk.f32.vlgmr.msra.gmra.mxu0 %vm347_vm0, %v1192_v40 }
  0xcf   : > { %13988 = vmatprep.mubr.msk.f32.mxu0 %vm347_vm0, %v15950_v43  ;;  %14084 = vmatpush3.msk.msra.mxu0 %vm638_vm2, %v15816_v8 }
  0xd0   : > { %14183 = vmatprep.subr.msk.mxu0 %vm638_vm2, %v15955_v44 }
  0xd1   : > { %v15963_v45 = vpop.trf.xlu0  ;;  %v15965_v46 = vld [vmem:[#allocation2 + $0x130] sm:$0xff] }
  0xd2   : > { %21497 = vst [vmem:[#allocation21_spill] sm:$0xff] %v15963_v45  ;;  %460 = vst.msk [vmem:[#allocation2 + $0x150] sm:$0xff] %vm347_vm0, %v15963_v45  ;;  %13910 = vmatmul.mubr.msk.f32.vlgmr.msra.gmra.mxu1 %vm347_vm0, %v15965_v46  ;;  %13989 = vmatmul.mubr.msk.f32.gmra.mxu0 %vm347_vm0, %v15967_v47  ;;  %v16080_v40 = vld [vmem:[#allocation2 + $0x129] sm:$0xff]  ;;  %v16088_v35 = vld [vmem:[#allocation2 + $0x131] sm:$0xff] }
  0xd3   : > { %13991 = vmatprep.mubr.msk.f32.mxu0 %vm347_vm0, %v15980_v49  ;;  %13934 = vmatpush3.msk.msra.mxu1 %vm638_vm2, %v15809_v7 }
  0xd4   : > { %14033 = vmatprep.subr.msk.mxu1 %vm638_vm2, %v15972_v48 }
  0xd5   : > { %v15988_v50 = vpop.trf.xlu0  ;;  %v15990_v51 = vld [vmem:[#allocation2 + $0x148] sm:$0xff] }
  0xd6   : > { %21498 = vst [vmem:[#allocation22_spill] sm:$0xff] %v15988_v50  ;;  %461 = vst.msk [vmem:[#allocation2 + $0x168] sm:$0xff] %vm347_vm0, %v15988_v50  ;;  %13912 = vmatprep.mubr.msk.f32.mxu1 %vm347_vm0, %v15990_v51  ;;  %13992 = vmatmul.mubr.msk.f32.gmra.mxu0 %vm347_vm0, %v15992_v52 }
  0xd7   : > { %13994 = vmatprep.mubr.msk.f32.mxu0 %vm347_vm0, %v16000_v53 }
  0xd9   : > { %v16004_v54 = vpop.trf.xlu0  ;;  %v16006_v55 = vld [vmem:[#allocation2 + $0x150] sm:$0xff] }
  0xda   : > { %21499 = vst [vmem:[#allocation23_spill] sm:$0xff] %v16004_v54  ;;  %462 = vst.msk [vmem:[#allocation2 + $0x170] sm:$0xff] %vm347_vm0, %v16004_v54  ;;  %13913 = vmatmul.mubr.msk.f32.gmra.mxu1 %vm347_vm0, %v16006_v55  ;;  %13995 = vmatmul.mubr.msk.f32.gmra.mxu0 %vm347_vm0, %v16008_v56  ;;  %v16096_v33 = vld [vmem:[#allocation2 + $0x149] sm:$0xff]  ;;  %v16104_v27 = vld [vmem:[#allocation2 + $0x151] sm:$0xff] }
  0xdb   : > { %13997 = vmatprep.mubr.msk.f32.mxu0 %vm347_vm0, %v16016_v57 }
  0xdd   : > { %v16020_v58 = vpop.trf.xlu0  ;;  %v16022_v59 = vld [vmem:[#allocation2 + $0x168] sm:$0xff] }
  0xde   : > { %21500 = vst [vmem:[#allocation24_spill] sm:$0xff] %v16020_v58  ;;  %463 = vst.msk [vmem:[#allocation2 + $0x188] sm:$0xff] %vm347_vm0, %v16020_v58  ;;  %13915 = vmatprep.mubr.msk.f32.mxu1 %vm347_vm0, %v16022_v59  ;;  %13998 = vmatmul.mubr.msk.f32.gmra.mxu0 %vm347_vm0, %v16024_v60 }
  0xdf   : > { %14000 = vmatprep.mubr.msk.f32.mxu0 %vm347_vm0, %v16032_v61 }
  0xe1   : > { %v16036_v62 = vpop.trf.xlu0  ;;  %v16038_v63 = vld [vmem:[#allocation2 + $0x170] sm:$0xff] }
  0xe2   : > { %21501 = vst [vmem:[#allocation25_spill] sm:$0xff] %v16036_v62  ;;  %464 = vst.msk [vmem:[#allocation2 + $0x190] sm:$0xff] %vm347_vm0, %v16036_v62  ;;  %13916 = vmatmul.mubr.msk.f32.gmra.mxu1 %vm347_vm0, %v16038_v63  ;;  %14001 = vmatmul.mubr.msk.f32.gmra.mxu0 %vm347_vm0, %v16040_v1  ;;  %v16112_v25 = vld [vmem:[#allocation2 + $0x169] sm:$0xff] }
  0xe3   : > { %14003 = vmatprep.mubr.msk.f32.mxu0 %vm347_vm0, %v16048_v2 }
  0xe5   : > { %v16052_v3 = vpop.trf.xlu0  ;;  %v16054_v4 = vld [vmem:[#allocation2 + $0x188] sm:$0xff] }
  0xe6   : > { %21502 = vst [vmem:[#allocation26_spill] sm:$0xff] %v16052_v3  ;;  %465 = vst.msk [vmem:[#allocation2 + $0x1a8] sm:$0xff] %vm347_vm0, %v16052_v3  ;;  %13918 = vmatprep.mubr.msk.f32.mxu1 %vm347_vm0, %v16054_v4  ;;  %14004 = vmatmul.mubr.msk.f32.gmra.mxu0 %vm347_vm0, %v16056_v5 }
  0xe7   : > { %14006 = vmatprep.mubr.msk.f32.mxu0 %vm347_vm0, %v16064_v6 }
  0xe9   : > { %v16068_v7 = vpop.trf.xlu0  ;;  %v16070_v8 = vld [vmem:[#allocation2 + $0x190] sm:$0xff] }
  0xea   : > { %21503 = vst [vmem:[#allocation27_spill] sm:$0xff] %v16068_v7  ;;  %466 = vst.msk [vmem:[#allocation2 + $0x1b0] sm:$0xff] %vm347_vm0, %v16068_v7  ;;  %13919 = vmatmul.mubr.msk.f32.gmra.mxu1 %vm347_vm0, %v16070_v8  ;;  %14007 = vmatmul.mubr.msk.f32.gmra.mxu0 %vm347_vm0, %v16072_v37  ;;  %v16120_v7 = vld [vmem:[#allocation2 + $0x171] sm:$0xff] }
  0xeb   : > { %14009 = vmatprep.mubr.msk.f32.mxu0 %vm347_vm0, %v16080_v40  ;;  %v16136_v19 = vld [vmem:[#allocation2 + $0x191] sm:$0xff] }
  0xed   : > { %v16084_v0 = vpop.trf.xlu0  ;;  %v16086_v38 = vld [vmem:[#allocation2 + $0x1a8] sm:$0xff] }
  0xee   : > { %21504 = vst [vmem:[#allocation28_spill] sm:$0xff] %v16084_v0  ;;  %467 = vst.msk [vmem:[#allocation2 + $0x1c8] sm:$0xff] %vm347_vm0, %v16084_v0  ;;  %13921 = vmatprep.mubr.msk.f32.mxu1 %vm347_vm0, %v16086_v38  ;;  %14010 = vmatmul.mubr.msk.f32.gmra.mxu0 %vm347_vm0, %v16088_v35 }
  0xef   : > { %14012 = vmatprep.mubr.msk.f32.mxu0 %vm347_vm0, %v16096_v33 }
  0xf1   : > { %v16100_v31 = vpop.trf.xlu0  ;;  %v16102_v29 = vld [vmem:[#allocation2 + $0x1b0] sm:$0xff] }
  0xf2   : > { %21505 = vst [vmem:[#allocation29_spill] sm:$0xff] %v16100_v31  ;;  %468 = vst.msk [vmem:[#allocation2 + $0x1d0] sm:$0xff] %vm347_vm0, %v16100_v31  ;;  %13922 = vmatmul.mubr.msk.f32.gmra.mxu1 %vm347_vm0, %v16102_v29  ;;  %14013 = vmatmul.mubr.msk.f32.gmra.mxu0 %vm347_vm0, %v16104_v27  ;;  %v16128_v31 = vld [vmem:[#allocation2 + $0x189] sm:$0xff]  ;;  %v16152_v58 = vld [vmem:[#allocation2 + $0x1b1] sm:$0xff] }
  0xf3   : > { %14015 = vmatprep.mubr.msk.f32.mxu0 %vm347_vm0, %v16112_v25 }
  0xf5   : > { %v16116_v0 = vpop.trf.xlu0  ;;  %v16118_v23 = vld [vmem:[#allocation2 + $0x1c8] sm:$0xff] }
  0xf6   : > { %21506 = vst [vmem:[#allocation30_spill] sm:$0xff] %v16116_v0  ;;  %469 = vst.msk [vmem:[#allocation2 + $0x1e8] sm:$0xff] %vm347_vm0, %v16116_v0  ;;  %13924 = vmatprep.mubr.msk.f32.mxu1 %vm347_vm0, %v16118_v23  ;;  %14016 = vmatmul.mubr.msk.f32.gmra.mxu0 %vm347_vm0, %v16120_v7  ;;  %v16144_v0 = vld [vmem:[#allocation2 + $0x1a9] sm:$0xff] }
  0xf7   : > { %14018 = vmatprep.mubr.msk.f32.mxu0 %vm347_vm0, %v16128_v31 }
  0xf9   : > { %v16132_v21 = vpop.trf.xlu0  ;;  %v16134_v3 = vld [vmem:[#allocation2 + $0x1d0] sm:$0xff] }
  0xfa   : > { %21507 = vst [vmem:[#allocation31_spill] sm:$0xff] %v16132_v21  ;;  %470 = vst.msk [vmem:[#allocation2 + $0x1f0] sm:$0xff] %vm347_vm0, %v16132_v21  ;;  %13925 = vmatmul.mubr.msk.f32.gmra.mxu1 %vm347_vm0, %v16134_v3  ;;  %14019 = vmatmul.mubr.msk.f32.gmra.mxu0 %vm347_vm0, %v16136_v19  ;;  %v16160_v21 = vld [vmem:[#allocation2 + $0x1c9] sm:$0xff]  ;;  %v16168_v13 = vld [vmem:[#allocation2 + $0x1d1] sm:$0xff] }
  0xfb   : > { %14021 = vmatprep.mubr.msk.f32.mxu0 %vm347_vm0, %v16144_v0 }
  0xfd   : > { %v16148_v62 = vpop.trf.xlu0  ;;  %v16150_v17 = vld [vmem:[#allocation2 + $0x1e8] sm:$0xff] }
  0xfe   : > { %21508 = vst [vmem:[#allocation32_spill] sm:$0xff] %v16148_v62  ;;  %471 = vst.msk [vmem:[#allocation2 + $0x208] sm:$0xff] %vm347_vm0, %v16148_v62  ;;  %13927 = vmatprep.mubr.msk.f32.mxu1 %vm347_vm0, %v16150_v17  ;;  %14022 = vmatmul.mubr.msk.f32.gmra.mxu0 %vm347_vm0, %v16152_v58 }
  0xff   : > { %14024 = vmatprep.mubr.msk.f32.mxu0 %vm347_vm0, %v16160_v21 }
 0x101   : > { %v16164_v15 = vpop.trf.xlu0  ;;  %v16166_v54 = vld [vmem:[#allocation2 + $0x1f0] sm:$0xff] }
 0x102   : > { %21509 = vst [vmem:[#allocation33_spill] sm:$0xff] %v16164_v15  ;;  %v16170_v50 = vld [vmem:[#allocation2 + $0x1e9] sm:$0xff]  ;;  %472 = vst.msk [vmem:[#allocation2 + $0x210] sm:$0xff] %vm347_vm0, %v16164_v15  ;;  %13928 = vmatmul.mubr.msk.f32.gmra.mxu1 %vm347_vm0, %v16166_v54  ;;  %14025 = vmatmul.mubr.msk.f32.gmra.mxu0 %vm347_vm0, %v16168_v13  ;;  %v16182_v11 = vld [vmem:[#allocation2 + $0x1f1] sm:$0xff] }
 0x103   : > { %21510 = vst [vmem:[#allocation34_spill] sm:$0xff] %v16170_v50  ;;  %14027 = vmatprep.mubr.msk.f32.mxu0 %vm347_vm0, %v16170_v50  ;;  %21511 = vst [vmem:[#allocation35_spill] sm:$0xff] %v16182_v11  ;;  %v476_v15 = vld [vmem:[#allocation2 + $0x27] sm:$0xff] }
 0x105   : > { %v16180_v62 = vld [vmem:[#allocation2 + $0x208] sm:$0xff]  ;;  %v16184_v45 = vpop.trf.xlu0 }
 0x106   : > { %21512 = vst [vmem:[#allocation36_spill] sm:$0xff] %v16184_v45  ;;  %13930 = vmatprep.mubr.msk.f32.mxu1 %vm347_vm0, %v16180_v62  ;;  %14028 = vmatmul.mubr.msk.f32.gmra.mxu0 %vm347_vm0, %v16182_v11  ;;  %473 = vst.msk [vmem:[#allocation2 + $0x228] sm:$0xff] %vm347_vm0, %v16184_v45  ;;  %v477_v45 = vld [vmem:[#allocation2 + $0x2f] sm:$0xff] }
 0x107   : > { %v16214_v11 = vld [vmem:[%s21344_s1 + $0x14] sm:$0xf] }
 0x109   : > { %v16192_v10 = vld [vmem:[#allocation2 + $0x210] sm:$0xff]  ;;  %v16198_v50 = vpop.trf.xlu0 }
 0x10a   : > { %v16194_v41 = vld [vmem:[#allocation2 + $0x209] sm:$0xff]  ;;  %v16196_v9 = vld [vmem:[#allocation2 + $0x211] sm:$0xff]  ;;  %21514 = vst [vmem:[#allocation38_spill] sm:$0xff] %v16198_v50  ;;  %13931 = vmatmul.mubr.msk.f32.gmra.mxu1 %vm347_vm0, %v16192_v10  ;;  %474 = vst.msk [vmem:[#allocation2 + $0x230] sm:$0xff] %vm347_vm0, %v16198_v50 }
 0x10b   : > { %21513 = vst [vmem:[#allocation37_spill] sm:$0xff] %v16194_v41  ;;  %14030 = vmatprep.mubr.msk.f32.mxu0 %vm347_vm0, %v16194_v41  ;;  %13935 = vmatprep.mubr.msk.f32.mxu1 %vm347_vm0, %v476_v15  ;;  %v16217_v41 = vld [vmem:[#allocation2 + $0x47] sm:$0xff]  ;;  %v16226_v15 = vld [vmem:[%s21344_s1 + $0x20] sm:$0xf] }
 0x10c   : > { %14031 = vmatmul.mubr.msk.f32.gmra.mxu0 %vm347_vm0, %v16196_v9 }
 0x10d   : > { %14085 = vmatprep.mubr.msk.f32.mxu0 %vm347_vm0, %v15830_v12  ;;  %v16234_v12 = vld [vmem:[#allocation2 + $0x4f] sm:$0xff] }
 0x10e   : > { %13936 = vmatmul.mubr.msk.f32.vlgmr.msra.gmra.mxu1 %vm347_vm0, %v477_v45  ;;  %v16240_v45 = vld [vmem:[#allocation2 + $0x67] sm:$0xff] }
 0x10f   : > { %14034 = vmatpush3.msk.msra.mxu1 %vm638_vm2, %v15972_v48  ;;  %13938 = vmatprep.mubr.msk.f32.mxu1 %vm347_vm0, %v16217_v41  ;;  %v16346_v48 = vld [vmem:[#allocation2 + $0x16f] sm:$0xff] }
 0x110   : > { %14086 = vmatmul.mubr.msk.f32.vlgmr.msra.gmra.mxu0 %vm347_vm0, %v15838_v14  ;;  %14133 = vmatprep.subr.msk.mxu1 %vm638_vm2, %v16214_v11  ;;  %v16250_v14 = vld [vmem:[#allocation2 + $0x6f] sm:$0xff] }
 0x111   : > { %14088 = vmatprep.mubr.msk.f32.mxu0 %vm347_vm0, %v15846_v16  ;;  %14184 = vmatpush3.msk.msra.mxu0 %vm638_vm2, %v15955_v44  ;;  %v16254_v16 = vld [vmem:[#allocation2 + $0x87] sm:$0xff]  ;;  %v16334_v44 = vld [vmem:[#allocation2 + $0x14f] sm:$0xff] }
 0x112   : > { %13939 = vmatmul.mubr.msk.f32.gmra.mxu1 %vm347_vm0, %v16234_v12  ;;  %14283 = vmatprep.subr.msk.mxu0 %vm638_vm2, %v16226_v15 }
 0x113   : > { %13941 = vmatprep.mubr.msk.f32.mxu1 %vm347_vm0, %v16240_v45 }
 0x114   : > { %14089 = vmatmul.mubr.msk.f32.gmra.mxu0 %vm347_vm0, %v15854_v18  ;;  %v16262_v18 = vld [vmem:[#allocation2 + $0x8f] sm:$0xff] }
 0x115   : > { %14091 = vmatprep.mubr.msk.f32.mxu0 %vm347_vm0, %v15862_v20  ;;  %v16266_v20 = vld [vmem:[#allocation2 + $0xa7] sm:$0xff] }
 0x116   : > { %13942 = vmatmul.mubr.msk.f32.gmra.mxu1 %vm347_vm0, %v16250_v14 }
 0x117   : > { %13944 = vmatprep.mubr.msk.f32.mxu1 %vm347_vm0, %v16254_v16 }
 0x118   : > { %14092 = vmatmul.mubr.msk.f32.gmra.mxu0 %vm347_vm0, %v15870_v22  ;;  %v16274_v22 = vld [vmem:[#allocation2 + $0xaf] sm:$0xff] }
 0x119   : > { %14094 = vmatprep.mubr.msk.f32.mxu0 %vm347_vm0, %v15878_v24  ;;  %v16278_v24 = vld [vmem:[#allocation2 + $0xc7] sm:$0xff] }
 0x11a   : > { %13945 = vmatmul.mubr.msk.f32.gmra.mxu1 %vm347_vm0, %v16262_v18 }
 0x11b   : > { %13947 = vmatprep.mubr.msk.f32.mxu1 %vm347_vm0, %v16266_v20 }
 0x11c   : > { %14095 = vmatmul.mubr.msk.f32.gmra.mxu0 %vm347_vm0, %v15886_v26  ;;  %v16286_v26 = vld [vmem:[#allocation2 + $0xcf] sm:$0xff] }
 0x11d   : > { %14097 = vmatprep.mubr.msk.f32.mxu0 %vm347_vm0, %v15894_v28  ;;  %v16290_v28 = vld [vmem:[#allocation2 + $0xe7] sm:$0xff] }
 0x11e   : > { %13948 = vmatmul.mubr.msk.f32.gmra.mxu1 %vm347_vm0, %v16274_v22 }
 0x11f   : > { %13950 = vmatprep.mubr.msk.f32.mxu1 %vm347_vm0, %v16278_v24 }
 0x120   : > { %14098 = vmatmul.mubr.msk.f32.gmra.mxu0 %vm347_vm0, %v15902_v30  ;;  %v16298_v30 = vld [vmem:[#allocation2 + $0xef] sm:$0xff] }
 0x121   : > { %14100 = vmatprep.mubr.msk.f32.mxu0 %vm347_vm0, %v15910_v32  ;;  %v16302_v32 = vld [vmem:[#allocation2 + $0x107] sm:$0xff] }
 0x122   : > { %13951 = vmatmul.mubr.msk.f32.gmra.mxu1 %vm347_vm0, %v16286_v26 }
 0x123   : > { %13953 = vmatprep.mubr.msk.f32.mxu1 %vm347_vm0, %v16290_v28 }
 0x124   : > { %14101 = vmatmul.mubr.msk.f32.gmra.mxu0 %vm347_vm0, %v15918_v34  ;;  %v16310_v34 = vld [vmem:[#allocation2 + $0x10f] sm:$0xff] }
 0x125   : > { %14103 = vmatprep.mubr.msk.f32.mxu0 %vm347_vm0, %v15926_v36  ;;  %v16314_v36 = vld [vmem:[#allocation2 + $0x127] sm:$0xff] }
 0x126   : > { %13954 = vmatmul.mubr.msk.f32.gmra.mxu1 %vm347_vm0, %v16298_v30 }
 0x127   : > { %13956 = vmatprep.mubr.msk.f32.mxu1 %vm347_vm0, %v16302_v32 }
 0x128   : > { %14104 = vmatmul.mubr.msk.f32.gmra.mxu0 %vm347_vm0, %v15934_v39  ;;  %v16322_v39 = vld [vmem:[#allocation2 + $0x12f] sm:$0xff] }
 0x129   : > { %14106 = vmatprep.mubr.msk.f32.mxu0 %vm347_vm0, %v15943_v42  ;;  %v16326_v42 = vld [vmem:[#allocation2 + $0x147] sm:$0xff] }
 0x12a   : > { %13957 = vmatmul.mubr.msk.f32.gmra.mxu1 %vm347_vm0, %v16310_v34 }
 0x12b   : > { %13959 = vmatprep.mubr.msk.f32.mxu1 %vm347_vm0, %v16314_v36 }
 0x12c   : > { %14107 = vmatmul.mubr.msk.f32.gmra.mxu0 %vm347_vm0, %v15965_v46  ;;  %v16338_v46 = vld [vmem:[#allocation2 + $0x167] sm:$0xff] }
 0x12d   : > { %14109 = vmatprep.mubr.msk.f32.mxu0 %vm347_vm0, %v15990_v51  ;;  %v16350_v51 = vld [vmem:[#allocation2 + $0x187] sm:$0xff] }
 0x12e   : > { %13960 = vmatmul.mubr.msk.f32.gmra.mxu1 %vm347_vm0, %v16322_v39 }
 0x12f   : > { %13962 = vmatprep.mubr.msk.f32.mxu1 %vm347_vm0, %v16326_v42 }
 0x130   : > { %14110 = vmatmul.mubr.msk.f32.gmra.mxu0 %vm347_vm0, %v16006_v55  ;;  %v16358_v55 = vld [vmem:[#allocation2 + $0x18f] sm:$0xff] }
 0x131   : > { %14112 = vmatprep.mubr.msk.f32.mxu0 %vm347_vm0, %v16022_v59  ;;  %v16362_v59 = vld [vmem:[#allocation2 + $0x1a7] sm:$0xff] }
 0x132   : > { %13963 = vmatmul.mubr.msk.f32.gmra.mxu1 %vm347_vm0, %v16334_v44 }
 0x133   : > { %13965 = vmatprep.mubr.msk.f32.mxu1 %vm347_vm0, %v16338_v46 }
 0x134   : > { %14113 = vmatmul.mubr.msk.f32.gmra.mxu0 %vm347_vm0, %v16038_v63  ;;  %v16370_v63 = vld [vmem:[#allocation2 + $0x1af] sm:$0xff] }
 0x135   : > { %14115 = vmatprep.mubr.msk.f32.mxu0 %vm347_vm0, %v16054_v4  ;;  %v1999_v4 = vld [vmem:[#allocation2 + $0x228] sm:$0xff] }
 0x136   : > { %13966 = vmatmul.mubr.msk.f32.gmra.mxu1 %vm347_vm0, %v16346_v48 }
 0x137   : > { %13968 = vmatprep.mubr.msk.f32.mxu1 %vm347_vm0, %v16350_v51 }
 0x138   : > { %14116 = vmatmul.mubr.msk.f32.gmra.mxu0 %vm347_vm0, %v16070_v8  ;;  %v16404_v8 = vld [vmem:[#allocation2 + $0x20f] sm:$0xff] }
 0x139   : > { %14118 = vmatprep.mubr.msk.f32.mxu0 %vm347_vm0, %v16086_v38  ;;  %v16374_v38 = vld [vmem:[#allocation2 + $0x1c7] sm:$0xff] }
 0x13a   : > { %13969 = vmatmul.mubr.msk.f32.gmra.mxu1 %vm347_vm0, %v16358_v55 }
 0x13b   : > { %13971 = vmatprep.mubr.msk.f32.mxu1 %vm347_vm0, %v16362_v59 }
 0x13c   : > { %14119 = vmatmul.mubr.msk.f32.gmra.mxu0 %vm347_vm0, %v16102_v29  ;;  %v16382_v29 = vld [vmem:[#allocation2 + $0x1cf] sm:$0xff] }
 0x13d   : > { %14121 = vmatprep.mubr.msk.f32.mxu0 %vm347_vm0, %v16118_v23  ;;  %v16386_v23 = vld [vmem:[#allocation2 + $0x1e7] sm:$0xff] }
 0x13e   : > { %13972 = vmatmul.mubr.msk.f32.gmra.mxu1 %vm347_vm0, %v16370_v63 }
 0x13f   : > { %13974 = vmatprep.mubr.msk.f32.mxu1 %vm347_vm0, %v16374_v38 }
 0x140   : > { %14122 = vmatmul.mubr.msk.f32.gmra.mxu0 %vm347_vm0, %v16134_v3  ;;  %v16394_v3 = vld [vmem:[#allocation2 + $0x1ef] sm:$0xff] }
 0x141   : > { %14124 = vmatprep.mubr.msk.f32.mxu0 %vm347_vm0, %v16150_v17  ;;  %v16398_v17 = vld [vmem:[#allocation2 + $0x207] sm:$0xff] }
 0x142   : > { %13975 = vmatmul.mubr.msk.f32.gmra.mxu1 %vm347_vm0, %v16382_v29 }
 0x143   : > { %13977 = vmatprep.mubr.msk.f32.mxu1 %vm347_vm0, %v16386_v23 }
 0x144   : > { %14125 = vmatmul.mubr.msk.f32.gmra.mxu0 %vm347_vm0, %v16166_v54  ;;  %v2000_v54 = vld [vmem:[#allocation2 + $0x230] sm:$0xff] }
 0x145   : > { %14127 = vmatprep.mubr.msk.f32.mxu0 %vm347_vm0, %v16180_v62 }
 0x146   : > { %13978 = vmatmul.mubr.msk.f32.gmra.mxu1 %vm347_vm0, %v16394_v3 }
 0x147   : > { %13980 = vmatprep.mubr.msk.f32.mxu1 %vm347_vm0, %v16398_v17 }
 0x148   : > { %14128 = vmatmul.mubr.msk.f32.gmra.mxu0 %vm347_vm0, %v16192_v10  ;;  %v16417_v10 = vld [vmem:[%s21344_s1 + $0x1c] sm:$0xf] }
 0x149   : > { %14130 = vmatprep.mubr.msk.f32.mxu0 %vm347_vm0, %v1999_v4 }
 0x14a   : > { %13981 = vmatmul.mubr.msk.f32.gmra.mxu1 %vm347_vm0, %v16404_v8 }
 0x14b   : > { %14035 = vmatprep.mubr.msk.f32.mxu1 %vm347_vm0, %v16217_v41  ;;  %v16428_v41 = vld [vmem:[%s21346_s3] sm:$0xf] }
 0x14c   : > { %14131 = vmatmul.mubr.msk.f32.gmra.mxu0 %vm347_vm0, %v2000_v54  ;;  %v21547_v54 = vld [vmem:[#allocation34_spill] sm:$0xff] }
 0x14d   : > { %14185 = vmatprep.mubr.msk.f32.mxu0 %vm347_vm0, %v16240_v45 }
 0x14e   : > { %14036 = vmatmul.mubr.msk.f32.vlgmr.msra.gmra.mxu1 %vm347_vm0, %v16234_v12 }
 0x14f   : > { %14134 = vmatpush3.msk.msra.mxu1 %vm638_vm2, %v16214_v11  ;;  %14038 = vmatprep.mubr.msk.f32.mxu1 %vm347_vm0, %v16240_v45  ;;  %v16464_v11 = vpop.f32.mrf.mxu0 }
 0x150   : > { %14186 = vmatmul.mubr.msk.f32.vlgmr.msra.gmra.mxu0 %vm347_vm0, %v16250_v14  ;;  %14233 = vmatprep.subr.msk.mxu1 %vm638_vm2, %v16417_v10 }
 0x151   : > { %14188 = vmatprep.mubr.msk.f32.mxu0 %vm347_vm0, %v16254_v16  ;;  %14284 = vmatpush3.msk.msra.mxu0 %vm638_vm2, %v16226_v15  ;;  %v16474_v62 = vpop.f32.mrf.mxu0 }
 0x152   : > { %14039 = vmatmul.mubr.msk.f32.gmra.mxu1 %vm347_vm0, %v16250_v14  ;;  %14383 = vmatprep.subr.msk.mxu0 %vm638_vm2, %v16428_v41 }
 0x153   : > { %14041 = vmatprep.mubr.msk.f32.mxu1 %vm347_vm0, %v16254_v16 }
 0x154   : > { %14189 = vmatmul.mubr.msk.f32.gmra.mxu0 %vm347_vm0, %v16262_v18 }
 0x155   : > { %14191 = vmatprep.mubr.msk.f32.mxu0 %vm347_vm0, %v16266_v20 }
 0x156   : > { %14042 = vmatmul.mubr.msk.f32.gmra.mxu1 %vm347_vm0, %v16262_v18 }
 0x157   : > { %14044 = vmatprep.mubr.msk.f32.mxu1 %vm347_vm0, %v16266_v20 }
 0x158   : > { %14192 = vmatmul.mubr.msk.f32.gmra.mxu0 %vm347_vm0, %v16274_v22 }
 0x159   : > { %14194 = vmatprep.mubr.msk.f32.mxu0 %vm347_vm0, %v16278_v24 }
 0x15a   : > { %14045 = vmatmul.mubr.msk.f32.gmra.mxu1 %vm347_vm0, %v16274_v22  ;;  %v16484_v15 = vpop.f32.mrf.mxu0 }
 0x15b   : > { %14047 = vmatprep.mubr.msk.f32.mxu1 %vm347_vm0, %v16278_v24 }
 0x15c   : > { %14195 = vmatmul.mubr.msk.f32.gmra.mxu0 %vm347_vm0, %v16286_v26  ;;  %v16494_v12 = vpop.f32.mrf.mxu0 }
 0x15d   : > { %14197 = vmatprep.mubr.msk.f32.mxu0 %vm347_vm0, %v16290_v28 }
 0x15e   : > { %14048 = vmatmul.mubr.msk.f32.gmra.mxu1 %vm347_vm0, %v16286_v26 }
 0x15f   : > { %14050 = vmatprep.mubr.msk.f32.mxu1 %vm347_vm0, %v16290_v28  ;;  %v2776_v28 = vld [vmem:[#allocation2 + $0x227] sm:$0xff] }
 0x160   : > { %14198 = vmatmul.mubr.msk.f32.gmra.mxu0 %vm347_vm0, %v16298_v30 }
 0x161   : > { %14200 = vmatprep.mubr.msk.f32.mxu0 %vm347_vm0, %v16302_v32 }
 0x162   : > { %14051 = vmatmul.mubr.msk.f32.gmra.mxu1 %vm347_vm0, %v16298_v30  ;;  %v16500_v45 = vpop.f32.mrf.mxu0 }
 0x163   : > { %14053 = vmatprep.mubr.msk.f32.mxu1 %vm347_vm0, %v16302_v32  ;;  %v2777_v32 = vld [vmem:[#allocation2 + $0x22f] sm:$0xff] }
 0x164   : > { %14201 = vmatmul.mubr.msk.f32.gmra.mxu0 %vm347_vm0, %v16310_v34  ;;  %v16510_v14 = vpop.f32.mrf.mxu0 }
 0x165   : > { %14203 = vmatprep.mubr.msk.f32.mxu0 %vm347_vm0, %v16314_v36 }
 0x166   : > { %14054 = vmatmul.mubr.msk.f32.gmra.mxu1 %vm347_vm0, %v16310_v34  ;;  %v2778_v34 = vld [vmem:[#allocation2 + $0x247] sm:$0xff] }
 0x167   : > { %14056 = vmatprep.mubr.msk.f32.mxu1 %vm347_vm0, %v16314_v36 }
 0x168   : > { %14204 = vmatmul.mubr.msk.f32.gmra.mxu0 %vm347_vm0, %v16322_v39 }
 0x169   : > { %14206 = vmatprep.mubr.msk.f32.mxu0 %vm347_vm0, %v16326_v42 }
 0x16a   : > { %14057 = vmatmul.mubr.msk.f32.gmra.mxu1 %vm347_vm0, %v16322_v39  ;;  %v16516_v16 = vpop.f32.mrf.mxu0  ;;  %v2779_v39 = vld [vmem:[#allocation2 + $0x24f] sm:$0xff] }
 0x16b   : > { %14059 = vmatprep.mubr.msk.f32.mxu1 %vm347_vm0, %v16326_v42 }
 0x16c   : > { %14207 = vmatmul.mubr.msk.f32.gmra.mxu0 %vm347_vm0, %v16334_v44  ;;  %v16526_v18 = vpop.f32.mrf.mxu0 }
 0x16d   : > { %14209 = vmatprep.mubr.msk.f32.mxu0 %vm347_vm0, %v16338_v46 }
 0x16e   : > { %14060 = vmatmul.mubr.msk.f32.gmra.mxu1 %vm347_vm0, %v16334_v44 }
 0x16f   : > { %14062 = vmatprep.mubr.msk.f32.mxu1 %vm347_vm0, %v16338_v46  ;;  %v16589_v46 = vld [vmem:[%s21346_s3 + $0x4] sm:$0xf] }
 0x170   : > { %14210 = vmatmul.mubr.msk.f32.gmra.mxu0 %vm347_vm0, %v16346_v48 }
 0x171   : > { %14212 = vmatprep.mubr.msk.f32.mxu0 %vm347_vm0, %v16350_v51 }
 0x172   : > { %14063 = vmatmul.mubr.msk.f32.gmra.mxu1 %vm347_vm0, %v16346_v48  ;;  %v16532_v20 = vpop.f32.mrf.mxu0 }
 0x173   : > { %14065 = vmatprep.mubr.msk.f32.mxu1 %vm347_vm0, %v16350_v51 }
 0x174   : > { %14213 = vmatmul.mubr.msk.f32.gmra.mxu0 %vm347_vm0, %v16358_v55  ;;  %v16542_v22 = vpop.f32.mrf.mxu0 }
 0x175   : > { %14215 = vmatprep.mubr.msk.f32.mxu0 %vm347_vm0, %v16362_v59 }
 0x176   : > { %14066 = vmatmul.mubr.msk.f32.gmra.mxu1 %vm347_vm0, %v16358_v55 }
 0x177   : > { %14068 = vmatprep.mubr.msk.f32.mxu1 %vm347_vm0, %v16362_v59 }
 0x178   : > { %14216 = vmatmul.mubr.msk.f32.gmra.mxu0 %vm347_vm0, %v16370_v63 }
 0x179   : > { %14218 = vmatprep.mubr.msk.f32.mxu0 %vm347_vm0, %v16374_v38 }
 0x17a   : > { %14069 = vmatmul.mubr.msk.f32.gmra.mxu1 %vm347_vm0, %v16370_v63  ;;  %v16548_v24 = vpop.f32.mrf.mxu0 }
 0x17b   : > { %14071 = vmatprep.mubr.msk.f32.mxu1 %vm347_vm0, %v16374_v38  ;;  %21515 = vst [vmem:[#allocation39_spill] sm:$0xff] %v16548_v24  ;;  %v17182_v24 = vld [vmem:[#allocation2 + $0x1ee] sm:$0xff] }
 0x17c   : > { %14219 = vmatmul.mubr.msk.f32.gmra.mxu0 %vm347_vm0, %v16382_v29  ;;  %v16558_v26 = vpop.f32.mrf.mxu0 }
 0x17d   : > { %14221 = vmatprep.mubr.msk.f32.mxu0 %vm347_vm0, %v16386_v23  ;;  %21516 = vst [vmem:[#allocation40_spill] sm:$0xff] %v16558_v26 }
 0x17e   : > { %14072 = vmatmul.mubr.msk.f32.gmra.mxu1 %vm347_vm0, %v16382_v29 }
 0x17f   : > { %14074 = vmatprep.mubr.msk.f32.mxu1 %vm347_vm0, %v16386_v23 }
 0x180   : > { %14222 = vmatmul.mubr.msk.f32.gmra.mxu0 %vm347_vm0, %v16394_v3 }
 0x181   : > { %14224 = vmatprep.mubr.msk.f32.mxu0 %vm347_vm0, %v16398_v17 }
 0x182   : > { %14075 = vmatmul.mubr.msk.f32.gmra.mxu1 %vm347_vm0, %v16394_v3  ;;  %v16564_v30 = vpop.f32.mrf.mxu0 }
 0x183   : > { %14077 = vmatprep.mubr.msk.f32.mxu1 %vm347_vm0, %v16398_v17  ;;  %21517 = vst [vmem:[#allocation41_spill] sm:$0xff] %v16564_v30 }
 0x184   : > { %14225 = vmatmul.mubr.msk.f32.gmra.mxu0 %vm347_vm0, %v16404_v8  ;;  %v16572_v36 = vpop.f32.mrf.mxu0 }
 0x185   : > { %14227 = vmatprep.mubr.msk.f32.mxu0 %vm347_vm0, %v2776_v28  ;;  %21518 = vst [vmem:[#allocation42_spill] sm:$0xff] %v16572_v36 }
 0x186   : > { %14078 = vmatmul.mubr.msk.f32.gmra.mxu1 %vm347_vm0, %v16404_v8 }
 0x187   : > { %14080 = vmatprep.mubr.msk.f32.mxu1 %vm347_vm0, %v2776_v28  ;;  %v21552_v28 = vld [vmem:[#allocation37_spill] sm:$0xff] }
 0x188   : > { %14228 = vmatmul.mubr.msk.f32.gmra.mxu0 %vm347_vm0, %v2777_v32 }
 0x189   : > { %14230 = vmatprep.mubr.msk.f32.mxu0 %vm347_vm0, %v2778_v34 }
 0x18a   : > { %v16576_v42 = vpop.f32.mrf.mxu0  ;;  %14081 = vmatmul.mubr.msk.f32.gmra.mxu1 %vm347_vm0, %v2777_v32 }
 0x18b   : > { %21519 = vst [vmem:[#allocation43_spill] sm:$0xff] %v16576_v42  ;;  %14135 = vmatprep.mubr.msk.f32.mxu1 %vm347_vm0, %v15950_v43  ;;  %v16602_v43 = vld [vmem:[%s21346_s3 + $0xc] sm:$0xf] }
 0x18c   : > { %14231 = vmatmul.mubr.msk.f32.gmra.mxu0 %vm347_vm0, %v2779_v39  ;;  %v16582_v44 = vpop.f32.mrf.mxu0 }
 0x18d   : > { %21520 = vst [vmem:[#allocation44_spill] sm:$0xff] %v16582_v44  ;;  %14285 = vmatprep.mubr.msk.f32.mxu0 %vm347_vm0, %v15980_v49 }
 0x18e   : > { %v16591_v48 = vpop.f32.mrf.mxu0  ;;  %14136 = vmatmul.mubr.msk.f32.vlgmr.msra.gmra.mxu1 %vm347_vm0, %v15967_v47 }
 0x18f   : > { %14234 = vmatpush3.msk.msra.mxu1 %vm638_vm2, %v16417_v10  ;;  %14138 = vmatprep.mubr.msk.f32.mxu1 %vm347_vm0, %v15980_v49 }
 0x190   : > { %14286 = vmatmul.mubr.msk.f32.vlgmr.msra.gmra.mxu0 %vm347_vm0, %v15992_v52  ;;  %v16606_v51 = vpop.f32.mrf.mxu0  ;;  %14333 = vmatprep.subr.msk.mxu1 %vm638_vm2, %v16589_v46 }
 0x191   : > { %14288 = vmatprep.mubr.msk.f32.mxu0 %vm347_vm0, %v16000_v53  ;;  %14384 = vmatpush3.msk.msra.mxu0 %vm638_vm2, %v16428_v41 }
 0x192   : > { %v16614_v47 = vpop.f32.mrf.mxu0  ;;  %14139 = vmatmul.mubr.msk.f32.gmra.mxu1 %vm347_vm0, %v15992_v52  ;;  %14483 = vmatprep.subr.msk.mxu0 %vm638_vm2, %v16602_v43 }
 0x193   : > { %14141 = vmatprep.mubr.msk.f32.mxu1 %vm347_vm0, %v16000_v53 }
 0x194   : > { %14289 = vmatmul.mubr.msk.f32.gmra.mxu0 %vm347_vm0, %v16008_v56  ;;  %v16624_v49 = vpop.f32.mrf.mxu0 }
 0x195   : > { %14291 = vmatprep.mubr.msk.f32.mxu0 %vm347_vm0, %v16016_v57 }
 0x196   : > { %v16628_v55 = vpop.f32.mrf.mxu0  ;;  %14142 = vmatmul.mubr.msk.f32.gmra.mxu1 %vm347_vm0, %v16008_v56 }
 0x197   : > { %14144 = vmatprep.mubr.msk.f32.mxu1 %vm347_vm0, %v16016_v57 }
 0x198   : > { %14292 = vmatmul.mubr.msk.f32.gmra.mxu0 %vm347_vm0, %v16024_v60  ;;  %v16636_v52 = vpop.f32.mrf.mxu0 }
 0x199   : > { %14294 = vmatprep.mubr.msk.f32.mxu0 %vm347_vm0, %v16032_v61 }
 0x19a   : > { %v16640_v53 = vpop.f32.mrf.mxu0  ;;  %14145 = vmatmul.mubr.msk.f32.gmra.mxu1 %vm347_vm0, %v16024_v60  ;;  %v16658_v60 = vpop.f32.mrf.mxu1 }
 0x19b   : > { %14147 = vmatprep.mubr.msk.f32.mxu1 %vm347_vm0, %v16032_v61  ;;  %21522 = vst [vmem:[#allocation46_spill] sm:$0xff] %v16658_v60  ;;  %v16914_v60 = vld [vmem:[#allocation2 + $0x6e] sm:$0xff] }
 0x19c   : > { %14295 = vmatmul.mubr.msk.f32.gmra.mxu0 %vm347_vm0, %v16040_v1  ;;  %v16648_v56 = vpop.f32.mrf.mxu0 }
 0x19d   : > { %14297 = vmatprep.mubr.msk.f32.mxu0 %vm347_vm0, %v16048_v2 }
 0x19e   : > { %v16652_v57 = vpop.f32.mrf.mxu0  ;;  %14148 = vmatmul.mubr.msk.f32.gmra.mxu1 %vm347_vm0, %v16040_v1  ;;  %v16672_v1 = vpop.f32.mrf.mxu1 }
 0x19f   : > { %21521 = vst [vmem:[#allocation45_spill] sm:$0xff] %v16652_v57  ;;  %14150 = vmatprep.mubr.msk.f32.mxu1 %vm347_vm0, %v16048_v2  ;;  %21525 = vst [vmem:[#allocation49_spill] sm:$0xff] %v16672_v1 }
 0x1a0   : > { %14298 = vmatmul.mubr.msk.f32.gmra.mxu0 %vm347_vm0, %v16056_v5  ;;  %v16662_v61 = vpop.f32.mrf.mxu0  ;;  %v16680_v63 = vpop.f32.mrf.mxu1 }
 0x1a1   : > { %21523 = vst [vmem:[#allocation47_spill] sm:$0xff] %v16662_v61  ;;  %14300 = vmatprep.mubr.msk.f32.mxu0 %vm347_vm0, %v16064_v6  ;;  %21527 = vst [vmem:[#allocation51_spill] sm:$0xff] %v16680_v63  ;;  %v16902_v63 = vld [vmem:[#allocation2 + $0xd0] sm:$0xff] }
 0x1a2   : > { %v16666_v59 = vpop.f32.mrf.mxu0  ;;  %14151 = vmatmul.mubr.msk.f32.gmra.mxu1 %vm347_vm0, %v16056_v5  ;;  %21562 = vst [vmem:[#allocation80_spill] sm:$0xff] %v16902_v63 }
 0x1a3   : > { %21524 = vst [vmem:[#allocation48_spill] sm:$0xff] %v16666_v59  ;;  %14153 = vmatprep.mubr.msk.f32.mxu1 %vm347_vm0, %v16064_v6  ;;  %v16694_v6 = vpop.f32.mrf.mxu1  ;;  %v16946_v59 = vld [vmem:[#allocation2 + $0xa6] sm:$0xff] }
 0x1a4   : > { %14301 = vmatmul.mubr.msk.f32.gmra.mxu0 %vm347_vm0, %v16072_v37  ;;  %v16676_v2 = vpop.f32.mrf.mxu0  ;;  %21530 = vst [vmem:[#allocation54_spill] sm:$0xff] %v16694_v6 }
 0x1a5   : > { %21526 = vst [vmem:[#allocation50_spill] sm:$0xff] %v16676_v2  ;;  %14303 = vmatprep.mubr.msk.f32.mxu0 %vm347_vm0, %v16080_v40 }
 0x1a6   : > { %v16682_v38 = vpop.f32.mrf.mxu0  ;;  %14154 = vmatmul.mubr.msk.f32.gmra.mxu1 %vm347_vm0, %v16072_v37  ;;  %v16702_v37 = vpop.f32.mrf.mxu1 }
 0x1a7   : > { %21528 = vst [vmem:[#allocation52_spill] sm:$0xff] %v16682_v38  ;;  %14156 = vmatprep.mubr.msk.f32.mxu1 %vm347_vm0, %v16080_v40  ;;  %21532 = vst [vmem:[#allocation56_spill] sm:$0xff] %v16702_v37  ;;  %v16886_v37 = vld [vmem:[#allocation2 + $0xc8] sm:$0xff] }
 0x1a8   : > { %14304 = vmatmul.mubr.msk.f32.gmra.mxu0 %vm347_vm0, %v16088_v35  ;;  %v16690_v5 = vpop.f32.mrf.mxu0  ;;  %21561 = vst [vmem:[#allocation79_spill] sm:$0xff] %v16886_v37  ;;  %v16922_v38 = vld [vmem:[#allocation2 + $0x86] sm:$0xff] }
 0x1a9   : > { %21529 = vst [vmem:[#allocation53_spill] sm:$0xff] %v16690_v5  ;;  %14306 = vmatprep.mubr.msk.f32.mxu0 %vm347_vm0, %v16096_v33 }
 0x1aa   : > { %v16696_v29 = vpop.f32.mrf.mxu0  ;;  %14157 = vmatmul.mubr.msk.f32.gmra.mxu1 %vm347_vm0, %v16088_v35  ;;  %v16716_v35 = vpop.f32.mrf.mxu1 }
 0x1ab   : > { %21531 = vst [vmem:[#allocation55_spill] sm:$0xff] %v16696_v29  ;;  %14159 = vmatprep.mubr.msk.f32.mxu1 %vm347_vm0, %v16096_v33  ;;  %21535 = vst [vmem:[#allocation59_spill] sm:$0xff] %v16716_v35  ;;  %v16910_v29 = vld [vmem:[#allocation2 + $0xe8] sm:$0xff] }
 0x1ac   : > { %14307 = vmatmul.mubr.msk.f32.gmra.mxu0 %vm347_vm0, %v16104_v27  ;;  %v16706_v40 = vpop.f32.mrf.mxu0  ;;  %v16724_v3 = vpop.f32.mrf.mxu1  ;;  %21563 = vst [vmem:[#allocation81_spill] sm:$0xff] %v16910_v29 }
 0x1ad   : > { %21533 = vst [vmem:[#allocation57_spill] sm:$0xff] %v16706_v40  ;;  %14309 = vmatprep.mubr.msk.f32.mxu0 %vm347_vm0, %v16112_v25  ;;  %21537 = vst [vmem:[#allocation61_spill] sm:$0xff] %v16724_v3  ;;  %v16874_v3 = vld [vmem:[#allocation2 + $0x46] sm:$0xff] }
 0x1ae   : > { %v16710_v23 = vpop.f32.mrf.mxu0  ;;  %14160 = vmatmul.mubr.msk.f32.gmra.mxu1 %vm347_vm0, %v16104_v27  ;;  %v16738_v27 = vpop.f32.mrf.mxu1 }
 0x1af   : > { %21534 = vst [vmem:[#allocation58_spill] sm:$0xff] %v16710_v23  ;;  %14162 = vmatprep.mubr.msk.f32.mxu1 %vm347_vm0, %v16112_v25  ;;  %21540 = vst [vmem:[#allocation64_spill] sm:$0xff] %v16738_v27  ;;  %v16898_v23 = vld [vmem:[#allocation2 + $0x66] sm:$0xff] }
 0x1b0   : > { %14310 = vmatmul.mubr.msk.f32.gmra.mxu0 %vm347_vm0, %v16120_v7  ;;  %v16720_v33 = vpop.f32.mrf.mxu0 }
 0x1b1   : > { %21536 = vst [vmem:[#allocation60_spill] sm:$0xff] %v16720_v33  ;;  %14312 = vmatprep.mubr.msk.f32.mxu0 %vm347_vm0, %v16128_v31 }
 0x1b2   : > { %v16726_v17 = vpop.f32.mrf.mxu0  ;;  %14163 = vmatmul.mubr.msk.f32.gmra.mxu1 %vm347_vm0, %v16120_v7  ;;  %v16746_v7 = vpop.f32.mrf.mxu1 }
 0x1b3   : > { %21538 = vst [vmem:[#allocation62_spill] sm:$0xff] %v16726_v17  ;;  %14165 = vmatprep.mubr.msk.f32.mxu1 %vm347_vm0, %v16128_v31  ;;  %21542 = vst [vmem:[#allocation66_spill] sm:$0xff] %v16746_v7 }
 0x1b4   : > { %14313 = vmatmul.mubr.msk.f32.gmra.mxu0 %vm347_vm0, %v16136_v19  ;;  %v16734_v25 = vpop.f32.mrf.mxu0 }
 0x1b5   : > { %21539 = vst [vmem:[#allocation63_spill] sm:$0xff] %v16734_v25  ;;  %14315 = vmatprep.mubr.msk.f32.mxu0 %vm347_vm0, %v16144_v0  ;;  %v16878_v25 = vld [vmem:[#allocation2 + $0xb0] sm:$0xff] }
 0x1b6   : > { %v16740_v4 = vpop.f32.mrf.mxu0  ;;  %14166 = vmatmul.mubr.msk.f32.gmra.mxu1 %vm347_vm0, %v16136_v19  ;;  %v16760_v19 = vpop.f32.mrf.mxu1  ;;  %21560 = vst [vmem:[#allocation78_spill] sm:$0xff] %v16878_v25 }
 0x1b7   : > { %21541 = vst [vmem:[#allocation65_spill] sm:$0xff] %v16740_v4  ;;  %14168 = vmatprep.mubr.msk.f32.mxu1 %vm347_vm0, %v16144_v0  ;;  %21545 = vst [vmem:[#allocation69_spill] sm:$0xff] %v16760_v19  ;;  %v4276_v19 = vld [vmem:[#allocation2 + $0x26] sm:$0xff] }
 0x1b8   : > { %14316 = vmatmul.mubr.msk.f32.gmra.mxu0 %vm347_vm0, %v16152_v58  ;;  %v16750_v31 = vpop.f32.mrf.mxu0 }
 0x1b9   : > { %21543 = vst [vmem:[#allocation67_spill] sm:$0xff] %v16750_v31  ;;  %14318 = vmatprep.mubr.msk.f32.mxu0 %vm347_vm0, %v16160_v21  ;;  %v16852_v31 = vld [vmem:[#allocation2 + $0x90] sm:$0xff] }
 0x1ba   : > { %v16754_v8 = vpop.f32.mrf.mxu0  ;;  %14169 = vmatmul.mubr.msk.f32.gmra.mxu1 %vm347_vm0, %v16152_v58  ;;  %v16768_v10 = vpop.f32.mrf.mxu1  ;;  %21558 = vst [vmem:[#allocation76_spill] sm:$0xff] %v16852_v31 }
 0x1bb   : > { %21544 = vst [vmem:[#allocation68_spill] sm:$0xff] %v16754_v8  ;;  %14171 = vmatprep.mubr.msk.f32.mxu1 %vm347_vm0, %v16160_v21  ;;  %21548 = vst [vmem:[#allocation34_spill] sm:$0xff] %v16768_v10  ;;  %v21550_v21 = vld [vmem:[#allocation35_spill] sm:$0xff]  ;;  %v4275_v10 = vld [vmem:[#allocation2 + $0xe] sm:$0xff] }
 0x1bc   : > { %14319 = vmatmul.mubr.msk.f32.gmra.mxu0 %vm347_vm0, %v16168_v13  ;;  %v16764_v0 = vpop.f32.mrf.mxu0  ;;  %v16782_v32 = vpop.f32.mrf.mxu1 }
 0x1bd   : > { %21546 = vst [vmem:[#allocation70_spill] sm:$0xff] %v16764_v0  ;;  %14321 = vmatprep.mubr.msk.f32.mxu0 %vm347_vm0, %v21547_v54  ;;  %21553 = vst [vmem:[#allocation37_spill] sm:$0xff] %v16782_v32 }
 0x1be   : > { %v16770_v41 = vpop.f32.mrf.mxu0  ;;  %14172 = vmatmul.mubr.msk.f32.gmra.mxu1 %vm347_vm0, %v16168_v13 }
 0x1bf   : > { %21549 = vst [vmem:[#allocation71_spill] sm:$0xff] %v16770_v41  ;;  %14174 = vmatprep.mubr.msk.f32.mxu1 %vm347_vm0, %v21547_v54  ;;  %v3554_v54 = vld [vmem:[#allocation2 + $0x229] sm:$0xff] }
 0x1c0   : > { %14322 = vmatmul.mubr.msk.f32.gmra.mxu0 %vm347_vm0, %v21550_v21  ;;  %v16778_v58 = vpop.f32.mrf.mxu0 }
 0x1c1   : > { %21551 = vst [vmem:[#allocation35_spill] sm:$0xff] %v16778_v58  ;;  %14324 = vmatprep.mubr.msk.f32.mxu0 %vm347_vm0, %v21552_v28 }
 0x1c2   : > { %v16784_v34 = vpop.f32.mrf.mxu0  ;;  %14175 = vmatmul.mubr.msk.f32.gmra.mxu1 %vm347_vm0, %v21550_v21  ;;  %v16790_v13 = vpop.f32.mrf.mxu1  ;;  %v3555_v21 = vld [vmem:[#allocation2 + $0x231] sm:$0xff] }
 0x1c3   : > { %21554 = vst [vmem:[#allocation72_spill] sm:$0xff] %v16784_v34  ;;  %14177 = vmatprep.mubr.msk.f32.mxu1 %vm347_vm0, %v21552_v28  ;;  %21555 = vst [vmem:[#allocation73_spill] sm:$0xff] %v16790_v13  ;;  %v3556_v34 = vld [vmem:[#allocation2 + $0x249] sm:$0xff] }
 0x1c4   : > { %14325 = vmatmul.mubr.msk.f32.gmra.mxu0 %vm347_vm0, %v16196_v9  ;;  %v16794_v39 = vpop.f32.mrf.mxu0  ;;  %v16802_v28 = vpop.f32.mrf.mxu1 }
 0x1c5   : > { %21556 = vst [vmem:[#allocation74_spill] sm:$0xff] %v16794_v39  ;;  %14327 = vmatprep.mubr.msk.f32.mxu0 %vm347_vm0, %v3554_v54  ;;  %v3557_v39 = vld [vmem:[#allocation2 + $0x251] sm:$0xff] }
 0x1c6   : > { %v16797_v50 = vpop.f32.mrf.mxu0  ;;  %14178 = vmatmul.mubr.msk.f32.gmra.mxu1 %vm347_vm0, %v16196_v9  ;;  %v4274_v9 = vld [vmem:[#allocation2 + $0x6] sm:$0xff] }
 0x1c7   : > { %21557 = vst [vmem:[#allocation75_spill] sm:$0xff] %v16797_v50  ;;  %14180 = vmatprep.mubr.msk.f32.mxu1 %vm347_vm0, %v3554_v54  ;;  %v16811_v50 = vld [vmem:[#allocation2 + $0x68] sm:$0xff] }
 0x1c8   : > { %14328 = vmatmul.mubr.msk.f32.gmra.mxu0 %vm347_vm0, %v3555_v21  ;;  %v16805_v13 = vpop.f32.mrf.mxu0 }
 0x1c9   : > { %14330 = vmatprep.mubr.msk.f32.mxu0 %vm347_vm0, %v3556_v34  ;;  %v16822_v34 = vld [vmem:[#allocation2 + $0x70] sm:$0xff] }
 0x1ca   : > { %v16808_v58 = vpop.f32.mrf.mxu1  ;;  %14181 = vmatmul.mubr.msk.f32.gmra.mxu1 %vm347_vm0, %v3555_v21  ;;  %v16828_v21 = vld [vmem:[%s21346_s3 + $0x8] sm:$0xf] }
 0x1cb   : > { %14235 = vmatprep.mubr.msk.f32.mxu1 %vm347_vm0, %v16811_v50 }
 0x1cc   : > { %v16813_v32 = vpop.f32.mrf.mxu0  ;;  %14331 = vmatmul.mubr.msk.f32.gmra.mxu0 %vm347_vm0, %v3557_v39  ;;  %v16818_v54 = vpop.f32.mrf.mxu1  ;;  %v16834_v39 = vld [vmem:[#allocation2 + $0x88] sm:$0xff] }
 0x1cd   : > { %14385 = vmatprep.mubr.msk.f32.mxu0 %vm347_vm0, %v4274_v9  ;;  %v16843_v9 = vld [vmem:[%s21346_s3 + $0x14] sm:$0xf] }
 0x1ce   : > { %v16820_v41 = vpop.f32.mrf.mxu0  ;;  %v16830_v0 = vpop.f32.mrf.mxu1  ;;  %14236 = vmatmul.mubr.msk.f32.vlgmr.msra.gmra.mxu1 %vm347_vm0, %v16822_v34 }
 0x1cf   : > { %14334 = vmatpush3.msk.msra.mxu1 %vm638_vm2, %v16589_v46  ;;  %14238 = vmatprep.mubr.msk.f32.mxu1 %vm347_vm0, %v16834_v39  ;;  %v4277_v46 = vld [vmem:[#allocation2 + $0x2e] sm:$0xff] }
 0x1d0   : > { %v16845_v8 = vpop.f32.mrf.mxu0  ;;  %14386 = vmatmul.mubr.msk.f32.vlgmr.msra.gmra.mxu0 %vm347_vm0, %v4275_v10  ;;  %v16848_v7 = vpop.f32.mrf.mxu1  ;;  %14433 = vmatprep.subr.msk.mxu1 %vm638_vm2, %v16828_v21  ;;  %v16863_v10 = vld [vmem:[#allocation2 + $0xa8] sm:$0xff] }
 0x1d1   : > { %14388 = vmatprep.mubr.msk.f32.mxu0 %vm347_vm0, %v4276_v19  ;;  %14484 = vmatpush3.msk.msra.mxu0 %vm638_vm2, %v16602_v43  ;;  %21559 = vst [vmem:[#allocation77_spill] sm:$0xff] %v16863_v10 }
 0x1d2   : > { %v16857_v27 = vpop.f32.mrf.mxu0  ;;  %v16859_v4 = vpop.f32.mrf.mxu1  ;;  %14239 = vmatmul.mubr.msk.f32.gmra.mxu1 %vm347_vm0, %v16852_v31  ;;  %14583 = vmatprep.subr.msk.mxu0 %vm638_vm2, %v16843_v9 }
 0x1d3   : > { %14241 = vmatprep.mubr.msk.f32.mxu1 %vm347_vm0, %v16863_v10 }
 0x1d4   : > { %v16869_v19 = vpop.f32.mrf.mxu0  ;;  %14389 = vmatmul.mubr.msk.f32.gmra.mxu0 %vm347_vm0, %v4277_v46  ;;  %v16872_v43 = vpop.f32.mrf.mxu1  ;;  %v16890_v46 = vld [vmem:[#allocation2 + $0x4e] sm:$0xff] }
 0x1d5   : > { %14391 = vmatprep.mubr.msk.f32.mxu0 %vm347_vm0, %v16874_v3 }
 0x1d6   : > { %v16880_v35 = vpop.f32.mrf.mxu0  ;;  %v16882_v17 = vpop.f32.mrf.mxu1  ;;  %14242 = vmatmul.mubr.msk.f32.gmra.mxu1 %vm347_vm0, %v16878_v25 }
 0x1d7   : > { %14244 = vmatprep.mubr.msk.f32.mxu1 %vm347_vm0, %v16886_v37  ;;  %v16938_v37 = vld [vmem:[#allocation2 + $0x8e] sm:$0xff] }
 0x1d8   : > { %v16892_v33 = vpop.f32.mrf.mxu0  ;;  %14392 = vmatmul.mubr.msk.f32.gmra.mxu0 %vm347_vm0, %v16890_v46  ;;  %v16896_v6 = vpop.f32.mrf.mxu1 }
 0x1d9   : > { %14394 = vmatprep.mubr.msk.f32.mxu0 %vm347_vm0, %v16898_v23 }
 0x1da   : > { %v16904_v40 = vpop.f32.mrf.mxu0  ;;  %v16906_v1 = vpop.f32.mrf.mxu1  ;;  %14245 = vmatmul.mubr.msk.f32.gmra.mxu1 %vm347_vm0, %v16902_v63  ;;  %v16926_v63 = vld [vmem:[#allocation2 + $0xf0] sm:$0xff] }
 0x1db   : > { %14247 = vmatprep.mubr.msk.f32.mxu1 %vm347_vm0, %v16910_v29  ;;  %21565 = vst [vmem:[#allocation83_spill] sm:$0xff] %v16926_v63  ;;  %v16934_v29 = vld [vmem:[#allocation2 + $0x108] sm:$0xff] }
 0x1dc   : > { %v16916_v5 = vpop.f32.mrf.mxu0  ;;  %14395 = vmatmul.mubr.msk.f32.gmra.mxu0 %vm347_vm0, %v16914_v60  ;;  %v16920_v44 = vpop.f32.mrf.mxu1  ;;  %21567 = vst [vmem:[#allocation85_spill] sm:$0xff] %v16934_v29 }
 0x1dd   : > { %21564 = vst [vmem:[#allocation82_spill] sm:$0xff] %v16916_v5  ;;  %14397 = vmatprep.mubr.msk.f32.mxu0 %vm347_vm0, %v16922_v38 }
 0x1de   : > { %v16928_v42 = vpop.f32.mrf.mxu0  ;;  %v16930_v2 = vpop.f32.mrf.mxu1  ;;  %14248 = vmatmul.mubr.msk.f32.gmra.mxu1 %vm347_vm0, %v16926_v63  ;;  %v16950_v63 = vld [vmem:[#allocation2 + $0x110] sm:$0xff] }
 0x1df   : > { %21566 = vst [vmem:[#allocation84_spill] sm:$0xff] %v16928_v42  ;;  %14250 = vmatprep.mubr.msk.f32.mxu1 %vm347_vm0, %v16934_v29  ;;  %21569 = vst [vmem:[#allocation87_spill] sm:$0xff] %v16950_v63  ;;  %v16958_v29 = vld [vmem:[#allocation2 + $0x128] sm:$0xff] }
 0x1e0   : > { %v16940_v36 = vpop.f32.mrf.mxu0  ;;  %14398 = vmatmul.mubr.msk.f32.gmra.mxu0 %vm347_vm0, %v16938_v37  ;;  %v16944_v25 = vpop.f32.mrf.mxu1  ;;  %21572 = vst [vmem:[#allocation90_spill] sm:$0xff] %v16958_v29 }
 0x1e1   : > { %21568 = vst [vmem:[#allocation86_spill] sm:$0xff] %v16940_v36  ;;  %14400 = vmatprep.mubr.msk.f32.mxu0 %vm347_vm0, %v16946_v59  ;;  %v16962_v36 = vld [vmem:[#allocation2 + $0xae] sm:$0xff] }
 0x1e2   : > { %v16952_v30 = vpop.f32.mrf.mxu0  ;;  %v16954_v42 = vpop.f32.mrf.mxu1  ;;  %14251 = vmatmul.mubr.msk.f32.gmra.mxu1 %vm347_vm0, %v16950_v63  ;;  %v16974_v63 = vld [vmem:[#allocation2 + $0x130] sm:$0xff] }
 0x1e3   : > { %21570 = vst [vmem:[#allocation88_spill] sm:$0xff] %v16952_v30  ;;  %21571 = vst [vmem:[#allocation89_spill] sm:$0xff] %v16954_v42  ;;  %14253 = vmatprep.mubr.msk.f32.mxu1 %vm347_vm0, %v16958_v29  ;;  %v16970_v30 = vld [vmem:[#allocation2 + $0xc6] sm:$0xff] }
 0x1e4   : > { %v16964_v61 = vpop.f32.mrf.mxu0  ;;  %14401 = vmatmul.mubr.msk.f32.gmra.mxu0 %vm347_vm0, %v16962_v36  ;;  %v16968_v10 = vpop.f32.mrf.mxu1  ;;  %21575 = vst [vmem:[#allocation93_spill] sm:$0xff] %v16970_v30  ;;  %21576 = vst [vmem:[#allocation94_spill] sm:$0xff] %v16974_v63  ;;  %v16982_v29 = vld [vmem:[#allocation2 + $0x148] sm:$0xff] }
 0x1e5   : > { %21573 = vst [vmem:[#allocation91_spill] sm:$0xff] %v16964_v61  ;;  %21574 = vst [vmem:[#allocation92_spill] sm:$0xff] %v16968_v10  ;;  %14403 = vmatprep.mubr.msk.f32.mxu0 %vm347_vm0, %v16970_v30  ;;  %v16986_v61 = vld [vmem:[#allocation2 + $0xce] sm:$0xff]  ;;  %v17169_v42 = vld [vmem:[#allocation2 + $0x1e6] sm:$0xff] }
 0x1e6   : > { %v16976_v26 = vpop.f32.mrf.mxu0  ;;  %v16978_v31 = vpop.f32.mrf.mxu1  ;;  %14254 = vmatmul.mubr.msk.f32.gmra.mxu1 %vm347_vm0, %v16974_v63  ;;  %21579 = vst [vmem:[#allocation97_spill] sm:$0xff] %v16982_v29  ;;  %21580 = vst [vmem:[#allocation98_spill] sm:$0xff] %v16986_v61  ;;  %v16998_v63 = vld [vmem:[#allocation2 + $0x150] sm:$0xff]  ;;  %v3167_v30 = vld [vmem:[#allocation2 + $0x248] sm:$0xff] }
 0x1e7   : > { %21577 = vst [vmem:[#allocation95_spill] sm:$0xff] %v16976_v26  ;;  %21578 = vst [vmem:[#allocation96_spill] sm:$0xff] %v16978_v31  ;;  %14256 = vmatprep.mubr.msk.f32.mxu1 %vm347_vm0, %v16982_v29  ;;  %v16994_v26 = vld [vmem:[#allocation2 + $0xe6] sm:$0xff] }
 0x1e8   : > { %v16988_v10 = vpop.f32.mrf.mxu0  ;;  %14404 = vmatmul.mubr.msk.f32.gmra.mxu0 %vm347_vm0, %v16986_v61  ;;  %v16992_v5 = vpop.f32.mrf.mxu1  ;;  %21583 = vst [vmem:[#allocation101_spill] sm:$0xff] %v16994_v26  ;;  %21584 = vst [vmem:[#allocation102_spill] sm:$0xff] %v16998_v63  ;;  %v17006_v29 = vld [vmem:[#allocation2 + $0x168] sm:$0xff] }
 0x1e9   : > { %21581 = vst [vmem:[#allocation99_spill] sm:$0xff] %v16988_v10  ;;  %21582 = vst [vmem:[#allocation100_spill] sm:$0xff] %v16992_v5  ;;  %14406 = vmatprep.mubr.msk.f32.mxu0 %vm347_vm0, %v16994_v26  ;;  %v17010_v10 = vld [vmem:[#allocation2 + $0xee] sm:$0xff] }
 0x1ea   : > { %v17000_v31 = vpop.f32.mrf.mxu0  ;;  %v17002_v57 = vpop.f32.mrf.mxu1  ;;  %14257 = vmatmul.mubr.msk.f32.gmra.mxu1 %vm347_vm0, %v16998_v63  ;;  %21587 = vst [vmem:[#allocation105_spill] sm:$0xff] %v17006_v29  ;;  %21588 = vst [vmem:[#allocation106_spill] sm:$0xff] %v17010_v10  ;;  %v17022_v63 = vld [vmem:[#allocation2 + $0x170] sm:$0xff] }
 0x1eb   : > { %21585 = vst [vmem:[#allocation103_spill] sm:$0xff] %v17000_v31  ;;  %21586 = vst [vmem:[#allocation104_spill] sm:$0xff] %v17002_v57  ;;  %14259 = vmatprep.mubr.msk.f32.mxu1 %vm347_vm0, %v17006_v29  ;;  %v17018_v31 = vld [vmem:[#allocation2 + $0x106] sm:$0xff] }
 0x1ec   : > { %v17012_v5 = vpop.f32.mrf.mxu0  ;;  %14407 = vmatmul.mubr.msk.f32.gmra.mxu0 %vm347_vm0, %v17010_v10  ;;  %v17016_v26 = vpop.f32.mrf.mxu1  ;;  %21591 = vst [vmem:[#allocation109_spill] sm:$0xff] %v17018_v31  ;;  %21592 = vst [vmem:[#allocation110_spill] sm:$0xff] %v17022_v63  ;;  %v17030_v29 = vld [vmem:[#allocation2 + $0x188] sm:$0xff] }
 0x1ed   : > { %21589 = vst [vmem:[#allocation107_spill] sm:$0xff] %v17012_v5  ;;  %21590 = vst [vmem:[#allocation108_spill] sm:$0xff] %v17016_v26  ;;  %14409 = vmatprep.mubr.msk.f32.mxu0 %vm347_vm0, %v17018_v31  ;;  %v17034_v5 = vld [vmem:[#allocation2 + $0x10e] sm:$0xff] }
 0x1ee   : > { %v17024_v57 = vpop.f32.mrf.mxu0  ;;  %v17026_v61 = vpop.f32.mrf.mxu1  ;;  %14260 = vmatmul.mubr.msk.f32.gmra.mxu1 %vm347_vm0, %v17022_v63  ;;  %21595 = vst [vmem:[#allocation113_spill] sm:$0xff] %v17030_v29  ;;  %21596 = vst [vmem:[#allocation114_spill] sm:$0xff] %v17034_v5  ;;  %v17046_v63 = vld [vmem:[#allocation2 + $0x190] sm:$0xff] }
 0x1ef   : > { %21593 = vst [vmem:[#allocation111_spill] sm:$0xff] %v17024_v57  ;;  %21594 = vst [vmem:[#allocation112_spill] sm:$0xff] %v17026_v61  ;;  %14262 = vmatprep.mubr.msk.f32.mxu1 %vm347_vm0, %v17030_v29  ;;  %v17042_v57 = vld [vmem:[#allocation2 + $0x126] sm:$0xff] }
 0x1f0   : > { %v17036_v26 = vpop.f32.mrf.mxu0  ;;  %14410 = vmatmul.mubr.msk.f32.gmra.mxu0 %vm347_vm0, %v17034_v5  ;;  %v17040_v31 = vpop.f32.mrf.mxu1  ;;  %21599 = vst [vmem:[#allocation117_spill] sm:$0xff] %v17042_v57  ;;  %21600 = vst [vmem:[#allocation118_spill] sm:$0xff] %v17046_v63  ;;  %v17054_v29 = vld [vmem:[#allocation2 + $0x1a8] sm:$0xff] }
 0x1f1   : > { %21597 = vst [vmem:[#allocation115_spill] sm:$0xff] %v17036_v26  ;;  %21598 = vst [vmem:[#allocation116_spill] sm:$0xff] %v17040_v31  ;;  %14412 = vmatprep.mubr.msk.f32.mxu0 %vm347_vm0, %v17042_v57  ;;  %v17058_v26 = vld [vmem:[#allocation2 + $0x12e] sm:$0xff] }
 0x1f2   : > { %v17048_v61 = vpop.f32.mrf.mxu0  ;;  %v17050_v10 = vpop.f32.mrf.mxu1  ;;  %14263 = vmatmul.mubr.msk.f32.gmra.mxu1 %vm347_vm0, %v17046_v63  ;;  %21603 = vst [vmem:[#allocation121_spill] sm:$0xff] %v17054_v29  ;;  %21604 = vst [vmem:[#allocation122_spill] sm:$0xff] %v17058_v26  ;;  %v17070_v63 = vld [vmem:[#allocation2 + $0x1b0] sm:$0xff] }
 0x1f3   : > { %21601 = vst [vmem:[#allocation119_spill] sm:$0xff] %v17048_v61  ;;  %21602 = vst [vmem:[#allocation120_spill] sm:$0xff] %v17050_v10  ;;  %14265 = vmatprep.mubr.msk.f32.mxu1 %vm347_vm0, %v17054_v29  ;;  %v17066_v61 = vld [vmem:[#allocation2 + $0x146] sm:$0xff] }
 0x1f4   : > { %v17060_v31 = vpop.f32.mrf.mxu0  ;;  %14413 = vmatmul.mubr.msk.f32.gmra.mxu0 %vm347_vm0, %v17058_v26  ;;  %v17064_v57 = vpop.f32.mrf.mxu1  ;;  %21607 = vst [vmem:[#allocation125_spill] sm:$0xff] %v17066_v61  ;;  %21608 = vst [vmem:[#allocation126_spill] sm:$0xff] %v17070_v63  ;;  %v17078_v29 = vld [vmem:[#allocation2 + $0x1c8] sm:$0xff] }
 0x1f5   : > { %21605 = vst [vmem:[#allocation123_spill] sm:$0xff] %v17060_v31  ;;  %21606 = vst [vmem:[#allocation124_spill] sm:$0xff] %v17064_v57  ;;  %14415 = vmatprep.mubr.msk.f32.mxu0 %vm347_vm0, %v17066_v61  ;;  %v17082_v31 = vld [vmem:[#allocation2 + $0x14e] sm:$0xff] }
 0x1f6   : > { %v17072_v10 = vpop.f32.mrf.mxu0  ;;  %v17074_v5 = vpop.f32.mrf.mxu1  ;;  %14266 = vmatmul.mubr.msk.f32.gmra.mxu1 %vm347_vm0, %v17070_v63  ;;  %21611 = vst [vmem:[#allocation129_spill] sm:$0xff] %v17078_v29  ;;  %21612 = vst [vmem:[#allocation130_spill] sm:$0xff] %v17082_v31  ;;  %v17094_v63 = vld [vmem:[#allocation2 + $0x1d0] sm:$0xff] }
 0x1f7   : > { %21609 = vst [vmem:[#allocation127_spill] sm:$0xff] %v17072_v10  ;;  %21610 = vst [vmem:[#allocation128_spill] sm:$0xff] %v17074_v5  ;;  %14268 = vmatprep.mubr.msk.f32.mxu1 %vm347_vm0, %v17078_v29  ;;  %v17090_v10 = vld [vmem:[#allocation2 + $0x166] sm:$0xff] }
 0x1f8   : > { %v17084_v57 = vpop.f32.mrf.mxu0  ;;  %14416 = vmatmul.mubr.msk.f32.gmra.mxu0 %vm347_vm0, %v17082_v31  ;;  %v17088_v61 = vpop.f32.mrf.mxu1  ;;  %21615 = vst [vmem:[#allocation133_spill] sm:$0xff] %v17090_v10  ;;  %21616 = vst [vmem:[#allocation134_spill] sm:$0xff] %v17094_v63  ;;  %v17102_v29 = vld [vmem:[#allocation2 + $0x1e8] sm:$0xff] }
 0x1f9   : > { %21613 = vst [vmem:[#allocation131_spill] sm:$0xff] %v17084_v57  ;;  %21614 = vst [vmem:[#allocation132_spill] sm:$0xff] %v17088_v61  ;;  %14418 = vmatprep.mubr.msk.f32.mxu0 %vm347_vm0, %v17090_v10  ;;  %v17106_v57 = vld [vmem:[#allocation2 + $0x16e] sm:$0xff] }
 0x1fa   : > { %v17096_v5 = vpop.f32.mrf.mxu0  ;;  %v17098_v26 = vpop.f32.mrf.mxu1  ;;  %14269 = vmatmul.mubr.msk.f32.gmra.mxu1 %vm347_vm0, %v17094_v63  ;;  %21619 = vst [vmem:[#allocation137_spill] sm:$0xff] %v17102_v29  ;;  %21620 = vst [vmem:[#allocation138_spill] sm:$0xff] %v17106_v57  ;;  %v17118_v63 = vld [vmem:[#allocation2 + $0x1f0] sm:$0xff] }
 0x1fb   : > { %21617 = vst [vmem:[#allocation135_spill] sm:$0xff] %v17096_v5  ;;  %21618 = vst [vmem:[#allocation136_spill] sm:$0xff] %v17098_v26  ;;  %14271 = vmatprep.mubr.msk.f32.mxu1 %vm347_vm0, %v17102_v29  ;;  %v17114_v5 = vld [vmem:[#allocation2 + $0x186] sm:$0xff] }
 0x1fc   : > { %v17108_v61 = vpop.f32.mrf.mxu0  ;;  %14419 = vmatmul.mubr.msk.f32.gmra.mxu0 %vm347_vm0, %v17106_v57  ;;  %v17112_v10 = vpop.f32.mrf.mxu1  ;;  %21623 = vst [vmem:[#allocation141_spill] sm:$0xff] %v17114_v5  ;;  %21624 = vst [vmem:[#allocation142_spill] sm:$0xff] %v17118_v63  ;;  %v3163_v29 = vld [vmem:[#allocation2 + $0x208] sm:$0xff] }
 0x1fd   : > { %21621 = vst [vmem:[#allocation139_spill] sm:$0xff] %v17108_v61  ;;  %21622 = vst [vmem:[#allocation140_spill] sm:$0xff] %v17112_v10  ;;  %14421 = vmatprep.mubr.msk.f32.mxu0 %vm347_vm0, %v17114_v5  ;;  %v17127_v61 = vld [vmem:[#allocation2 + $0x18e] sm:$0xff]  ;;  %v17135_v57 = vld [vmem:[#allocation2 + $0x1a6] sm:$0xff] }
 0x1fe   : > { %v17120_v26 = vpop.f32.mrf.mxu0  ;;  %v17122_v31 = vpop.f32.mrf.mxu1  ;;  %14272 = vmatmul.mubr.msk.f32.gmra.mxu1 %vm347_vm0, %v17118_v63  ;;  %21627 = vst [vmem:[#allocation145_spill] sm:$0xff] %v17127_v61  ;;  %21630 = vst [vmem:[#allocation148_spill] sm:$0xff] %v17135_v57 }
 0x1ff   : > { %21625 = vst [vmem:[#allocation143_spill] sm:$0xff] %v17120_v26  ;;  %21626 = vst [vmem:[#allocation144_spill] sm:$0xff] %v17122_v31  ;;  %14274 = vmatprep.mubr.msk.f32.mxu1 %vm347_vm0, %v3163_v29  ;;  %v3164_v26 = vld [vmem:[#allocation2 + $0x210] sm:$0xff]  ;;  %v3165_v29 = vld [vmem:[#allocation2 + $0x228] sm:$0xff] }
 0x200   : > { %v17129_v10 = vpop.f32.mrf.mxu0  ;;  %14422 = vmatmul.mubr.msk.f32.gmra.mxu0 %vm347_vm0, %v17127_v61  ;;  %v17133_v5 = vpop.f32.mrf.mxu1 }
 0x201   : > { %21628 = vst [vmem:[#allocation146_spill] sm:$0xff] %v17129_v10  ;;  %21629 = vst [vmem:[#allocation147_spill] sm:$0xff] %v17133_v5  ;;  %14424 = vmatprep.mubr.msk.f32.mxu0 %vm347_vm0, %v17135_v57  ;;  %v17145_v10 = vld [vmem:[#allocation2 + $0x1ae] sm:$0xff]  ;;  %v17153_v57 = vld [vmem:[#allocation2 + $0x1c6] sm:$0xff] }
 0x202   : > { %v17139_v31 = vpop.f32.mrf.mxu0  ;;  %v17141_v63 = vpop.f32.mrf.mxu1  ;;  %14275 = vmatmul.mubr.msk.f32.gmra.mxu1 %vm347_vm0, %v3164_v26  ;;  %21633 = vst [vmem:[#allocation151_spill] sm:$0xff] %v17145_v10  ;;  %21636 = vst [vmem:[#allocation154_spill] sm:$0xff] %v17153_v57 }
 0x203   : > { %21631 = vst [vmem:[#allocation149_spill] sm:$0xff] %v17139_v31  ;;  %21632 = vst [vmem:[#allocation150_spill] sm:$0xff] %v17141_v63  ;;  %14277 = vmatprep.mubr.msk.f32.mxu1 %vm347_vm0, %v3165_v29  ;;  %v3166_v31 = vld [vmem:[#allocation2 + $0x230] sm:$0xff] }
 0x204   : > { %v17147_v61 = vpop.f32.mrf.mxu0  ;;  %14425 = vmatmul.mubr.msk.f32.gmra.mxu0 %vm347_vm0, %v17145_v10  ;;  %v17151_v5 = vpop.f32.mrf.mxu1  ;;  %v17162_v29 = vld [vmem:[#allocation2 + $0x1ce] sm:$0xff] }
 0x205   : > { %21634 = vst [vmem:[#allocation152_spill] sm:$0xff] %v17147_v61  ;;  %21635 = vst [vmem:[#allocation153_spill] sm:$0xff] %v17151_v5  ;;  %14427 = vmatprep.mubr.msk.f32.mxu0 %vm347_vm0, %v17153_v57  ;;  %v3168_v61 = vld [vmem:[#allocation2 + $0x250] sm:$0xff]  ;;  %v4307_v57 = vld [vmem:[#allocation2 + $0x8] sm:$0xff] }
 0x206   : > { %v17157_v26 = vpop.f32.mrf.mxu0  ;;  %v17159_v63 = vpop.f32.mrf.mxu1  ;;  %14278 = vmatmul.mubr.msk.f32.gmra.mxu1 %vm347_vm0, %v3166_v31  ;;  %21639 = vst [vmem:[#allocation157_spill] sm:$0xff] %v17162_v29 }
 0x207   : > { %21637 = vst [vmem:[#allocation155_spill] sm:$0xff] %v17157_v26  ;;  %21638 = vst [vmem:[#allocation156_spill] sm:$0xff] %v17159_v63  ;;  %14280 = vmatprep.mubr.msk.f32.mxu1 %vm347_vm0, %v3167_v30  ;;  %v1038_v26 = vadd.f32 %v16830_v0, %v16464_v11  ;;  %v1033_v30 = vadd.f32 %v16848_v7, %v16474_v62  ;;  %v4308_v11 = vld [vmem:[#allocation2 + $0x10] sm:$0xff]  ;;  %v1048_v0 = vadd.f32 %v16859_v4, %v16484_v15 }
 0x208   : > { %v17165_v10 = vpop.f32.mrf.mxu0  ;;  %14428 = vmatmul.mubr.msk.f32.gmra.mxu0 %vm347_vm0, %v17162_v29  ;;  %v1172_v5 = vpop.f32.mrf.mxu1  ;;  %v17204_v15 = vld [vmem:[%s21346_s3 + $0x10] sm:$0xf] }
 0x209   : > { %21640 = vst [vmem:[#allocation158_spill] sm:$0xff] %v17165_v10  ;;  %v1173_v63 = vadd.f32 %v1172_v5, %v16802_v28  ;;  %14430 = vmatprep.mubr.msk.f32.mxu0 %vm347_vm0, %v17169_v42 }
 0x20a   : > { %v17178_v31 = vpop.f32.mrf.mxu0  ;;  %v13982_v10 = vpop.f32.mrf.mxu1  ;;  %14281 = vmatmul.mubr.msk.f32.gmra.mxu1 %vm347_vm0, %v3168_v61  ;;  %v4309_v61 = vld [vmem:[#allocation2 + $0x28] sm:$0xff] }
 0x20b   : > { %v1188_v29 = vadd.f32 %v13982_v10, %v16808_v58  ;;  %14335 = vmatprep.mubr.msk.f32.mxu1 %vm347_vm0, %v4307_v57  ;;  %v17186_v5 = vadd.f32 %v16805_v13, %v1173_v63  ;;  %v1549_v57 = vadd.f32 %v16591_v48, %v1038_v26  ;;  %v1548_v13 = vadd.f32 %v16606_v51, %v1033_v30  ;;  %v4310_v48 = vld [vmem:[#allocation2 + $0x30] sm:$0xff]  ;;  %v17221_v10 = vld [vmem:[%s21346_s3 + $0x1c] sm:$0xf] }
 0x20c   : > { %v17190_v28 = vpop.f32.mrf.mxu0  ;;  %14431 = vmatmul.mubr.msk.f32.gmra.mxu0 %vm347_vm0, %v17182_v24  ;;  %v1182_v62 = vpop.f32.mrf.mxu1  ;;  %v1551_v51 = vadd.f32 %v16614_v47, %v1048_v0  ;;  %v17242_v47 = vld [vmem:[#allocation2 + $0x48] sm:$0xff] }
 0x20d   : > { %v1183_v7 = vadd.f32 %v1182_v62, %v16818_v54  ;;  %14485 = vmatprep.mubr.msk.f32.mxu0 %vm347_vm0, %v16874_v3  ;;  %v17199_v63 = vadd.f32 %v16813_v32, %v1188_v29  ;;  %v1043_v3 = vadd.f32 %v16872_v43, %v16494_v12  ;;  %21641 = vst [vmem:[#allocation159_spill] sm:$0xff] %v17242_v47 }
 0x20e   : > { %v17206_v4 = vpop.f32.mrf.mxu0  ;;  %v14037_v58 = vpop.f32.mrf.mxu1  ;;  %14336 = vmatmul.mubr.msk.f32.vlgmr.msra.gmra.mxu1 %vm347_vm0, %v4308_v11  ;;  %v1068_v11 = vadd.f32 %v16906_v1, %v16516_v16  ;;  %v1063_v16 = vadd.f32 %v16920_v44, %v16526_v18 }
 0x20f   : > { %v1938_v54 = vadd.f32 %v14037_v58, %v1549_v57  ;;  %14434 = vmatpush3.msk.msra.mxu1 %vm638_vm2, %v16828_v21  ;;  %14338 = vmatprep.mubr.msk.f32.mxu1 %vm347_vm0, %v4309_v61  ;;  %v17216_v32 = vadd.f32 %v16820_v41, %v1183_v7  ;;  %v1058_v41 = vadd.f32 %v16882_v17, %v16500_v45 }
 0x210   : > { %v17223_v26 = vpop.f32.mrf.mxu0  ;;  %14486 = vmatmul.mubr.msk.f32.vlgmr.msra.gmra.mxu0 %vm347_vm0, %v16890_v46  ;;  %v1778_v12 = vpop.f32.mrf.mxu1  ;;  %14533 = vmatprep.subr.msk.mxu1 %vm638_vm2, %v17204_v15  ;;  %v1053_v45 = vadd.f32 %v16896_v6, %v16510_v14  ;;  %v1550_v17 = vadd.f32 %v16624_v49, %v1043_v3  ;;  %v17263_v6 = vld [vmem:[#allocation2 + $0x50] sm:$0xff]  ;;  %v1078_v61 = vadd.f32 %v16930_v2, %v16532_v20 }
 0x211   : > { %v1937_v21 = vadd.f32 %v1778_v12, %v1548_v13  ;;  %14488 = vmatprep.mubr.msk.f32.mxu0 %vm347_vm0, %v16898_v23  ;;  %v17235_v43 = vadd.f32 %v16845_v8, %v1938_v54  ;;  %14584 = vmatpush3.msk.msra.mxu0 %vm638_vm2, %v16843_v9  ;;  %v1553_v14 = vadd.f32 %v16628_v55, %v1058_v41  ;;  %v21647_v13 = vld [vmem:[#allocation82_spill] sm:$0xff]  ;;  %v21648_v54 = vld [vmem:[#allocation76_spill] sm:$0xff]  ;;  %v21651_v41 = vld [vmem:[#allocation77_spill] sm:$0xff] }
 0x212   : > { %v17239_v46 = vpop.f32.mrf.mxu0  ;;  %v14040_v29 = vpop.f32.mrf.mxu1  ;;  %14339 = vmatmul.mubr.msk.f32.gmra.mxu1 %vm347_vm0, %v4310_v48  ;;  %14683 = vmatprep.subr.msk.mxu0 %vm638_vm2, %v17221_v10  ;;  %21642 = vst [vmem:[#allocation160_spill] sm:$0xff] %v17263_v6  ;;  %v1552_v55 = vadd.f32 %v16636_v52, %v1053_v45  ;;  %v1554_v20 = vadd.f32 %v16648_v56, %v1063_v16  ;;  %v21650_v48 = vld [vmem:[#allocation92_spill] sm:$0xff] }
 0x213   : > { %v1940_v23 = vadd.f32 %v14040_v29, %v1551_v51  ;;  %14341 = vmatprep.mubr.msk.f32.mxu1 %vm347_vm0, %v17242_v47  ;;  %v17252_v8 = vadd.f32 %v16857_v27, %v1937_v21  ;;  %v21652_v21 = vld [vmem:[#allocation47_spill] sm:$0xff]  ;;  %v21653_v45 = vld [vmem:[#allocation84_spill] sm:$0xff] }
 0x214   : > { %v17254_v9 = vpop.f32.mrf.mxu0  ;;  %14489 = vmatmul.mubr.msk.f32.gmra.mxu0 %vm347_vm0, %v16914_v60  ;;  %v1788_v30 = vpop.f32.mrf.mxu1 }
 0x215   : > { %v1939_v0 = vadd.f32 %v1788_v30, %v1550_v17  ;;  %14491 = vmatprep.mubr.msk.f32.mxu0 %vm347_vm0, %v16922_v38  ;;  %v17266_v49 = vadd.f32 %v16869_v19, %v1940_v23  ;;  %v21654_v30 = vld [vmem:[#allocation98_spill] sm:$0xff] }
 0x216   : > { %v17268_v27 = vpop.f32.mrf.mxu0  ;;  %v14043_v62 = vpop.f32.mrf.mxu1  ;;  %14342 = vmatmul.mubr.msk.f32.gmra.mxu1 %vm347_vm0, %v17263_v6 }
 0x217   : > { %v1942_v60 = vadd.f32 %v14043_v62, %v1553_v14  ;;  %14344 = vmatprep.mubr.msk.f32.mxu1 %vm347_vm0, %v16811_v50  ;;  %v17278_v1 = vadd.f32 %v16880_v35, %v1939_v0  ;;  %v1555_v50 = vadd.f32 %v16640_v53, %v1068_v11  ;;  %v21655_v0 = vld [vmem:[#allocation41_spill] sm:$0xff]  ;;  %v21656_v14 = vld [vmem:[#allocation96_spill] sm:$0xff] }
 0x218   : > { %v17280_v38 = vpop.f32.mrf.mxu0  ;;  %14492 = vmatmul.mubr.msk.f32.gmra.mxu0 %vm347_vm0, %v16938_v37  ;;  %v1798_v19 = vpop.f32.mrf.mxu1  ;;  %v1073_v37 = vadd.f32 %v16944_v25, %v16542_v22  ;;  %v21645_v22 = vld [vmem:[#allocation93_spill] sm:$0xff]  ;;  %v1098_v62 = vadd.f32 %v21656_v14, %v21655_v0  ;;  %v21672_v0 = vld [vmem:[#allocation80_spill] sm:$0xff] }
 0x219   : > { %v1941_v7 = vadd.f32 %v1798_v19, %v1552_v55  ;;  %14494 = vmatprep.mubr.msk.f32.mxu0 %vm347_vm0, %v16946_v59  ;;  %v17290_v18 = vadd.f32 %v16892_v33, %v1942_v60  ;;  %v21643_v33 = vld [vmem:[#allocation39_spill] sm:$0xff]  ;;  %v21646_v25 = vld [vmem:[#allocation45_spill] sm:$0xff]  ;;  %v21658_v55 = vld [vmem:[#allocation48_spill] sm:$0xff] }
 0x21a   : > { %v17292_v44 = vpop.f32.mrf.mxu0  ;;  %v14046_v52 = vpop.f32.mrf.mxu1  ;;  %14345 = vmatmul.mubr.msk.f32.gmra.mxu1 %vm347_vm0, %v16822_v34  ;;  %v21644_v34 = vld [vmem:[#allocation89_spill] sm:$0xff]  ;;  %v1556_v29 = vadd.f32 %v21652_v21, %v1073_v37  ;;  %v21660_v37 = vld [vmem:[#allocation78_spill] sm:$0xff]  ;;  %v21670_v21 = vld [vmem:[#allocation52_spill] sm:$0xff] }
 0x21b   : > { %v1944_v35 = vadd.f32 %v14046_v52, %v1555_v50  ;;  %14347 = vmatprep.mubr.msk.f32.mxu1 %vm347_vm0, %v16834_v39  ;;  %v17302_v53 = vadd.f32 %v16904_v40, %v1941_v7  ;;  %v1088_v57 = vadd.f32 %v21644_v34, %v21643_v33  ;;  %v1557_v39 = vadd.f32 %v21646_v25, %v1078_v61  ;;  %v21657_v60 = vld [vmem:[#allocation101_spill] sm:$0xff]  ;;  %v21659_v61 = vld [vmem:[#allocation86_spill] sm:$0xff]  ;;  %v21663_v34 = vld [vmem:[#allocation79_spill] sm:$0xff] }
 0x21c   : > { %v17304_v59 = vpop.f32.mrf.mxu0  ;;  %14495 = vmatmul.mubr.msk.f32.gmra.mxu0 %vm347_vm0, %v16962_v36  ;;  %v1808_v2 = vpop.f32.mrf.mxu1  ;;  %v21649_v36 = vld [vmem:[#allocation40_spill] sm:$0xff] }
 0x21d   : > { %v1943_v58 = vadd.f32 %v1808_v2, %v1554_v20  ;;  %14497 = vmatprep.mubr.msk.f32.mxu0 %vm347_vm0, %v21645_v22  ;;  %v17314_v56 = vadd.f32 %v21647_v13, %v1944_v35  ;;  %v1083_v12 = vadd.f32 %v21650_v48, %v21649_v36  ;;  %v1559_v19 = vadd.f32 %v21658_v55, %v1088_v57  ;;  %v21661_v35 = vld [vmem:[#allocation42_spill] sm:$0xff]  ;;  %v21662_v20 = vld [vmem:[#allocation100_spill] sm:$0xff] }
 0x21e   : > { %v17316_v40 = vpop.f32.mrf.mxu0  ;;  %v14049_v3 = vpop.f32.mrf.mxu1  ;;  %14348 = vmatmul.mubr.msk.f32.gmra.mxu1 %vm347_vm0, %v21648_v54  ;;  %v1093_v2 = vadd.f32 %v21662_v20, %v21661_v35  ;;  %v21665_v25 = vld [vmem:[#allocation88_spill] sm:$0xff]  ;;  %v21666_v13 = vld [vmem:[#allocation106_spill] sm:$0xff]  ;;  %v21667_v54 = vld [vmem:[#allocation43_spill] sm:$0xff] }
 0x21f   : > { %v1946_v51 = vadd.f32 %v14049_v3, %v1557_v39  ;;  %14350 = vmatprep.mubr.msk.f32.mxu1 %vm347_vm0, %v21651_v41  ;;  %v17326_v23 = vadd.f32 %v21653_v45, %v1943_v58  ;;  %v21664_v58 = vld [vmem:[#allocation50_spill] sm:$0xff]  ;;  %v21668_v36 = vld [vmem:[#allocation104_spill] sm:$0xff]  ;;  %v21669_v41 = vld [vmem:[#allocation109_spill] sm:$0xff] }
 0x220   : > { %v17328_v17 = vpop.f32.mrf.mxu0  ;;  %14498 = vmatmul.mubr.msk.f32.gmra.mxu0 %vm347_vm0, %v21654_v30  ;;  %v1818_v11 = vpop.f32.mrf.mxu1  ;;  %v1558_v22 = vadd.f32 %v21664_v58, %v1083_v12  ;;  %v1108_v48 = vadd.f32 %v21668_v36, %v21667_v54  ;;  %v21671_v45 = vld [vmem:[#allocation91_spill] sm:$0xff]  ;;  %v21673_v14 = vld [vmem:[#allocation44_spill] sm:$0xff]  ;;  %v21678_v20 = vld [vmem:[#allocation114_spill] sm:$0xff] }
 0x221   : > { %v1945_v16 = vadd.f32 %v1818_v11, %v1556_v29  ;;  %14500 = vmatprep.mubr.msk.f32.mxu0 %vm347_vm0, %v21657_v60  ;;  %v17338_v7 = vadd.f32 %v21659_v61, %v1946_v51  ;;  %v1561_v29 = vadd.f32 %v21670_v21, %v1098_v62  ;;  %v21676_v61 = vld [vmem:[#allocation53_spill] sm:$0xff]  ;;  %v21680_v58 = vld [vmem:[#allocation112_spill] sm:$0xff]  ;;  %v21683_v36 = vld [vmem:[#allocation99_spill] sm:$0xff] }
 0x222   : > { %v17340_v50 = vpop.f32.mrf.mxu0  ;;  %v14052_v52 = vpop.f32.mrf.mxu1  ;;  %14351 = vmatmul.mubr.msk.f32.gmra.mxu1 %vm347_vm0, %v21660_v37  ;;  %v21677_v37 = vld [vmem:[#allocation95_spill] sm:$0xff] }
 0x223   : > { %v1948_v33 = vadd.f32 %v14052_v52, %v1559_v19  ;;  %14353 = vmatprep.mubr.msk.f32.mxu1 %vm347_vm0, %v21663_v34  ;;  %v17350_v57 = vadd.f32 %v21665_v25, %v1945_v16  ;;  %v21674_v16 = vld [vmem:[#allocation108_spill] sm:$0xff]  ;;  %v21675_v19 = vld [vmem:[#allocation81_spill] sm:$0xff]  ;;  %v1560_v52 = vadd.f32 %v21676_v61, %v1093_v2  ;;  %v21679_v34 = vld [vmem:[#allocation46_spill] sm:$0xff] }
 0x224   : > { %v17352_v39 = vpop.f32.mrf.mxu0  ;;  %14501 = vmatmul.mubr.msk.f32.gmra.mxu0 %vm347_vm0, %v21666_v13  ;;  %v1828_v3 = vpop.f32.mrf.mxu1  ;;  %v1103_v60 = vadd.f32 %v21674_v16, %v21673_v14  ;;  %v21681_v13 = vld [vmem:[#allocation117_spill] sm:$0xff]  ;;  %v21684_v21 = vld [vmem:[#allocation83_spill] sm:$0xff] }
 0x225   : > { %v1947_v51 = vadd.f32 %v1828_v3, %v1558_v22  ;;  %14503 = vmatprep.mubr.msk.f32.mxu0 %vm347_vm0, %v21669_v41  ;;  %v17362_v12 = vadd.f32 %v21671_v45, %v1948_v33  ;;  %v1118_v22 = vadd.f32 %v21680_v58, %v21679_v34  ;;  %v21682_v3 = vld [vmem:[#allocation55_spill] sm:$0xff]  ;;  %v21686_v45 = vld [vmem:[#allocation116_spill] sm:$0xff]  ;;  %v21687_v14 = vld [vmem:[#allocation85_spill] sm:$0xff] }
 0x226   : > { %v17364_v30 = vpop.f32.mrf.mxu0  ;;  %v14055_v11 = vpop.f32.mrf.mxu1  ;;  %14354 = vmatmul.mubr.msk.f32.gmra.mxu1 %vm347_vm0, %v21672_v0  ;;  %v1563_v54 = vadd.f32 %v21682_v3, %v1108_v48  ;;  %v21688_v16 = vld [vmem:[#allocation57_spill] sm:$0xff]  ;;  %v21689_v61 = vld [vmem:[#allocation103_spill] sm:$0xff]  ;;  %v21694_v3 = vld [vmem:[#allocation58_spill] sm:$0xff] }
 0x227   : > { %v1950_v55 = vadd.f32 %v14055_v11, %v1561_v29  ;;  %14356 = vmatprep.mubr.msk.f32.mxu1 %vm347_vm0, %v21675_v19  ;;  %v17374_v62 = vadd.f32 %v21677_v37, %v1947_v51  ;;  %v21685_v29 = vld [vmem:[#allocation49_spill] sm:$0xff]  ;;  %v1562_v19 = vadd.f32 %v21688_v16, %v1103_v60 }
 0x228   : > { %v17376_v35 = vpop.f32.mrf.mxu0  ;;  %14504 = vmatmul.mubr.msk.f32.gmra.mxu0 %vm347_vm0, %v21678_v20  ;;  %v1838_v33 = vpop.f32.mrf.mxu1  ;;  %v1113_v11 = vadd.f32 %v21686_v45, %v21685_v29  ;;  %v21691_v20 = vld [vmem:[#allocation51_spill] sm:$0xff]  ;;  %v21697_v29 = vld [vmem:[#allocation54_spill] sm:$0xff]  ;;  %v21698_v45 = vld [vmem:[#allocation124_spill] sm:$0xff] }
 0x229   : > { %v1949_v25 = vadd.f32 %v1838_v33, %v1560_v52  ;;  %14506 = vmatprep.mubr.msk.f32.mxu0 %vm347_vm0, %v21681_v13  ;;  %v17386_v2 = vadd.f32 %v21683_v36, %v1950_v55  ;;  %v21690_v52 = vld [vmem:[#allocation122_spill] sm:$0xff]  ;;  %v21692_v33 = vld [vmem:[#allocation120_spill] sm:$0xff]  ;;  %v21693_v13 = vld [vmem:[#allocation125_spill] sm:$0xff] }
 0x22a   : > { %v17388_v51 = vpop.f32.mrf.mxu0  ;;  %v14058_v41 = vpop.f32.mrf.mxu1  ;;  %14357 = vmatmul.mubr.msk.f32.gmra.mxu1 %vm347_vm0, %v21684_v21  ;;  %v1128_v34 = vadd.f32 %v21692_v33, %v21691_v20  ;;  %v21695_v36 = vld [vmem:[#allocation107_spill] sm:$0xff]  ;;  %v21703_v20 = vld [vmem:[#allocation130_spill] sm:$0xff] }
 0x22b   : > { %v1952_v0 = vadd.f32 %v14058_v41, %v1563_v54  ;;  %14359 = vmatprep.mubr.msk.f32.mxu1 %vm347_vm0, %v21687_v14  ;;  %v17398_v48 = vadd.f32 %v21689_v61, %v1949_v25  ;;  %v1565_v54 = vadd.f32 %v21694_v3, %v1118_v22  ;;  %v21696_v21 = vld [vmem:[#allocation87_spill] sm:$0xff]  ;;  %v1123_v14 = vadd.f32 %v21698_v45, %v21697_v29  ;;  %v21699_v61 = vld [vmem:[#allocation90_spill] sm:$0xff]  ;;  %v21705_v3 = vld [vmem:[#allocation128_spill] sm:$0xff] }
 0x22c   : > { %v17400_v55 = vpop.f32.mrf.mxu0  ;;  %14507 = vmatmul.mubr.msk.f32.gmra.mxu0 %vm347_vm0, %v21690_v52  ;;  %v1848_v37 = vpop.f32.mrf.mxu1  ;;  %v21706_v29 = vld [vmem:[#allocation133_spill] sm:$0xff]  ;;  %v21708_v45 = vld [vmem:[#allocation115_spill] sm:$0xff] }
 0x22d   : > { %v1951_v58 = vadd.f32 %v1848_v37, %v1562_v19  ;;  %14509 = vmatprep.mubr.msk.f32.mxu0 %vm347_vm0, %v21693_v13  ;;  %v17410_v60 = vadd.f32 %v21695_v36, %v1952_v0  ;;  %v21700_v19 = vld [vmem:[#allocation60_spill] sm:$0xff]  ;;  %v21701_v37 = vld [vmem:[#allocation111_spill] sm:$0xff] }
 0x22e   : > { %v17412_v25 = vpop.f32.mrf.mxu0  ;;  %v14061_v41 = vpop.f32.mrf.mxu1  ;;  %14360 = vmatmul.mubr.msk.f32.gmra.mxu1 %vm347_vm0, %v21696_v21  ;;  %v1564_v52 = vadd.f32 %v21700_v19, %v1113_v11  ;;  %v21704_v13 = vld [vmem:[#allocation56_spill] sm:$0xff]  ;;  %v21710_v19 = vld [vmem:[#allocation94_spill] sm:$0xff] }
 0x22f   : > { %v1954_v16 = vadd.f32 %v14061_v41, %v1565_v54  ;;  %14362 = vmatprep.mubr.msk.f32.mxu1 %vm347_vm0, %v21699_v61  ;;  %v17422_v22 = vadd.f32 %v21701_v37, %v1951_v58  ;;  %v1138_v36 = vadd.f32 %v21705_v3, %v21704_v13  ;;  %v21707_v54 = vld [vmem:[#allocation62_spill] sm:$0xff]  ;;  %v21711_v37 = vld [vmem:[#allocation59_spill] sm:$0xff]  ;;  %v21713_v13 = vld [vmem:[#allocation97_spill] sm:$0xff] }
 0x230   : > { %v17424_v0 = vpop.f32.mrf.mxu0  ;;  %14510 = vmatmul.mubr.msk.f32.gmra.mxu0 %vm347_vm0, %v21703_v20  ;;  %v1858_v33 = vpop.f32.mrf.mxu1  ;;  %v1567_v41 = vadd.f32 %v21707_v54, %v1128_v34  ;;  %v21712_v20 = vld [vmem:[#allocation132_spill] sm:$0xff]  ;;  %v21715_v3 = vld [vmem:[#allocation119_spill] sm:$0xff] }
 0x231   : > { %21702 = vst [vmem:[#allocation39_spill] sm:$0xff] %v17424_v0  ;;  %v1953_v21 = vadd.f32 %v1858_v33, %v1564_v52  ;;  %14512 = vmatprep.mubr.msk.f32.mxu0 %vm347_vm0, %v21706_v29  ;;  %v17434_v11 = vadd.f32 %v21708_v45, %v1954_v16  ;;  %v1133_v6 = vadd.f32 %v21712_v20, %v21711_v37  ;;  %v21714_v52 = vld [vmem:[#allocation63_spill] sm:$0xff]  ;;  %v21718_v29 = vld [vmem:[#allocation138_spill] sm:$0xff]  ;;  %v21719_v45 = vld [vmem:[#allocation61_spill] sm:$0xff] }
 0x232   : > { %v17436_v58 = vpop.f32.mrf.mxu0  ;;  %v14064_v61 = vpop.f32.mrf.mxu1  ;;  %14363 = vmatmul.mubr.msk.f32.gmra.mxu1 %vm347_vm0, %v21710_v19  ;;  %v1566_v33 = vadd.f32 %v21714_v52, %v1123_v14  ;;  %v21720_v19 = vld [vmem:[#allocation136_spill] sm:$0xff]  ;;  %v21721_v37 = vld [vmem:[#allocation141_spill] sm:$0xff]  ;;  %v21723_v20 = vld [vmem:[#allocation123_spill] sm:$0xff] }
 0x233   : > { %21709 = vst [vmem:[#allocation89_spill] sm:$0xff] %v17436_v58  ;;  %v1956_v47 = vadd.f32 %v14064_v61, %v1567_v41  ;;  %14365 = vmatprep.mubr.msk.f32.mxu1 %vm347_vm0, %v21713_v13  ;;  %v17446_v34 = vadd.f32 %v21715_v3, %v1953_v21  ;;  %v1148_v58 = vadd.f32 %v21720_v19, %v21719_v45  ;;  %v21722_v41 = vld [vmem:[#allocation65_spill] sm:$0xff]  ;;  %v21726_v52 = vld [vmem:[#allocation102_spill] sm:$0xff]  ;;  %v21727_v3 = vld [vmem:[#allocation64_spill] sm:$0xff] }
 0x234   : > { %v17448_v16 = vpop.f32.mrf.mxu0  ;;  %14513 = vmatmul.mubr.msk.f32.gmra.mxu0 %vm347_vm0, %v21718_v29  ;;  %v1868_v54 = vpop.f32.mrf.mxu1  ;;  %v1569_v61 = vadd.f32 %v21722_v41, %v1138_v36  ;;  %v21728_v29 = vld [vmem:[#allocation140_spill] sm:$0xff]  ;;  %v21729_v45 = vld [vmem:[#allocation105_spill] sm:$0xff]  ;;  %v21731_v19 = vld [vmem:[#allocation127_spill] sm:$0xff] }
 0x235   : > { %21716 = vst [vmem:[#allocation93_spill] sm:$0xff] %v17446_v34  ;;  %21717 = vst [vmem:[#allocation45_spill] sm:$0xff] %v17448_v16  ;;  %v1955_v0 = vadd.f32 %v1868_v54, %v1566_v33  ;;  %14515 = vmatprep.mubr.msk.f32.mxu0 %vm347_vm0, %v21721_v37  ;;  %v17458_v14 = vadd.f32 %v21723_v20, %v1956_v47  ;;  %v1143_v16 = vadd.f32 %v21728_v29, %v21727_v3  ;;  %v21730_v33 = vld [vmem:[#allocation67_spill] sm:$0xff]  ;;  %v21734_v37 = vld [vmem:[#allocation145_spill] sm:$0xff] }
 0x236   : > { %v17460_v21 = vpop.f32.mrf.mxu0  ;;  %v14067_v13 = vpop.f32.mrf.mxu1  ;;  %14366 = vmatmul.mubr.msk.f32.gmra.mxu1 %vm347_vm0, %v21726_v52  ;;  %v1568_v54 = vadd.f32 %v21730_v33, %v1133_v6  ;;  %v21735_v20 = vld [vmem:[#allocation66_spill] sm:$0xff]  ;;  %v21736_v52 = vld [vmem:[#allocation144_spill] sm:$0xff]  ;;  %v21739_v29 = vld [vmem:[#allocation131_spill] sm:$0xff] }
 0x237   : > { %21724 = vst [vmem:[#allocation82_spill] sm:$0xff] %v17458_v14  ;;  %21725 = vst [vmem:[#allocation76_spill] sm:$0xff] %v17460_v21  ;;  %v1958_v34 = vadd.f32 %v14067_v13, %v1569_v61  ;;  %14368 = vmatprep.mubr.msk.f32.mxu1 %vm347_vm0, %v21729_v45  ;;  %v17470_v36 = vadd.f32 %v21731_v19, %v1955_v0  ;;  %v1158_v21 = vadd.f32 %v21736_v52, %v21735_v20  ;;  %v21737_v3 = vld [vmem:[#allocation148_spill] sm:$0xff]  ;;  %v21742_v33 = vld [vmem:[#allocation110_spill] sm:$0xff] }
 0x238   : > { %v17472_v47 = vpop.f32.mrf.mxu0  ;;  %14516 = vmatmul.mubr.msk.f32.gmra.mxu0 %vm347_vm0, %v21734_v37  ;;  %v1878_v41 = vpop.f32.mrf.mxu1  ;;  %v21738_v61 = vld [vmem:[#allocation68_spill] sm:$0xff]  ;;  %v21743_v19 = vld [vmem:[#allocation69_spill] sm:$0xff]  ;;  %v21744_v37 = vld [vmem:[#allocation147_spill] sm:$0xff] }
 0x239   : > { %21732 = vst [vmem:[#allocation40_spill] sm:$0xff] %v17470_v36  ;;  %21733 = vst [vmem:[#allocation92_spill] sm:$0xff] %v17472_v47  ;;  %v1957_v14 = vadd.f32 %v1878_v41, %v1568_v54  ;;  %14518 = vmatprep.mubr.msk.f32.mxu0 %vm347_vm0, %v21737_v3  ;;  %v1571_v13 = vadd.f32 %v21738_v61, %v1148_v58  ;;  %v17482_v6 = vadd.f32 %v21739_v29, %v1958_v34  ;;  %v21745_v20 = vld [vmem:[#allocation113_spill] sm:$0xff]  ;;  %v21746_v54 = vld [vmem:[#allocation70_spill] sm:$0xff] }
 0x23a   : > { %v17484_v0 = vpop.f32.mrf.mxu0  ;;  %v14070_v45 = vpop.f32.mrf.mxu1  ;;  %14369 = vmatmul.mubr.msk.f32.gmra.mxu1 %vm347_vm0, %v21742_v33  ;;  %v1153_v47 = vadd.f32 %v21744_v37, %v21743_v19  ;;  %v1570_v41 = vadd.f32 %v21746_v54, %v1143_v16  ;;  %v21747_v52 = vld [vmem:[#allocation135_spill] sm:$0xff]  ;;  %v21751_v29 = vld [vmem:[#allocation34_spill] sm:$0xff] }
 0x23b   : > { %21740 = vst [vmem:[#allocation77_spill] sm:$0xff] %v17482_v6  ;;  %21741 = vst [vmem:[#allocation47_spill] sm:$0xff] %v17484_v0  ;;  %v1960_v36 = vadd.f32 %v14070_v45, %v1571_v13  ;;  %14371 = vmatprep.mubr.msk.f32.mxu1 %vm347_vm0, %v21745_v20  ;;  %v17494_v58 = vadd.f32 %v21747_v52, %v1957_v14  ;;  %v21750_v3 = vld [vmem:[#allocation151_spill] sm:$0xff]  ;;  %v21752_v33 = vld [vmem:[#allocation150_spill] sm:$0xff] }
 0x23c   : > { %v17496_v34 = vpop.f32.mrf.mxu0  ;;  %14519 = vmatmul.mubr.msk.f32.gmra.mxu0 %vm347_vm0, %v21750_v3  ;;  %v1888_v61 = vpop.f32.mrf.mxu1  ;;  %v1168_v0 = vadd.f32 %v21752_v33, %v21751_v29  ;;  %v21753_v19 = vld [vmem:[#allocation154_spill] sm:$0xff]  ;;  %v21754_v13 = vld [vmem:[#allocation71_spill] sm:$0xff]  ;;  %v21759_v52 = vld [vmem:[#allocation37_spill] sm:$0xff] }
 0x23d   : > { %21748 = vst [vmem:[#allocation84_spill] sm:$0xff] %v17494_v58  ;;  %21749 = vst [vmem:[#allocation98_spill] sm:$0xff] %v17496_v34  ;;  %v1959_v6 = vadd.f32 %v1888_v61, %v1570_v41  ;;  %14521 = vmatprep.mubr.msk.f32.mxu0 %vm347_vm0, %v21753_v19  ;;  %v1573_v45 = vadd.f32 %v21754_v13, %v1158_v21  ;;  %v21755_v37 = vld [vmem:[#allocation139_spill] sm:$0xff]  ;;  %v21758_v54 = vld [vmem:[#allocation118_spill] sm:$0xff] }
 0x23e   : > { %v17506_v16 = vadd.f32 %v21755_v37, %v1960_v36  ;;  %v17508_v14 = vpop.f32.mrf.mxu0  ;;  %v14073_v20 = vpop.f32.mrf.mxu1  ;;  %14372 = vmatmul.mubr.msk.f32.gmra.mxu1 %vm347_vm0, %v21758_v54  ;;  %v21760_v3 = vld [vmem:[#allocation153_spill] sm:$0xff]  ;;  %v21762_v41 = vld [vmem:[#allocation35_spill] sm:$0xff]  ;;  %v21766_v54 = vld [vmem:[#allocation156_spill] sm:$0xff] }
 0x23f   : > { %21757 = vst [vmem:[#allocation96_spill] sm:$0xff] %v17508_v14  ;;  %v1163_v34 = vadd.f32 %v21760_v3, %v21759_v52  ;;  %v1962_v58 = vadd.f32 %v14073_v20, %v1573_v45  ;;  %v21761_v29 = vld [vmem:[#allocation121_spill] sm:$0xff]  ;;  %v1572_v61 = vadd.f32 %v21762_v41, %v1153_v47  ;;  %v21763_v33 = vld [vmem:[#allocation143_spill] sm:$0xff]  ;;  %v21767_v45 = vld [vmem:[#allocation72_spill] sm:$0xff] }
 0x240   : > { %21756 = vst [vmem:[#allocation41_spill] sm:$0xff] %v17506_v16  ;;  %14374 = vmatprep.mubr.msk.f32.mxu1 %vm347_vm0, %v21761_v29  ;;  %v17518_v21 = vadd.f32 %v21763_v33, %v1959_v6  ;;  %v17520_v36 = vpop.f32.mrf.mxu0  ;;  %v21764_v19 = vld [vmem:[#allocation157_spill] sm:$0xff]  ;;  %v1898_v13 = vpop.f32.mrf.mxu1  ;;  %v1575_v20 = vadd.f32 %v21767_v45, %v1168_v0  ;;  %v21768_v52 = vld [vmem:[#allocation146_spill] sm:$0xff]  ;;  %v21773_v45 = vld [vmem:[#allocation75_spill] sm:$0xff] }
 0x241   : > { %14522 = vmatmul.mubr.msk.f32.gmra.mxu0 %vm347_vm0, %v21764_v19  ;;  %v21765_v37 = vld [vmem:[#allocation73_spill] sm:$0xff]  ;;  %v1961_v16 = vadd.f32 %v1898_v13, %v1572_v61  ;;  %v17530_v47 = vadd.f32 %v21768_v52, %v1962_v58  ;;  %v21769_v29 = vld [vmem:[#allocation126_spill] sm:$0xff]  ;;  %v21774_v52 = vld [vmem:[#allocation152_spill] sm:$0xff] }
 0x242   : > { %v1178_v14 = vadd.f32 %v21766_v54, %v21765_v37  ;;  %14524 = vmatprep.mubr.msk.f32.mxu0 %vm347_vm0, %v17169_v42  ;;  %v17532_v6 = vpop.f32.mrf.mxu0  ;;  %v14076_v3 = vpop.f32.mrf.mxu1  ;;  %14375 = vmatmul.mubr.msk.f32.gmra.mxu1 %vm347_vm0, %v21769_v29  ;;  %v21770_v33 = vld [vmem:[#allocation129_spill] sm:$0xff]  ;;  %v21771_v19 = vld [vmem:[#allocation74_spill] sm:$0xff] }
 0x243   : > { %v1964_v41 = vadd.f32 %v14076_v3, %v1575_v20  ;;  %14377 = vmatprep.mubr.msk.f32.mxu1 %vm347_vm0, %v21770_v33  ;;  %v1574_v61 = vadd.f32 %v21771_v19, %v1163_v34  ;;  %v21772_v13 = vld [vmem:[#allocation149_spill] sm:$0xff] }
 0x244   : > { %v17540_v37 = vadd.f32 %v21772_v13, %v1961_v16  ;;  %v17542_v42 = vpop.f32.mrf.mxu0  ;;  %v1908_v0 = vpop.f32.mrf.mxu1  ;;  %v5405_v58 = vld [vmem:[#allocation2 + $0x206] sm:$0xff]  ;;  %v1577_v20 = vadd.f32 %v21773_v45, %v1178_v14  ;;  %v21775_v16 = vld [vmem:[#allocation134_spill] sm:$0xff]  ;;  %v21777_v13 = vld [vmem:[#allocation155_spill] sm:$0xff] }
 0x245   : > { %14525 = vmatmul.mubr.msk.f32.gmra.mxu0 %vm347_vm0, %v17182_v24  ;;  %v1963_v54 = vadd.f32 %v1908_v0, %v1574_v61  ;;  %v17549_v3 = vadd.f32 %v21774_v52, %v1964_v41  ;;  %v21776_v19 = vld [vmem:[#allocation137_spill] sm:$0xff]  ;;  %v21779_v52 = vld [vmem:[#allocation158_spill] sm:$0xff] }
 0x246   : > { %14527 = vmatprep.mubr.msk.f32.mxu0 %vm347_vm0, %v5405_v58  ;;  %v17551_v29 = vpop.f32.mrf.mxu0  ;;  %v14079_v34 = vpop.f32.mrf.mxu1  ;;  %14378 = vmatmul.mubr.msk.f32.gmra.mxu1 %vm347_vm0, %v21775_v16  ;;  %v5406_v24 = vld [vmem:[#allocation2 + $0x20e] sm:$0xff]  ;;  %v5407_v41 = vld [vmem:[#allocation2 + $0x226] sm:$0xff] }
 0x247   : > { %v1966_v33 = vadd.f32 %v14079_v34, %v1577_v20  ;;  %14380 = vmatprep.mubr.msk.f32.mxu1 %vm347_vm0, %v21776_v19  ;;  %v17558_v61 = vadd.f32 %v21777_v13, %v1963_v54  ;;  %v4988_v58 = vld [vmem:[#allocation2 + $0xa] sm:$0xff] }
 0x248   : > { %v17560_v0 = vpop.f32.mrf.mxu0  ;;  %v1918_v14 = vpop.f32.mrf.mxu1  ;;  %v21780_v19 = vld [vmem:[#allocation142_spill] sm:$0xff] }
 0x249   : > { %21778 = vst [vmem:[#allocation101_spill] sm:$0xff] %v17560_v0  ;;  %14528 = vmatmul.mubr.msk.f32.gmra.mxu0 %vm347_vm0, %v5406_v24  ;;  %v1965_v45 = vadd.f32 %v1918_v14, %v17186_v5  ;;  %v17566_v20 = vadd.f32 %v21779_v52, %v1966_v33  ;;  %v5408_v13 = vld [vmem:[#allocation2 + $0x22e] sm:$0xff] }
 0x24a   : > { %14530 = vmatprep.mubr.msk.f32.mxu0 %vm347_vm0, %v5407_v41  ;;  %v17568_v34 = vpop.f32.mrf.mxu0  ;;  %v14082_v16 = vpop.f32.mrf.mxu1  ;;  %14381 = vmatmul.mubr.msk.f32.gmra.mxu1 %vm347_vm0, %v21780_v19  ;;  %v4989_v24 = vld [vmem:[#allocation2 + $0x12] sm:$0xff]  ;;  %v6155_v14 = vld [vmem:[#allocation2 + $0x4a] sm:$0xff] }
 0x24b   : > { %v1968_v54 = vadd.f32 %v14082_v16, %v17199_v63  ;;  %14435 = vmatprep.mubr.msk.f32.mxu1 %vm347_vm0, %v4988_v58  ;;  %v17575_v0 = vadd.f32 %v17178_v31, %v1965_v45  ;;  %v4990_v41 = vld [vmem:[#allocation2 + $0x2a] sm:$0xff]  ;;  %v17588_v58 = vld [vmem:[%s21346_s3 + $0x18] sm:$0xf] }
 0x24c   : > { %v17577_v5 = vpop.f32.mrf.mxu0  ;;  %v1928_v33 = vpop.f32.mrf.mxu1 }
 0x24d   : > { %14531 = vmatmul.mubr.msk.f32.gmra.mxu0 %vm347_vm0, %v5408_v13  ;;  %v1967_v52 = vadd.f32 %v1928_v33, %v17216_v32  ;;  %v17583_v63 = vadd.f32 %v17190_v28, %v1968_v54  ;;  %v6156_v32 = vld [vmem:[#allocation2 + $0x52] sm:$0xff]  ;;  %v6157_v33 = vld [vmem:[#allocation2 + $0x6a] sm:$0xff] }
 0x24e   : > { %14585 = vmatprep.mubr.msk.f32.mxu0 %vm347_vm0, %v6155_v14  ;;  %v17590_v31 = vpop.f32.mrf.mxu0  ;;  %v14137_v45 = vpop.f32.mrf.mxu1  ;;  %14436 = vmatmul.mubr.msk.f32.vlgmr.msra.gmra.mxu1 %vm347_vm0, %v4989_v24  ;;  %v4991_v28 = vld [vmem:[#allocation2 + $0x32] sm:$0xff] }
 0x24f   : > { %v2716_v16 = vadd.f32 %v14137_v45, %v17235_v43  ;;  %14534 = vmatpush3.msk.msra.mxu1 %vm638_vm2, %v17204_v15  ;;  %14438 = vmatprep.mubr.msk.f32.mxu1 %vm347_vm0, %v4990_v41  ;;  %v17598_v19 = vadd.f32 %v17206_v4, %v1967_v52  ;;  %v6158_v52 = vld [vmem:[#allocation2 + $0x72] sm:$0xff] }
 0x250   : > { %v17600_v54 = vpop.f32.mrf.mxu0  ;;  %v2556_v13 = vpop.f32.mrf.mxu1  ;;  %14633 = vmatprep.subr.msk.mxu1 %vm638_vm2, %v17588_v58 }
 0x251   : > { %14586 = vmatmul.mubr.msk.f32.vlgmr.msra.gmra.mxu0 %vm347_vm0, %v6156_v32  ;;  %v2715_v43 = vadd.f32 %v2556_v13, %v17252_v8  ;;  %v17608_v15 = vadd.f32 %v17223_v26, %v2716_v16  ;;  %v6159_v16 = vld [vmem:[#allocation2 + $0x8a] sm:$0xff]  ;;  %v6160_v13 = vld [vmem:[#allocation2 + $0x92] sm:$0xff] }
 0x252   : > { %14588 = vmatprep.mubr.msk.f32.mxu0 %vm347_vm0, %v6157_v33  ;;  %14684 = vmatpush3.msk.msra.mxu0 %vm638_vm2, %v17221_v10  ;;  %v17612_v4 = vpop.f32.mrf.mxu0  ;;  %v14140_v24 = vpop.f32.mrf.mxu1 }
 0x253   : > { %14439 = vmatmul.mubr.msk.f32.gmra.mxu1 %vm347_vm0, %v4991_v28  ;;  %v2718_v41 = vadd.f32 %v14140_v24, %v17266_v49  ;;  %v17618_v8 = vadd.f32 %v17239_v46, %v2715_v43 }
 0x254   : > { %14441 = vmatprep.mubr.msk.f32.mxu1 %vm347_vm0, %v6155_v14  ;;  %v17620_v45 = vpop.f32.mrf.mxu0  ;;  %v2566_v26 = vpop.f32.mrf.mxu1 }
 0x255   : > { %14589 = vmatmul.mubr.msk.f32.gmra.mxu0 %vm347_vm0, %v6158_v52  ;;  %v2717_v10 = vadd.f32 %v2566_v26, %v17278_v1  ;;  %v17626_v28 = vadd.f32 %v17254_v9, %v2718_v41  ;;  %v6161_v9 = vld [vmem:[#allocation2 + $0xaa] sm:$0xff]  ;;  %v6162_v26 = vld [vmem:[#allocation2 + $0xb2] sm:$0xff] }
 0x256   : > { %14591 = vmatprep.mubr.msk.f32.mxu0 %vm347_vm0, %v6159_v16  ;;  %v17628_v49 = vpop.f32.mrf.mxu0  ;;  %v14143_v14 = vpop.f32.mrf.mxu1 }
 0x257   : > { %14442 = vmatmul.mubr.msk.f32.gmra.mxu1 %vm347_vm0, %v6156_v32  ;;  %v2720_v46 = vadd.f32 %v14143_v14, %v17290_v18  ;;  %v17634_v43 = vadd.f32 %v17268_v27, %v2717_v10 }
 0x258   : > { %14444 = vmatprep.mubr.msk.f32.mxu1 %vm347_vm0, %v6157_v33  ;;  %v17636_v24 = vpop.f32.mrf.mxu0  ;;  %v2576_v1 = vpop.f32.mrf.mxu1 }
 0x259   : > { %14592 = vmatmul.mubr.msk.f32.gmra.mxu0 %vm347_vm0, %v6160_v13  ;;  %v2719_v41 = vadd.f32 %v2576_v1, %v17302_v53  ;;  %v17642_v32 = vadd.f32 %v17280_v38, %v2720_v46  ;;  %v6163_v38 = vld [vmem:[#allocation2 + $0xca] sm:$0xff]  ;;  %v6164_v1 = vld [vmem:[#allocation2 + $0xd2] sm:$0xff] }
 0x25a   : > { %14594 = vmatprep.mubr.msk.f32.mxu0 %vm347_vm0, %v6161_v9  ;;  %v17644_v18 = vpop.f32.mrf.mxu0  ;;  %v14146_v33 = vpop.f32.mrf.mxu1 }
 0x25b   : > { %14445 = vmatmul.mubr.msk.f32.gmra.mxu1 %vm347_vm0, %v6158_v52  ;;  %v2722_v27 = vadd.f32 %v14146_v33, %v17314_v56  ;;  %v17650_v10 = vadd.f32 %v17292_v44, %v2719_v41 }
 0x25c   : > { %14447 = vmatprep.mubr.msk.f32.mxu1 %vm347_vm0, %v6159_v16  ;;  %v17652_v14 = vpop.f32.mrf.mxu0  ;;  %v2586_v53 = vpop.f32.mrf.mxu1 }
 0x25d   : > { %14595 = vmatmul.mubr.msk.f32.gmra.mxu0 %vm347_vm0, %v6162_v26  ;;  %v2721_v46 = vadd.f32 %v2586_v53, %v17326_v23  ;;  %v17658_v52 = vadd.f32 %v17304_v59, %v2722_v27  ;;  %v6165_v59 = vld [vmem:[#allocation2 + $0xea] sm:$0xff]  ;;  %v6166_v53 = vld [vmem:[#allocation2 + $0xf2] sm:$0xff] }
 0x25e   : > { %14597 = vmatprep.mubr.msk.f32.mxu0 %vm347_vm0, %v6163_v38  ;;  %v17660_v56 = vpop.f32.mrf.mxu0  ;;  %v14149_v16 = vpop.f32.mrf.mxu1 }
 0x25f   : > { %14448 = vmatmul.mubr.msk.f32.gmra.mxu1 %vm347_vm0, %v6160_v13  ;;  %v2724_v44 = vadd.f32 %v14149_v16, %v17338_v7  ;;  %v17666_v41 = vadd.f32 %v17316_v40, %v2721_v46 }
 0x260   : > { %14450 = vmatprep.mubr.msk.f32.mxu1 %vm347_vm0, %v6161_v9  ;;  %v17668_v33 = vpop.f32.mrf.mxu0  ;;  %v2596_v23 = vpop.f32.mrf.mxu1 }
 0x261   : > { %14598 = vmatmul.mubr.msk.f32.gmra.mxu0 %vm347_vm0, %v6164_v1  ;;  %v2723_v27 = vadd.f32 %v2596_v23, %v17350_v57  ;;  %v17674_v13 = vadd.f32 %v17328_v17, %v2724_v44  ;;  %v6167_v17 = vld [vmem:[#allocation2 + $0x10a] sm:$0xff]  ;;  %v6168_v23 = vld [vmem:[#allocation2 + $0x112] sm:$0xff] }
 0x262   : > { %14600 = vmatprep.mubr.msk.f32.mxu0 %vm347_vm0, %v6165_v59  ;;  %v17676_v7 = vpop.f32.mrf.mxu0  ;;  %v14152_v9 = vpop.f32.mrf.mxu1 }
 0x263   : > { %14451 = vmatmul.mubr.msk.f32.gmra.mxu1 %vm347_vm0, %v6162_v26  ;;  %v2726_v40 = vadd.f32 %v14152_v9, %v17362_v12  ;;  %v17682_v46 = vadd.f32 %v17340_v50, %v2723_v27 }
 0x264   : > { %14453 = vmatprep.mubr.msk.f32.mxu1 %vm347_vm0, %v6163_v38  ;;  %v17684_v16 = vpop.f32.mrf.mxu0  ;;  %v2606_v57 = vpop.f32.mrf.mxu1 }
 0x265   : > { %14601 = vmatmul.mubr.msk.f32.gmra.mxu0 %vm347_vm0, %v6166_v53  ;;  %v2725_v44 = vadd.f32 %v2606_v57, %v17374_v62  ;;  %v17690_v26 = vadd.f32 %v17352_v39, %v2726_v40  ;;  %v6169_v39 = vld [vmem:[#allocation2 + $0x12a] sm:$0xff]  ;;  %v6170_v57 = vld [vmem:[#allocation2 + $0x132] sm:$0xff] }
 0x266   : > { %14603 = vmatprep.mubr.msk.f32.mxu0 %vm347_vm0, %v6167_v17  ;;  %v17692_v12 = vpop.f32.mrf.mxu0  ;;  %v14155_v38 = vpop.f32.mrf.mxu1 }
 0x267   : > { %14454 = vmatmul.mubr.msk.f32.gmra.mxu1 %vm347_vm0, %v6164_v1  ;;  %v2728_v50 = vadd.f32 %v14155_v38, %v17386_v2  ;;  %v17698_v27 = vadd.f32 %v17364_v30, %v2725_v44 }
 0x268   : > { %14456 = vmatprep.mubr.msk.f32.mxu1 %vm347_vm0, %v6165_v59  ;;  %v17700_v9 = vpop.f32.mrf.mxu0  ;;  %v2616_v62 = vpop.f32.mrf.mxu1 }
 0x269   : > { %14604 = vmatmul.mubr.msk.f32.gmra.mxu0 %vm347_vm0, %v6168_v23  ;;  %v2727_v40 = vadd.f32 %v2616_v62, %v17398_v48  ;;  %v17706_v1 = vadd.f32 %v17376_v35, %v2728_v50  ;;  %v6171_v35 = vld [vmem:[#allocation2 + $0x14a] sm:$0xff]  ;;  %v6172_v62 = vld [vmem:[#allocation2 + $0x152] sm:$0xff] }
 0x26a   : > { %14606 = vmatprep.mubr.msk.f32.mxu0 %vm347_vm0, %v6169_v39  ;;  %v17708_v2 = vpop.f32.mrf.mxu0  ;;  %v14158_v59 = vpop.f32.mrf.mxu1 }
 0x26b   : > { %14457 = vmatmul.mubr.msk.f32.gmra.mxu1 %vm347_vm0, %v6166_v53  ;;  %v2730_v30 = vadd.f32 %v14158_v59, %v17410_v60  ;;  %v17714_v44 = vadd.f32 %v17388_v51, %v2727_v40 }
 0x26c   : > { %14459 = vmatprep.mubr.msk.f32.mxu1 %vm347_vm0, %v6167_v17  ;;  %v17716_v38 = vpop.f32.mrf.mxu0  ;;  %v2626_v48 = vpop.f32.mrf.mxu1 }
 0x26d   : > { %21781 = vst [vmem:[#allocation48_spill] sm:$0xff] %v17716_v38  ;;  %14607 = vmatmul.mubr.msk.f32.gmra.mxu0 %vm347_vm0, %v6170_v57  ;;  %v2729_v50 = vadd.f32 %v2626_v48, %v17422_v22  ;;  %v17722_v53 = vadd.f32 %v17400_v55, %v2730_v30  ;;  %v6173_v55 = vld [vmem:[#allocation2 + $0x16a] sm:$0xff] }
 0x26e   : > { %14609 = vmatprep.mubr.msk.f32.mxu0 %vm347_vm0, %v6171_v35  ;;  %v17724_v60 = vpop.f32.mrf.mxu0  ;;  %v14161_v17 = vpop.f32.mrf.mxu1  ;;  %v21785_v30 = vld [vmem:[#allocation93_spill] sm:$0xff] }
 0x26f   : > { %21782 = vst [vmem:[#allocation86_spill] sm:$0xff] %v17724_v60  ;;  %14460 = vmatmul.mubr.msk.f32.gmra.mxu1 %vm347_vm0, %v6168_v23  ;;  %v2732_v51 = vadd.f32 %v14161_v17, %v17434_v11  ;;  %v17730_v40 = vadd.f32 %v17412_v25, %v2729_v50  ;;  %v21786_v60 = vld [vmem:[#allocation39_spill] sm:$0xff]  ;;  %v21789_v25 = vld [vmem:[#allocation82_spill] sm:$0xff] }
 0x270   : > { %14462 = vmatprep.mubr.msk.f32.mxu1 %vm347_vm0, %v6169_v39  ;;  %v17732_v59 = vpop.f32.mrf.mxu0  ;;  %v2636_v22 = vpop.f32.mrf.mxu1  ;;  %v6174_v17 = vld [vmem:[#allocation2 + $0x172] sm:$0xff] }
 0x271   : > { %21783 = vst [vmem:[#allocation78_spill] sm:$0xff] %v17730_v40  ;;  %21784 = vst [vmem:[#allocation42_spill] sm:$0xff] %v17732_v59  ;;  %14610 = vmatmul.mubr.msk.f32.gmra.mxu0 %vm347_vm0, %v6172_v62  ;;  %v2731_v48 = vadd.f32 %v2636_v22, %v21785_v30  ;;  %v17738_v23 = vadd.f32 %v21786_v60, %v2732_v51  ;;  %v21790_v59 = vld [vmem:[#allocation89_spill] sm:$0xff]  ;;  %v21793_v51 = vld [vmem:[#allocation40_spill] sm:$0xff] }
 0x272   : > { %14612 = vmatprep.mubr.msk.f32.mxu0 %vm347_vm0, %v6173_v55  ;;  %v17740_v11 = vpop.f32.mrf.mxu0  ;;  %v14164_v39 = vpop.f32.mrf.mxu1  ;;  %v6175_v60 = vld [vmem:[#allocation2 + $0x18a] sm:$0xff] }
 0x273   : > { %21787 = vst [vmem:[#allocation100_spill] sm:$0xff] %v17738_v23  ;;  %21788 = vst [vmem:[#allocation79_spill] sm:$0xff] %v17740_v11  ;;  %14463 = vmatmul.mubr.msk.f32.gmra.mxu1 %vm347_vm0, %v6170_v57  ;;  %v2734_v50 = vadd.f32 %v14164_v39, %v21789_v25  ;;  %v17746_v40 = vadd.f32 %v21790_v59, %v2731_v48  ;;  %v21794_v11 = vld [vmem:[#allocation45_spill] sm:$0xff]  ;;  %v6176_v25 = vld [vmem:[#allocation2 + $0x192] sm:$0xff] }
 0x274   : > { %14465 = vmatprep.mubr.msk.f32.mxu1 %vm347_vm0, %v6171_v35  ;;  %v17748_v38 = vpop.f32.mrf.mxu0  ;;  %v2646_v22 = vpop.f32.mrf.mxu1  ;;  %v21797_v59 = vld [vmem:[#allocation77_spill] sm:$0xff] }
 0x275   : > { %21791 = vst [vmem:[#allocation50_spill] sm:$0xff] %v17746_v40  ;;  %21792 = vst [vmem:[#allocation88_spill] sm:$0xff] %v17748_v38  ;;  %14613 = vmatmul.mubr.msk.f32.gmra.mxu0 %vm347_vm0, %v6174_v17  ;;  %v2733_v30 = vadd.f32 %v2646_v22, %v21793_v51  ;;  %v17754_v57 = vadd.f32 %v21794_v11, %v2734_v50  ;;  %v21798_v38 = vld [vmem:[#allocation76_spill] sm:$0xff]  ;;  %v6177_v11 = vld [vmem:[#allocation2 + $0x1aa] sm:$0xff] }
 0x276   : > { %14615 = vmatprep.mubr.msk.f32.mxu0 %vm347_vm0, %v6175_v60  ;;  %v17756_v39 = vpop.f32.mrf.mxu0  ;;  %v14167_v35 = vpop.f32.mrf.mxu1  ;;  %v21801_v50 = vld [vmem:[#allocation84_spill] sm:$0xff] }
 0x277   : > { %21795 = vst [vmem:[#allocation106_spill] sm:$0xff] %v17754_v57  ;;  %21796 = vst [vmem:[#allocation43_spill] sm:$0xff] %v17756_v39  ;;  %14466 = vmatmul.mubr.msk.f32.gmra.mxu1 %vm347_vm0, %v6172_v62  ;;  %v2736_v48 = vadd.f32 %v14167_v35, %v21797_v59  ;;  %v17762_v40 = vadd.f32 %v21798_v38, %v2733_v30  ;;  %v21802_v39 = vld [vmem:[#allocation92_spill] sm:$0xff]  ;;  %v21804_v38 = vld [vmem:[#allocation41_spill] sm:$0xff] }
 0x278   : > { %14468 = vmatprep.mubr.msk.f32.mxu1 %vm347_vm0, %v6173_v55  ;;  %v17764_v23 = vpop.f32.mrf.mxu0  ;;  %v2656_v22 = vpop.f32.mrf.mxu1  ;;  %v6178_v59 = vld [vmem:[#allocation2 + $0x1b2] sm:$0xff] }
 0x279   : > { %21799 = vst [vmem:[#allocation104_spill] sm:$0xff] %v17762_v40  ;;  %21800 = vst [vmem:[#allocation109_spill] sm:$0xff] %v17764_v23  ;;  %14616 = vmatmul.mubr.msk.f32.gmra.mxu0 %vm347_vm0, %v6176_v25  ;;  %v2735_v51 = vadd.f32 %v2656_v22, %v21801_v50  ;;  %v17770_v62 = vadd.f32 %v21802_v39, %v2736_v48  ;;  %v21805_v23 = vld [vmem:[#allocation47_spill] sm:$0xff]  ;;  %v6179_v39 = vld [vmem:[#allocation2 + $0x1ca] sm:$0xff] }
 0x27a   : > { %14618 = vmatprep.mubr.msk.f32.mxu0 %vm347_vm0, %v6177_v11  ;;  %v17772_v35 = vpop.f32.mrf.mxu0  ;;  %v14170_v55 = vpop.f32.mrf.mxu1  ;;  %v21807_v50 = vld [vmem:[#allocation98_spill] sm:$0xff] }
 0x27b   : > { %21803 = vst [vmem:[#allocation52_spill] sm:$0xff] %v17772_v35  ;;  %14469 = vmatmul.mubr.msk.f32.gmra.mxu1 %vm347_vm0, %v6174_v17  ;;  %v2738_v30 = vadd.f32 %v14170_v55, %v21804_v38  ;;  %v17778_v40 = vadd.f32 %v21805_v23, %v2735_v51  ;;  %v6180_v51 = vld [vmem:[#allocation2 + $0x1d2] sm:$0xff]  ;;  %v21808_v38 = vld [vmem:[#allocation96_spill] sm:$0xff] }
 0x27c   : > { %14471 = vmatprep.mubr.msk.f32.mxu1 %vm347_vm0, %v6175_v60  ;;  %v17780_v57 = vpop.f32.mrf.mxu0  ;;  %v2666_v22 = vpop.f32.mrf.mxu1 }
 0x27d   : > { %21806 = vst [vmem:[#allocation91_spill] sm:$0xff] %v17780_v57  ;;  %14619 = vmatmul.mubr.msk.f32.gmra.mxu0 %vm347_vm0, %v6178_v59  ;;  %v2737_v48 = vadd.f32 %v2666_v22, %v17518_v21  ;;  %v17786_v17 = vadd.f32 %v21807_v50, %v2738_v30  ;;  %v6181_v30 = vld [vmem:[#allocation2 + $0x1ea] sm:$0xff]  ;;  %v6182_v50 = vld [vmem:[#allocation2 + $0x1f2] sm:$0xff] }
 0x27e   : > { %14621 = vmatprep.mubr.msk.f32.mxu0 %vm347_vm0, %v6179_v39  ;;  %v17788_v55 = vpop.f32.mrf.mxu0  ;;  %v14173_v60 = vpop.f32.mrf.mxu1 }
 0x27f   : > { %14472 = vmatmul.mubr.msk.f32.gmra.mxu1 %vm347_vm0, %v6176_v25  ;;  %v2740_v23 = vadd.f32 %v14173_v60, %v17530_v47  ;;  %v17794_v57 = vadd.f32 %v21808_v38, %v2737_v48 }
 0x280   : > { %14474 = vmatprep.mubr.msk.f32.mxu1 %vm347_vm0, %v6177_v11  ;;  %v17796_v35 = vpop.f32.mrf.mxu0  ;;  %v2676_v21 = vpop.f32.mrf.mxu1 }
 0x281   : > { %14622 = vmatmul.mubr.msk.f32.gmra.mxu0 %vm347_vm0, %v6180_v51  ;;  %v2739_v22 = vadd.f32 %v2676_v21, %v17540_v37  ;;  %v17802_v25 = vadd.f32 %v17520_v36, %v2740_v23  ;;  %v6183_v36 = vld [vmem:[#allocation2 + $0x20a] sm:$0xff]  ;;  %v6184_v21 = vld [vmem:[#allocation2 + $0x212] sm:$0xff] }
 0x282   : > { %14624 = vmatprep.mubr.msk.f32.mxu0 %vm347_vm0, %v6181_v30  ;;  %v17804_v47 = vpop.f32.mrf.mxu0  ;;  %v14176_v11 = vpop.f32.mrf.mxu1 }
 0x283   : > { %14475 = vmatmul.mubr.msk.f32.gmra.mxu1 %vm347_vm0, %v6178_v59  ;;  %v2742_v48 = vadd.f32 %v14176_v11, %v17549_v3  ;;  %v17810_v60 = vadd.f32 %v17532_v6, %v2739_v22 }
 0x284   : > { %14477 = vmatprep.mubr.msk.f32.mxu1 %vm347_vm0, %v6179_v39  ;;  %v17812_v38 = vpop.f32.mrf.mxu0  ;;  %v2686_v37 = vpop.f32.mrf.mxu1 }
 0x285   : > { %14625 = vmatmul.mubr.msk.f32.gmra.mxu0 %vm347_vm0, %v6182_v50  ;;  %v2741_v23 = vadd.f32 %v2686_v37, %v17558_v61  ;;  %v17818_v59 = vadd.f32 %v17542_v42, %v2742_v48  ;;  %v6185_v42 = vld [vmem:[#allocation2 + $0x22a] sm:$0xff] }
 0x286   : > { %14627 = vmatprep.mubr.msk.f32.mxu0 %vm347_vm0, %v6183_v36  ;;  %v17820_v3 = vpop.f32.mrf.mxu0  ;;  %v14179_v39 = vpop.f32.mrf.mxu1  ;;  %v21809_v37 = vld [vmem:[#allocation101_spill] sm:$0xff]  ;;  %v21810_v36 = vld [vmem:[#allocation159_spill] sm:$0xff] }
 0x287   : > { %14478 = vmatmul.mubr.msk.f32.gmra.mxu1 %vm347_vm0, %v6180_v51  ;;  %v2744_v6 = vadd.f32 %v14179_v39, %v17566_v20  ;;  %v17826_v22 = vadd.f32 %v17551_v29, %v2741_v23  ;;  %v6186_v23 = vld [vmem:[#allocation2 + $0x232] sm:$0xff] }
 0x288   : > { %14480 = vmatprep.mubr.msk.f32.mxu1 %vm347_vm0, %v6181_v30  ;;  %v17828_v11 = vpop.f32.mrf.mxu0  ;;  %v2696_v61 = vpop.f32.mrf.mxu1 }
 0x289   : > { %14628 = vmatmul.mubr.msk.f32.gmra.mxu0 %vm347_vm0, %v6184_v21  ;;  %v2743_v48 = vadd.f32 %v2696_v61, %v17575_v0  ;;  %v17834_v51 = vadd.f32 %v21809_v37, %v2744_v6  ;;  %v6934_v21 = vld [vmem:[#allocation2 + $0x88] sm:$0xff] }
 0x28a   : > { %14630 = vmatprep.mubr.msk.f32.mxu0 %vm347_vm0, %v6185_v42  ;;  %v17836_v20 = vpop.f32.mrf.mxu0  ;;  %v14182_v30 = vpop.f32.mrf.mxu1  ;;  %v5768_v37 = vld [vmem:[#allocation2 + $0x68] sm:$0xff] }
 0x28b   : > { %14481 = vmatmul.mubr.msk.f32.gmra.mxu1 %vm347_vm0, %v6182_v50  ;;  %v2746_v29 = vadd.f32 %v14182_v30, %v17583_v63  ;;  %v17843_v39 = vadd.f32 %v17568_v34, %v2743_v48  ;;  %v17856_v63 = vld [vmem:[%s21346_s3 + $0x20] sm:$0xf] }
 0x28c   : > { %14535 = vmatprep.mubr.msk.f32.mxu1 %vm347_vm0, %v21810_v36  ;;  %v17845_v0 = vpop.f32.mrf.mxu0  ;;  %v2706_v6 = vpop.f32.mrf.mxu1  ;;  %v21811_v48 = vld [vmem:[#allocation160_spill] sm:$0xff] }
 0x28d   : > { %14631 = vmatmul.mubr.msk.f32.gmra.mxu0 %vm347_vm0, %v6186_v23  ;;  %v2745_v61 = vadd.f32 %v2706_v6, %v17598_v19  ;;  %v17851_v50 = vadd.f32 %v17577_v5, %v2746_v29  ;;  %v6935_v5 = vld [vmem:[#allocation2 + $0x90] sm:$0xff]  ;;  %v17872_v29 = vld [vmem:[%s21345_s2] ss:$0 sm:$0xff] }
 0x28e   : > { %14685 = vmatprep.mubr.msk.f32.mxu0 %vm347_vm0, %v6934_v21  ;;  %v17858_v34 = vpop.f32.mrf.mxu0  ;;  %v14237_v42 = vpop.f32.mrf.mxu1 }
 0x28f   : > { %14536 = vmatmul.mubr.msk.f32.vlgmr.msra.gmra.mxu1 %vm347_vm0, %v21811_v48  ;;  %v3495_v30 = vadd.f32 %v14237_v42, %v17608_v15  ;;  %v17867_v19 = vadd.f32 %v17590_v31, %v2745_v61  ;;  %v6936_v15 = vld [vmem:[#allocation2 + $0xa8] sm:$0xff]  ;;  %v5769_v31 = vld [vmem:[#allocation2 + $0x70] sm:$0xff] }
 0x290   : > { %14634 = vmatpush3.msk.msra.mxu1 %vm638_vm2, %v17588_v58  ;;  %14538 = vmatprep.mubr.msk.f32.mxu1 %vm347_vm0, %v5768_v37  ;;  %v17874_v36 = vpop.f32.mrf.mxu0  ;;  %v3335_v23 = vpop.f32.mrf.mxu1 }
 0x291   : > { %21812 = vst [vmem:[#allocation80_spill] sm:$0xff] %v17874_v36  ;;  %14686 = vmatmul.mubr.msk.f32.vlgmr.msra.gmra.mxu0 %vm347_vm0, %v6935_v5  ;;  %14733 = vmatprep.subr.msk.mxu1 %vm638_vm2, %v17856_v63  ;;  %v3884_v58 = vadd.f32 %v17600_v54, %v3495_v30  ;;  %v3494_v6 = vadd.f32 %v3335_v23, %v17618_v8  ;;  %v6937_v54 = vld [vmem:[#allocation2 + $0xb0] sm:$0xff]  ;;  %v6938_v23 = vld [vmem:[#allocation2 + $0xc8] sm:$0xff] }
 0x292   : > { %14688 = vmatprep.mubr.msk.f32.mxu0 %vm347_vm0, %v6936_v15  ;;  %v17882_v61 = vpop.f32.mrf.mxu0  ;;  %v14240_v42 = vpop.f32.mrf.mxu1 }
 0x293   : > { %21813 = vst [vmem:[#allocation44_spill] sm:$0xff] %v17882_v61  ;;  %14539 = vmatmul.mubr.msk.f32.gmra.mxu1 %vm347_vm0, %v5769_v31  ;;  %v17886_v48 = vadd.f32 %v17872_v29, %v3884_v58  ;;  %v3883_v37 = vadd.f32 %v17612_v4, %v3494_v6  ;;  %v3497_v36 = vadd.f32 %v14240_v42, %v17626_v28 }
 0x294   : > { %14541 = vmatprep.mubr.msk.f32.mxu1 %vm347_vm0, %v6934_v21  ;;  %v17891_v30 = vpop.f32.mrf.mxu0  ;;  %v3345_v8 = vpop.f32.mrf.mxu1 }
 0x295   : > { %21814 = vst [vmem:[#allocation108_spill] sm:$0xff] %v17891_v30  ;;  %14689 = vmatmul.mubr.msk.f32.gmra.mxu0 %vm347_vm0, %v6937_v54  ;;  %v3955_v61 = vmin.f32 %v17886_v48, 20.0  ;;  %v17896_v31 = vadd.f32 %v17872_v29, %v3883_v37  ;;  %v3886_v58 = vadd.f32 %v17620_v45, %v3497_v36  ;;  %v3496_v4 = vadd.f32 %v3345_v8, %v17634_v43  ;;  %v6939_v45 = vld [vmem:[#allocation2 + $0xd0] sm:$0xff] }
 0x296   : > { %14691 = vmatprep.mubr.msk.f32.mxu0 %vm347_vm0, %v6938_v23  ;;  %v17901_v28 = vpop.f32.mrf.mxu0  ;;  %v14243_v21 = vpop.f32.mrf.mxu1 }
 0x297   : > { %21815 = vst [vmem:[#allocation81_spill] sm:$0xff] %v17901_v28  ;;  %14542 = vmatmul.mubr.msk.f32.gmra.mxu1 %vm347_vm0, %v6935_v5  ;;  %v3988_v6 = vmul.f32 1.442695, %v3955_v61  ;;  %v3954_v42 = vmin.f32 %v17896_v31, 20.0  ;;  %v17906_v30 = vadd.f32 %v17872_v29, %v3886_v58  ;;  %v3885_v37 = vadd.f32 %v17628_v49, %v3496_v4  ;;  %v6940_v28 = vld [vmem:[#allocation2 + $0xe8] sm:$0xff] }
 0x298   : > { %14544 = vmatprep.mubr.msk.f32.mxu1 %vm347_vm0, %v6936_v15  ;;  %v3499_v43 = vadd.f32 %v14243_v21, %v17642_v32  ;;  %v17911_v36 = vpop.f32.mrf.mxu0  ;;  %v3355_v8 = vpop.f32.mrf.mxu1 }
 0x299   : > { %21816 = vst [vmem:[#allocation53_spill] sm:$0xff] %v17911_v36  ;;  %14692 = vmatmul.mubr.msk.f32.gmra.mxu0 %vm347_vm0, %v6939_v45  ;;  %15246 = vpow2.f32 %v3988_v6  ;;  %v3986_v5 = vmul.f32 1.442695, %v3954_v42  ;;  %v3957_v61 = vmin.f32 %v17906_v30, 20.0  ;;  %v17916_v58 = vadd.f32 %v17872_v29, %v3885_v37  ;;  %v6941_v37 = vld [vmem:[#allocation2 + $0xf0] sm:$0xff] }
 0x29a   : > { %14694 = vmatprep.mubr.msk.f32.mxu0 %vm347_vm0, %v6940_v28  ;;  %v3888_v49 = vadd.f32 %v17636_v24, %v3499_v43  ;;  %v3498_v15 = vadd.f32 %v3355_v8, %v17650_v10  ;;  %v17921_v32 = vpop.f32.mrf.mxu0  ;;  %v14246_v4 = vpop.f32.mrf.mxu1 }
 0x29b   : > { %14545 = vmatmul.mubr.msk.f32.gmra.mxu1 %vm347_vm0, %v6937_v54  ;;  %15248 = vpow2.f32 %v3986_v5  ;;  %v3992_v21 = vmul.f32 1.442695, %v3957_v61  ;;  %v3956_v6 = vmin.f32 %v17916_v58, 20.0  ;;  %v3501_v42 = vadd.f32 %v14246_v4, %v17658_v52  ;;  %v6942_v54 = vld [vmem:[#allocation2 + $0x108] sm:$0xff]  ;;  %v6943_v4 = vld [vmem:[#allocation2 + $0x110] sm:$0xff] }
 0x29c   : > { %14547 = vmatprep.mubr.msk.f32.mxu1 %vm347_vm0, %v6938_v23  ;;  %v17928_v36 = vadd.f32 %v17872_v29, %v3888_v49  ;;  %v3887_v24 = vadd.f32 %v17644_v18, %v3498_v15  ;;  %v17931_v10 = vpop.f32.mrf.mxu0  ;;  %v3365_v43 = vpop.f32.mrf.mxu1 }
 0x29d   : > { %14695 = vmatmul.mubr.msk.f32.gmra.mxu0 %vm347_vm0, %v6941_v37  ;;  %v3990_v8 = vmul.f32 1.442695, %v3956_v6  ;;  %v3890_v5 = vadd.f32 %v17652_v14, %v3501_v42  ;;  %v3500_v61 = vadd.f32 %v3365_v43, %v17666_v41  ;;  %15250 = vpow2.f32 %v3992_v21 }
 0x29e   : > { %14697 = vmatprep.mubr.msk.f32.mxu0 %vm347_vm0, %v6942_v54  ;;  %v3959_v52 = vmin.f32 %v17928_v36, 20.0  ;;  %v17939_v23 = vadd.f32 %v17872_v29, %v3887_v24  ;;  %v17941_v18 = vpop.f32.mrf.mxu0  ;;  %v14249_v49 = vpop.f32.mrf.mxu1 }
 0x29f   : > { %14548 = vmatmul.mubr.msk.f32.gmra.mxu1 %vm347_vm0, %v6939_v45  ;;  %v17945_v15 = vadd.f32 %v17872_v29, %v3890_v5  ;;  %v3889_v14 = vadd.f32 %v17660_v56, %v3500_v61  ;;  %v3503_v41 = vadd.f32 %v14249_v49, %v17674_v13  ;;  %15252 = vpow2.f32 %v3990_v8  ;;  %v6944_v45 = vld [vmem:[#allocation2 + $0x128] sm:$0xff] }
 0x2a0   : > { %14550 = vmatprep.mubr.msk.f32.mxu1 %vm347_vm0, %v6940_v28  ;;  %v3996_v21 = vmul.f32 1.442695, %v3959_v52  ;;  %v3958_v6 = vmin.f32 %v17939_v23, 20.0  ;;  %v17951_v42 = vpop.f32.mrf.mxu0  ;;  %v3375_v24 = vpop.f32.mrf.mxu1 }
 0x2a1   : > { %21817 = vst [vmem:[#allocation95_spill] sm:$0xff] %v17945_v15  ;;  %14698 = vmatmul.mubr.msk.f32.gmra.mxu0 %vm347_vm0, %v6943_v4  ;;  %v3961_v43 = vmin.f32 %v17945_v15, 20.0  ;;  %v17956_v5 = vadd.f32 %v17872_v29, %v3889_v14  ;;  %v3892_v56 = vadd.f32 %v17668_v33, %v3503_v41  ;;  %v3502_v13 = vadd.f32 %v3375_v24, %v17682_v46  ;;  %v6945_v33 = vld [vmem:[#allocation2 + $0x130] sm:$0xff]  ;;  %v6946_v24 = vld [vmem:[#allocation2 + $0x148] sm:$0xff] }
 0x2a2   : > { %14700 = vmatprep.mubr.msk.f32.mxu0 %vm347_vm0, %v6944_v45  ;;  %v3994_v28 = vmul.f32 1.442695, %v3958_v6  ;;  %v17961_v8 = vpop.f32.mrf.mxu0  ;;  %v14252_v61 = vpop.f32.mrf.mxu1  ;;  %15254 = vpow2.f32 %v3996_v21 }
 0x2a3   : > { %21818 = vst [vmem:[#allocation114_spill] sm:$0xff] %v17956_v5  ;;  %14551 = vmatmul.mubr.msk.f32.gmra.mxu1 %vm347_vm0, %v6941_v37  ;;  %v4000_v52 = vmul.f32 1.442695, %v3961_v43  ;;  %v3960_v49 = vmin.f32 %v17956_v5, 20.0  ;;  %v17966_v15 = vadd.f32 %v17872_v29, %v3892_v56  ;;  %v3891_v14 = vadd.f32 %v17676_v7, %v3502_v13 }
 0x2a4   : > { %14553 = vmatprep.mubr.msk.f32.mxu1 %vm347_vm0, %v6942_v54  ;;  %v3505_v46 = vadd.f32 %v14252_v61, %v17690_v26  ;;  %v17971_v41 = vpop.f32.mrf.mxu0  ;;  %v3385_v6 = vpop.f32.mrf.mxu1  ;;  %15256 = vpow2.f32 %v3994_v28 }
 0x2a5   : > { %21819 = vst [vmem:[#allocation46_spill] sm:$0xff] %v17966_v15  ;;  %21820 = vst [vmem:[#allocation112_spill] sm:$0xff] %v17971_v41  ;;  %14701 = vmatmul.mubr.msk.f32.gmra.mxu0 %vm347_vm0, %v6945_v33  ;;  %v3998_v37 = vmul.f32 1.442695, %v3960_v49  ;;  %v3963_v43 = vmin.f32 %v17966_v15, 20.0  ;;  %v17976_v56 = vadd.f32 %v17872_v29, %v3891_v14  ;;  %v3504_v26 = vadd.f32 %v3385_v6, %v17698_v27  ;;  %v6947_v15 = vld [vmem:[#allocation2 + $0x150] sm:$0xff] }
 0x2a6   : > { %14703 = vmatprep.mubr.msk.f32.mxu0 %vm347_vm0, %v6946_v24  ;;  %v15247_v7 = vpop.eup %15246  ;;  %v3894_v54 = vadd.f32 %v17684_v16, %v3505_v46  ;;  %v17981_v13 = vpop.f32.mrf.mxu0  ;;  %15258 = vpow2.f32 %v4000_v52  ;;  %v6948_v52 = vld [vmem:[#allocation2 + $0x168] sm:$0xff]  ;;  %v21846_v41 = vld [vmem:[#allocation104_spill] sm:$0xff] }
 0x2a7   : > { %21821 = vst [vmem:[#allocation117_spill] sm:$0xff] %v17976_v56  ;;  %21822 = vst [vmem:[#allocation55_spill] sm:$0xff] %v17981_v13  ;;  %v14255_v61 = vpop.f32.mrf.mxu1  ;;  %14554 = vmatmul.mubr.msk.f32.gmra.mxu1 %vm347_vm0, %v6943_v4  ;;  %v4004_v21 = vmul.f32 1.442695, %v3963_v43  ;;  %v3962_v49 = vmin.f32 %v17976_v56, 20.0  ;;  %15260 = vpow2.f32 %v3998_v37  ;;  %v3893_v27 = vadd.f32 %v17692_v12, %v3504_v26 }
 0x2a8   : > { %v3507_v14 = vadd.f32 %v14255_v61, %v17706_v1  ;;  %14556 = vmatprep.mubr.msk.f32.mxu1 %vm347_vm0, %v6944_v45  ;;  %v15249_v5 = vpop.eup %15248  ;;  %v17988_v16 = vadd.f32 %v17872_v29, %v3894_v54  ;;  %v17991_v28 = vpop.f32.mrf.mxu0  ;;  %v4051_v46 = vadd.f32 2.0, %v15247_v7 }
 0x2a9   : > { %21824 = vst [vmem:[#allocation83_spill] sm:$0xff] %v17991_v28  ;;  %14704 = vmatmul.mubr.msk.f32.gmra.mxu0 %vm347_vm0, %v6947_v15  ;;  %v3395_v4 = vpop.f32.mrf.mxu1  ;;  %15262 = vpow2.f32 %v4004_v21  ;;  %v4002_v6 = vmul.f32 1.442695, %v3962_v49  ;;  %v17999_v43 = vadd.f32 %v17872_v29, %v3893_v27  ;;  %v4050_v61 = vadd.f32 2.0, %v15249_v5 }
 0x2aa   : > { %21823 = vst [vmem:[#allocation99_spill] sm:$0xff] %v17988_v16  ;;  %v3896_v1 = vadd.f32 %v17700_v9, %v3507_v14  ;;  %v3506_v45 = vadd.f32 %v3395_v4, %v17714_v44  ;;  %14706 = vmatprep.mubr.msk.f32.mxu0 %vm347_vm0, %v6948_v52  ;;  %v3965_v37 = vmin.f32 %v17988_v16, 20.0  ;;  %v18001_v12 = vpop.f32.mrf.mxu0  ;;  %v18004_v26 = vmul.f32 %v15247_v7, %v4051_v46  ;;  %v15251_v21 = vpop.eup %15250  ;;  %v6949_v14 = vld [vmem:[#allocation2 + $0x170] sm:$0xff]  ;;  %v6950_v7 = vld [vmem:[#allocation2 + $0x188] sm:$0xff] }
 0x2ab   : > { %21825 = vst [vmem:[#allocation49_spill] sm:$0xff] %v17999_v43  ;;  %21826 = vst [vmem:[#allocation116_spill] sm:$0xff] %v18001_v12  ;;  %v14258_v54 = vpop.f32.mrf.mxu1  ;;  %14557 = vmatmul.mubr.msk.f32.gmra.mxu1 %vm347_vm0, %v6945_v33  ;;  %15264 = vpow2.f32 %v4002_v6  ;;  %v3964_v4 = vmin.f32 %v17999_v43, 20.0  ;;  %v18017_v6 = vmul.f32 %v15249_v5, %v4050_v61  ;;  %v4053_v61 = vadd.f32 2.0, %v15251_v21 }
 0x2ac   : > { %v18007_v9 = vadd.f32 %v17872_v29, %v3896_v1  ;;  %v3895_v44 = vadd.f32 %v17708_v2, %v3506_v45  ;;  %v3509_v49 = vadd.f32 %v14258_v54, %v17722_v53  ;;  %14559 = vmatprep.mubr.msk.f32.mxu1 %vm347_vm0, %v6946_v24  ;;  %v4008_v27 = vmul.f32 1.442695, %v3965_v37  ;;  %v18013_v16 = vpop.f32.mrf.mxu0  ;;  %v15253_v1 = vpop.eup %15252  ;;  %v21830_v24 = vld [vmem:[#allocation48_spill] sm:$0xff]  ;;  %v21831_v37 = vld [vmem:[#allocation78_spill] sm:$0xff] }
 0x2ad   : > { %21828 = vst [vmem:[#allocation57_spill] sm:$0xff] %v18013_v16  ;;  %14707 = vmatmul.mubr.msk.f32.gmra.mxu0 %vm347_vm0, %v6949_v14  ;;  %v3405_v33 = vpop.f32.mrf.mxu1  ;;  %v4115_v46 = vadd.f32 2.0, %v18004_v26  ;;  %v4006_v43 = vmul.f32 1.442695, %v3964_v4  ;;  %v4114_v5 = vadd.f32 2.0, %v18017_v6  ;;  %v21835_v4 = vld [vmem:[#allocation100_spill] sm:$0xff] }
 0x2ae   : > { %21827 = vst [vmem:[#allocation85_spill] sm:$0xff] %v18007_v9  ;;  %v3967_v2 = vmin.f32 %v18007_v9, 20.0  ;;  %v18021_v53 = vadd.f32 %v17872_v29, %v3895_v44  ;;  %v3898_v45 = vadd.f32 %v21830_v24, %v3509_v49  ;;  %v3508_v54 = vadd.f32 %v3405_v33, %v21831_v37  ;;  %14709 = vmatprep.mubr.msk.f32.mxu0 %vm347_vm0, %v6950_v7  ;;  %v18026_v16 = vpop.f32.mrf.mxu0  ;;  %v21834_v49 = vld [vmem:[#allocation86_spill] sm:$0xff] }
 0x2af   : > { %15266 = vpow2.f32 %v4008_v27  ;;  %21832 = vst [vmem:[#allocation122_spill] sm:$0xff] %v18026_v16  ;;  %v14261_v56 = vpop.f32.mrf.mxu1  ;;  %14560 = vmatmul.mubr.msk.f32.gmra.mxu1 %vm347_vm0, %v6947_v15  ;;  %v6951_v27 = vld [vmem:[#allocation2 + $0x190] sm:$0xff]  ;;  %v6952_v16 = vld [vmem:[#allocation2 + $0x1a8] sm:$0xff] }
 0x2b0   : > { %21829 = vst [vmem:[#allocation103_spill] sm:$0xff] %v18021_v53  ;;  %v4012_v9 = vmul.f32 1.442695, %v3967_v2  ;;  %v3966_v44 = vmin.f32 %v18021_v53, 20.0  ;;  %v18032_v12 = vadd.f32 %v17872_v29, %v3898_v45  ;;  %v3897_v33 = vadd.f32 %v21834_v49, %v3508_v54  ;;  %14562 = vmatprep.mubr.msk.f32.mxu1 %vm347_vm0, %v6948_v52  ;;  %v18037_v37 = vpop.f32.mrf.mxu0  ;;  %v18047_v52 = vpop.eup %15254  ;;  %v21839_v49 = vld [vmem:[#allocation50_spill] sm:$0xff] }
 0x2b1   : > { %15268 = vpow2.f32 %v4006_v43  ;;  %v3511_v24 = vadd.f32 %v14261_v56, %v21835_v4  ;;  %21836 = vst [vmem:[#allocation120_spill] sm:$0xff] %v18037_v37  ;;  %14710 = vmatmul.mubr.msk.f32.gmra.mxu0 %vm347_vm0, %v6951_v27  ;;  %v3415_v15 = vpop.f32.mrf.mxu1  ;;  %v18040_v2 = vmul.f32 %v15251_v21, %v4053_v61  ;;  %v4052_v53 = vadd.f32 2.0, %v15253_v1  ;;  %v21838_v56 = vld [vmem:[#allocation42_spill] sm:$0xff]  ;;  %v18055_v61 = vpop.eup %15256 }
 0x2b2   : > { %21833 = vst [vmem:[#allocation51_spill] sm:$0xff] %v18032_v12  ;;  %15270 = vpow2.f32 %v4012_v9  ;;  %v4010_v45 = vmul.f32 1.442695, %v3966_v44  ;;  %v3969_v28 = vmin.f32 %v18032_v12, 20.0  ;;  %v18044_v54 = vadd.f32 %v17872_v29, %v3897_v33  ;;  %14712 = vmatprep.mubr.msk.f32.mxu0 %vm347_vm0, %v6952_v16  ;;  %v18051_v37 = vpop.f32.mrf.mxu0  ;;  %v21841_v12 = vld [vmem:[#allocation106_spill] sm:$0xff] }
 0x2b3   : > { %v3900_v43 = vadd.f32 %v21838_v56, %v3511_v24  ;;  %v3510_v4 = vadd.f32 %v3415_v15, %v21839_v49  ;;  %21840 = vst [vmem:[#allocation58_spill] sm:$0xff] %v18051_v37  ;;  %v14264_v21 = vpop.f32.mrf.mxu1  ;;  %14563 = vmatmul.mubr.msk.f32.gmra.mxu1 %vm347_vm0, %v6949_v14  ;;  %15272 = vrcp.f32 %v4115_v46  ;;  %v4117_v9 = vadd.f32 2.0, %v18040_v2  ;;  %v6953_v24 = vld [vmem:[#allocation2 + $0x1b0] sm:$0xff]  ;;  %v18060_v15 = vpop.eup %15258  ;;  %v21843_v14 = vld [vmem:[#allocation79_spill] sm:$0xff] }
 0x2b4   : > { %21837 = vst [vmem:[#allocation125_spill] sm:$0xff] %v18044_v54  ;;  %15274 = vpow2.f32 %v4010_v45  ;;  %v4016_v44 = vmul.f32 1.442695, %v3969_v28  ;;  %v3968_v33 = vmin.f32 %v18044_v54, 20.0  ;;  %v3513_v13 = vadd.f32 %v14264_v21, %v21841_v12  ;;  %14565 = vmatprep.mubr.msk.f32.mxu1 %vm347_vm0, %v6950_v7  ;;  %v18066_v49 = vpop.f32.mrf.mxu0  ;;  %v6954_v28 = vld [vmem:[#allocation2 + $0x1c8] sm:$0xff]  ;;  %v18071_v12 = vpop.eup %15260  ;;  %v21845_v21 = vld [vmem:[#allocation88_spill] sm:$0xff] }
 0x2b5   : > { %v18063_v56 = vadd.f32 %v17872_v29, %v3900_v43  ;;  %v3899_v46 = vadd.f32 %v21843_v14, %v3510_v4  ;;  %21844 = vst [vmem:[#allocation87_spill] sm:$0xff] %v18066_v49  ;;  %14713 = vmatmul.mubr.msk.f32.gmra.mxu0 %vm347_vm0, %v6953_v24  ;;  %v3425_v45 = vpop.f32.mrf.mxu1  ;;  %15276 = vrcp.f32 %v4114_v5  ;;  %v18069_v37 = vmul.f32 %v15253_v1, %v4052_v53 }
 0x2b6   : > { %15278 = vpow2.f32 %v4016_v44  ;;  %v4014_v7 = vmul.f32 1.442695, %v3968_v33  ;;  %v3902_v54 = vadd.f32 %v21845_v21, %v3513_v13  ;;  %v3512_v43 = vadd.f32 %v3425_v45, %v21846_v41  ;;  %14715 = vmatprep.mubr.msk.f32.mxu0 %vm347_vm0, %v6954_v28  ;;  %v18076_v4 = vpop.eup %15262  ;;  %v18082_v5 = vpop.f32.mrf.mxu0  ;;  %v21850_v13 = vld [vmem:[#allocation43_spill] sm:$0xff] }
 0x2b7   : > { %21842 = vst [vmem:[#allocation107_spill] sm:$0xff] %v18063_v56  ;;  %v3971_v14 = vmin.f32 %v18063_v56, 20.0  ;;  %v18080_v49 = vadd.f32 %v17872_v29, %v3899_v46  ;;  %21848 = vst [vmem:[#allocation124_spill] sm:$0xff] %v18082_v5  ;;  %v14267_v1 = vpop.f32.mrf.mxu1  ;;  %14566 = vmatmul.mubr.msk.f32.gmra.mxu1 %vm347_vm0, %v6951_v27  ;;  %15280 = vrcp.f32 %v4117_v9  ;;  %v4116_v53 = vadd.f32 2.0, %v18069_v37  ;;  %v6955_v46 = vld [vmem:[#allocation2 + $0x1d0] sm:$0xff] }
 0x2b8   : > { %15282 = vpow2.f32 %v4014_v7  ;;  %v18087_v41 = vadd.f32 %v17872_v29, %v3902_v54  ;;  %v3901_v44 = vadd.f32 %v21850_v13, %v3512_v43  ;;  %v3515_v33 = vadd.f32 %v14267_v1, %v17770_v62  ;;  %14568 = vmatprep.mubr.msk.f32.mxu1 %vm347_vm0, %v6952_v16  ;;  %v18092_v45 = vpop.eup %15264  ;;  %v18095_v27 = vpop.f32.mrf.mxu0  ;;  %v6956_v7 = vld [vmem:[#allocation2 + $0x1e8] sm:$0xff] }
 0x2b9   : > { %21847 = vst [vmem:[#allocation54_spill] sm:$0xff] %v18080_v49  ;;  %v4020_v21 = vmul.f32 1.442695, %v3971_v14  ;;  %v3970_v5 = vmin.f32 %v18080_v49, 20.0  ;;  %21851 = vst [vmem:[#allocation60_spill] sm:$0xff] %v18095_v27  ;;  %14716 = vmatmul.mubr.msk.f32.gmra.mxu0 %vm347_vm0, %v6955_v46  ;;  %v3435_v9 = vpop.f32.mrf.mxu1  ;;  %15284 = vrcp.f32 %v4116_v53  ;;  %v4055_v54 = vadd.f32 2.0, %v18047_v52 }
 0x2ba   : > { %21849 = vst [vmem:[#allocation90_spill] sm:$0xff] %v18087_v41  ;;  %v3973_v43 = vmin.f32 %v18087_v41, 20.0  ;;  %v18101_v62 = vadd.f32 %v17872_v29, %v3901_v44  ;;  %v21853_v16 = vld [vmem:[#allocation109_spill] sm:$0xff]  ;;  %v3514_v14 = vadd.f32 %v3435_v9, %v17778_v40  ;;  %14718 = vmatprep.mubr.msk.f32.mxu0 %vm347_vm0, %v6956_v7  ;;  %v18106_v27 = vpop.f32.mrf.mxu0  ;;  %v4054_v41 = vadd.f32 2.0, %v18055_v61  ;;  %v6957_v9 = vld [vmem:[#allocation2 + $0x1f0] sm:$0xff] }
 0x2bb   : > { %v3904_v1 = vadd.f32 %v21853_v16, %v3515_v33  ;;  %15286 = vpow2.f32 %v4020_v21  ;;  %v4018_v13 = vmul.f32 1.442695, %v3970_v5  ;;  %21854 = vst [vmem:[#allocation130_spill] sm:$0xff] %v18106_v27  ;;  %v14270_v49 = vpop.f32.mrf.mxu1  ;;  %14569 = vmatmul.mubr.msk.f32.gmra.mxu1 %vm347_vm0, %v6953_v24  ;;  %v18110_v53 = vmul.f32 %v18047_v52, %v4055_v54  ;;  %v21856_v21 = vld [vmem:[#allocation52_spill] sm:$0xff]  ;;  %v6958_v16 = vld [vmem:[#allocation2 + $0x208] sm:$0xff] }
 0x2bc   : > { %21852 = vst [vmem:[#allocation111_spill] sm:$0xff] %v18101_v62  ;;  %v18113_v44 = vpop.eup %15266  ;;  %v4024_v56 = vmul.f32 1.442695, %v3973_v43  ;;  %v3972_v33 = vmin.f32 %v18101_v62, 20.0  ;;  %v3903_v5 = vadd.f32 %v21856_v21, %v3514_v14  ;;  %14571 = vmatprep.mubr.msk.f32.mxu1 %vm347_vm0, %v6954_v28  ;;  %v3517_v24 = vadd.f32 %v14270_v49, %v17786_v17  ;;  %v18122_v52 = vpop.f32.mrf.mxu0  ;;  %v21858_v49 = vld [vmem:[#allocation91_spill] sm:$0xff] }
 0x2bd   : > { %v18117_v40 = vadd.f32 %v17872_v29, %v3904_v1  ;;  %15288 = vpow2.f32 %v4018_v13  ;;  %21857 = vst [vmem:[#allocation128_spill] sm:$0xff] %v18122_v52  ;;  %14719 = vmatmul.mubr.msk.f32.gmra.mxu0 %vm347_vm0, %v6957_v9  ;;  %v3445_v54 = vpop.f32.mrf.mxu1  ;;  %v4119_v43 = vadd.f32 2.0, %v18110_v53  ;;  %v18127_v27 = vmul.f32 %v18055_v61, %v4054_v41 }
 0x2be   : > { %v18129_v1 = vpop.eup %15268  ;;  %15290 = vpow2.f32 %v4024_v56  ;;  %v4022_v14 = vmul.f32 1.442695, %v3972_v33  ;;  %v18133_v13 = vadd.f32 %v17872_v29, %v3903_v5  ;;  %14721 = vmatprep.mubr.msk.f32.mxu0 %vm347_vm0, %v6958_v16  ;;  %v3906_v21 = vadd.f32 %v21858_v49, %v3517_v24  ;;  %v18140_v62 = vpop.f32.mrf.mxu0  ;;  %v6959_v24 = vld [vmem:[#allocation2 + $0x210] sm:$0xff] }
 0x2bf   : > { %21855 = vst [vmem:[#allocation56_spill] sm:$0xff] %v18117_v40  ;;  %v3975_v28 = vmin.f32 %v18117_v40, 20.0  ;;  %v18136_v17 = vpop.eup %15270  ;;  %v3516_v52 = vadd.f32 %v3445_v54, %v17794_v57  ;;  %21859 = vst [vmem:[#allocation133_spill] sm:$0xff] %v18140_v62  ;;  %v14273_v61 = vpop.f32.mrf.mxu1  ;;  %14572 = vmatmul.mubr.msk.f32.gmra.mxu1 %vm347_vm0, %v6955_v46  ;;  %15292 = vrcp.f32 %v4119_v43  ;;  %v4118_v56 = vadd.f32 2.0, %v18127_v27 }
 0x2c0   : > { %v15273_v41 = vpop.eup %15272  ;;  %15294 = vpow2.f32 %v4022_v14  ;;  %v3974_v5 = vmin.f32 %v18133_v13, 20.0  ;;  %v3519_v40 = vadd.f32 %v14273_v61, %v17802_v25  ;;  %14574 = vmatprep.mubr.msk.f32.mxu1 %vm347_vm0, %v6956_v7  ;;  %v18150_v57 = vadd.f32 %v17872_v29, %v3906_v21  ;;  %v18153_v54 = vpop.f32.mrf.mxu0  ;;  %v6960_v14 = vld [vmem:[#allocation2 + $0x228] sm:$0xff] }
 0x2c1   : > { %v4028_v33 = vmul.f32 1.442695, %v3975_v28  ;;  %v18147_v49 = vpop.eup %15274  ;;  %v3905_v46 = vadd.f32 %v17788_v55, %v3516_v52  ;;  %21860 = vst [vmem:[#allocation62_spill] sm:$0xff] %v18153_v54  ;;  %14722 = vmatmul.mubr.msk.f32.gmra.mxu0 %vm347_vm0, %v6959_v24  ;;  %v3455_v43 = vpop.f32.mrf.mxu1  ;;  %v4149_v28 = vmul.f32 %v15273_v41, %v18004_v26  ;;  %15296 = vrcp.f32 %v4118_v56  ;;  %v6962_v56 = vld [vmem:[#allocation2 + $0x248] sm:$0xff] }
 0x2c2   : > { %v15277_v25 = vpop.eup %15276  ;;  %v4026_v7 = vmul.f32 1.442695, %v3974_v5  ;;  %v3908_v61 = vadd.f32 %v17796_v35, %v3519_v40  ;;  %v3518_v62 = vadd.f32 %v3455_v43, %v17810_v60  ;;  %14724 = vmatprep.mubr.msk.f32.mxu0 %vm347_vm0, %v6960_v14  ;;  %v3977_v55 = vmin.f32 %v18150_v57, 20.0  ;;  %v18166_v54 = vpop.f32.mrf.mxu0 }
 0x2c3   : > { %15298 = vpow2.f32 %v4028_v33  ;;  %v18160_v21 = vpop.eup %15278  ;;  %v18164_v52 = vadd.f32 %v17872_v29, %v3905_v46  ;;  %21861 = vst [vmem:[#allocation115_spill] sm:$0xff] %v18166_v54  ;;  %v14276_v26 = vpop.f32.mrf.mxu1  ;;  %14575 = vmatmul.mubr.msk.f32.gmra.mxu1 %vm347_vm0, %v6957_v9  ;;  %v4211_v41 = vmul.f32 %v4149_v28, %v17886_v48  ;;  %v4147_v35 = vmul.f32 %v15277_v25, %v18017_v6  ;;  %v6961_v46 = vld [vmem:[#allocation2 + $0x230] sm:$0xff] }
 0x2c4   : > { %v15281_v60 = vpop.eup %15280  ;;  %15300 = vpow2.f32 %v4026_v7  ;;  %v18172_v40 = vadd.f32 %v17872_v29, %v3908_v61  ;;  %v3907_v33 = vadd.f32 %v17804_v47, %v3518_v62  ;;  %v3521_v5 = vadd.f32 %v14276_v26, %v17818_v59  ;;  %14577 = vmatprep.mubr.msk.f32.mxu1 %vm347_vm0, %v6958_v16  ;;  %v18180_v48 = vpop.f32.mrf.mxu0  ;;  %v6963_v61 = vld [vmem:[#allocation2 + $0x250] sm:$0xff] }
 0x2c5   : > { %v18177_v43 = vpop.eup %15282  ;;  %v4032_v9 = vmul.f32 1.442695, %v3977_v55  ;;  %v3976_v54 = vmin.f32 %v18164_v52, 20.0  ;;  %14725 = vmatmul.mubr.msk.f32.gmra.mxu0 %vm347_vm0, %v6961_v46  ;;  %v3465_v6 = vpop.f32.mrf.mxu1  ;;  %4243 = vst.msk [vmem:[#allocation3 + $0x30] sm:$0xff] %vm347_vm0, %v4211_v41  ;;  %v4210_v28 = vmul.f32 %v4147_v35, %v17896_v31  ;;  %v4153_v47 = vmul.f32 %v15281_v60, %v18040_v2  ;;  %v6964_v2 = vld [vmem:[#allocation2 + $0x268] sm:$0xff] }
 0x2c6   : > { %v15285_v59 = vpop.eup %15284  ;;  %v3979_v62 = vmin.f32 %v18172_v40, 20.0  ;;  %v18188_v16 = vadd.f32 %v17872_v29, %v3907_v33  ;;  %v3910_v25 = vadd.f32 %v17812_v38, %v3521_v5  ;;  %v3520_v7 = vadd.f32 %v3465_v6, %v17826_v22  ;;  %14727 = vmatprep.mubr.msk.f32.mxu0 %vm347_vm0, %v6962_v56  ;;  %v18193_v26 = vpop.f32.mrf.mxu0 }
 0x2c7   : > { %15302 = vpow2.f32 %v4032_v9  ;;  %v4030_v55 = vmul.f32 1.442695, %v3976_v54  ;;  %21862 = vst [vmem:[#allocation94_spill] sm:$0xff] %v18193_v26  ;;  %v14279_v31 = vpop.f32.mrf.mxu1  ;;  %14578 = vmatmul.mubr.msk.f32.gmra.mxu1 %vm347_vm0, %v6959_v24  ;;  %4242 = vst.msk [vmem:[#allocation3 + $0x28] sm:$0xff] %vm347_vm0, %v4210_v28  ;;  %v4213_v41 = vmul.f32 %v4153_v47, %v17906_v30  ;;  %v4151_v35 = vmul.f32 %v15285_v59, %v18069_v37 }
 0x2c8   : > { %v18199_v38 = vpop.eup %15286  ;;  %v4036_v22 = vmul.f32 1.442695, %v3979_v62  ;;  %v3978_v56 = vmin.f32 %v18188_v16, 20.0  ;;  %v18203_v60 = vadd.f32 %v17872_v29, %v3910_v25  ;;  %v3909_v54 = vadd.f32 %v17820_v3, %v3520_v7  ;;  %14580 = vmatprep.mubr.msk.f32.mxu1 %vm347_vm0, %v6960_v14  ;;  %v18208_v33 = vpop.f32.mrf.mxu0  ;;  %v6545_v25 = vld [vmem:[#allocation2 + $0x86] sm:$0xff] }
 0x2c9   : > { %15304 = vpow2.f32 %v4030_v55  ;;  %v3523_v24 = vadd.f32 %v14279_v31, %v17834_v51  ;;  %v3475_v30 = vpop.f32.mrf.mxu1  ;;  %14728 = vmatmul.mubr.msk.f32.gmra.mxu0 %vm347_vm0, %v6963_v61  ;;  %4245 = vst.msk [vmem:[#allocation3 + $0x50] sm:$0xff] %vm347_vm0, %v4213_v41  ;;  %v4212_v37 = vmul.f32 %v4151_v35, %v17916_v58  ;;  %v4057_v5 = vadd.f32 2.0, %v18060_v15  ;;  %v6965_v51 = vld [vmem:[#allocation2 + $0x270] sm:$0xff] }
 0x2ca   : > { %v18214_v9 = vpop.eup %15288  ;;  %15306 = vpow2.f32 %v4036_v22  ;;  %v4034_v3 = vmul.f32 1.442695, %v3978_v56  ;;  %v3981_v14 = vmin.f32 %v18203_v60, 20.0  ;;  %v18218_v6 = vadd.f32 %v17872_v29, %v3909_v54  ;;  %14730 = vmatprep.mubr.msk.f32.mxu0 %vm347_vm0, %v6964_v2  ;;  %v18225_v59 = vpop.f32.mrf.mxu0 }
 0x2cb   : > { %v18221_v28 = vpop.eup %15290  ;;  %v3912_v47 = vadd.f32 %v17828_v11, %v3523_v24  ;;  %v3522_v58 = vadd.f32 %v3475_v30, %v17843_v39  ;;  %21863 = vst [vmem:[#allocation59_spill] sm:$0xff] %v18225_v59  ;;  %v14282_v62 = vpop.f32.mrf.mxu1  ;;  %14581 = vmatmul.mubr.msk.f32.gmra.mxu1 %vm347_vm0, %v6961_v46  ;;  %4244 = vst.msk [vmem:[#allocation3 + $0x48] sm:$0xff] %vm347_vm0, %v4212_v37  ;;  %v18230_v7 = vmul.f32 %v18060_v15, %v4057_v5  ;;  %v6546_v37 = vld [vmem:[#allocation2 + $0x8e] sm:$0xff] }
 0x2cc   : > { %v4056_v61 = vadd.f32 2.0, %v18071_v12  ;;  %v15293_v55 = vpop.eup %15292  ;;  %15308 = vpow2.f32 %v4034_v3  ;;  %v4040_v31 = vmul.f32 1.442695, %v3981_v14  ;;  %v3980_v11 = vmin.f32 %v18218_v6, 20.0  ;;  %14635 = vmatprep.mubr.msk.f32.mxu1 %vm347_vm0, %v6545_v25  ;;  %v18242_v15 = vpop.f32.mrf.mxu0 }
 0x2cd   : > { %v3525_v39 = vadd.f32 %v14282_v62, %v17851_v50  ;;  %v18236_v2 = vpop.eup %15294  ;;  %v18239_v46 = vadd.f32 %v17872_v29, %v3912_v47  ;;  %v3911_v41 = vadd.f32 %v17836_v20, %v3522_v58  ;;  %v3485_v35 = vpop.f32.mrf.mxu1  ;;  %14731 = vmatmul.mubr.msk.f32.gmra.mxu0 %vm347_vm0, %v6965_v51  ;;  %v4157_v22 = vmul.f32 %v15293_v55, %v18110_v53  ;;  %v6547_v51 = vld [vmem:[#allocation2 + $0xa6] sm:$0xff] }
 0x2ce   : > { %v4121_v56 = vadd.f32 2.0, %v18230_v7  ;;  %v15297_v54 = vpop.eup %15296  ;;  %15310 = vpow2.f32 %v4040_v31  ;;  %v4038_v50 = vmul.f32 1.442695, %v3980_v11  ;;  %v3524_v30 = vadd.f32 %v3485_v35, %v17867_v19  ;;  %v18255_v14 = vpop.f32.mrf.mxu0  ;;  %v21865_v62 = vld [vmem:[#allocation80_spill] sm:$0xff] }
 0x2cf   : > { %v3914_v24 = vadd.f32 %v17845_v0, %v3525_v39  ;;  %v3983_v20 = vmin.f32 %v18239_v46, 20.0  ;;  %v18253_v3 = vadd.f32 %v17872_v29, %v3911_v41  ;;  %21864 = vst [vmem:[#allocation132_spill] sm:$0xff] %v18255_v14  ;;  %v14337_v53 = vpop.f32.mrf.mxu1  ;;  %14636 = vmatmul.mubr.msk.f32.vlgmr.msra.gmra.mxu1 %vm347_vm0, %v6546_v37  ;;  %v4215_v47 = vmul.f32 %v4157_v22, %v17928_v36  ;;  %v6548_v22 = vld [vmem:[#allocation2 + $0xae] sm:$0xff]  ;;  %v6553_v14 = vld [vmem:[#allocation2 + $0x106] sm:$0xff] }
 0x2d0   : > { %v18249_v5 = vpop.eup %15298  ;;  %v4155_v0 = vmul.f32 %v15297_v54, %v18127_v27  ;;  %15312 = vpow2.f32 %v4038_v50  ;;  %v3913_v58 = vadd.f32 %v17858_v34, %v3524_v30  ;;  %v18265_v25 = vadd.f32 %v21865_v62, %v14337_v53  ;;  %14734 = vmatpush3.msk.msra.mxu1 %vm638_vm2, %v17856_v63  ;;  %14638 = vmatprep.mubr.msk.f32.mxu1 %vm347_vm0, %v6547_v51  ;;  %v18273_v27 = vpop.f32.mrf.mxu0  ;;  %v21866_v63 = vld [vmem:[#allocation44_spill] sm:$0xff] }
 0x2d1   : > { %v18261_v19 = vadd.f32 %v17872_v29, %v3914_v24  ;;  %v18270_v55 = vpop.eup %15300  ;;  %v4044_v31 = vmul.f32 1.442695, %v3983_v20  ;;  %v3982_v36 = vmin.f32 %v18253_v3, 20.0  ;;  %v4505_v11 = vpop.f32.mrf.mxu1  ;;  %4247 = vst.msk [vmem:[#allocation3 + $0x70] sm:$0xff] %vm347_vm0, %v4215_v47  ;;  %15314 = vrcp.f32 %v4121_v56 }
 0x2d2   : > { %v4214_v34 = vmul.f32 %v4155_v0, %v17939_v23  ;;  %v18279_v41 = vadd.f32 %v17872_v29, %v3913_v58  ;;  %v18282_v35 = vadd.f32 %v21866_v63, %v4505_v11  ;;  %v18285_v54 = vmul.f32 %v18071_v12, %v4056_v61  ;;  %v18287_v24 = vpop.f32.mrf.mxu0  ;;  %v6549_v23 = vld [vmem:[#allocation2 + $0xc6] sm:$0xff]  ;;  %v6550_v63 = vld [vmem:[#allocation2 + $0xce] sm:$0xff] }
 0x2d3   : > { %v3985_v39 = vmin.f32 %v18261_v19, 20.0  ;;  %15316 = vpow2.f32 %v4044_v31  ;;  %v4042_v50 = vmul.f32 1.442695, %v3982_v36  ;;  %21867 = vst [vmem:[#allocation97_spill] sm:$0xff] %v18287_v24  ;;  %v14340_v30 = vpop.f32.mrf.mxu1  ;;  %14639 = vmatmul.mubr.msk.f32.gmra.mxu1 %vm347_vm0, %v6548_v22  ;;  %v4059_v29 = vadd.f32 2.0, %v18076_v4  ;;  %v21868_v61 = vld [vmem:[#allocation108_spill] sm:$0xff] }
 0x2d4   : > { %4246 = vst.msk [vmem:[#allocation3 + $0x68] sm:$0xff] %vm347_vm0, %v4214_v34  ;;  %v4067_v56 = vadd.f32 2.0, %v18199_v38  ;;  %v18293_v37 = vpop.eup %15302  ;;  %v3984_v12 = vmin.f32 %v18279_v41, 20.0  ;;  %v18297_v53 = vadd.f32 %v21868_v61, %v14340_v30  ;;  %14641 = vmatprep.mubr.msk.f32.mxu1 %vm347_vm0, %v6549_v23  ;;  %v4120_v51 = vadd.f32 2.0, %v18285_v54  ;;  %v18301_v47 = vpop.f32.mrf.mxu0  ;;  %v21869_v34 = vld [vmem:[#allocation81_spill] sm:$0xff] }
 0x2d5   : > { %v4048_v20 = vmul.f32 1.442695, %v3985_v39  ;;  %15318 = vpow2.f32 %v4042_v50  ;;  %v4515_v0 = vpop.f32.mrf.mxu1  ;;  %v18304_v58 = vmul.f32 %v18076_v4, %v4059_v29  ;;  %v4058_v31 = vadd.f32 2.0, %v18092_v45 }
 0x2d6   : > { %v18307_v62 = vmul.f32 %v18199_v38, %v4067_v56  ;;  %v18310_v36 = vpop.eup %15304  ;;  %v4046_v11 = vmul.f32 1.442695, %v3984_v12  ;;  %v18313_v39 = vadd.f32 %v21869_v34, %v4515_v0  ;;  %v4061_v22 = vadd.f32 2.0, %v18113_v44  ;;  %v18318_v30 = vpop.f32.mrf.mxu0  ;;  %v6551_v38 = vld [vmem:[#allocation2 + $0xe6] sm:$0xff] }
 0x2d7   : > { %15320 = vpow2.f32 %v4048_v20  ;;  %v18316_v50 = vpop.eup %15306  ;;  %21870 = vst [vmem:[#allocation63_spill] sm:$0xff] %v18318_v30  ;;  %v14343_v4 = vpop.f32.mrf.mxu1  ;;  %14642 = vmatmul.mubr.msk.f32.gmra.mxu1 %vm347_vm0, %v6550_v63  ;;  %v4123_v23 = vadd.f32 2.0, %v18304_v58  ;;  %v18324_v56 = vmul.f32 %v18092_v45, %v4058_v31  ;;  %v21871_v20 = vld [vmem:[#allocation53_spill] sm:$0xff]  ;;  %v4060_v0 = vadd.f32 2.0, %v18129_v1 }
 0x2d8   : > { %15322 = vrcp.f32 %v4120_v51  ;;  %v4131_v29 = vadd.f32 2.0, %v18307_v62  ;;  %v18327_v12 = vadd.f32 %v21871_v20, %v14343_v4  ;;  %14644 = vmatprep.mubr.msk.f32.mxu1 %vm347_vm0, %v6551_v38  ;;  %v18331_v61 = vmul.f32 %v18113_v44, %v4061_v22  ;;  %v18336_v51 = vpop.f32.mrf.mxu0  ;;  %v6552_v38 = vld [vmem:[#allocation2 + $0xee] sm:$0xff] }
 0x2d9   : > { %15324 = vpow2.f32 %v4046_v11  ;;  %v18334_v34 = vpop.eup %15308  ;;  %21872 = vst [vmem:[#allocation119_spill] sm:$0xff] %v18336_v51  ;;  %v4525_v63 = vpop.f32.mrf.mxu1  ;;  %v4122_v45 = vadd.f32 2.0, %v18324_v56  ;;  %v4063_v31 = vadd.f32 2.0, %v18136_v17  ;;  %v4062_v11 = vadd.f32 2.0, %v18147_v49  ;;  %v21891_v51 = vld [vmem:[#allocation83_spill] sm:$0xff] }
 0x2da   : > { %15326 = vrcp.f32 %v4123_v23  ;;  %v18342_v4 = vadd.f32 %v17921_v32, %v4525_v63  ;;  %v4125_v44 = vadd.f32 2.0, %v18331_v61  ;;  %v18346_v22 = vmul.f32 %v18129_v1, %v4060_v0  ;;  %v18350_v30 = vpop.f32.mrf.mxu0 }
 0x2db   : > { %15328 = vrcp.f32 %v4131_v29  ;;  %v18348_v20 = vpop.eup %15310  ;;  %21874 = vst [vmem:[#allocation61_spill] sm:$0xff] %v18350_v30  ;;  %v14346_v23 = vpop.f32.mrf.mxu1  ;;  %14645 = vmatmul.mubr.msk.f32.gmra.mxu1 %vm347_vm0, %v6552_v38  ;;  %v18354_v59 = vmul.f32 %v18136_v17, %v4063_v31  ;;  %v18357_v32 = vmul.f32 %v18147_v49, %v4062_v11  ;;  %v4065_v29 = vadd.f32 2.0, %v18160_v21 }
 0x2dc   : > { %21873 = vst [vmem:[#allocation138_spill] sm:$0xff] %v18342_v4  ;;  %15330 = vrcp.f32 %v4122_v45  ;;  %v18361_v1 = vadd.f32 %v17931_v10, %v14346_v23  ;;  %14647 = vmatprep.mubr.msk.f32.mxu1 %vm347_vm0, %v6553_v14  ;;  %v4124_v0 = vadd.f32 2.0, %v18346_v22  ;;  %v4064_v63 = vadd.f32 2.0, %v18177_v43  ;;  %v18368_v45 = vpop.f32.mrf.mxu0  ;;  %v6554_v23 = vld [vmem:[#allocation2 + $0x10e] sm:$0xff] }
 0x2dd   : > { %15332 = vrcp.f32 %v4125_v44  ;;  %v18366_v38 = vpop.eup %15312  ;;  %21876 = vst [vmem:[#allocation141_spill] sm:$0xff] %v18368_v45  ;;  %v4535_v17 = vpop.f32.mrf.mxu1  ;;  %v4127_v49 = vadd.f32 2.0, %v18354_v59  ;;  %v4126_v31 = vadd.f32 2.0, %v18357_v32  ;;  %v18373_v11 = vmul.f32 %v18160_v21, %v4065_v29  ;;  %v6555_v21 = vld [vmem:[#allocation2 + $0x126] sm:$0xff] }
 0x2de   : > { %21875 = vst [vmem:[#allocation136_spill] sm:$0xff] %v18361_v1  ;;  %v4066_v10 = vadd.f32 2.0, %v18214_v9  ;;  %v15315_v14 = vpop.eup %15314  ;;  %v18377_v44 = vadd.f32 %v17941_v18, %v4535_v17  ;;  %15334 = vrcp.f32 %v4124_v0  ;;  %v18380_v30 = vmul.f32 %v18177_v43, %v4064_v63  ;;  %v18383_v24 = vpop.f32.mrf.mxu0 }
 0x2df   : > { %v4069_v26 = vadd.f32 2.0, %v18221_v28  ;;  %21878 = vst [vmem:[#allocation123_spill] sm:$0xff] %v18383_v24  ;;  %v14349_v45 = vpop.f32.mrf.mxu1  ;;  %14648 = vmatmul.mubr.msk.f32.gmra.mxu1 %vm347_vm0, %v6554_v23  ;;  %v4161_v29 = vmul.f32 %v15315_v14, %v18230_v7  ;;  %15336 = vrcp.f32 %v4127_v49  ;;  %v4129_v1 = vadd.f32 2.0, %v18373_v11  ;;  %v21881_v14 = vld [vmem:[#allocation95_spill] sm:$0xff] }
 0x2e0   : > { %21877 = vst [vmem:[#allocation65_spill] sm:$0xff] %v18377_v44  ;;  %v18389_v18 = vmul.f32 %v18214_v9, %v4066_v10  ;;  %v18391_v0 = vpop.eup %15316  ;;  %v18394_v43 = vadd.f32 %v17951_v42, %v14349_v45  ;;  %14650 = vmatprep.mubr.msk.f32.mxu1 %vm347_vm0, %v6555_v21  ;;  %15338 = vrcp.f32 %v4126_v31  ;;  %v4128_v63 = vadd.f32 2.0, %v18380_v30  ;;  %v18401_v7 = vpop.f32.mrf.mxu0  ;;  %v6556_v31 = vld [vmem:[#allocation2 + $0x12e] sm:$0xff] }
 0x2e1   : > { %v18399_v17 = vmul.f32 %v18221_v28, %v4069_v26  ;;  %21880 = vst [vmem:[#allocation64_spill] sm:$0xff] %v18401_v7  ;;  %v4545_v49 = vpop.f32.mrf.mxu1  ;;  %v4217_v23 = vmul.f32 %v4161_v29, %v21881_v14  ;;  %15340 = vrcp.f32 %v4129_v1  ;;  %v4068_v10 = vadd.f32 2.0, %v18236_v2  ;;  %v6557_v29 = vld [vmem:[#allocation2 + $0x146] sm:$0xff] }
 0x2e2   : > { %21879 = vst [vmem:[#allocation102_spill] sm:$0xff] %v18394_v43  ;;  %v4130_v9 = vadd.f32 2.0, %v18389_v18  ;;  %v18406_v42 = vpop.eup %15318  ;;  %v18409_v45 = vadd.f32 %v17961_v8, %v4545_v49  ;;  %15342 = vrcp.f32 %v4128_v63  ;;  %v4071_v28 = vadd.f32 2.0, %v18249_v5  ;;  %v18415_v24 = vpop.f32.mrf.mxu0  ;;  %v21884_v7 = vld [vmem:[#allocation112_spill] sm:$0xff] }
 0x2e3   : > { %v4133_v26 = vadd.f32 2.0, %v18399_v17  ;;  %21883 = vst [vmem:[#allocation105_spill] sm:$0xff] %v18415_v24  ;;  %v14352_v1 = vpop.f32.mrf.mxu1  ;;  %14651 = vmatmul.mubr.msk.f32.gmra.mxu1 %vm347_vm0, %v6556_v31  ;;  %4249 = vst.msk [vmem:[#allocation3 + $0x90] sm:$0xff] %vm347_vm0, %v4217_v23  ;;  %v18420_v8 = vmul.f32 %v18236_v2, %v4068_v10  ;;  %v4070_v63 = vadd.f32 2.0, %v18270_v55  ;;  %v4073_v49 = vadd.f32 2.0, %v18293_v37 }
 0x2e4   : > { %21882 = vst [vmem:[#allocation140_spill] sm:$0xff] %v18409_v45  ;;  %v18413_v21 = vpop.eup %15320  ;;  %15344 = vrcp.f32 %v4130_v9  ;;  %v18425_v45 = vadd.f32 %v21884_v7, %v14352_v1  ;;  %14653 = vmatprep.mubr.msk.f32.mxu1 %vm347_vm0, %v6557_v29  ;;  %v18429_v31 = vmul.f32 %v18249_v5, %v4071_v28  ;;  %v4072_v23 = vadd.f32 2.0, %v18310_v36  ;;  %v18434_v2 = vpop.f32.mrf.mxu0  ;;  %v21887_v5 = vld [vmem:[#allocation55_spill] sm:$0xff]  ;;  %v6558_v29 = vld [vmem:[#allocation2 + $0x14e] sm:$0xff] }
 0x2e5   : > { %v15323_v14 = vpop.eup %15322  ;;  %15346 = vrcp.f32 %v4133_v26  ;;  %21886 = vst [vmem:[#allocation127_spill] sm:$0xff] %v18434_v2  ;;  %v4555_v10 = vpop.f32.mrf.mxu1  ;;  %v4132_v43 = vadd.f32 2.0, %v18420_v8  ;;  %v18439_v7 = vmul.f32 %v18270_v55, %v4070_v63  ;;  %v18442_v1 = vmul.f32 %v18293_v37, %v4073_v49  ;;  %v6559_v37 = vld [vmem:[#allocation2 + $0x166] sm:$0xff]  ;;  %v21890_v63 = vld [vmem:[#allocation114_spill] sm:$0xff] }
 0x2e6   : > { %21885 = vst [vmem:[#allocation67_spill] sm:$0xff] %v18425_v45  ;;  %v18432_v9 = vpop.eup %15324  ;;  %v4159_v24 = vmul.f32 %v15323_v14, %v18285_v54  ;;  %v18445_v28 = vadd.f32 %v21887_v5, %v4555_v10  ;;  %v4135_v45 = vadd.f32 2.0, %v18429_v31  ;;  %v18449_v2 = vmul.f32 %v18310_v36, %v4072_v23  ;;  %v18452_v44 = vpop.f32.mrf.mxu0 }
 0x2e7   : > { %v15327_v26 = vpop.eup %15326  ;;  %v4075_v54 = vadd.f32 2.0, %v18316_v50  ;;  %21889 = vst [vmem:[#allocation66_spill] sm:$0xff] %v18452_v44  ;;  %v14355_v55 = vpop.f32.mrf.mxu1  ;;  %14654 = vmatmul.mubr.msk.f32.gmra.mxu1 %vm347_vm0, %v6558_v29  ;;  %15348 = vrcp.f32 %v4132_v43  ;;  %v4134_v5 = vadd.f32 2.0, %v18439_v7  ;;  %v4137_v44 = vadd.f32 2.0, %v18442_v1 }
 0x2e8   : > { %21888 = vst [vmem:[#allocation145_spill] sm:$0xff] %v18445_v28  ;;  %v15329_v14 = vpop.eup %15328  ;;  %v4216_v49 = vmul.f32 %v4159_v24, %v21890_v63  ;;  %v4165_v10 = vmul.f32 %v15327_v26, %v18304_v58  ;;  %v18459_v36 = vadd.f32 %v21891_v51, %v14355_v55  ;;  %14656 = vmatprep.mubr.msk.f32.mxu1 %vm347_vm0, %v6559_v37  ;;  %15350 = vrcp.f32 %v4135_v45  ;;  %v18464_v4 = vpop.f32.mrf.mxu0  ;;  %v21894_v58 = vld [vmem:[#allocation46_spill] sm:$0xff]  ;;  %v21895_v55 = vld [vmem:[#allocation116_spill] sm:$0xff]  ;;  %v21896_v45 = vld [vmem:[#allocation107_spill] sm:$0xff] }
 0x2e9   : > { %v15331_v28 = vpop.eup %15330  ;;  %v4181_v23 = vmul.f32 %v15329_v14, %v18307_v62  ;;  %21893 = vst [vmem:[#allocation148_spill] sm:$0xff] %v18464_v4  ;;  %v4565_v24 = vpop.f32.mrf.mxu1  ;;  %15352 = vrcp.f32 %v4134_v5  ;;  %v4136_v51 = vadd.f32 2.0, %v18449_v2  ;;  %v6560_v62 = vld [vmem:[#allocation2 + $0x16e] sm:$0xff]  ;;  %v18481_v5 = vmul.f32 %v18316_v50, %v4075_v54 }
 0x2ea   : > { %21892 = vst [vmem:[#allocation144_spill] sm:$0xff] %v18459_v36  ;;  %v15333_v29 = vpop.eup %15332  ;;  %4248 = vst.msk [vmem:[#allocation3 + $0x88] sm:$0xff] %vm347_vm0, %v4216_v49  ;;  %v4219_v43 = vmul.f32 %v4165_v10, %v21894_v58  ;;  %v4163_v26 = vmul.f32 %v15331_v28, %v18324_v56  ;;  %v18471_v37 = vadd.f32 %v21895_v55, %v4565_v24  ;;  %15354 = vrcp.f32 %v4137_v44  ;;  %v18475_v36 = vpop.f32.mrf.mxu0  ;;  %v6561_v10 = vld [vmem:[#allocation2 + $0x186] sm:$0xff] }
 0x2eb   : > { %v4227_v14 = vmul.f32 %v4181_v23, %v21896_v45  ;;  %v4169_v63 = vmul.f32 %v15333_v29, %v18331_v61  ;;  %v15335_v4 = vpop.eup %15334  ;;  %v14358_v49 = vpop.f32.mrf.mxu1  ;;  %14657 = vmatmul.mubr.msk.f32.gmra.mxu1 %vm347_vm0, %v6560_v62  ;;  %v21897_v56 = vld [vmem:[#allocation117_spill] sm:$0xff]  ;;  %15356 = vrcp.f32 %v4136_v51  ;;  %v4074_v23 = vadd.f32 2.0, %v18334_v34  ;;  %v21899_v29 = vld [vmem:[#allocation99_spill] sm:$0xff] }
 0x2ec   : > { %4251 = vst.msk [vmem:[#allocation3 + $0xb0] sm:$0xff] %vm347_vm0, %v4219_v43  ;;  %v4218_v28 = vmul.f32 %v4163_v26, %v21897_v56  ;;  %v15337_v24 = vpop.eup %15336  ;;  %v21898_v61 = vld [vmem:[#allocation57_spill] sm:$0xff]  ;;  %14659 = vmatprep.mubr.msk.f32.mxu1 %vm347_vm0, %v6561_v10  ;;  %v4167_v43 = vmul.f32 %v15335_v4, %v18346_v22  ;;  %v4077_v26 = vadd.f32 2.0, %v18348_v20  ;;  %v18492_v55 = vpop.f32.mrf.mxu0  ;;  %v4139_v62 = vadd.f32 2.0, %v18481_v5 }
 0x2ed   : > { %v18485_v44 = vadd.f32 %v21898_v61, %v14358_v49  ;;  %4259 = vst.msk [vmem:[#allocation3 + $0x130] sm:$0xff] %vm347_vm0, %v4227_v14  ;;  %v4221_v58 = vmul.f32 %v4169_v63, %v21899_v29  ;;  %v15339_v51 = vpop.eup %15338  ;;  %v4575_v50 = vpop.f32.mrf.mxu1  ;;  %v4173_v54 = vmul.f32 %v15337_v24, %v18354_v59  ;;  %v18498_v45 = vmul.f32 %v18334_v34, %v4074_v23  ;;  %v21900_v49 = vld [vmem:[#allocation122_spill] sm:$0xff]  ;;  %v21901_v10 = vld [vmem:[#allocation49_spill] sm:$0xff] }
 0x2ee   : > { %4250 = vst.msk [vmem:[#allocation3 + $0xa8] sm:$0xff] %vm347_vm0, %v4218_v28  ;;  %v4076_v14 = vadd.f32 2.0, %v18366_v38  ;;  %v15341_v63 = vpop.eup %15340  ;;  %v18502_v4 = vadd.f32 %v21900_v49, %v4575_v50  ;;  %v6562_v22 = vld [vmem:[#allocation2 + $0x18e] sm:$0xff]  ;;  %v4220_v56 = vmul.f32 %v4167_v43, %v21901_v10  ;;  %v4171_v28 = vmul.f32 %v15339_v51, %v18357_v32  ;;  %v18510_v61 = vpop.f32.mrf.mxu0  ;;  %v6563_v23 = vld [vmem:[#allocation2 + $0x1a6] sm:$0xff] }
 0x2ef   : > { %4253 = vst.msk [vmem:[#allocation3 + $0xd0] sm:$0xff] %vm347_vm0, %v4221_v58  ;;  %v18508_v59 = vmul.f32 %v18348_v20, %v4077_v26  ;;  %v15343_v24 = vpop.eup %15342  ;;  %v14361_v34 = vpop.f32.mrf.mxu1  ;;  %14660 = vmatmul.mubr.msk.f32.gmra.mxu1 %vm347_vm0, %v6562_v22  ;;  %v21902_v29 = vld [vmem:[#allocation85_spill] sm:$0xff]  ;;  %v4177_v49 = vmul.f32 %v15341_v63, %v18373_v11  ;;  %15358 = vrcp.f32 %v4139_v62  ;;  %v4138_v58 = vadd.f32 2.0, %v18498_v45  ;;  %v21903_v10 = vld [vmem:[#allocation120_spill] sm:$0xff]  ;;  %v21904_v20 = vld [vmem:[#allocation103_spill] sm:$0xff] }
 0x2f0   : > { %v4223_v50 = vmul.f32 %v4173_v54, %v21902_v29  ;;  %v18517_v32 = vadd.f32 %v21903_v10, %v14361_v34  ;;  %14662 = vmatprep.mubr.msk.f32.mxu1 %vm347_vm0, %v6563_v23  ;;  %4252 = vst.msk [vmem:[#allocation3 + $0xc8] sm:$0xff] %vm347_vm0, %v4220_v56  ;;  %v4222_v26 = vmul.f32 %v4171_v28, %v21904_v20  ;;  %v18524_v29 = vpop.f32.mrf.mxu0  ;;  %v21905_v62 = vld [vmem:[#allocation51_spill] sm:$0xff]  ;;  %v6564_v28 = vld [vmem:[#allocation2 + $0x1ae] sm:$0xff] }
 0x2f1   : > { %v15345_v43 = vpop.eup %15344  ;;  %v4175_v51 = vmul.f32 %v15343_v24, %v18380_v30  ;;  %v4141_v22 = vadd.f32 2.0, %v18508_v59  ;;  %v18526_v11 = vpop.f32.mrf.mxu1  ;;  %v4225_v63 = vmul.f32 %v4177_v49, %v21905_v62  ;;  %15360 = vrcp.f32 %v4138_v58  ;;  %v21906_v30 = vld [vmem:[#allocation125_spill] sm:$0xff] }
 0x2f2   : > { %v15347_v54 = vpop.eup %15346  ;;  %4255 = vst.msk [vmem:[#allocation3 + $0xf0] sm:$0xff] %vm347_vm0, %v4223_v50  ;;  %v4179_v34 = vmul.f32 %v15345_v43, %v18389_v18  ;;  %v18532_v56 = vmul.f32 %v18366_v38, %v4076_v14  ;;  %4254 = vst.msk [vmem:[#allocation3 + $0xe8] sm:$0xff] %vm347_vm0, %v4222_v26  ;;  %v18537_v10 = vpop.f32.mrf.mxu0  ;;  %v6565_v50 = vld [vmem:[#allocation2 + $0x1c6] sm:$0xff]  ;;  %v21907_v18 = vld [vmem:[#allocation54_spill] sm:$0xff]  ;;  %v4078_v14 = vadd.f32 2.0, %v18406_v42  ;;  %v4079_v58 = vadd.f32 2.0, %v18391_v0 }
 0x2f3   : > { %v4224_v24 = vmul.f32 %v4175_v51, %v21906_v30  ;;  %v4185_v23 = vmul.f32 %v15347_v54, %v18399_v17  ;;  %15362 = vrcp.f32 %v4141_v22  ;;  %v14364_v20 = vpop.f32.mrf.mxu1  ;;  %14663 = vmatmul.mubr.msk.f32.gmra.mxu1 %vm347_vm0, %v6564_v28  ;;  %4257 = vst.msk [vmem:[#allocation3 + $0x110] sm:$0xff] %vm347_vm0, %v4225_v63  ;;  %v21908_v26 = vld [vmem:[#allocation87_spill] sm:$0xff]  ;;  %v21909_v51 = vld [vmem:[#allocation90_spill] sm:$0xff]  ;;  %v4080_v54 = vadd.f32 2.0, %v18432_v9 }
 0x2f4   : > { %v4226_v49 = vmul.f32 %v4179_v34, %v21907_v18  ;;  %v4140_v38 = vadd.f32 2.0, %v18532_v56  ;;  %v15349_v43 = vpop.eup %15348  ;;  %v18546_v17 = vadd.f32 %v21908_v26, %v14364_v20  ;;  %14665 = vmatprep.mubr.msk.f32.mxu1 %vm347_vm0, %v6565_v50  ;;  %v4081_v62 = vadd.f32 2.0, %v18413_v21  ;;  %v18553_v34 = vpop.f32.mrf.mxu0  ;;  %v6566_v50 = vld [vmem:[#allocation2 + $0x1ce] sm:$0xff] }
 0x2f5   : > { %4256 = vst.msk [vmem:[#allocation3 + $0x108] sm:$0xff] %vm347_vm0, %v4224_v24  ;;  %v4229_v22 = vmul.f32 %v4185_v23, %v21909_v51  ;;  %v15351_v63 = vpop.eup %15350  ;;  %v18555_v28 = vpop.f32.mrf.mxu1  ;;  %v4183_v30 = vmul.f32 %v15349_v43, %v18420_v8  ;;  %v18560_v20 = vmul.f32 %v18406_v42, %v4078_v14  ;;  %v18563_v24 = vmul.f32 %v18391_v0, %v4079_v58  ;;  %v6567_v0 = vld [vmem:[#allocation2 + $0x1e6] sm:$0xff]  ;;  %v21911_v14 = vld [vmem:[#allocation111_spill] sm:$0xff] }
 0x2f6   : > { %4258 = vst.msk [vmem:[#allocation3 + $0x128] sm:$0xff] %vm347_vm0, %v4226_v49  ;;  %15364 = vrcp.f32 %v4140_v38  ;;  %v15353_v23 = vpop.eup %15352  ;;  %v4189_v18 = vmul.f32 %v15351_v63, %v18429_v31  ;;  %v18568_v26 = vmul.f32 %v18432_v9, %v4080_v54  ;;  %v18571_v49 = vmul.f32 %v18413_v21, %v4081_v62  ;;  %v18573_v38 = vpop.f32.mrf.mxu0  ;;  %v21913_v21 = vld [vmem:[#allocation56_spill] sm:$0xff] }
 0x2f7   : > { %4261 = vst.msk [vmem:[#allocation3 + $0x150] sm:$0xff] %vm347_vm0, %v4229_v22  ;;  %v15355_v8 = vpop.eup %15354  ;;  %21910 = vst [vmem:[#allocation68_spill] sm:$0xff] %v18573_v38  ;;  %v14367_v42 = vpop.f32.mrf.mxu1  ;;  %14666 = vmatmul.mubr.msk.f32.gmra.mxu1 %vm347_vm0, %v6566_v50  ;;  %v4228_v58 = vmul.f32 %v4183_v30, %v21911_v14  ;;  %v4187_v43 = vmul.f32 %v15353_v23, %v18439_v7  ;;  %v4142_v51 = vadd.f32 2.0, %v18560_v20  ;;  %v4143_v31 = vadd.f32 2.0, %v18563_v24  ;;  %v21912_v22 = vld [vmem:[#allocation60_spill] sm:$0xff] }
 0x2f8   : > { %v15357_v9 = vpop.eup %15356  ;;  %v18581_v54 = vadd.f32 %v21912_v22, %v14367_v42  ;;  %14668 = vmatprep.mubr.msk.f32.mxu1 %vm347_vm0, %v6567_v0  ;;  %v4231_v62 = vmul.f32 %v4189_v18, %v21913_v21  ;;  %v4193_v63 = vmul.f32 %v15355_v8, %v18442_v1  ;;  %v4144_v50 = vadd.f32 2.0, %v18568_v26  ;;  %v18587_v38 = vpop.f32.mrf.mxu0  ;;  %v6568_v0 = vld [vmem:[#allocation2 + $0x1ee] sm:$0xff]  ;;  %v6569_v14 = vld [vmem:[#allocation2 + $0x206] sm:$0xff] }
 0x2f9   : > { %v18589_v30 = vpop.f32.mrf.mxu1  ;;  %4260 = vst.msk [vmem:[#allocation3 + $0x148] sm:$0xff] %vm347_vm0, %v4228_v58  ;;  %v4230_v7 = vmul.f32 %v4187_v43, %v18133_v13  ;;  %v4191_v23 = vmul.f32 %v15357_v9, %v18449_v2  ;;  %15366 = vrcp.f32 %v4142_v51  ;;  %v4145_v42 = vadd.f32 2.0, %v18571_v49  ;;  %v21915_v58 = vld [vmem:[#allocation128_spill] sm:$0xff] }
 0x2fa   : > { %4263 = vst.msk [vmem:[#allocation3 + $0x170] sm:$0xff] %vm347_vm0, %v4231_v62  ;;  %v4233_v1 = vmul.f32 %v4193_v63, %v18150_v57  ;;  %15368 = vrcp.f32 %v4143_v31  ;;  %v18597_v18 = vpop.f32.mrf.mxu0  ;;  %v6571_v63 = vld [vmem:[#allocation2 + $0x226] sm:$0xff] }
 0x2fb   : > { %21914 = vst [vmem:[#allocation131_spill] sm:$0xff] %v18597_v18  ;;  %v14370_v8 = vpop.f32.mrf.mxu1  ;;  %14669 = vmatmul.mubr.msk.f32.gmra.mxu1 %vm347_vm0, %v6568_v0  ;;  %4262 = vst.msk [vmem:[#allocation3 + $0x168] sm:$0xff] %vm347_vm0, %v4230_v7  ;;  %v4232_v13 = vmul.f32 %v4191_v23, %v18164_v52  ;;  %15370 = vrcp.f32 %v4144_v50  ;;  %v6570_v52 = vld [vmem:[#allocation2 + $0x20e] sm:$0xff] }
 0x2fc   : > { %v15359_v2 = vpop.eup %15358  ;;  %v18603_v43 = vadd.f32 %v21915_v58, %v14370_v8  ;;  %14671 = vmatprep.mubr.msk.f32.mxu1 %vm347_vm0, %v6569_v14  ;;  %4265 = vst.msk [vmem:[#allocation3 + $0x190] sm:$0xff] %vm347_vm0, %v4233_v1  ;;  %15372 = vrcp.f32 %v4145_v42  ;;  %v18607_v57 = vpop.f32.mrf.mxu0  ;;  %v21917_v23 = vld [vmem:[#allocation62_spill] sm:$0xff]  ;;  %v6573_v8 = vld [vmem:[#allocation2 + $0x246] sm:$0xff] }
 0x2fd   : > { %v18609_v51 = vpop.f32.mrf.mxu1  ;;  %4264 = vst.msk [vmem:[#allocation3 + $0x188] sm:$0xff] %vm347_vm0, %v4232_v13  ;;  %v4197_v31 = vmul.f32 %v15359_v2, %v18481_v5 }
 0x2fe   : > { %v15361_v9 = vpop.eup %15360  ;;  %v18613_v21 = vpop.f32.mrf.mxu0 }
 0x2ff   : > { %21916 = vst [vmem:[#allocation110_spill] sm:$0xff] %v18613_v21  ;;  %v14373_v62 = vpop.f32.mrf.mxu1  ;;  %14672 = vmatmul.mubr.msk.f32.gmra.mxu1 %vm347_vm0, %v6570_v52  ;;  %v4235_v50 = vmul.f32 %v4197_v31, %v18172_v40  ;;  %v4195_v7 = vmul.f32 %v15361_v9, %v18498_v45  ;;  %v6572_v40 = vld [vmem:[#allocation2 + $0x22e] sm:$0xff]  ;;  %v6575_v52 = vld [vmem:[#allocation2 + $0x266] sm:$0xff] }
 0x300   : > { %v15363_v22 = vpop.eup %15362  ;;  %v18619_v42 = vadd.f32 %v21917_v23, %v14373_v62  ;;  %14674 = vmatprep.mubr.msk.f32.mxu1 %vm347_vm0, %v6571_v63  ;;  %v6574_v9 = vld [vmem:[#allocation2 + $0x24e] sm:$0xff] }
 0x301   : > { %v4201_v5 = vmul.f32 %v15363_v22, %v18508_v59  ;;  %v18623_v0 = vpop.f32.mrf.mxu0  ;;  %v18625_v1 = vpop.f32.mrf.mxu1  ;;  %4267 = vst.msk [vmem:[#allocation3 + $0x1b0] sm:$0xff] %vm347_vm0, %v4235_v50  ;;  %v4234_v14 = vmul.f32 %v4195_v7, %v18188_v16 }
 0x303   : > { %v15365_v13 = vpop.eup %15364  ;;  %v4237_v45 = vmul.f32 %v4201_v5, %v18203_v60  ;;  %v18630_v2 = vpop.f32.mrf.mxu0  ;;  %14675 = vmatmul.mubr.msk.f32.gmra.mxu1 %vm347_vm0, %v6572_v40  ;;  %4266 = vst.msk [vmem:[#allocation3 + $0x1a8] sm:$0xff] %vm347_vm0, %v4234_v14  ;;  %v6576_v5 = vld [vmem:[#allocation2 + $0x26e] sm:$0xff] }
 0x304   : > { %21918 = vst [vmem:[#allocation69_spill] sm:$0xff] %v18630_v2  ;;  %v14376_v58 = vpop.f32.mrf.mxu1  ;;  %v4199_v59 = vmul.f32 %v15365_v13, %v18532_v56  ;;  %14677 = vmatprep.mubr.msk.f32.mxu1 %vm347_vm0, %v6573_v8 }
 0x305   : > { %v18636_v31 = vadd.f32 %v18180_v48, %v14376_v58  ;;  %4269 = vst.msk [vmem:[#allocation3 + $0x1d0] sm:$0xff] %vm347_vm0, %v4237_v45  ;;  %v18640_v16 = vpop.f32.mrf.mxu0 }
 0x306   : > { %v18642_v60 = vpop.f32.mrf.mxu1  ;;  %v4236_v22 = vmul.f32 %v4199_v59, %v18218_v6  ;;  %v15367_v62 = vpop.eup %15366 }
 0x307   : > { %v15369_v63 = vpop.eup %15368  ;;  %v18645_v50 = vpop.f32.mrf.mxu0  ;;  %14678 = vmatmul.mubr.msk.f32.gmra.mxu1 %vm347_vm0, %v6574_v9  ;;  %v4203_v48 = vmul.f32 %v15367_v62, %v18560_v20  ;;  %v7323_v9 = vld [vmem:[#allocation2 + $0x8a] sm:$0xff] }
 0x308   : > { %21919 = vst [vmem:[#allocation147_spill] sm:$0xff] %v18645_v50  ;;  %v14379_v56 = vpop.f32.mrf.mxu1  ;;  %4268 = vst.msk [vmem:[#allocation3 + $0x1c8] sm:$0xff] %vm347_vm0, %v4236_v22  ;;  %v15371_v7 = vpop.eup %15370  ;;  %14680 = vmatprep.mubr.msk.f32.mxu1 %vm347_vm0, %v6575_v52  ;;  %v4205_v6 = vmul.f32 %v15369_v63, %v18563_v24 }
 0x309   : > { %v18651_v23 = vadd.f32 %v18208_v33, %v14379_v56  ;;  %v15373_v8 = vpop.eup %15372  ;;  %v18655_v14 = vpop.f32.mrf.mxu0  ;;  %v4238_v40 = vmul.f32 %v4203_v48, %v18253_v3  ;;  %v4207_v45 = vmul.f32 %v15371_v7, %v18568_v26  ;;  %v7326_v48 = vld [vmem:[#allocation2 + $0xb2] sm:$0xff] }
 0x30a   : > { %v18657_v13 = vpop.f32.mrf.mxu1  ;;  %v4239_v20 = vmul.f32 %v4205_v6, %v18239_v46  ;;  %v4209_v58 = vmul.f32 %v15373_v8, %v18571_v49  ;;  %v7324_v49 = vld [vmem:[#allocation2 + $0x92] sm:$0xff]  ;;  %v7327_v8 = vld [vmem:[#allocation2 + $0xca] sm:$0xff] }
 0x30b   : > { %v18663_v33 = vpop.f32.mrf.mxu0  ;;  %14681 = vmatmul.mubr.msk.f32.gmra.mxu1 %vm347_vm0, %v6576_v5  ;;  %4270 = vst.msk [vmem:[#allocation3 + $0x1e8] sm:$0xff] %vm347_vm0, %v4238_v40  ;;  %v4240_v24 = vmul.f32 %v4207_v45, %v18279_v41 }
 0x30c   : > { %21920 = vst [vmem:[#allocation113_spill] sm:$0xff] %v18663_v33  ;;  %v14382_v59 = vpop.f32.mrf.mxu1  ;;  %14735 = vmatprep.mubr.msk.f32.mxu1 %vm347_vm0, %v7323_v9  ;;  %4271 = vst.msk [vmem:[#allocation3 + $0x1f0] sm:$0xff] %vm347_vm0, %v4239_v20  ;;  %v4241_v46 = vmul.f32 %v4209_v58, %v18261_v19  ;;  %v7328_v20 = vld [vmem:[#allocation2 + $0xd2] sm:$0xff] }
 0x30d   : > { %v18669_v52 = vadd.f32 %v18242_v15, %v14382_v59  ;;  %v18674_v3 = vpop.f32.mrf.mxu0  ;;  %4272 = vst.msk [vmem:[#allocation3 + $0x208] sm:$0xff] %vm347_vm0, %v4240_v24  ;;  %v7325_v15 = vld [vmem:[#allocation2 + $0xaa] sm:$0xff] }
 0x30e   : > { %v18676_v26 = vpop.f32.mrf.mxu1  ;;  %4273 = vst.msk [vmem:[#allocation3 + $0x210] sm:$0xff] %vm347_vm0, %v4241_v46  ;;  %v7329_v59 = vld [vmem:[#allocation2 + $0xea] sm:$0xff] }
 0x30f   : > { %v18680_v22 = vpop.f32.mrf.mxu0  ;;  %14736 = vmatmul.mubr.msk.f32.vlgmr.msra.gmra.mxu1 %vm347_vm0, %v7324_v49  ;;  %v21923_v46 = vld [vmem:[#allocation138_spill] sm:$0xff] }
 0x310   : > { %21921 = vst [vmem:[#allocation70_spill] sm:$0xff] %v18680_v22  ;;  %v14437_v41 = vpop.f32.mrf.mxu1  ;;  %14738 = vmatprep.mubr.msk.f32.mxu1 %vm347_vm0, %v7325_v15 }
 0x311   : > { %v5346_v62 = vadd.f32 %v14437_v41, %v18265_v25  ;;  %v18685_v19 = vpop.f32.mrf.mxu0  ;;  %v21924_v41 = vld [vmem:[#allocation119_spill] sm:$0xff] }
 0x312   : > { %v5186_v63 = vpop.f32.mrf.mxu1 }
 0x313   : > { %v18688_v56 = vadd.f32 %v5186_v63, %v18282_v35  ;;  %v18691_v7 = vadd.f32 %v18273_v27, %v5346_v62  ;;  %v18693_v5 = vpop.f32.mrf.mxu0  ;;  %14739 = vmatmul.mubr.msk.f32.gmra.mxu1 %vm347_vm0, %v7326_v48  ;;  %v7331_v62 = vld [vmem:[#allocation2 + $0x10a] sm:$0xff]  ;;  %v21925_v63 = vld [vmem:[#allocation136_spill] sm:$0xff] }
 0x314   : > { %v14440_v6 = vpop.f32.mrf.mxu1  ;;  %14741 = vmatprep.mubr.msk.f32.mxu1 %vm347_vm0, %v7327_v8  ;;  %v21926_v8 = vld [vmem:[#allocation65_spill] sm:$0xff] }
 0x315   : > { %v5348_v25 = vadd.f32 %v14440_v6, %v18297_v53  ;;  %v18698_v40 = vpop.f32.mrf.mxu0 }
 0x316   : > { %v5196_v45 = vpop.f32.mrf.mxu1 }
 0x317   : > { %v18701_v35 = vadd.f32 %v5196_v45, %v18313_v39  ;;  %v18704_v27 = vadd.f32 %v18301_v47, %v5348_v25  ;;  %14742 = vmatmul.mubr.msk.f32.gmra.mxu1 %vm347_vm0, %v7328_v20  ;;  %v18709_v53 = vpop.f32.mrf.mxu0  ;;  %v7330_v39 = vld [vmem:[#allocation2 + $0xf2] sm:$0xff]  ;;  %v21927_v20 = vld [vmem:[#allocation141_spill] sm:$0xff] }
 0x318   : > { %v14443_v58 = vpop.f32.mrf.mxu1  ;;  %14744 = vmatprep.mubr.msk.f32.mxu1 %vm347_vm0, %v7329_v59  ;;  %21922 = vst [vmem:[#allocation135_spill] sm:$0xff] %v18709_v53  ;;  %v7332_v45 = vld [vmem:[#allocation2 + $0x112] sm:$0xff] }
 0x319   : > { %v5350_v9 = vadd.f32 %v14443_v58, %v18327_v12  ;;  %v18720_v12 = vpop.f32.mrf.mxu0 }
 0x31a   : > { %v5206_v24 = vpop.f32.mrf.mxu1 }
 0x31b   : > { %v18712_v49 = vadd.f32 %v5206_v24, %v21923_v46  ;;  %v18715_v15 = vadd.f32 %v21924_v41, %v5350_v9  ;;  %14745 = vmatmul.mubr.msk.f32.gmra.mxu1 %vm347_vm0, %v7330_v39  ;;  %v7333_v9 = vld [vmem:[#allocation2 + $0x12a] sm:$0xff]  ;;  %v18731_v39 = vpop.f32.mrf.mxu0 }
 0x31c   : > { %v14446_v47 = vpop.f32.mrf.mxu1  ;;  %14747 = vmatprep.mubr.msk.f32.mxu1 %vm347_vm0, %v7331_v62  ;;  %v21928_v24 = vld [vmem:[#allocation102_spill] sm:$0xff]  ;;  %21929 = vst [vmem:[#allocation151_spill] sm:$0xff] %v18731_v39 }
 0x31d   : > { %v5352_v48 = vadd.f32 %v14446_v47, %v21925_v63  ;;  %v21930_v47 = vld [vmem:[#allocation140_spill] sm:$0xff]  ;;  %v7334_v63 = vld [vmem:[#allocation2 + $0x132] sm:$0xff] }
 0x31e   : > { %v5216_v6 = vpop.f32.mrf.mxu1 }
 0x31f   : > { %v18723_v25 = vadd.f32 %v5216_v6, %v21926_v8  ;;  %v18726_v58 = vadd.f32 %v21927_v20, %v5352_v48  ;;  %14748 = vmatmul.mubr.msk.f32.gmra.mxu1 %vm347_vm0, %v7332_v45  ;;  %v21931_v6 = vld [vmem:[#allocation64_spill] sm:$0xff]  ;;  %v7335_v20 = vld [vmem:[#allocation2 + $0x14a] sm:$0xff]  ;;  %v21932_v45 = vld [vmem:[#allocation67_spill] sm:$0xff] }
 0x320   : > { %v14449_v59 = vpop.f32.mrf.mxu1  ;;  %14750 = vmatprep.mubr.msk.f32.mxu1 %vm347_vm0, %v7333_v9 }
 0x321   : > { %v5354_v46 = vadd.f32 %v14449_v59, %v21928_v24  ;;  %v18742_v59 = vpop.f32.mrf.mxu0  ;;  %v21933_v24 = vld [vmem:[#allocation145_spill] sm:$0xff] }
 0x322   : > { %v5226_v41 = vpop.f32.mrf.mxu1 }
 0x323   : > { %v18734_v62 = vadd.f32 %v5226_v41, %v21930_v47  ;;  %v18737_v8 = vadd.f32 %v21931_v6, %v5354_v46  ;;  %14751 = vmatmul.mubr.msk.f32.gmra.mxu1 %vm347_vm0, %v7334_v63  ;;  %v7336_v41 = vld [vmem:[#allocation2 + $0x152] sm:$0xff]  ;;  %v7337_v6 = vld [vmem:[#allocation2 + $0x16a] sm:$0xff]  ;;  %v21935_v63 = vld [vmem:[#allocation144_spill] sm:$0xff] }
 0x324   : > { %v14452_v48 = vpop.f32.mrf.mxu1  ;;  %14753 = vmatprep.mubr.msk.f32.mxu1 %vm347_vm0, %v7335_v20  ;;  %v21934_v47 = vld [vmem:[#allocation127_spill] sm:$0xff] }
 0x325   : > { %v5356_v22 = vadd.f32 %v14452_v48, %v21932_v45  ;;  %v18753_v48 = vpop.f32.mrf.mxu0 }
 0x326   : > { %v5236_v9 = vpop.f32.mrf.mxu1  ;;  %21936 = vst [vmem:[#allocation34_spill] sm:$0xff] %v18753_v48 }
 0x327   : > { %v18745_v39 = vadd.f32 %v5236_v9, %v21933_v24  ;;  %v18748_v33 = vadd.f32 %v21934_v47, %v5356_v22  ;;  %14754 = vmatmul.mubr.msk.f32.gmra.mxu1 %vm347_vm0, %v7336_v41  ;;  %v7338_v9 = vld [vmem:[#allocation2 + $0x172] sm:$0xff]  ;;  %v21937_v24 = vld [vmem:[#allocation148_spill] sm:$0xff]  ;;  %v7339_v47 = vld [vmem:[#allocation2 + $0x18a] sm:$0xff] }
 0x328   : > { %v14455_v46 = vpop.f32.mrf.mxu1  ;;  %14756 = vmatprep.mubr.msk.f32.mxu1 %vm347_vm0, %v7337_v6 }
 0x329   : > { %v5358_v50 = vadd.f32 %v14455_v46, %v21935_v63  ;;  %v18764_v46 = vpop.f32.mrf.mxu0 }
 0x32a   : > { %v5246_v20 = vpop.f32.mrf.mxu1 }
 0x32b   : > { %v18756_v45 = vadd.f32 %v5246_v20, %v18471_v37  ;;  %v18759_v2 = vadd.f32 %v21937_v24, %v5358_v50  ;;  %14757 = vmatmul.mubr.msk.f32.gmra.mxu1 %vm347_vm0, %v7338_v9  ;;  %v7340_v37 = vld [vmem:[#allocation2 + $0x192] sm:$0xff]  ;;  %v7341_v24 = vld [vmem:[#allocation2 + $0x1aa] sm:$0xff] }
 0x32c   : > { %v14458_v22 = vpop.f32.mrf.mxu1  ;;  %14759 = vmatprep.mubr.msk.f32.mxu1 %vm347_vm0, %v7339_v47  ;;  %v7342_v47 = vld [vmem:[#allocation2 + $0x1b2] sm:$0xff] }
 0x32d   : > { %v5360_v41 = vadd.f32 %v14458_v22, %v18485_v44  ;;  %v18775_v44 = vpop.f32.mrf.mxu0 }
 0x32e   : > { %v5256_v6 = vpop.f32.mrf.mxu1  ;;  %21938 = vst [vmem:[#allocation150_spill] sm:$0xff] %v18775_v44 }
 0x32f   : > { %v18767_v63 = vadd.f32 %v5256_v6, %v18502_v4  ;;  %v18770_v20 = vadd.f32 %v18492_v55, %v5360_v41  ;;  %14760 = vmatmul.mubr.msk.f32.gmra.mxu1 %vm347_vm0, %v7340_v37  ;;  %v7343_v55 = vld [vmem:[#allocation2 + $0x1ca] sm:$0xff]  ;;  %v18785_v37 = vpop.f32.mrf.mxu0 }
 0x330   : > { %v14461_v50 = vpop.f32.mrf.mxu1  ;;  %14762 = vmatprep.mubr.msk.f32.mxu1 %vm347_vm0, %v7341_v24 }
 0x331   : > { %v5362_v9 = vadd.f32 %v14461_v50, %v18517_v32  ;;  %v7344_v50 = vld [vmem:[#allocation2 + $0x1d2] sm:$0xff] }
 0x332   : > { %v18777_v22 = vpop.f32.mrf.mxu1 }
 0x333   : > { %v18780_v4 = vadd.f32 %v18524_v29, %v5362_v9  ;;  %14763 = vmatmul.mubr.msk.f32.gmra.mxu1 %vm347_vm0, %v7342_v47  ;;  %v7345_v29 = vld [vmem:[#allocation2 + $0x1ea] sm:$0xff]  ;;  %v18795_v47 = vpop.f32.mrf.mxu0 }
 0x334   : > { %v14464_v6 = vpop.f32.mrf.mxu1  ;;  %14765 = vmatprep.mubr.msk.f32.mxu1 %vm347_vm0, %v7343_v55  ;;  %21939 = vst [vmem:[#allocation154_spill] sm:$0xff] %v18795_v47 }
 0x335   : > { %v5364_v41 = vadd.f32 %v14464_v6, %v18546_v17  ;;  %v7346_v6 = vld [vmem:[#allocation2 + $0x1f2] sm:$0xff] }
 0x336   : > { %v18787_v32 = vpop.f32.mrf.mxu1 }
 0x337   : > { %v18790_v24 = vadd.f32 %v18553_v34, %v5364_v41  ;;  %14766 = vmatmul.mubr.msk.f32.gmra.mxu1 %vm347_vm0, %v7344_v50  ;;  %v7347_v34 = vld [vmem:[#allocation2 + $0x20a] sm:$0xff]  ;;  %v18805_v50 = vpop.f32.mrf.mxu0 }
 0x338   : > { %v14467_v44 = vpop.f32.mrf.mxu1  ;;  %14768 = vmatprep.mubr.msk.f32.mxu1 %vm347_vm0, %v7345_v29 }
 0x339   : > { %v5366_v9 = vadd.f32 %v14467_v44, %v18581_v54  ;;  %v7348_v44 = vld [vmem:[#allocation2 + $0x212] sm:$0xff] }
 0x33a   : > { %v18797_v17 = vpop.f32.mrf.mxu1 }
 0x33b   : > { %v18800_v55 = vadd.f32 %v18587_v38, %v5366_v9  ;;  %14769 = vmatmul.mubr.msk.f32.gmra.mxu1 %vm347_vm0, %v7346_v6  ;;  %v7349_v38 = vld [vmem:[#allocation2 + $0x22a] sm:$0xff]  ;;  %v18815_v6 = vpop.f32.mrf.mxu0 }
 0x33c   : > { %v14470_v48 = vpop.f32.mrf.mxu1  ;;  %14771 = vmatprep.mubr.msk.f32.mxu1 %vm347_vm0, %v7347_v34  ;;  %21940 = vst [vmem:[#allocation71_spill] sm:$0xff] %v18815_v6  ;;  %v7350_v34 = vld [vmem:[#allocation2 + $0x232] sm:$0xff] }
 0x33d   : > { %v5368_v41 = vadd.f32 %v14470_v48, %v18603_v43  ;;  %v7351_v48 = vld [vmem:[#allocation2 + $0x24a] sm:$0xff] }
 0x33e   : > { %v18807_v54 = vpop.f32.mrf.mxu1 }
 0x33f   : > { %v18810_v29 = vadd.f32 %v18607_v57, %v5368_v41  ;;  %14772 = vmatmul.mubr.msk.f32.gmra.mxu1 %vm347_vm0, %v7348_v44  ;;  %v7352_v41 = vld [vmem:[#allocation2 + $0x252] sm:$0xff]  ;;  %v7353_v44 = vld [vmem:[#allocation2 + $0x26a] sm:$0xff] }
 0x340   : > { %v14473_v47 = vpop.f32.mrf.mxu1  ;;  %14774 = vmatprep.mubr.msk.f32.mxu1 %vm347_vm0, %v7349_v38 }
 0x341   : > { %v5370_v9 = vadd.f32 %v14473_v47, %v18619_v42  ;;  %v14608_v42 = vpop.f32.mrf.mxu0 }
 0x342   : > { %v18817_v43 = vpop.f32.mrf.mxu1 }
 0x343   : > { %v18820_v53 = vadd.f32 %v18623_v0, %v5370_v9  ;;  %14775 = vmatmul.mubr.msk.f32.gmra.mxu1 %vm347_vm0, %v7350_v34  ;;  %v7354_v9 = vld [vmem:[#allocation2 + $0x272] sm:$0xff]  ;;  %v18833_v34 = vpop.f32.mrf.mxu0 }
 0x344   : > { %v14476_v21 = vpop.f32.mrf.mxu1  ;;  %14777 = vmatprep.mubr.msk.f32.mxu1 %vm347_vm0, %v7351_v48  ;;  %21941 = vst [vmem:[#allocation139_spill] sm:$0xff] %v18833_v34 }
 0x345   : > { %v5372_v57 = vadd.f32 %v14476_v21, %v18636_v31 }
 0x346   : > { %v18825_v47 = vpop.f32.mrf.mxu1 }
 0x347   : > { %v18828_v38 = vadd.f32 %v18640_v16, %v5372_v57  ;;  %14778 = vmatmul.mubr.msk.f32.gmra.mxu1 %vm347_vm0, %v7352_v41  ;;  %v18842_v57 = vpop.f32.mrf.mxu0 }
 0x348   : > { %v14479_v6 = vpop.f32.mrf.mxu1  ;;  %14780 = vmatprep.mubr.msk.f32.mxu1 %vm347_vm0, %v7353_v44  ;;  %21943 = vst [vmem:[#allocation37_spill] sm:$0xff] %v18842_v57 }
 0x349   : > { %v5374_v0 = vadd.f32 %v14479_v6, %v18651_v23  ;;  %v18852_v34 = vpop.f32.mrf.mxu0 }
 0x34a   : > { %v18835_v21 = vpop.f32.mrf.mxu1  ;;  %21945 = vst [vmem:[#allocation121_spill] sm:$0xff] %v18852_v34 }
 0x34b   : > { %21942 = vst [vmem:[#allocation118_spill] sm:$0xff] %v18835_v21  ;;  %v18838_v31 = vadd.f32 %v18655_v14, %v5374_v0  ;;  %14781 = vmatmul.mubr.msk.f32.gmra.mxu1 %vm347_vm0, %v7354_v9  ;;  %v14614_v18 = vpop.f32.mrf.mxu0 }
 0x34c   : > { %v14482_v48 = vpop.f32.mrf.mxu1 }
 0x34d   : > { %v5376_v16 = vadd.f32 %v14482_v48, %v18669_v52 }
 0x34e   : > { %v18844_v41 = vpop.f32.mrf.mxu1 }
 0x34f   : > { %21944 = vst [vmem:[#allocation153_spill] sm:$0xff] %v18844_v41  ;;  %v18847_v23 = vadd.f32 %v18674_v3, %v5376_v16  ;;  %v18863_v16 = vpop.f32.mrf.mxu0 }
 0x350   : > { %v14537_v6 = vpop.f32.mrf.mxu1  ;;  %21946 = vst [vmem:[#allocation35_spill] sm:$0xff] %v18863_v16 }
 0x351   : > { %v18850_v44 = vadd.f32 %v14537_v6, %v18691_v7 }
 0x352   : > { %v18854_v14 = vpop.f32.mrf.mxu1 }
 0x354   : > { %v14540_v0 = vpop.f32.mrf.mxu1 }
 0x355   : > { %v6126_v9 = vadd.f32 %v14540_v0, %v18704_v27  ;;  %v14617_v27 = vpop.f32.mrf.mxu0 }
 0x356   : > { %v18857_v52 = vpop.f32.mrf.mxu1 }
 0x357   : > { %v18860_v48 = vadd.f32 %v18698_v40, %v6126_v9 }
 0x358   : > { %v14543_v57 = vpop.f32.mrf.mxu1 }
 0x359   : > { %v6128_v3 = vadd.f32 %v14543_v57, %v18715_v15  ;;  %v18877_v15 = vpop.f32.mrf.mxu0 }
 0x35a   : > { %v18865_v7 = vpop.f32.mrf.mxu1  ;;  %21948 = vst [vmem:[#allocation157_spill] sm:$0xff] %v18877_v15 }
 0x35b   : > { %v18868_v6 = vadd.f32 %v18720_v12, %v6128_v3 }
 0x35c   : > { %v14546_v34 = vpop.f32.mrf.mxu1 }
 0x35d   : > { %v6130_v41 = vadd.f32 %v14546_v34, %v18726_v58  ;;  %v14620_v58 = vpop.f32.mrf.mxu0 }
 0x35e   : > { %v18871_v0 = vpop.f32.mrf.mxu1 }
 0x35f   : > { %21947 = vst [vmem:[#allocation143_spill] sm:$0xff] %v18871_v0  ;;  %v18874_v21 = vadd.f32 %v18742_v59, %v6130_v41 }
 0x360   : > { %v14549_v40 = vpop.f32.mrf.mxu1 }
 0x361   : > { %v6132_v9 = vadd.f32 %v14549_v40, %v18737_v8  ;;  %v18891_v8 = vpop.f32.mrf.mxu0 }
 0x362   : > { %v18879_v57 = vpop.f32.mrf.mxu1  ;;  %21950 = vst [vmem:[#allocation156_spill] sm:$0xff] %v18891_v8 }
 0x363   : > { %v18882_v16 = vadd.f32 %v18764_v46, %v6132_v9 }
 0x364   : > { %v14552_v12 = vpop.f32.mrf.mxu1 }
 0x365   : > { %v6134_v3 = vadd.f32 %v14552_v12, %v18748_v33  ;;  %v14623_v33 = vpop.f32.mrf.mxu0 }
 0x366   : > { %v18885_v34 = vpop.f32.mrf.mxu1 }
 0x367   : > { %21949 = vst [vmem:[#allocation73_spill] sm:$0xff] %v18885_v34  ;;  %v18888_v0 = vadd.f32 %v18785_v37, %v6134_v3 }
 0x368   : > { %v14555_v59 = vpop.f32.mrf.mxu1 }
 0x369   : > { %v6136_v41 = vadd.f32 %v14555_v59, %v18759_v2  ;;  %v18906_v2 = vpop.f32.mrf.mxu0 }
 0x36a   : > { %v18893_v40 = vpop.f32.mrf.mxu1  ;;  %21954 = vst [vmem:[#allocation129_spill] sm:$0xff] %v18906_v2 }
 0x36b   : > { %21951 = vst [vmem:[#allocation72_spill] sm:$0xff] %v18893_v40  ;;  %v18896_v15 = vadd.f32 %v18805_v50, %v6136_v41  ;;  %v14626_v41 = vpop.f32.mrf.mxu0 }
 0x36c   : > { %v14558_v46 = vpop.f32.mrf.mxu1 }
 0x36d   : > { %v6138_v9 = vadd.f32 %v14558_v46, %v18770_v20 }
 0x36e   : > { %v18899_v12 = vpop.f32.mrf.mxu1 }
 0x36f   : > { %21952 = vst [vmem:[#allocation146_spill] sm:$0xff] %v18899_v12  ;;  %v18901_v34 = vadd.f32 %v14608_v42, %v6138_v9  ;;  %v18916_v9 = vpop.f32.mrf.mxu0 }
 0x370   : > { %v14561_v37 = vpop.f32.mrf.mxu1  ;;  %21957 = vst [vmem:[#allocation75_spill] sm:$0xff] %v18916_v9 }
 0x371   : > { %v18904_v3 = vadd.f32 %v14561_v37, %v18780_v4 }
 0x372   : > { %v18908_v59 = vpop.f32.mrf.mxu1 }
 0x373   : > { %21953 = vst [vmem:[#allocation126_spill] sm:$0xff] %v18904_v3  ;;  %21955 = vst [vmem:[#allocation74_spill] sm:$0xff] %v18908_v59  ;;  %v14629_v3 = vpop.f32.mrf.mxu0 }
 0x374   : > { %v14564_v8 = vpop.f32.mrf.mxu1 }
 0x375   : > { %v6142_v50 = vadd.f32 %v14564_v8, %v18790_v24 }
 0x376   : > { %v18911_v40 = vpop.f32.mrf.mxu1 }
 0x377   : > { %21956 = vst [vmem:[#allocation149_spill] sm:$0xff] %v18911_v40  ;;  %v18913_v20 = vadd.f32 %v14614_v18, %v6142_v50  ;;  %v18928_v50 = vpop.f32.mrf.mxu0 }
 0x378   : > { %v14567_v46 = vpop.f32.mrf.mxu1  ;;  %21960 = vst [vmem:[#allocation137_spill] sm:$0xff] %v18928_v50 }
 0x379   : > { %v6144_v42 = vadd.f32 %v14567_v46, %v18800_v55 }
 0x37a   : > { %v18918_v12 = vpop.f32.mrf.mxu1 }
 0x37b   : > { %21958 = vst [vmem:[#allocation152_spill] sm:$0xff] %v18918_v12  ;;  %v18920_v4 = vadd.f32 %v14617_v27, %v6144_v42  ;;  %v14632_v42 = vpop.f32.mrf.mxu0 }
 0x37c   : > { %v14570_v37 = vpop.f32.mrf.mxu1 }
 0x37d   : > { %v6146_v2 = vadd.f32 %v14570_v37, %v18810_v29 }
 0x37e   : > { %v18923_v59 = vpop.f32.mrf.mxu1 }
 0x37f   : > { %21959 = vst [vmem:[#allocation134_spill] sm:$0xff] %v18923_v59  ;;  %v18925_v24 = vadd.f32 %v14620_v58, %v6146_v2  ;;  %v18940_v2 = vpop.f32.mrf.mxu0 }
 0x380   : > { %v14573_v8 = vpop.f32.mrf.mxu1  ;;  %21963 = vst [vmem:[#allocation142_spill] sm:$0xff] %v18940_v2 }
 0x381   : > { %v6148_v18 = vadd.f32 %v14573_v8, %v18820_v53 }
 0x382   : > { %v18930_v55 = vpop.f32.mrf.mxu1 }
 0x383   : > { %21961 = vst [vmem:[#allocation155_spill] sm:$0xff] %v18930_v55  ;;  %v18932_v46 = vadd.f32 %v14623_v33, %v6148_v18  ;;  %v18947_v18 = vpop.f32.mrf.mxu0 }
 0x384   : > { %v14576_v9 = vpop.f32.mrf.mxu1 }
 0x385   : > { %v6150_v27 = vadd.f32 %v14576_v9, %v18828_v38 }
 0x386   : > { %v18935_v12 = vpop.f32.mrf.mxu1 }
 0x387   : > { %21962 = vst [vmem:[#allocation158_spill] sm:$0xff] %v18935_v12  ;;  %v18937_v29 = vadd.f32 %v14626_v41, %v6150_v27  ;;  %v18955_v27 = vpop.f32.mrf.mxu0 }
 0x388   : > { %v14579_v37 = vpop.f32.mrf.mxu1 }
 0x389   : > { %v6152_v58 = vadd.f32 %v14579_v37, %v18838_v31 }
 0x38a   : > { %v18942_v53 = vpop.f32.mrf.mxu1 }
 0x38b   : > { %21964 = vst [vmem:[#allocation93_spill] sm:$0xff] %v18942_v53  ;;  %v18944_v8 = vadd.f32 %v14629_v3, %v6152_v58  ;;  %v18962_v3 = vpop.f32.mrf.mxu0 }
 0x38c   : > { %v14582_v50 = vpop.f32.mrf.mxu1 }
 0x38d   : > { %v6154_v33 = vadd.f32 %v14582_v50, %v18847_v23 }
 0x38e   : > { %v18949_v38 = vpop.f32.mrf.mxu1 }
 0x38f   : > { %21965 = vst [vmem:[#allocation39_spill] sm:$0xff] %v18949_v38  ;;  %v18951_v9 = vadd.f32 %v14632_v42, %v6154_v33  ;;  %v18969_v42 = vpop.f32.mrf.mxu0 }
 0x390   : > { %v18953_v41 = vpop.f32.mrf.mxu1 }
 0x391   : > { %v18976_v12 = vpop.f32.mrf.mxu0 }
 0x392   : > { %v18957_v31 = vpop.f32.mrf.mxu1  ;;  %21968 = vst [vmem:[#allocation40_spill] sm:$0xff] %v18976_v12 }
 0x393   : > { %v18983_v59 = vpop.f32.mrf.mxu0 }
 0x394   : > { %v14640_v37 = vpop.f32.mrf.mxu1 }
 0x395   : > { %v18960_v2 = vadd.f32 %v14640_v37, %v18860_v48  ;;  %v18990_v40 = vpop.f32.mrf.mxu0 }
 0x396   : > { %v18964_v58 = vpop.f32.mrf.mxu1 }
 0x397   : > { %v18997_v12 = vpop.f32.mrf.mxu0 }
 0x398   : > { %v14643_v23 = vpop.f32.mrf.mxu1 }
 0x399   : > { %v18967_v50 = vadd.f32 %v14643_v23, %v18868_v6 }
 0x39a   : > { %v18971_v33 = vpop.f32.mrf.mxu1 }
 0x39b   : > { %21966 = vst [vmem:[#allocation82_spill] sm:$0xff] %v18967_v50 }
 0x39c   : > { %v14646_v38 = vpop.f32.mrf.mxu1 }
 0x39d   : > { %v18974_v53 = vadd.f32 %v14646_v38, %v18874_v21 }
 0x39e   : > { %v18978_v48 = vpop.f32.mrf.mxu1 }
 0x39f   : > { %21967 = vst [vmem:[#allocation89_spill] sm:$0xff] %v18974_v53 }
 0x3a0   : > { %v14649_v37 = vpop.f32.mrf.mxu1 }
 0x3a1   : > { %v18981_v55 = vadd.f32 %v14649_v37, %v18882_v16 }
 0x3a2   : > { %v18985_v6 = vpop.f32.mrf.mxu1 }
 0x3a3   : > { %21969 = vst [vmem:[#allocation45_spill] sm:$0xff] %v18981_v55  ;;  %21970 = vst [vmem:[#allocation77_spill] sm:$0xff] %v18985_v6  ;;  %v19004_v6 = vpop.f32.mrf.mxu0 }
 0x3a4   : > { %v14652_v23 = vpop.f32.mrf.mxu1 }
 0x3a5   : > { %v18988_v50 = vadd.f32 %v14652_v23, %v18888_v0 }
 0x3a6   : > { %v18992_v21 = vpop.f32.mrf.mxu1 }
 0x3a7   : > { %21971 = vst [vmem:[#allocation76_spill] sm:$0xff] %v18988_v50  ;;  %21972 = vst [vmem:[#allocation84_spill] sm:$0xff] %v18992_v21  ;;  %v19010_v50 = vpop.f32.mrf.mxu0 }
 0x3a8   : > { %v14655_v38 = vpop.f32.mrf.mxu1  ;;  %21978 = vst [vmem:[#allocation101_spill] sm:$0xff] %v19010_v50 }
 0x3a9   : > { %v18995_v53 = vadd.f32 %v14655_v38, %v18896_v15 }
 0x3aa   : > { %v18999_v16 = vpop.f32.mrf.mxu1 }
 0x3ab   : > { %21973 = vst [vmem:[#allocation92_spill] sm:$0xff] %v18995_v53  ;;  %21974 = vst [vmem:[#allocation41_spill] sm:$0xff] %v18999_v16  ;;  %v19017_v53 = vpop.f32.mrf.mxu0 }
 0x3ac   : > { %v14658_v37 = vpop.f32.mrf.mxu1 }
 0x3ad   : > { %v19002_v55 = vadd.f32 %v14658_v37, %v18901_v34 }
 0x3ae   : > { %v19006_v0 = vpop.f32.mrf.mxu1 }
 0x3af   : > { %21975 = vst [vmem:[#allocation47_spill] sm:$0xff] %v19002_v55  ;;  %21976 = vst [vmem:[#allocation98_spill] sm:$0xff] %v19006_v0  ;;  %v19024_v55 = vpop.f32.mrf.mxu0 }
 0x3b0   : > { %v19008_v23 = vpop.f32.mrf.mxu1  ;;  %21983 = vst [vmem:[#allocation86_spill] sm:$0xff] %v19024_v55 }
 0x3b1   : > { %21977 = vst [vmem:[#allocation96_spill] sm:$0xff] %v19008_v23 }
 0x3b2   : > { %v19012_v21 = vpop.f32.mrf.mxu1 }
 0x3b3   : > { %21979 = vst [vmem:[#allocation159_spill] sm:$0xff] %v19012_v21  ;;  %v19031_v21 = vpop.f32.mrf.mxu0 }
 0x3b4   : > { %v14664_v15 = vpop.f32.mrf.mxu1  ;;  %21986 = vst [vmem:[#allocation50_spill] sm:$0xff] %v19031_v21 }
 0x3b5   : > { %v19015_v38 = vadd.f32 %v14664_v15, %v18913_v20 }
 0x3b6   : > { %v19019_v16 = vpop.f32.mrf.mxu1 }
 0x3b7   : > { %21980 = vst [vmem:[#allocation160_spill] sm:$0xff] %v19015_v38  ;;  %21981 = vst [vmem:[#allocation48_spill] sm:$0xff] %v19019_v16  ;;  %v19038_v16 = vpop.f32.mrf.mxu0 }
 0x3b8   : > { %v14667_v34 = vpop.f32.mrf.mxu1  ;;  %21989 = vst [vmem:[#allocation88_spill] sm:$0xff] %v19038_v16 }
 0x3b9   : > { %v19022_v37 = vadd.f32 %v14667_v34, %v18920_v4 }
 0x3ba   : > { %v19026_v0 = vpop.f32.mrf.mxu1 }
 0x3bb   : > { %21982 = vst [vmem:[#allocation78_spill] sm:$0xff] %v19022_v37  ;;  %21984 = vst [vmem:[#allocation100_spill] sm:$0xff] %v19026_v0  ;;  %v21991_v37 = vld [vmem:[#allocation97_spill] sm:$0xff] }
 0x3bc   : > { %v14670_v23 = vpop.f32.mrf.mxu1  ;;  %v5734_v0 = vadd.f32 %v21991_v37, %v18688_v56  ;;  %v21998_v56 = vld [vmem:[#allocation115_spill] sm:$0xff]  ;;  %v21999_v37 = vld [vmem:[#allocation94_spill] sm:$0xff] }
 0x3bd   : > { %v19029_v50 = vadd.f32 %v14670_v23, %v18925_v24  ;;  %v21993_v24 = vld [vmem:[#allocation58_spill] sm:$0xff] }
 0x3be   : > { %v19033_v20 = vpop.f32.mrf.mxu1  ;;  %v4910_v23 = vadd.f32 %v21993_v24, %v18526_v11  ;;  %v6123_v11 = vadd.f32 %v18854_v14, %v5734_v0  ;;  %v22005_v0 = vld [vmem:[#allocation105_spill] sm:$0xff] }
 0x3bf   : > { %21985 = vst [vmem:[#allocation42_spill] sm:$0xff] %v19029_v50  ;;  %21987 = vst [vmem:[#allocation106_spill] sm:$0xff] %v19033_v20  ;;  %v21994_v50 = vld [vmem:[#allocation124_spill] sm:$0xff] }
 0x3c0   : > { %v14673_v15 = vpop.f32.mrf.mxu1  ;;  %v4920_v20 = vadd.f32 %v21994_v50, %v18555_v28  ;;  %v22000_v28 = vld [vmem:[#allocation59_spill] sm:$0xff] }
 0x3c1   : > { %v19036_v38 = vadd.f32 %v14673_v15, %v18932_v46  ;;  %v21995_v46 = vld [vmem:[#allocation130_spill] sm:$0xff]  ;;  %v4970_v50 = vadd.f32 %v22000_v28, %v18657_v13 }
 0x3c2   : > { %v19040_v4 = vpop.f32.mrf.mxu1  ;;  %v4930_v15 = vadd.f32 %v21995_v46, %v18589_v30  ;;  %v22001_v30 = vld [vmem:[#allocation132_spill] sm:$0xff]  ;;  %v5361_v46 = vadd.f32 %v18777_v22, %v4910_v23 }
 0x3c3   : > { %21988 = vst [vmem:[#allocation79_spill] sm:$0xff] %v19036_v38  ;;  %21990 = vst [vmem:[#allocation104_spill] sm:$0xff] %v19040_v4  ;;  %v19053_v38 = vpop.f32.mrf.mxu0  ;;  %v21997_v4 = vld [vmem:[#allocation133_spill] sm:$0xff]  ;;  %v4980_v24 = vadd.f32 %v22001_v30, %v18676_v26  ;;  %v22004_v26 = vld [vmem:[#allocation123_spill] sm:$0xff] }
 0x3c4   : > { %v14676_v34 = vpop.f32.mrf.mxu1  ;;  %v4940_v21 = vadd.f32 %v21997_v4, %v18609_v51  ;;  %v5363_v4 = vadd.f32 %v18787_v32, %v4920_v20  ;;  %v5365_v13 = vadd.f32 %v18797_v17, %v4930_v15  ;;  %v5740_v22 = vadd.f32 %v22004_v26, %v18723_v25 }
 0x3c5   : > { %v19045_v55 = vadd.f32 %v14676_v34, %v18937_v29  ;;  %v4950_v29 = vadd.f32 %v21998_v56, %v18625_v1  ;;  %v4960_v34 = vadd.f32 %v21999_v37, %v18642_v60  ;;  %v22003_v1 = vld [vmem:[#allocation61_spill] sm:$0xff]  ;;  %v6513_v60 = vadd.f32 %v18685_v19, %v18850_v44  ;;  %v19086_v20 = vpop.f32.mrf.mxu0 }
 0x3c6   : > { %v19055_v16 = vpop.f32.mrf.mxu1  ;;  %v5738_v56 = vadd.f32 %v22003_v1, %v18712_v49  ;;  %v5367_v19 = vadd.f32 %v18807_v54, %v4940_v21  ;;  %v6512_v17 = vadd.f32 %v18693_v5, %v6123_v11  ;;  %v5750_v23 = vadd.f32 %v18537_v10, %v5361_v46  ;;  %v22007_v54 = vld [vmem:[#allocation68_spill] sm:$0xff]  ;;  %v22008_v5 = vld [vmem:[#allocation118_spill] sm:$0xff]  ;;  %v22014_v46 = vld [vmem:[#allocation73_spill] sm:$0xff] }
 0x3c7   : > { %21992 = vst [vmem:[#allocation43_spill] sm:$0xff] %v19045_v55  ;;  %21996 = vst [vmem:[#allocation109_spill] sm:$0xff] %v19055_v16  ;;  %v22002_v55 = vld [vmem:[#allocation63_spill] sm:$0xff]  ;;  %v5369_v25 = vadd.f32 %v18817_v43, %v4950_v29  ;;  %v5371_v37 = vadd.f32 %v18825_v47, %v4960_v34  ;;  %v5752_v21 = vadd.f32 %v22007_v54, %v5363_v4  ;;  %v22012_v11 = vld [vmem:[#allocation110_spill] sm:$0xff] }
 0x3c8   : > { %v5736_v16 = vadd.f32 %v22002_v55, %v18701_v35  ;;  %v14679_v51 = vpop.f32.mrf.mxu1  ;;  %v5742_v35 = vadd.f32 %v22005_v0, %v18734_v62  ;;  %v22006_v55 = vld [vmem:[#allocation66_spill] sm:$0xff]  ;;  %v5746_v62 = vadd.f32 %v18475_v36, %v18756_v45  ;;  %v5373_v43 = vadd.f32 %v22008_v5, %v4970_v50  ;;  %v19109_v45 = vpop.f32.mrf.mxu0  ;;  %v22011_v47 = vld [vmem:[#allocation143_spill] sm:$0xff]  ;;  %v22016_v4 = vld [vmem:[#allocation69_spill] sm:$0xff] }
 0x3c9   : > { %v19077_v14 = vadd.f32 %v14679_v51, %v18944_v8  ;;  %v5744_v32 = vadd.f32 %v22006_v55, %v18745_v39  ;;  %v6903_v8 = vadd.f32 %v18953_v41, %v6513_v60  ;;  %v5748_v39 = vadd.f32 %v18510_v61, %v18767_v63  ;;  %v22010_v61 = vld [vmem:[#allocation131_spill] sm:$0xff]  ;;  %v22015_v51 = vld [vmem:[#allocation72_spill] sm:$0xff]  ;;  %v22018_v0 = vld [vmem:[#allocation146_spill] sm:$0xff] }
 0x3ca   : > { %v19088_v49 = vpop.f32.mrf.mxu1  ;;  %v6125_v44 = vadd.f32 %v18857_v52, %v5736_v16  ;;  %v6902_v52 = vadd.f32 %v18957_v31, %v6512_v17  ;;  %v22009_v16 = vld [vmem:[#allocation153_spill] sm:$0xff]  ;;  %v6127_v36 = vadd.f32 %v18865_v7, %v5738_v56  ;;  %v5754_v10 = vadd.f32 %v22010_v61, %v5365_v13  ;;  %v22013_v31 = vld [vmem:[#allocation135_spill] sm:$0xff]  ;;  %v19127_v60 = vld [vmem:[%s21347_s4] ss:$0 sm:$0xff]  ;;  %v19135_v55 = vpop.f32.mrf.mxu0 }
 0x3cb   : > { %v5375_v29 = vadd.f32 %v22009_v16, %v4980_v24  ;;  %v6129_v34 = vadd.f32 %v22011_v47, %v5740_v22  ;;  %v5756_v28 = vadd.f32 %v22012_v11, %v5367_v19  ;;  %v6131_v50 = vadd.f32 %v18879_v57, %v5742_v35  ;;  %v22017_v13 = vld [vmem:[#allocation147_spill] sm:$0xff] }
 0x3cc   : > { %v14682_v15 = vpop.f32.mrf.mxu1  ;;  %v6514_v30 = vadd.f32 %v22013_v31, %v6125_v44  ;;  %v6133_v24 = vadd.f32 %v22014_v46, %v5744_v32  ;;  %v6135_v7 = vadd.f32 %v22015_v51, %v5746_v62  ;;  %v19122_v1 = vadd.f32 %v22016_v4, %v5369_v25  ;;  %v22019_v32 = vld [vmem:[#allocation113_spill] sm:$0xff]  ;;  %v22020_v44 = vld [vmem:[#allocation70_spill] sm:$0xff]  ;;  %v22021_v17 = vld [vmem:[#allocation151_spill] sm:$0xff] }
 0x3cd   : > { %v19104_v41 = vadd.f32 %v14682_v15, %v18951_v9  ;;  %v7292_v9 = vadd.f32 %v18947_v18, %v6903_v8  ;;  %v19130_v26 = vadd.f32 %v22017_v13, %v5371_v37  ;;  %v7291_v57 = vadd.f32 %v18955_v27, %v6902_v52  ;;  %v22022_v15 = vld [vmem:[#allocation34_spill] sm:$0xff]  ;;  %v22030_v51 = vld [vmem:[#allocation37_spill] sm:$0xff] }
 0x3ce   : > { %v19112_v63 = vpop.f32.mrf.mxu1  ;;  %v6904_v18 = vadd.f32 %v18964_v58, %v6514_v30  ;;  %v6137_v35 = vadd.f32 %v22018_v0, %v5748_v39  ;;  %v19138_v19 = vadd.f32 %v22019_v32, %v5373_v43  ;;  %v19141_v8 = vadd.f32 %v22020_v44, %v5375_v29  ;;  %v22023_v52 = vld [vmem:[#allocation150_spill] sm:$0xff]  ;;  %v22025_v29 = vld [vmem:[#allocation71_spill] sm:$0xff]  ;;  %v22027_v30 = vld [vmem:[#allocation149_spill] sm:$0xff] }
 0x3cf   : > { %v6516_v25 = vadd.f32 %v22021_v17, %v6127_v36  ;;  %v6518_v37 = vadd.f32 %v22022_v15, %v6129_v34  ;;  %v7294_v27 = vadd.f32 %v18962_v3, %v18960_v2  ;;  %v6520_v5 = vadd.f32 %v22023_v52, %v6131_v50  ;;  %v22024_v43 = vld [vmem:[#allocation154_spill] sm:$0xff]  ;;  %v22028_v50 = vld [vmem:[#allocation139_spill] sm:$0xff]  ;;  %v22033_v0 = vld [vmem:[#allocation40_spill] sm:$0xff] }
 0x3d0   : > { %v14737_v56 = vpop.f32.mrf.mxu1  ;;  %v19153_v16 = vadd.f32 %v22024_v43, %v6133_v24  ;;  %v19156_v61 = vadd.f32 %v22025_v29, %v6135_v7  ;;  %v7293_v31 = vadd.f32 %v18969_v42, %v6904_v18  ;;  %v22026_v2 = vld [vmem:[#allocation74_spill] sm:$0xff]  ;;  %v19168_v46 = vadd.f32 %v22028_v50, %v6137_v35  ;;  %v22036_v43 = vld [vmem:[#allocation89_spill] sm:$0xff] }
 0x3d1   : > { %v7681_v22 = vadd.f32 %v14737_v56, %v7292_v9  ;;  %v6906_v39 = vadd.f32 %v18971_v33, %v6516_v25  ;;  %v6139_v3 = vadd.f32 %v22026_v2, %v5750_v23  ;;  %v19164_v33 = vpop.f32.mrf.mxu0  ;;  %v6141_v9 = vadd.f32 %v22027_v30, %v5752_v21  ;;  %v22029_v24 = vld [vmem:[#allocation126_spill] sm:$0xff]  ;;  %v22031_v23 = vld [vmem:[#allocation152_spill] sm:$0xff] }
 0x3d2   : > { %v7521_v62 = vpop.f32.mrf.mxu1  ;;  %v19172_v7 = vadd.f32 %v22030_v51, %v22029_v24  ;;  %v6143_v18 = vadd.f32 %v22031_v23, %v5754_v10  ;;  %v22032_v21 = vld [vmem:[#allocation82_spill] sm:$0xff]  ;;  %v22035_v10 = vld [vmem:[#allocation121_spill] sm:$0xff]  ;;  %v7298_v29 = vadd.f32 %v18990_v40, %v22036_v43 }
 0x3d3   : > { %v19146_v58 = vadd.f32 %v19127_v60, %v7681_v22  ;;  %v7680_v54 = vadd.f32 %v7521_v62, %v7291_v57  ;;  %v6908_v57 = vadd.f32 %v18978_v48, %v6518_v37  ;;  %v7296_v35 = vadd.f32 %v22033_v0, %v22032_v21  ;;  %v19187_v15 = vpop.f32.mrf.mxu0 }
 0x3d4   : > { %v14740_v36 = vpop.f32.mrf.mxu1  ;;  %v7295_v44 = vadd.f32 %v18983_v59, %v6906_v39  ;;  %v6528_v52 = vadd.f32 %v22035_v10, %v6139_v3 }
 0x3d5   : > { %v7752_v47 = vmin.f32 %v19146_v58, 20.0  ;;  %v19160_v34 = vadd.f32 %v19127_v60, %v7680_v54  ;;  %v7683_v11 = vadd.f32 %v14740_v36, %v7294_v27  ;;  %v22034_v54 = vld [vmem:[#allocation134_spill] sm:$0xff]  ;;  %v7297_v30 = vadd.f32 %v18997_v12, %v6908_v57  ;;  %v19207_v51 = vpop.f32.mrf.mxu0 }
 0x3d6   : > { %v7531_v4 = vpop.f32.mrf.mxu1  ;;  %v6145_v27 = vadd.f32 %v22034_v54, %v5756_v28 }
 0x3d7   : > { %v7785_v56 = vmul.f32 1.442695, %v7752_v47  ;;  %v7751_v13 = vmin.f32 %v19160_v34, 20.0  ;;  %v19176_v22 = vadd.f32 %v19127_v60, %v7683_v11  ;;  %v7682_v42 = vadd.f32 %v7531_v4, %v7293_v31  ;;  %v22037_v47 = vld [vmem:[#allocation35_spill] sm:$0xff]  ;;  %v22038_v31 = vld [vmem:[#allocation157_spill] sm:$0xff]  ;;  %v19230_v43 = vpop.f32.mrf.mxu0 }
 0x3d8   : > { %v14743_v32 = vpop.f32.mrf.mxu1  ;;  %v19195_v11 = vadd.f32 %v22037_v47, %v6141_v9  ;;  %v19198_v2 = vadd.f32 %v22038_v31, %v6143_v18  ;;  %v22039_v9 = vld [vmem:[#allocation155_spill] sm:$0xff]  ;;  %v22048_v47 = vld [vmem:[#allocation84_spill] sm:$0xff] }
 0x3d9   : > { %15374 = vpow2.f32 %v7785_v56  ;;  %v7783_v17 = vmul.f32 1.442695, %v7751_v13  ;;  %v7754_v25 = vmin.f32 %v19176_v22, 20.0  ;;  %v19185_v62 = vadd.f32 %v19127_v60, %v7682_v42  ;;  %v22040_v56 = vld [vmem:[#allocation77_spill] sm:$0xff]  ;;  %v22041_v42 = vld [vmem:[#allocation156_spill] sm:$0xff] }
 0x3da   : > { %v7685_v48 = vadd.f32 %v14743_v32, %v7296_v35  ;;  %v7541_v37 = vpop.f32.mrf.mxu1  ;;  %v6147_v4 = vadd.f32 %v22039_v9, %v19122_v1  ;;  %v6910_v13 = vadd.f32 %v22040_v56, %v6520_v5  ;;  %v19213_v23 = vadd.f32 %v22041_v42, %v6145_v27  ;;  %v22042_v35 = vld [vmem:[#allocation45_spill] sm:$0xff] }
 0x3db   : > { %15376 = vpow2.f32 %v7783_v17  ;;  %v7789_v59 = vmul.f32 1.442695, %v7754_v25  ;;  %v7753_v39 = vmin.f32 %v19185_v62, 20.0  ;;  %v7684_v36 = vadd.f32 %v7541_v37, %v7295_v44  ;;  %v22043_v44 = vld [vmem:[#allocation158_spill] sm:$0xff]  ;;  %v22044_v5 = vld [vmem:[#allocation93_spill] sm:$0xff] }
 0x3dc   : > { %v19201_v28 = vadd.f32 %v19127_v60, %v7685_v48  ;;  %v14746_v3 = vpop.f32.mrf.mxu1  ;;  %v7300_v32 = vadd.f32 %v19004_v6, %v22042_v35  ;;  %v6149_v1 = vadd.f32 %v22043_v44, %v19130_v26  ;;  %v6151_v17 = vadd.f32 %v22044_v5, %v19138_v19  ;;  %v22045_v6 = vld [vmem:[#allocation39_spill] sm:$0xff]  ;;  %v22047_v19 = vld [vmem:[#allocation101_spill] sm:$0xff]  ;;  %v22055_v5 = vld [vmem:[#allocation142_spill] sm:$0xff] }
 0x3dd   : > { %15378 = vpow2.f32 %v7789_v59  ;;  %v7787_v50 = vmul.f32 1.442695, %v7753_v39  ;;  %v19205_v40 = vadd.f32 %v19127_v60, %v7684_v36  ;;  %v7687_v24 = vadd.f32 %v14746_v3, %v7298_v29  ;;  %v22046_v59 = vld [vmem:[#allocation129_spill] sm:$0xff] }
 0x3de   : > { %v7756_v18 = vmin.f32 %v19201_v28, 20.0  ;;  %v7551_v21 = vpop.f32.mrf.mxu1  ;;  %v6153_v29 = vadd.f32 %v22045_v6, %v19141_v8  ;;  %v19235_v26 = vadd.f32 %v22046_v59, %v6147_v4  ;;  %v7299_v39 = vadd.f32 %v22047_v19, %v6910_v13  ;;  %v22050_v9 = vld [vmem:[#allocation41_spill] sm:$0xff]  ;;  %v22051_v8 = vld [vmem:[#allocation98_spill] sm:$0xff]  ;;  %v22052_v13 = vld [vmem:[#allocation75_spill] sm:$0xff] }
 0x3df   : > { %v7755_v12 = vmin.f32 %v19205_v40, 20.0  ;;  %v19218_v57 = vadd.f32 %v19127_v60, %v7687_v24  ;;  %v7686_v0 = vadd.f32 %v7551_v21, %v7297_v30  ;;  %15380 = vpow2.f32 %v7787_v50  ;;  %v22049_v50 = vld [vmem:[#allocation76_spill] sm:$0xff]  ;;  %v22059_v59 = vld [vmem:[#allocation50_spill] sm:$0xff] }
 0x3e0   : > { %v7793_v25 = vmul.f32 1.442695, %v7756_v18  ;;  %v14749_v54 = vpop.f32.mrf.mxu1  ;;  %v6912_v31 = vadd.f32 %v22048_v47, %v19153_v16  ;;  %v7302_v24 = vadd.f32 %v19017_v53, %v22049_v50  ;;  %v6914_v56 = vadd.f32 %v22050_v9, %v19156_v61  ;;  %v22054_v61 = vld [vmem:[#allocation96_spill] sm:$0xff]  ;;  %v22061_v50 = vld [vmem:[#allocation47_spill] sm:$0xff] }
 0x3e1   : > { %v7791_v27 = vmul.f32 1.442695, %v7755_v12  ;;  %v7758_v10 = vmin.f32 %v19218_v57, 20.0  ;;  %v19228_v48 = vadd.f32 %v19127_v60, %v7686_v0  ;;  %v7689_v37 = vadd.f32 %v14749_v54, %v7300_v32  ;;  %v22053_v12 = vld [vmem:[#allocation137_spill] sm:$0xff]  ;;  %v14720_v32 = vpop.f32.mrf.mxu0  ;;  %v22058_v6 = vld [vmem:[#allocation92_spill] sm:$0xff] }
 0x3e2   : > { %15382 = vpow2.f32 %v7793_v25  ;;  %v7561_v36 = vpop.f32.mrf.mxu1  ;;  %v6916_v4 = vadd.f32 %v22051_v8, %v19168_v46  ;;  %v19248_v21 = vadd.f32 %v22052_v13, %v6149_v1  ;;  %v19251_v16 = vadd.f32 %v22053_v12, %v6151_v17  ;;  %v22056_v1 = vld [vmem:[#allocation159_spill] sm:$0xff]  ;;  %v22060_v47 = vld [vmem:[#allocation88_spill] sm:$0xff] }
 0x3e3   : > { %v7797_v3 = vmul.f32 1.442695, %v7758_v10  ;;  %v7757_v30 = vmin.f32 %v19228_v48, 20.0  ;;  %15384 = vpow2.f32 %v7791_v27  ;;  %v7688_v42 = vadd.f32 %v7561_v36, %v7299_v39  ;;  %v22057_v10 = vld [vmem:[#allocation86_spill] sm:$0xff] }
 0x3e4   : > { %v14752_v18 = vpop.f32.mrf.mxu1  ;;  %v19254_v0 = vadd.f32 %v19127_v60, %v7689_v37  ;;  %v6919_v44 = vadd.f32 %v22054_v61, %v19172_v7  ;;  %v19259_v46 = vadd.f32 %v22055_v5, %v6153_v29  ;;  %v6918_v27 = vadd.f32 %v22056_v1, %v6528_v52  ;;  %v22064_v5 = vld [vmem:[#allocation160_spill] sm:$0xff] }
 0x3e5   : > { %v7691_v35 = vadd.f32 %v14752_v18, %v7302_v24  ;;  %15386 = vpow2.f32 %v7797_v3  ;;  %v7795_v25 = vmul.f32 1.442695, %v7757_v30  ;;  %v19263_v17 = vadd.f32 %v19127_v60, %v7688_v42  ;;  %v22062_v30 = vld [vmem:[#allocation48_spill] sm:$0xff]  ;;  %v7242_v18 = vpop.f32.mrf.mxu0 }
 0x3e6   : > { %v15375_v53 = vpop.eup %15374  ;;  %v7571_v54 = vpop.f32.mrf.mxu1  ;;  %v7301_v37 = vadd.f32 %v22057_v10, %v6912_v31  ;;  %v7304_v19 = vadd.f32 %v22059_v59, %v22058_v6  ;;  %v7303_v7 = vadd.f32 %v22060_v47, %v6914_v56  ;;  %v19271_v29 = vadd.f32 %v19053_v38, %v22061_v50 }
 0x3e7   : > { %v19274_v3 = vadd.f32 %v19086_v20, %v6916_v4  ;;  %v7848_v52 = vadd.f32 2.0, %v15375_v53  ;;  %v6920_v24 = vadd.f32 %v22062_v30, %v19195_v11  ;;  %v7760_v31 = vmin.f32 %v19254_v0, 20.0  ;;  %v22063_v4 = vld [vmem:[#allocation100_spill] sm:$0xff]  ;;  %v22066_v30 = vld [vmem:[#allocation78_spill] sm:$0xff] }
 0x3e8   : > { %v15377_v39 = vpop.eup %15376  ;;  %v14755_v36 = vpop.f32.mrf.mxu1  ;;  %v19280_v9 = vadd.f32 %v19127_v60, %v7691_v35  ;;  %v7690_v8 = vadd.f32 %v7571_v54, %v7301_v37  ;;  %15388 = vpow2.f32 %v7795_v25  ;;  %v7308_v38 = vadd.f32 %v19109_v45, %v6919_v44  ;;  %v22065_v54 = vld [vmem:[#allocation106_spill] sm:$0xff] }
 0x3e9   : > { %v19283_v13 = vmul.f32 %v15375_v53, %v7848_v52  ;;  %v7847_v20 = vadd.f32 2.0, %v15377_v39  ;;  %v6922_v12 = vadd.f32 %v22063_v4, %v19198_v2  ;;  %v7759_v11 = vmin.f32 %v19263_v17, 20.0  ;;  %v8265_v2 = vld [vmem:[%s21348_s5 + $0x8] sm:$0xff] }
 0x3ea   : > { %v15379_v42 = vpop.eup %15378  ;;  %v7581_v56 = vpop.f32.mrf.mxu1  ;;  %v7307_v61 = vadd.f32 %v19135_v55, %v6918_v27  ;;  %v7310_v35 = vadd.f32 %v19164_v33, %v22064_v5  ;;  %v6924_v1 = vadd.f32 %v22065_v54, %v19213_v23  ;;  %v7801_v37 = vmul.f32 1.442695, %v7760_v31  ;;  %14783 = vmatprep.subr.mxu0 %v8265_v2 }
 0x3eb   : > { %v7912_v10 = vadd.f32 2.0, %v19283_v13  ;;  %v19294_v45 = vmul.f32 %v15377_v39, %v7847_v20  ;;  %v7850_v53 = vadd.f32 2.0, %v15379_v42  ;;  %v7762_v55 = vmin.f32 %v19280_v9, 20.0  ;;  %v19304_v23 = vpop.f32.mrf.mxu0  ;;  %14784 = vmatpush3.msra.mxu0 %v8265_v2 }
 0x3ec   : > { %v14758_v25 = vpop.f32.mrf.mxu1  ;;  %v15381_v44 = vpop.eup %15380  ;;  %v19301_v27 = vadd.f32 %v19127_v60, %v7690_v8  ;;  %v7309_v33 = vadd.f32 %v19187_v15, %v6920_v24  ;;  %v7693_v6 = vadd.f32 %v14755_v36, %v7304_v19  ;;  %v7799_v52 = vmul.f32 1.442695, %v7759_v11  ;;  %v22067_v15 = vld [vmem:[#allocation42_spill] sm:$0xff] }
 0x3ed   : > { %15390 = vrcp.f32 %v7912_v10  ;;  %v7911_v39 = vadd.f32 2.0, %v19294_v45  ;;  %v19307_v47 = vmul.f32 %v15379_v42, %v7850_v53  ;;  %v7312_v31 = vadd.f32 %v19207_v51, %v22066_v30  ;;  %v19321_v51 = vpop.f32.mrf.mxu0 }
 0x3ee   : > { %v7591_v59 = vpop.f32.mrf.mxu1  ;;  %v19312_v8 = vadd.f32 %v19230_v43, %v6922_v12  ;;  %v19315_v24 = vadd.f32 %v14720_v32, %v22067_v15  ;;  %v19317_v19 = vadd.f32 %v7242_v18, %v6924_v1  ;;  %v7849_v42 = vadd.f32 2.0, %v15381_v44 }
 0x3ef   : > { %v15383_v50 = vpop.eup %15382  ;;  %15392 = vrcp.f32 %v7911_v39  ;;  %v7914_v36 = vadd.f32 2.0, %v19307_v47  ;;  %v7805_v5 = vmul.f32 1.442695, %v7762_v55  ;;  %v7761_v11 = vmin.f32 %v19301_v27, 20.0 }
 0x3f0   : > { %v14761_v20 = vpop.f32.mrf.mxu1  ;;  %v15385_v4 = vpop.eup %15384  ;;  %15394 = vpow2.f32 %v7801_v37  ;;  %v19324_v43 = vadd.f32 %v19127_v60, %v7693_v6  ;;  %v19326_v12 = vmul.f32 %v15381_v44, %v7849_v42  ;;  %v7852_v18 = vadd.f32 2.0, %v15383_v50 }
 0x3f1   : > { %v7697_v54 = vadd.f32 %v14761_v20, %v7308_v38  ;;  %15396 = vrcp.f32 %v7914_v36  ;;  %v7692_v10 = vadd.f32 %v7581_v56, %v7303_v7  ;;  %v7695_v37 = vadd.f32 %v14758_v25, %v19271_v29  ;;  %v19339_v7 = vpop.f32.mrf.mxu0 }
 0x3f2   : > { %v7601_v32 = vpop.f32.mrf.mxu1  ;;  %v15387_v1 = vpop.eup %15386  ;;  %15398 = vpow2.f32 %v7799_v52  ;;  %v7913_v55 = vadd.f32 2.0, %v19326_v12  ;;  %v19333_v39 = vmul.f32 %v15383_v50, %v7852_v18  ;;  %v7851_v6 = vadd.f32 2.0, %v15385_v4  ;;  %v22070_v18 = vld [vmem:[#allocation104_spill] sm:$0xff] }
 0x3f3   : > { %v19329_v53 = vadd.f32 %v19127_v60, %v7697_v54  ;;  %v7696_v2 = vadd.f32 %v7601_v32, %v7307_v61  ;;  %15400 = vpow2.f32 %v7805_v5  ;;  %v7803_v56 = vmul.f32 1.442695, %v7761_v11 }
 0x3f4   : > { %v14764_v38 = vpop.f32.mrf.mxu1  ;;  %v7916_v61 = vadd.f32 2.0, %v19333_v39  ;;  %v19342_v29 = vmul.f32 %v15385_v4, %v7851_v6  ;;  %v7854_v25 = vadd.f32 2.0, %v15387_v1  ;;  %v19345_v50 = vadd.f32 %v19127_v60, %v7692_v10  ;;  %v8232_v4 = vld [vmem:[%s21348_s5] sm:$0xff] }
 0x3f5   : > { %v7768_v44 = vmin.f32 %v19329_v53, 20.0  ;;  %v19337_v30 = vadd.f32 %v19127_v60, %v7696_v2  ;;  %v7699_v52 = vadd.f32 %v14764_v38, %v7310_v35  ;;  %v15389_v20 = vpop.eup %15388  ;;  %v7694_v36 = vadd.f32 %v7591_v59, %v19274_v3  ;;  %14833 = vmatprep.subr.mxu1 %v8232_v4  ;;  %v19362_v2 = vpop.f32.mrf.mxu0 }
 0x3f6   : > { %v7611_v15 = vpop.f32.mrf.mxu1  ;;  %22068 = vst [vmem:[#allocation52_spill] sm:$0xff] %v19345_v50  ;;  %v7764_v35 = vmin.f32 %v19324_v43, 20.0  ;;  %v19353_v11 = vadd.f32 %v19127_v60, %v7695_v37  ;;  %15402 = vrcp.f32 %v7913_v55  ;;  %v6926_v10 = vadd.f32 %v22070_v18, %v19235_v26  ;;  %14834 = vmatpush3.msra.mxu1 %v8232_v4 }
 0x3f7   : > { %v7817_v42 = vmul.f32 1.442695, %v7768_v44  ;;  %v19349_v5 = vadd.f32 %v19127_v60, %v7699_v52  ;;  %v7698_v54 = vadd.f32 %v7611_v15, %v7309_v33  ;;  %v19360_v59 = vmul.f32 %v15387_v1, %v7854_v25  ;;  %v19376_v52 = vpop.f32.mrf.mxu0 }
 0x3f8   : > { %22069 = vst [vmem:[#allocation91_spill] sm:$0xff] %v19353_v11  ;;  %v14767_v32 = vpop.f32.mrf.mxu1  ;;  %v7915_v38 = vadd.f32 2.0, %v19342_v29  ;;  %v7853_v55 = vadd.f32 2.0, %v15389_v20  ;;  %v7763_v44 = vmin.f32 %v19345_v50, 20.0  ;;  %v19370_v26 = vadd.f32 %v19127_v60, %v7694_v36 }
 0x3f9   : > { %15404 = vpow2.f32 %v7817_v42  ;;  %v7701_v3 = vadd.f32 %v14767_v32, %v7312_v31  ;;  %v19365_v37 = vadd.f32 %v19127_v60, %v7698_v54  ;;  %v7809_v15 = vmul.f32 1.442695, %v7764_v35  ;;  %v22071_v35 = vld [vmem:[#allocation79_spill] sm:$0xff] }
 0x3fa   : > { %v7621_v33 = vpop.f32.mrf.mxu1  ;;  %15406 = vrcp.f32 %v7916_v61  ;;  %v15391_v6 = vpop.eup %15390  ;;  %v7766_v61 = vmin.f32 %v19353_v11, 20.0  ;;  %v7918_v4 = vadd.f32 2.0, %v19360_v59  ;;  %v19385_v18 = vmul.f32 %v15389_v20, %v7853_v55 }
 0x3fb   : > { %v19373_v31 = vadd.f32 %v19127_v60, %v7701_v3  ;;  %v7700_v1 = vadd.f32 %v7621_v33, %v19312_v8  ;;  %15408 = vpow2.f32 %v7803_v56  ;;  %v7946_v42 = vmul.f32 %v15391_v6, %v19283_v13 }
 0x3fc   : > { %v14770_v25 = vpop.f32.mrf.mxu1  ;;  %v15393_v54 = vpop.eup %15392  ;;  %v7316_v33 = vadd.f32 %v19304_v23, %v22071_v35  ;;  %15410 = vrcp.f32 %v7915_v38  ;;  %v7807_v6 = vmul.f32 1.442695, %v7763_v44  ;;  %v7315_v23 = vadd.f32 %v19321_v51, %v6926_v10  ;;  %v22073_v44 = vld [vmem:[#allocation43_spill] sm:$0xff] }
 0x3fd   : > { %v19381_v32 = vadd.f32 %v19127_v60, %v7700_v1  ;;  %v7703_v36 = vadd.f32 %v14770_v25, %v19315_v24  ;;  %v15395_v8 = vpop.eup %15394  ;;  %v8008_v56 = vmul.f32 %v7946_v42, %v19146_v58  ;;  %v7944_v11 = vmul.f32 %v15393_v54, %v19294_v45  ;;  %v22072_v25 = vld [vmem:[#allocation109_spill] sm:$0xff]  ;;  %v7272_v58 = vpop.f32.mrf.mxu0 }
 0x3fe   : > { %v7631_v3 = vpop.f32.mrf.mxu1  ;;  %v15397_v13 = vpop.eup %15396  ;;  %v7765_v1 = vmin.f32 %v19370_v26, 20.0  ;;  %v6928_v50 = vadd.f32 %v22072_v25, %v19248_v21  ;;  %15412 = vpow2.f32 %v7809_v15  ;;  %v7813_v42 = vmul.f32 1.442695, %v7766_v61 }
 0x3ff   : > { %v19393_v24 = vadd.f32 %v19127_v60, %v7703_v36  ;;  %v7702_v20 = vadd.f32 %v7631_v3, %v19317_v19  ;;  %v15399_v55 = vpop.eup %15398  ;;  %8073 = vrot.lane.b32.xlu1 %v8008_v56, %s15639_s11  ;;  %v7318_v54 = vadd.f32 %v19339_v7, %v22073_v44  ;;  %15414 = vrcp.f32 %v7918_v4 }
 0x400   : > { %v14773_v45 = vpop.f32.mrf.mxu1  ;;  %v7917_v19 = vadd.f32 2.0, %v19385_v18  ;;  %v19406_v36 = vpop.eup %15400  ;;  %v8007_v61 = vmul.f32 %v7944_v11, %v19160_v34  ;;  %v7950_v3 = vmul.f32 %v15397_v13, %v19307_v47  ;;  %v7856_v56 = vadd.f32 2.0, %v15395_v8 }
 0x401   : > { %v19401_v38 = vadd.f32 %v19127_v60, %v7702_v20  ;;  %v7705_v21 = vadd.f32 %v14773_v45, %v7316_v33  ;;  %v6930_v51 = vadd.f32 %v19088_v49, %v19251_v16  ;;  %15416 = vpow2.f32 %v7807_v6  ;;  %v14732_v20 = vpop.f32.mrf.mxu0 }
 0x402   : > { %v7641_v15 = vpop.f32.mrf.mxu1  ;;  %v7811_v10 = vmul.f32 1.442695, %v7765_v1  ;;  %15418 = vpow2.f32 %v7813_v42  ;;  %v7767_v7 = vmin.f32 %v19337_v30, 20.0  ;;  %v19417_v34 = vmul.f32 %v15395_v8, %v7856_v56 }
 0x403   : > { %v7704_v35 = vadd.f32 %v7641_v15, %v7315_v23  ;;  %v19414_v4 = vadd.f32 %v19127_v60, %v7705_v21  ;;  %8071 = vrot.lane.b32.xlu1 %v8007_v61, %s15639_s11  ;;  %v15403_v47 = vpop.eup %15402  ;;  %v7317_v16 = vadd.f32 %v19362_v2, %v6928_v50  ;;  %15420 = vrcp.f32 %v7917_v19  ;;  %v7282_v19 = vpop.f32.mrf.mxu0 }
 0x404   : > { %v14776_v33 = vpop.f32.mrf.mxu1  ;;  %v8010_v1 = vmul.f32 %v7950_v3, %v19176_v22  ;;  %v7948_v25 = vmul.f32 %v15403_v47, %v19326_v12  ;;  %v7920_v42 = vadd.f32 2.0, %v19417_v34  ;;  %v7855_v45 = vadd.f32 2.0, %v15399_v55 }
 0x405   : > { %v19420_v11 = vadd.f32 %v19127_v60, %v7704_v35  ;;  %v7707_v49 = vadd.f32 %v14776_v33, %v7318_v54  ;;  %v7320_v8 = vadd.f32 %v19376_v52, %v19077_v14  ;;  %v6932_v44 = vadd.f32 %v19112_v63, %v19259_v46 }
 0x406   : > { %v15405_v13 = vpop.eup %15404  ;;  %v7651_v6 = vpop.f32.mrf.mxu1  ;;  %v7319_v2 = vadd.f32 %v7272_v58, %v6930_v51  ;;  %15422 = vpow2.f32 %v7811_v10  ;;  %v7815_v22 = vmul.f32 1.442695, %v7767_v7  ;;  %v7770_v15 = vmin.f32 %v19349_v5, 20.0 }
 0x407   : > { %v15407_v23 = vpop.eup %15406  ;;  %v19431_v54 = vadd.f32 %v19127_v60, %v7707_v49  ;;  %v7706_v50 = vadd.f32 %v7651_v6, %v7317_v16  ;;  %8077 = vrot.lane.b32.xlu1 %v8010_v1, %s15639_s11  ;;  %v8009_v52 = vmul.f32 %v7948_v25, %v19185_v62  ;;  %15424 = vrcp.f32 %v7920_v42 }
 0x408   : > { %v14779_v12 = vpop.f32.mrf.mxu1  ;;  %v15409_v21 = vpop.eup %15408  ;;  %v7954_v63 = vmul.f32 %v15407_v23, %v19333_v39  ;;  %v7864_v58 = vadd.f32 2.0, %v15405_v13  ;;  %v19440_v3 = vmul.f32 %v15399_v55, %v7855_v45  ;;  %v7322_v51 = vadd.f32 %v14732_v20, %v19104_v41 }
 0x409   : > { %v19436_v61 = vadd.f32 %v19127_v60, %v7706_v50  ;;  %v7709_v14 = vadd.f32 %v14779_v12, %v7320_v8  ;;  %v15411_v56 = vpop.eup %15410  ;;  %v7321_v10 = vadd.f32 %v7282_v19, %v6932_v44  ;;  %15426 = vpow2.f32 %v7815_v22 }
 0x40a   : > { %v7661_v46 = vpop.f32.mrf.mxu1  ;;  %v19447_v39 = vmul.f32 %v15405_v13, %v7864_v58  ;;  %v7858_v62 = vadd.f32 2.0, %v19406_v36  ;;  %v7821_v49 = vmul.f32 1.442695, %v7770_v15  ;;  %v7769_v55 = vmin.f32 %v19365_v37, 20.0 }
 0x40b   : > { %v19444_v35 = vadd.f32 %v19127_v60, %v7709_v14  ;;  %v7708_v7 = vadd.f32 %v7661_v46, %v7319_v2  ;;  %8075 = vrot.lane.b32.xlu1 %v8009_v52, %s15639_s11  ;;  %v15413_v47 = vpop.eup %15412  ;;  %v8012_v41 = vmul.f32 %v7954_v63, %v19201_v28  ;;  %v7952_v25 = vmul.f32 %v15411_v56, %v19342_v29 }
 0x40c   : > { %v14782_v33 = vpop.f32.mrf.mxu1  ;;  %v15415_v20 = vpop.eup %15414  ;;  %v7928_v42 = vadd.f32 2.0, %v19447_v39  ;;  %v7919_v13 = vadd.f32 2.0, %v19440_v3  ;;  %v7772_v45 = vmin.f32 %v19373_v31, 20.0  ;;  %v19464_v28 = vmul.f32 %v19406_v36, %v7858_v62 }
 0x40d   : > { %v7711_v16 = vadd.f32 %v14782_v33, %v7322_v51  ;;  %v19453_v6 = vadd.f32 %v19127_v60, %v7708_v7  ;;  %v7819_v29 = vmul.f32 1.442695, %v7769_v55  ;;  %v7857_v19 = vadd.f32 2.0, %v15409_v21 }
 0x40e   : > { %v7671_v1 = vpop.f32.mrf.mxu1  ;;  %v15417_v44 = vpop.eup %15416  ;;  %15428 = vrcp.f32 %v7928_v42  ;;  %v8011_v12 = vmul.f32 %v7952_v25, %v19205_v40  ;;  %v7958_v15 = vmul.f32 %v15415_v20, %v19360_v59  ;;  %v7922_v14 = vadd.f32 2.0, %v19464_v28 }
 0x40f   : > { %v19460_v23 = vadd.f32 %v19127_v60, %v7711_v16  ;;  %v7710_v8 = vadd.f32 %v7671_v1, %v7321_v10  ;;  %8081 = vrot.lane.b32.xlu1 %v8012_v41, %s15639_s11  ;;  %v15419_v50 = vpop.eup %15418  ;;  %15430 = vpow2.f32 %v7821_v49  ;;  %v7825_v63 = vmul.f32 1.442695, %v7772_v45 }
 0x410   : > { %v15421_v22 = vpop.eup %15420  ;;  %15432 = vrcp.f32 %v7919_v13  ;;  %v19472_v46 = vmul.f32 %v15409_v21, %v7857_v19  ;;  %v7860_v36 = vadd.f32 2.0, %v15413_v47  ;;  %v7771_v52 = vmin.f32 %v19381_v32, 20.0 }
 0x411   : > { %v19467_v2 = vadd.f32 %v19127_v60, %v7710_v8  ;;  %v7859_v58 = vadd.f32 2.0, %v15417_v44  ;;  %15434 = vpow2.f32 %v7819_v29  ;;  %v7956_v56 = vmul.f32 %v15421_v22, %v19385_v18 }
 0x412   : > { %v7921_v40 = vadd.f32 2.0, %v19472_v46  ;;  %v19478_v51 = vmul.f32 %v15413_v47, %v7860_v36  ;;  %v8014_v59 = vmul.f32 %v7958_v15, %v19218_v57  ;;  %15436 = vrcp.f32 %v7922_v14 }
 0x413   : > { %8079 = vrot.lane.b32.xlu1 %v8011_v12, %s15639_s11  ;;  %v15423_v60 = vpop.eup %15422  ;;  %v19481_v10 = vmul.f32 %v15417_v44, %v7859_v58  ;;  %v7862_v21 = vadd.f32 2.0, %v15419_v50  ;;  %15438 = vpow2.f32 %v7825_v63  ;;  %v7823_v49 = vmul.f32 1.442695, %v7771_v52 }
 0x414   : > { %v15425_v7 = vpop.eup %15424  ;;  %v7924_v33 = vadd.f32 2.0, %v19478_v51  ;;  %15440 = vrcp.f32 %v7921_v40  ;;  %v7774_v18 = vmin.f32 %v19393_v24, 20.0  ;;  %v8013_v47 = vmul.f32 %v7956_v56, %v19228_v48 }
 0x415   : > { %v7861_v55 = vadd.f32 2.0, %v15423_v60  ;;  %v7962_v57 = vmul.f32 %v15425_v7, %v19417_v34  ;;  %v7923_v16 = vadd.f32 2.0, %v19481_v10  ;;  %v19489_v41 = vmul.f32 %v15419_v50, %v7862_v21 }
 0x416   : > { %v15427_v62 = vpop.eup %15426  ;;  %15442 = vrcp.f32 %v7924_v33  ;;  %v7773_v20 = vmin.f32 %v19401_v38, 20.0  ;;  %v7829_v25 = vmul.f32 1.442695, %v7774_v18  ;;  %v7776_v22 = vmin.f32 %v19414_v4, 20.0 }
 0x417   : > { %8085 = vrot.lane.b32.xlu1 %v8014_v59, %s15639_s11  ;;  %15444 = vpow2.f32 %v7823_v49  ;;  %v19493_v42 = vmul.f32 %v15423_v60, %v7861_v55  ;;  %v7863_v13 = vadd.f32 2.0, %v15427_v62  ;;  %v8016_v48 = vmul.f32 %v7962_v57, %v19254_v0  ;;  %v19527_v55 = vld [vmem:[%s21348_s5 + $0x10] sm:$0xff] }
 0x418   : > { %15446 = vrcp.f32 %v7923_v16  ;;  %v7926_v8 = vadd.f32 2.0, %v19489_v41  ;;  %v7827_v50 = vmul.f32 1.442695, %v7773_v20  ;;  %v7833_v52 = vmul.f32 1.442695, %v7776_v22  ;;  %14883 = vmatprep.subr.mxu0 %v19527_v55 }
 0x419   : > { %15448 = vpow2.f32 %v7829_v25  ;;  %v19502_v12 = vmul.f32 %v15427_v62, %v7863_v13  ;;  %v7775_v58 = vmin.f32 %v19420_v11, 20.0  ;;  %v7778_v7 = vmin.f32 %v19431_v54, 20.0 }
 0x41a   : > { %15450 = vrcp.f32 %v7926_v8  ;;  %v22074_v16 = vmov 0.0  }
 0x41b   : > { %8083 = vrot.lane.b32.xlu1 %v8013_v47, %s15639_s11  ;;  %v15429_v1 = vpop.eup %15428  ;;  %15452 = vpow2.f32 %v7827_v50  ;;  %v7927_v60 = vadd.f32 2.0, %v19502_v12  ;;  %v7837_v57 = vmul.f32 1.442695, %v7778_v7  ;;  %401 = vst.msk [vmem:[#allocation3 + $0x8] sm:$0xff] %vm399_vm3, %v22074_v16  ;;  %400 = vst.msk [vmem:[#allocation3] sm:$0xff] %vm399_vm3, %v22074_v16  ;;  %v7781_v7 = vmin.f32 %v19467_v2, 20.0 }
 0x41c   : > { %v15431_v45 = vpop.eup %15430  ;;  %v7978_v34 = vmul.f32 %v15429_v1, %v19447_v39  ;;  %v7925_v39 = vadd.f32 2.0, %v19493_v42  ;;  %402 = vst.msk [vmem:[#allocation3 + $0x10] sm:$0xff] %vm399_vm3, %v22074_v16  ;;  %406 = vst.msk [vmem:[#allocation3 + $0x220] sm:$0xff] %vm399_vm3, %v22074_v16 }
 0x41d   : > { %v15433_v44 = vpop.eup %15432  ;;  %v7866_v14 = vadd.f32 2.0, %v15431_v45  ;;  %407 = vst.msk [vmem:[#allocation3 + $0x228] sm:$0xff] %vm399_vm3, %v22074_v16  ;;  %408 = vst.msk [vmem:[#allocation3 + $0x230] sm:$0xff] %vm399_vm3, %v22074_v16 }
 0x41e   : > { %v8024_v29 = vmul.f32 %v7978_v34, %v19329_v53  ;;  %v7960_v19 = vmul.f32 %v15433_v44, %v19440_v3  ;;  %v15435_v15 = vpop.eup %15434  ;;  %15454 = vrcp.f32 %v7925_v39  ;;  %411 = vst.msk [vmem:[#allocation3 + $0x27] sm:$0x1] %vm403_vm4, %v22074_v16  ;;  %404 = vst.msk [vmem:[#allocation3 + $0x18] sm:$0x1] %vm403_vm4, %v22074_v16  ;;  %v7779_v44 = vmin.f32 %v19453_v6, 20.0 }
 0x41f   : > { %8089 = vrot.lane.b32.xlu1 %v8016_v48, %s15639_s11  ;;  %v15437_v63 = vpop.eup %15436  ;;  %v7865_v56 = vadd.f32 2.0, %v15435_v15  ;;  %v19513_v59 = vmul.f32 %v15431_v45, %v7866_v14  ;;  %15456 = vpow2.f32 %v7833_v52  ;;  %409 = vst.msk [vmem:[#allocation3 + $0x238] sm:$0x1] %vm403_vm4, %v22074_v16  ;;  %412 = vst.msk [vmem:[#allocation3 + $0x47] sm:$0x1] %vm403_vm4, %v22074_v16 }
 0x420   : > { %8105 = vrot.lane.b32.xlu0 %v8024_v29, %s15639_s11  ;;  %v8015_v0 = vmul.f32 %v7960_v19, %v19263_v17  ;;  %v15439_v36 = vpop.eup %15438  ;;  %v7966_v53 = vmul.f32 %v15437_v63, %v19464_v28  ;;  %v7831_v28 = vmul.f32 1.442695, %v7775_v58  ;;  %15458 = vrcp.f32 %v7927_v60  ;;  %413 = vst.msk [vmem:[#allocation3 + $0x67] sm:$0x1] %vm403_vm4, %v22074_v16  ;;  %414 = vst.msk [vmem:[#allocation3 + $0x87] sm:$0x1] %vm403_vm4, %v22074_v16 }
 0x421   : > { %v15441_v3 = vpop.eup %15440  ;;  %v19517_v33 = vmul.f32 %v15435_v15, %v7865_v56  ;;  %v7868_v62 = vadd.f32 2.0, %v15439_v36  ;;  %415 = vst.msk [vmem:[#allocation3 + $0xa7] sm:$0x1] %vm403_vm4, %v22074_v16  ;;  %416 = vst.msk [vmem:[#allocation3 + $0xc7] sm:$0x1] %vm403_vm4, %v22074_v16  ;;  %v22075_v19 = vld [vmem:[#allocation52_spill] sm:$0xff] }
 0x422   : > { %v8018_v17 = vmul.f32 %v7966_v53, %v19280_v9  ;;  %v7964_v40 = vmul.f32 %v15441_v3, %v19472_v46  ;;  %v7930_v46 = vadd.f32 2.0, %v19513_v59  ;;  %15460 = vpow2.f32 %v7831_v28  ;;  %417 = vst.msk [vmem:[#allocation3 + $0xe7] sm:$0x1] %vm403_vm4, %v22074_v16  ;;  %418 = vst.msk [vmem:[#allocation3 + $0x107] sm:$0x1] %vm403_vm4, %v22074_v16  ;;  %v8200_v39 = vld [vmem:[#allocation3 + $0x7] sm:$0xff] }
 0x423   : > { %8087 = vrot.lane.b32.xlu1 %v8015_v0, %s15639_s11  ;;  %v15443_v21 = vpop.eup %15442  ;;  %419 = vst.msk [vmem:[#allocation3 + $0x127] sm:$0x1] %vm403_vm4, %v22074_v16  ;;  %420 = vst.msk [vmem:[#allocation3 + $0x147] sm:$0x1] %vm403_vm4, %v22074_v16  ;;  %v7929_v45 = vadd.f32 2.0, %v19517_v33  ;;  %v8233_v0 = vld [vmem:[#allocation3 + $0x8] sm:$0xff]  ;;  %14835 = vmatprep.mubr.msk.f32.mxu1 %vm399_vm3, %v8200_v39 }
 0x424   : > { %v19519_v49 = vpop.eup %15444  ;;  %v8017_v18 = vmul.f32 %v7964_v40, %v19301_v27  ;;  %v7970_v9 = vmul.f32 %v15443_v21, %v19478_v51  ;;  %v7777_v27 = vmin.f32 %v19436_v61, 20.0  ;;  %v19544_v51 = vmul.f32 %v15439_v36, %v7868_v62  ;;  %421 = vst.msk [vmem:[#allocation3 + $0x167] sm:$0x1] %vm403_vm4, %v22074_v16  ;;  %422 = vst.msk [vmem:[#allocation3 + $0x187] sm:$0x1] %vm403_vm4, %v22074_v16  ;;  %v8234_v14 = vld [vmem:[#allocation3 + $0x10] sm:$0xff] }
 0x425   : > { %v15447_v47 = vpop.eup %15446  ;;  %v7867_v20 = vadd.f32 2.0, %v19519_v49  ;;  %423 = vst.msk [vmem:[#allocation3 + $0x1a7] sm:$0x1] %vm403_vm4, %v22074_v16  ;;  %424 = vst.msk [vmem:[#allocation3 + $0x1c7] sm:$0x1] %vm403_vm4, %v22074_v16  ;;  %15462 = vrcp.f32 %v7930_v46  ;;  %v7780_v63 = vmin.f32 %v19444_v35, 20.0  ;;  %14785 = vmatprep.mubr.msk.f32.mxu0 %vm399_vm3, %v8233_v0 }
 0x426   : > { %425 = vst.msk [vmem:[#allocation3 + $0x1e7] sm:$0x1] %vm403_vm4, %v22074_v16  ;;  %426 = vst.msk [vmem:[#allocation3 + $0x207] sm:$0x1] %vm403_vm4, %v22074_v16  ;;  %v15449_v1 = vpop.eup %15448  ;;  %v8020_v25 = vmul.f32 %v7970_v9, %v19324_v43  ;;  %v7968_v13 = vmul.f32 %v15447_v47, %v19481_v10  ;;  %15464 = vpow2.f32 %v7837_v57  ;;  %v7835_v8 = vmul.f32 1.442695, %v7777_v27  ;;  %14786 = vmatmul.mubr.msk.f32.vlgmr.msra.gmra.mxu0 %vm399_vm3, %v8234_v14 }
 0x427   : > { %8093 = vrot.lane.b32.xlu1 %v8018_v17, %s15639_s11  ;;  %427 = vst.msk [vmem:[#allocation3 + $0x38] sm:$0x1] %vm403_vm4, %v22074_v16  ;;  %428 = vst.msk [vmem:[#allocation3 + $0x58] sm:$0x1] %vm403_vm4, %v22074_v16  ;;  %v15451_v48 = vpop.eup %15450  ;;  %v19621_v50 = vmul.f32 %v19519_v49, %v7867_v20  ;;  %v7870_v29 = vadd.f32 2.0, %v15449_v1  ;;  %15466 = vrcp.f32 %v7929_v45  ;;  %v7932_v10 = vadd.f32 2.0, %v19544_v51  ;;  %14884 = vmatpush3.msra.mxu0 %v19527_v55 }
 0x428   : > { %429 = vst.msk [vmem:[#allocation3 + $0x78] sm:$0x1] %vm403_vm4, %v22074_v16  ;;  %430 = vst.msk [vmem:[#allocation3 + $0x98] sm:$0x1] %vm403_vm4, %v22074_v16  ;;  %v15453_v34 = vpop.eup %15452  ;;  %v8019_v22 = vmul.f32 %v7968_v13, %v22075_v19  ;;  %v7974_v43 = vmul.f32 %v15451_v48, %v19489_v41  ;;  %v8201_v36 = vld [vmem:[#allocation3 + $0xf] sm:$0xff]  ;;  %15468 = vpow2.f32 %v7835_v8  ;;  %v22076_v58 = vld [vmem:[#allocation91_spill] sm:$0xff] }
 0x429   : > { %431 = vst.msk [vmem:[#allocation3 + $0xb8] sm:$0x1] %vm403_vm4, %v22074_v16  ;;  %432 = vst.msk [vmem:[#allocation3 + $0xd8] sm:$0x1] %vm403_vm4, %v22074_v16  ;;  %v7839_v53 = vmul.f32 1.442695, %v7779_v44  ;;  %v19629_v3 = vmul.f32 %v15449_v1, %v7870_v29  ;;  %15470 = vrcp.f32 %v7932_v10  ;;  %14836 = vmatmul.mubr.msk.f32.vlgmr.msra.gmra.mxu1 %vm399_vm3, %v8201_v36 }
 0x42a   : > { %433 = vst.msk [vmem:[#allocation3 + $0xf8] sm:$0x1] %vm403_vm4, %v22074_v16  ;;  %434 = vst.msk [vmem:[#allocation3 + $0x118] sm:$0x1] %vm403_vm4, %v22074_v16  ;;  %v7869_v52 = vadd.f32 2.0, %v15453_v34  ;;  %v8022_v60 = vmul.f32 %v7974_v43, %v22076_v58  ;;  %v7931_v17 = vadd.f32 2.0, %v19621_v50 }
 0x42b   : > { %8091 = vrot.lane.b32.xlu1 %v8017_v18, %s15639_s11  ;;  %435 = vst.msk [vmem:[#allocation3 + $0x138] sm:$0x1] %vm403_vm4, %v22074_v16  ;;  %436 = vst.msk [vmem:[#allocation3 + $0x158] sm:$0x1] %vm403_vm4, %v22074_v16  ;;  %v15455_v15 = vpop.eup %15454  ;;  %v7841_v21 = vmul.f32 1.442695, %v7780_v63  ;;  %15472 = vpow2.f32 %v7839_v53 }
 0x42c   : > { %437 = vst.msk [vmem:[#allocation3 + $0x178] sm:$0x1] %vm403_vm4, %v22074_v16  ;;  %438 = vst.msk [vmem:[#allocation3 + $0x198] sm:$0x1] %vm403_vm4, %v22074_v16  ;;  %v15457_v41 = vpop.eup %15456  ;;  %v7972_v56 = vmul.f32 %v15455_v15, %v19493_v42  ;;  %v7934_v28 = vadd.f32 2.0, %v19629_v3  ;;  %v19641_v62 = vmul.f32 %v15453_v34, %v7869_v52  ;;  %15474 = vrcp.f32 %v7931_v17 }
 0x42d   : > { %439 = vst.msk [vmem:[#allocation3 + $0x1b8] sm:$0x1] %vm403_vm4, %v22074_v16  ;;  %440 = vst.msk [vmem:[#allocation3 + $0x1d8] sm:$0x1] %vm403_vm4, %v22074_v16  ;;  %v15459_v40 = vpop.eup %15458  ;;  %v7872_v9 = vadd.f32 2.0, %v15457_v41  ;;  %15476 = vpow2.f32 %v7841_v21  ;;  %v7782_v55 = vmin.f32 %v19460_v23, 20.0 }
 0x42e   : > { %441 = vst.msk [vmem:[#allocation3 + $0x1f8] sm:$0x1] %vm403_vm4, %v22074_v16  ;;  %442 = vst.msk [vmem:[#allocation3 + $0x218] sm:$0x1] %vm403_vm4, %v22074_v16  ;;  %v8021_v42 = vmul.f32 %v7972_v56, %v19370_v26  ;;  %v7976_v18 = vmul.f32 %v15459_v40, %v19502_v12  ;;  %v7843_v57 = vmul.f32 1.442695, %v7781_v7  ;;  %15478 = vrcp.f32 %v7934_v28 }
 0x42f   : > { %8097 = vrot.lane.b32.xlu1 %v8020_v25, %s15639_s11  ;;  %v15461_v49 = vpop.eup %15460  ;;  %v7933_v16 = vadd.f32 2.0, %v19641_v62  ;;  %v7904_v26 = vmul.f32 %v15457_v41, %v7872_v9  ;;  %v7845_v25 = vmul.f32 1.442695, %v7782_v55 }
 0x430   : > { %v7871_v27 = vadd.f32 2.0, %v15461_v49  ;;  %v8023_v20 = vmul.f32 %v7976_v18, %v19337_v30  ;;  %15480 = vpow2.f32 %v7843_v57 }
 0x431   : > { %15482 = vrcp.f32 %v7933_v16  ;;  %v7936_v44 = vadd.f32 2.0, %v7904_v26 }
 0x432   : > { %v15463_v46 = vpop.eup %15462  ;;  %v7903_v13 = vmul.f32 %v15461_v49, %v7871_v27  ;;  %15484 = vpow2.f32 %v7845_v25 }
 0x433   : > { %8095 = vrot.lane.b32.xlu1 %v8019_v22, %s15639_s11  ;;  %v15465_v47 = vpop.eup %15464  ;;  %v7982_v1 = vmul.f32 %v15463_v46, %v19513_v59  ;;  %15486 = vrcp.f32 %v7936_v44 }
 0x434   : > { %v15467_v12 = vpop.eup %15466  ;;  %v7874_v45 = vadd.f32 2.0, %v15465_v47  ;;  %v7935_v10 = vadd.f32 2.0, %v7903_v13 }
 0x435   : > { %v15469_v48 = vpop.eup %15468  ;;  %v8026_v34 = vmul.f32 %v7982_v1, %v19349_v5  ;;  %v7980_v8 = vmul.f32 %v15467_v12, %v19517_v33 }
 0x436   : > { %v15471_v29 = vpop.eup %15470  ;;  %v7906_v30 = vmul.f32 %v15465_v47, %v7874_v45  ;;  %v7873_v59 = vadd.f32 2.0, %v15469_v48  ;;  %15488 = vrcp.f32 %v7935_v10  ;;  %v9326_v45 = vld [vmem:[%s21348_s5 + $0x18] sm:$0xff] }
 0x437   : > { %8101 = vrot.lane.b32.xlu1 %v8022_v60, %s15639_s11  ;;  %v8025_v22 = vmul.f32 %v7980_v8, %v19365_v37  ;;  %v7986_v43 = vmul.f32 %v15471_v29, %v19544_v51  ;;  %14933 = vmatprep.subr.mxu1 %v9326_v45 }
 0x438   : > { %v15473_v19 = vpop.eup %15472  ;;  %v7905_v33 = vmul.f32 %v15469_v48, %v7873_v59  ;;  %v7938_v63 = vadd.f32 2.0, %v7906_v30  ;;  %14934 = vmatpush3.msra.mxu1 %v9326_v45 }
 0x439   : > { %v15475_v15 = vpop.eup %15474  ;;  %v7875_v0 = vadd.f32 2.0, %v15473_v19  ;;  %v8028_v39 = vmul.f32 %v7986_v43, %v19373_v31 }
 0x43a   : > { %v15477_v5 = vpop.eup %15476  ;;  %v7984_v14 = vmul.f32 %v15475_v15, %v19621_v50  ;;  %15490 = vrcp.f32 %v7938_v63  ;;  %v7937_v58 = vadd.f32 2.0, %v7905_v33 }
 0x43b   : > { %8099 = vrot.lane.b32.xlu1 %v8021_v42, %s15639_s11  ;;  %v15479_v36 = vpop.eup %15478  ;;  %v7907_v37 = vmul.f32 %v15473_v19, %v7875_v0  ;;  %v7876_v53 = vadd.f32 2.0, %v15477_v5 }
 0x43c   : > { %v8027_v52 = vmul.f32 %v7984_v14, %v19381_v32  ;;  %v7990_v41 = vmul.f32 %v15479_v36, %v19629_v3  ;;  %15492 = vrcp.f32 %v7937_v58 }
 0x43d   : > { %v15481_v51 = vpop.eup %15480  ;;  %v7939_v31 = vadd.f32 2.0, %v7907_v37  ;;  %v7908_v56 = vmul.f32 %v15477_v5, %v7876_v53 }
 0x43e   : > { %v15483_v60 = vpop.eup %15482  ;;  %v8030_v17 = vmul.f32 %v7990_v41, %v19393_v24  ;;  %v7877_v21 = vadd.f32 2.0, %v15481_v51 }
 0x43f   : > { %8103 = vrot.lane.b32.xlu1 %v8023_v20, %s15639_s11  ;;  %v15485_v50 = vpop.eup %15484  ;;  %v7988_v40 = vmul.f32 %v15483_v60, %v19641_v62  ;;  %15494 = vrcp.f32 %v7939_v31  ;;  %v7940_v32 = vadd.f32 2.0, %v7908_v56 }
 0x440   : > { %v15487_v7 = vpop.eup %15486  ;;  %v7909_v49 = vmul.f32 %v15481_v51, %v7877_v21  ;;  %v7878_v42 = vadd.f32 2.0, %v15485_v50 }
 0x441   : > { %v8029_v3 = vmul.f32 %v7988_v40, %v19401_v38  ;;  %v7994_v28 = vmul.f32 %v15487_v7, %v7904_v26  ;;  %15496 = vrcp.f32 %v7940_v32 }
 0x442   : > { %v7941_v62 = vadd.f32 2.0, %v7909_v49  ;;  %v7910_v46 = vmul.f32 %v15485_v50, %v7878_v42 }
 0x443   : > { %8109 = vrot.lane.b32.xlu1 %v8026_v34, %s15639_s11  ;;  %v15489_v18 = vpop.eup %15488  ;;  %v8032_v24 = vmul.f32 %v7994_v28, %v19414_v4 }
 0x444   : > { %v7992_v9 = vmul.f32 %v15489_v18, %v7903_v13  ;;  %15498 = vrcp.f32 %v7941_v62  ;;  %v7942_v38 = vadd.f32 2.0, %v7910_v46  ;;  %v19802_v62 = vld [vmem:[%s21348_s5 + $0x28] sm:$0xff] }
 0x445   : > { %15033 = vmatprep.subr.mxu1 %v19802_v62 }
 0x446   : > { %v8031_v55 = vmul.f32 %v7992_v9, %v19420_v11  ;;  %15500 = vrcp.f32 %v7942_v38 }
 0x447   : > { %8107 = vrot.lane.b32.xlu1 %v8025_v22, %s15639_s11  ;;  %v15491_v47 = vpop.eup %15490 }
 0x448   : > { %v7998_v57 = vmul.f32 %v15491_v47, %v7906_v30 }
 0x449   : > { %v15493_v16 = vpop.eup %15492 }
 0x44a   : > { %v8034_v20 = vmul.f32 %v7998_v57, %v19431_v54  ;;  %v7996_v1 = vmul.f32 %v15493_v16, %v7905_v33  ;;  %v19684_v54 = vld [vmem:[%s21348_s5 + $0x20] sm:$0xff] }
 0x44b   : > { %8113 = vrot.lane.b32.xlu1 %v8028_v39, %s15639_s11  ;;  %14983 = vmatprep.subr.mxu0 %v19684_v54 }
 0x44c   : > { %v15495_v27 = vpop.eup %15494  ;;  %v8033_v26 = vmul.f32 %v7996_v1, %v19436_v61 }
 0x44d   : > { %v8000_v12 = vmul.f32 %v15495_v27, %v7907_v37 }
 0x44e   : > { %v15497_v4 = vpop.eup %15496 }
 0x44f   : > { %8111 = vrot.lane.b32.xlu1 %v8027_v52, %s15639_s11  ;;  %v8035_v11 = vmul.f32 %v8000_v12, %v19453_v6  ;;  %v8002_v25 = vmul.f32 %v15497_v4, %v7908_v56 }
 0x451   : > { %v15499_v13 = vpop.eup %15498  ;;  %v8036_v61 = vmul.f32 %v8002_v25, %v19444_v35 }
 0x452   : > { %v8004_v6 = vmul.f32 %v15499_v13, %v7909_v49 }
 0x453   : > { %8117 = vrot.lane.b32.xlu1 %v8030_v17, %s15639_s11  ;;  %v15501_v48 = vpop.eup %15500 }
 0x454   : > { %v8037_v8 = vmul.f32 %v8004_v6, %v19467_v2  ;;  %v8006_v44 = vmul.f32 %v15501_v48, %v7910_v46 }
 0x456   : > { %v8038_v30 = vmul.f32 %v8006_v44, %v19460_v23 }
 0x457   : > { %8115 = vrot.lane.b32.xlu1 %v8029_v3, %s15639_s11 }
 0x45b   : > { %8121 = vrot.lane.b32.xlu1 %v8032_v24, %s15639_s11 }
 0x45f   : > { %8119 = vrot.lane.b32.xlu1 %v8031_v55, %s15639_s11 }
 0x463   : > { %8125 = vrot.lane.b32.xlu1 %v8034_v20, %s15639_s11 }
 0x467   : > { %8123 = vrot.lane.b32.xlu1 %v8033_v26, %s15639_s11 }
 0x46b   : > { %8127 = vrot.lane.b32.xlu1 %v8035_v11, %s15639_s11 }
 0x46f   : > { %8129 = vrot.lane.b32.xlu1 %v8036_v61, %s15639_s11 }
 0x471   : > { %v8074_v34 = vpop.permute.xlu1 %8073 }
 0x472   : > { %8169 = vst.msk [vmem:[#allocation3 + $0x30] sm:$0xff] %vm8167_vm5, %v8074_v34 }
 0x473   : > { %8131 = vrot.lane.b32.xlu1 %v8037_v8, %s15639_s11 }
 0x475   : > { %v8072_v29 = vpop.permute.xlu1 %8071 }
 0x476   : > { %8168 = vst.msk [vmem:[#allocation3 + $0x28] sm:$0xff] %vm8167_vm5, %v8072_v29 }
 0x477   : > { %8133 = vrot.lane.b32.xlu1 %v8038_v30, %s15639_s11 }
 0x479   : > { %v8078_v35 = vpop.permute.xlu1 %8077  ;;  %v8236_v23 = vld [vmem:[#allocation3 + $0x30] sm:$0xff] }
 0x47a   : > { %8171 = vst.msk [vmem:[#allocation3 + $0x50] sm:$0xff] %vm8167_vm5, %v8078_v35 }
 0x47d   : > { %v8076_v59 = vpop.permute.xlu1 %8075  ;;  %v8235_v19 = vld [vmem:[#allocation3 + $0x28] sm:$0xff] }
 0x47e   : > { %v19696_v22 = vld [vmem:[#allocation3 + $0x27] sm:$0xff]  ;;  %v19698_v2 = vld [vmem:[#allocation3 + $0x2f] sm:$0xff]  ;;  %8170 = vst.msk [vmem:[#allocation3 + $0x48] sm:$0xff] %vm8167_vm5, %v8076_v59  ;;  %14788 = vmatprep.mubr.msk.f32.mxu0 %vm399_vm3, %v8235_v19 }
 0x47f   : > { %14838 = vmatprep.mubr.msk.f32.mxu1 %vm399_vm3, %v19696_v22  ;;  %14789 = vmatmul.mubr.msk.f32.gmra.mxu0 %vm399_vm3, %v8236_v23 }
 0x480   : > { %14839 = vmatmul.mubr.msk.f32.gmra.mxu1 %vm399_vm3, %v19698_v2 }
 0x481   : > { %v8082_v43 = vpop.permute.xlu1 %8081  ;;  %v19719_v0 = vld [vmem:[#allocation3 + $0x50] sm:$0xff] }
 0x482   : > { %8173 = vst.msk [vmem:[#allocation3 + $0x70] sm:$0xff] %vm8167_vm5, %v8082_v43 }
 0x485   : > { %v8080_v10 = vpop.permute.xlu1 %8079  ;;  %v19708_v15 = vld [vmem:[#allocation3 + $0x48] sm:$0xff] }
 0x486   : > { %v19710_v5 = vld [vmem:[#allocation3 + $0x47] sm:$0xff]  ;;  %v19712_v33 = vld [vmem:[#allocation3 + $0x4f] sm:$0xff]  ;;  %8172 = vst.msk [vmem:[#allocation3 + $0x68] sm:$0xff] %vm8167_vm5, %v8080_v10  ;;  %14791 = vmatprep.mubr.msk.f32.mxu0 %vm399_vm3, %v19708_v15 }
 0x487   : > { %14841 = vmatprep.mubr.msk.f32.mxu1 %vm399_vm3, %v19710_v5  ;;  %14792 = vmatmul.mubr.msk.f32.gmra.mxu0 %vm399_vm3, %v19719_v0 }
 0x488   : > { %14842 = vmatmul.mubr.msk.f32.gmra.mxu1 %vm399_vm3, %v19712_v33 }
 0x489   : > { %v8086_v39 = vpop.permute.xlu1 %8085  ;;  %v19737_v53 = vld [vmem:[#allocation3 + $0x70] sm:$0xff] }
 0x48a   : > { %8175 = vst.msk [vmem:[#allocation3 + $0x90] sm:$0xff] %vm8167_vm5, %v8086_v39 }
 0x48d   : > { %v8084_v14 = vpop.permute.xlu1 %8083  ;;  %v19726_v63 = vld [vmem:[#allocation3 + $0x68] sm:$0xff] }
 0x48e   : > { %v19728_v36 = vld [vmem:[#allocation3 + $0x67] sm:$0xff]  ;;  %v19730_v37 = vld [vmem:[#allocation3 + $0x6f] sm:$0xff]  ;;  %8174 = vst.msk [vmem:[#allocation3 + $0x88] sm:$0xff] %vm8167_vm5, %v8084_v14  ;;  %14794 = vmatprep.mubr.msk.f32.mxu0 %vm399_vm3, %v19726_v63 }
 0x48f   : > { %14844 = vmatprep.mubr.msk.f32.mxu1 %vm399_vm3, %v19728_v36  ;;  %14795 = vmatmul.mubr.msk.f32.gmra.mxu0 %vm399_vm3, %v19737_v53 }
 0x490   : > { %14845 = vmatmul.mubr.msk.f32.gmra.mxu1 %vm399_vm3, %v19730_v37 }
 0x491   : > { %v8090_v51 = vpop.permute.xlu1 %8089  ;;  %v19756_v56 = vld [vmem:[#allocation3 + $0x90] sm:$0xff] }
 0x492   : > { %8177 = vst.msk [vmem:[#allocation3 + $0xb0] sm:$0xff] %vm8167_vm5, %v8090_v51  ;;  %v8106_v52 = vpop.permute.xlu0 %8105 }
 0x493   : > { %8185 = vst.msk [vmem:[#allocation3 + $0x130] sm:$0xff] %vm8167_vm5, %v8106_v52 }
 0x495   : > { %v8088_v41 = vpop.permute.xlu1 %8087  ;;  %v19745_v58 = vld [vmem:[#allocation3 + $0x88] sm:$0xff] }
 0x496   : > { %v19747_v60 = vld [vmem:[#allocation3 + $0x87] sm:$0xff]  ;;  %v19749_v31 = vld [vmem:[#allocation3 + $0x8f] sm:$0xff]  ;;  %8176 = vst.msk [vmem:[#allocation3 + $0xa8] sm:$0xff] %vm8167_vm5, %v8088_v41  ;;  %14797 = vmatprep.mubr.msk.f32.mxu0 %vm399_vm3, %v19745_v58 }
 0x497   : > { %14847 = vmatprep.mubr.msk.f32.mxu1 %vm399_vm3, %v19747_v60  ;;  %14798 = vmatmul.mubr.msk.f32.gmra.mxu0 %vm399_vm3, %v19756_v56 }
 0x498   : > { %14848 = vmatmul.mubr.msk.f32.gmra.mxu1 %vm399_vm3, %v19749_v31 }
 0x499   : > { %v8094_v50 = vpop.permute.xlu1 %8093  ;;  %v19774_v32 = vld [vmem:[#allocation3 + $0xb0] sm:$0xff] }
 0x49a   : > { %8179 = vst.msk [vmem:[#allocation3 + $0xd0] sm:$0xff] %vm8167_vm5, %v8094_v50  ;;  %v19851_v45 = vld [vmem:[#allocation3 + $0x130] sm:$0xff] }
 0x49d   : > { %v8092_v17 = vpop.permute.xlu1 %8091  ;;  %v19763_v40 = vld [vmem:[#allocation3 + $0xa8] sm:$0xff] }
 0x49e   : > { %v19765_v21 = vld [vmem:[#allocation3 + $0xa7] sm:$0xff]  ;;  %v19767_v7 = vld [vmem:[#allocation3 + $0xaf] sm:$0xff]  ;;  %8178 = vst.msk [vmem:[#allocation3 + $0xc8] sm:$0xff] %vm8167_vm5, %v8092_v17  ;;  %14800 = vmatprep.mubr.msk.f32.mxu0 %vm399_vm3, %v19763_v40 }
 0x49f   : > { %14850 = vmatprep.mubr.msk.f32.mxu1 %vm399_vm3, %v19765_v21  ;;  %14801 = vmatmul.mubr.msk.f32.gmra.mxu0 %vm399_vm3, %v19774_v32 }
 0x4a0   : > { %14851 = vmatmul.mubr.msk.f32.gmra.mxu1 %vm399_vm3, %v19767_v7 }
 0x4a1   : > { %v8098_v3 = vpop.permute.xlu1 %8097  ;;  %v19792_v24 = vld [vmem:[#allocation3 + $0xd0] sm:$0xff] }
 0x4a2   : > { %8181 = vst.msk [vmem:[#allocation3 + $0xf0] sm:$0xff] %vm8167_vm5, %v8098_v3 }
 0x4a5   : > { %v8096_v28 = vpop.permute.xlu1 %8095  ;;  %v19781_v49 = vld [vmem:[#allocation3 + $0xc8] sm:$0xff] }
 0x4a6   : > { %v19783_v42 = vld [vmem:[#allocation3 + $0xc7] sm:$0xff]  ;;  %v19785_v18 = vld [vmem:[#allocation3 + $0xcf] sm:$0xff]  ;;  %8180 = vst.msk [vmem:[#allocation3 + $0xe8] sm:$0xff] %vm8167_vm5, %v8096_v28  ;;  %14803 = vmatprep.mubr.msk.f32.mxu0 %vm399_vm3, %v19781_v49 }
 0x4a7   : > { %14853 = vmatprep.mubr.msk.f32.mxu1 %vm399_vm3, %v19783_v42  ;;  %14804 = vmatmul.mubr.msk.f32.gmra.mxu0 %vm399_vm3, %v19792_v24 }
 0x4a8   : > { %14854 = vmatmul.mubr.msk.f32.gmra.mxu1 %vm399_vm3, %v19785_v18 }
 0x4a9   : > { %v8102_v9 = vpop.permute.xlu1 %8101  ;;  %v19816_v38 = vld [vmem:[#allocation3 + $0xf0] sm:$0xff] }
 0x4aa   : > { %8183 = vst.msk [vmem:[#allocation3 + $0x110] sm:$0xff] %vm8167_vm5, %v8102_v9 }
 0x4ad   : > { %v8100_v46 = vpop.permute.xlu1 %8099  ;;  %v19805_v47 = vld [vmem:[#allocation3 + $0xe8] sm:$0xff] }
 0x4ae   : > { %v19807_v55 = vld [vmem:[#allocation3 + $0xe7] sm:$0xff]  ;;  %v19809_v57 = vld [vmem:[#allocation3 + $0xef] sm:$0xff]  ;;  %8182 = vst.msk [vmem:[#allocation3 + $0x108] sm:$0xff] %vm8167_vm5, %v8100_v46  ;;  %14806 = vmatprep.mubr.msk.f32.mxu0 %vm399_vm3, %v19805_v47 }
 0x4af   : > { %14856 = vmatprep.mubr.msk.f32.mxu1 %vm399_vm3, %v19807_v55  ;;  %14807 = vmatmul.mubr.msk.f32.gmra.mxu0 %vm399_vm3, %v19816_v38 }
 0x4b0   : > { %14857 = vmatmul.mubr.msk.f32.gmra.mxu1 %vm399_vm3, %v19809_v57 }
 0x4b1   : > { %v8104_v16 = vpop.permute.xlu1 %8103  ;;  %v19834_v26 = vld [vmem:[#allocation3 + $0x110] sm:$0xff] }
 0x4b2   : > { %8184 = vst.msk [vmem:[#allocation3 + $0x128] sm:$0xff] %vm8167_vm5, %v8104_v16 }
 0x4b5   : > { %v8110_v27 = vpop.permute.xlu1 %8109  ;;  %v19823_v20 = vld [vmem:[#allocation3 + $0x108] sm:$0xff] }
 0x4b6   : > { %v19825_v1 = vld [vmem:[#allocation3 + $0x107] sm:$0xff]  ;;  %v19827_v4 = vld [vmem:[#allocation3 + $0x10f] sm:$0xff]  ;;  %8187 = vst.msk [vmem:[#allocation3 + $0x150] sm:$0xff] %vm8167_vm5, %v8110_v27  ;;  %14809 = vmatprep.mubr.msk.f32.mxu0 %vm399_vm3, %v19823_v20 }
 0x4b7   : > { %14859 = vmatprep.mubr.msk.f32.mxu1 %vm399_vm3, %v19825_v1  ;;  %14810 = vmatmul.mubr.msk.f32.gmra.mxu0 %vm399_vm3, %v19834_v26 }
 0x4b8   : > { %14860 = vmatmul.mubr.msk.f32.gmra.mxu1 %vm399_vm3, %v19827_v4 }
 0x4b9   : > { %v8108_v12 = vpop.permute.xlu1 %8107  ;;  %v19840_v11 = vld [vmem:[#allocation3 + $0x128] sm:$0xff] }
 0x4ba   : > { %v19842_v25 = vld [vmem:[#allocation3 + $0x127] sm:$0xff]  ;;  %v19844_v13 = vld [vmem:[#allocation3 + $0x12f] sm:$0xff]  ;;  %8186 = vst.msk [vmem:[#allocation3 + $0x148] sm:$0xff] %vm8167_vm5, %v8108_v12  ;;  %14812 = vmatprep.mubr.msk.f32.mxu0 %vm399_vm3, %v19840_v11 }
 0x4bb   : > { %14862 = vmatprep.mubr.msk.f32.mxu1 %vm399_vm3, %v19842_v25  ;;  %14813 = vmatmul.mubr.msk.f32.gmra.mxu0 %vm399_vm3, %v19851_v45 }
 0x4bc   : > { %14863 = vmatmul.mubr.msk.f32.gmra.mxu1 %vm399_vm3, %v19844_v13 }
 0x4bd   : > { %v8114_v61 = vpop.permute.xlu1 %8113  ;;  %v19869_v44 = vld [vmem:[#allocation3 + $0x150] sm:$0xff] }
 0x4be   : > { %8189 = vst.msk [vmem:[#allocation3 + $0x170] sm:$0xff] %vm8167_vm5, %v8114_v61 }
 0x4c1   : > { %v8112_v6 = vpop.permute.xlu1 %8111  ;;  %v19858_v48 = vld [vmem:[#allocation3 + $0x148] sm:$0xff] }
 0x4c2   : > { %v19860_v34 = vld [vmem:[#allocation3 + $0x147] sm:$0xff]  ;;  %v19862_v8 = vld [vmem:[#allocation3 + $0x14f] sm:$0xff]  ;;  %8188 = vst.msk [vmem:[#allocation3 + $0x168] sm:$0xff] %vm8167_vm5, %v8112_v6  ;;  %14815 = vmatprep.mubr.msk.f32.mxu0 %vm399_vm3, %v19858_v48 }
 0x4c3   : > { %14865 = vmatprep.mubr.msk.f32.mxu1 %vm399_vm3, %v19860_v34  ;;  %14816 = vmatmul.mubr.msk.f32.gmra.mxu0 %vm399_vm3, %v19869_v44 }
 0x4c4   : > { %14866 = vmatmul.mubr.msk.f32.gmra.mxu1 %vm399_vm3, %v19862_v8 }
 0x4c5   : > { %v8118_v29 = vpop.permute.xlu1 %8117  ;;  %v19887_v23 = vld [vmem:[#allocation3 + $0x170] sm:$0xff] }
 0x4c6   : > { %8191 = vst.msk [vmem:[#allocation3 + $0x190] sm:$0xff] %vm8167_vm5, %v8118_v29 }
 0x4c9   : > { %v8116_v30 = vpop.permute.xlu1 %8115  ;;  %v19876_v35 = vld [vmem:[#allocation3 + $0x168] sm:$0xff] }
 0x4ca   : > { %v19878_v59 = vld [vmem:[#allocation3 + $0x167] sm:$0xff]  ;;  %v19880_v19 = vld [vmem:[#allocation3 + $0x16f] sm:$0xff]  ;;  %8190 = vst.msk [vmem:[#allocation3 + $0x188] sm:$0xff] %vm8167_vm5, %v8116_v30  ;;  %14818 = vmatprep.mubr.msk.f32.mxu0 %vm399_vm3, %v19876_v35 }
 0x4cb   : > { %14868 = vmatprep.mubr.msk.f32.mxu1 %vm399_vm3, %v19878_v59  ;;  %14819 = vmatmul.mubr.msk.f32.gmra.mxu0 %vm399_vm3, %v19887_v23 }
 0x4cc   : > { %14869 = vmatmul.mubr.msk.f32.gmra.mxu1 %vm399_vm3, %v19880_v19 }
 0x4cd   : > { %v8122_v43 = vpop.permute.xlu1 %8121  ;;  %v19905_v52 = vld [vmem:[#allocation3 + $0x190] sm:$0xff] }
 0x4ce   : > { %8193 = vst.msk [vmem:[#allocation3 + $0x1b0] sm:$0xff] %vm8167_vm5, %v8122_v43 }
 0x4d1   : > { %v8120_v10 = vpop.permute.xlu1 %8119  ;;  %v19894_v39 = vld [vmem:[#allocation3 + $0x188] sm:$0xff] }
 0x4d2   : > { %v19896_v14 = vld [vmem:[#allocation3 + $0x187] sm:$0xff]  ;;  %v19898_v51 = vld [vmem:[#allocation3 + $0x18f] sm:$0xff]  ;;  %8192 = vst.msk [vmem:[#allocation3 + $0x1a8] sm:$0xff] %vm8167_vm5, %v8120_v10  ;;  %14821 = vmatprep.mubr.msk.f32.mxu0 %vm399_vm3, %v19894_v39 }
 0x4d3   : > { %14871 = vmatprep.mubr.msk.f32.mxu1 %vm399_vm3, %v19896_v14  ;;  %14822 = vmatmul.mubr.msk.f32.gmra.mxu0 %vm399_vm3, %v19905_v52  ;;  %v8908_v10 = vld [vmem:[#allocation3 + $0x9] sm:$0xff] }
 0x4d4   : > { %14872 = vmatmul.mubr.msk.f32.gmra.mxu1 %vm399_vm3, %v19898_v51 }
 0x4d5   : > { %v8126_v41 = vpop.permute.xlu1 %8125  ;;  %v19923_v9 = vld [vmem:[#allocation3 + $0x1b0] sm:$0xff] }
 0x4d6   : > { %8195 = vst.msk [vmem:[#allocation3 + $0x1d0] sm:$0xff] %vm8167_vm5, %v8126_v41 }
 0x4d9   : > { %v8124_v50 = vpop.permute.xlu1 %8123  ;;  %v19912_v17 = vld [vmem:[#allocation3 + $0x1a8] sm:$0xff] }
 0x4da   : > { %v19914_v3 = vld [vmem:[#allocation3 + $0x1a7] sm:$0xff]  ;;  %v19916_v28 = vld [vmem:[#allocation3 + $0x1af] sm:$0xff]  ;;  %8194 = vst.msk [vmem:[#allocation3 + $0x1c8] sm:$0xff] %vm8167_vm5, %v8124_v50  ;;  %14824 = vmatprep.mubr.msk.f32.mxu0 %vm399_vm3, %v19912_v17 }
 0x4db   : > { %22077 = vst [vmem:[#allocation80_spill] sm:$0xff] %v19916_v28  ;;  %14874 = vmatprep.mubr.msk.f32.mxu1 %vm399_vm3, %v19914_v3  ;;  %14825 = vmatmul.mubr.msk.f32.gmra.mxu0 %vm399_vm3, %v19923_v9 }
 0x4dc   : > { %14875 = vmatmul.mubr.msk.f32.gmra.mxu1 %vm399_vm3, %v19916_v28 }
 0x4dd   : > { %v8128_v46 = vpop.permute.xlu1 %8127  ;;  %v19941_v6 = vld [vmem:[#allocation3 + $0x1d0] sm:$0xff] }
 0x4de   : > { %8196 = vst.msk [vmem:[#allocation3 + $0x1e8] sm:$0xff] %vm8167_vm5, %v8128_v46 }
 0x4e1   : > { %v8130_v16 = vpop.permute.xlu1 %8129  ;;  %v19930_v27 = vld [vmem:[#allocation3 + $0x1c8] sm:$0xff] }
 0x4e2   : > { %v19932_v12 = vld [vmem:[#allocation3 + $0x1c7] sm:$0xff]  ;;  %v19934_v61 = vld [vmem:[#allocation3 + $0x1cf] sm:$0xff]  ;;  %8197 = vst.msk [vmem:[#allocation3 + $0x1f0] sm:$0xff] %vm8167_vm5, %v8130_v16  ;;  %14827 = vmatprep.mubr.msk.f32.mxu0 %vm399_vm3, %v19930_v27 }
 0x4e3   : > { %22078 = vst [vmem:[#allocation44_spill] sm:$0xff] %v19932_v12  ;;  %22079 = vst [vmem:[#allocation108_spill] sm:$0xff] %v19934_v61  ;;  %14877 = vmatprep.mubr.msk.f32.mxu1 %vm399_vm3, %v19932_v12  ;;  %14828 = vmatmul.mubr.msk.f32.gmra.mxu0 %vm399_vm3, %v19941_v6  ;;  %v8909_v16 = vld [vmem:[#allocation3 + $0x11] sm:$0xff] }
 0x4e4   : > { %14878 = vmatmul.mubr.msk.f32.gmra.mxu1 %vm399_vm3, %v19934_v61 }
 0x4e5   : > { %v8132_v29 = vpop.permute.xlu1 %8131  ;;  %v19947_v30 = vld [vmem:[#allocation3 + $0x1e8] sm:$0xff] }
 0x4e6   : > { %v19949_v43 = vld [vmem:[#allocation3 + $0x1e7] sm:$0xff]  ;;  %8198 = vst.msk [vmem:[#allocation3 + $0x208] sm:$0xff] %vm8167_vm5, %v8132_v29  ;;  %14830 = vmatprep.mubr.msk.f32.mxu0 %vm399_vm3, %v19947_v30 }
 0x4e7   : > { %22080 = vst [vmem:[#allocation81_spill] sm:$0xff] %v19949_v43  ;;  %14880 = vmatprep.mubr.msk.f32.mxu1 %vm399_vm3, %v19949_v43  ;;  %v19971_v29 = vld [vmem:[#allocation3 + $0x29] sm:$0xff] }
 0x4e9   : > { %v8134_v41 = vpop.permute.xlu1 %8133  ;;  %v19956_v50 = vld [vmem:[#allocation3 + $0x1f0] sm:$0xff] }
 0x4ea   : > { %22081 = vst [vmem:[#allocation53_spill] sm:$0xff] %v19956_v50  ;;  %v19958_v46 = vld [vmem:[#allocation3 + $0x1ef] sm:$0xff]  ;;  %8199 = vst.msk [vmem:[#allocation3 + $0x210] sm:$0xff] %vm8167_vm5, %v8134_v41  ;;  %14831 = vmatmul.mubr.msk.f32.gmra.mxu0 %vm399_vm3, %v19956_v50  ;;  %v19981_v50 = vld [vmem:[%s21348_s5 + $0x38] sm:$0xff] }
 0x4eb   : > { %22082 = vst [vmem:[#allocation95_spill] sm:$0xff] %v19958_v46  ;;  %14881 = vmatmul.mubr.msk.f32.gmra.mxu1 %vm399_vm3, %v19958_v46  ;;  %14885 = vmatprep.mubr.msk.f32.mxu0 %vm399_vm3, %v8908_v10  ;;  %v19976_v41 = vld [vmem:[%s21348_s5 + $0x30] sm:$0xff] }
 0x4ec   : > { %14935 = vmatprep.mubr.msk.f32.mxu1 %vm399_vm3, %v19696_v22  ;;  %v19989_v22 = vld [vmem:[#allocation3 + $0x31] sm:$0xff]  ;;  %v20009_v10 = vld [vmem:[#allocation3 + $0x69] sm:$0xff] }
 0x4ee   : > { %14886 = vmatmul.mubr.msk.f32.vlgmr.msra.gmra.mxu0 %vm399_vm3, %v8909_v16  ;;  %v20023_v16 = vld [vmem:[#allocation3 + $0x89] sm:$0xff] }
 0x4ef   : > { %14936 = vmatmul.mubr.msk.f32.vlgmr.msra.gmra.mxu1 %vm399_vm3, %v19698_v2  ;;  %14984 = vmatpush3.msra.mxu0 %v19684_v54  ;;  %v19997_v54 = vld [vmem:[#allocation3 + $0x49] sm:$0xff]  ;;  %v20003_v2 = vld [vmem:[#allocation3 + $0x51] sm:$0xff] }
 0x4f0   : > { %14888 = vmatprep.mubr.msk.f32.mxu0 %vm399_vm3, %v19971_v29  ;;  %14938 = vmatprep.mubr.msk.f32.mxu1 %vm399_vm3, %v19710_v5  ;;  %v14787_v5 = vpop.f32.mrf.mxu0 }
 0x4f1   : > { %15034 = vmatpush3.msra.mxu1 %v19802_v62  ;;  %15083 = vmatprep.subr.mxu0 %v19976_v41  ;;  %v14837_v62 = vpop.f32.mrf.mxu1 }
 0x4f2   : > { %15133 = vmatprep.subr.mxu1 %v19981_v50  ;;  %14889 = vmatmul.mubr.msk.f32.gmra.mxu0 %vm399_vm3, %v19989_v22 }
 0x4f3   : > { %14939 = vmatmul.mubr.msk.f32.gmra.mxu1 %vm399_vm3, %v19712_v33  ;;  %14891 = vmatprep.mubr.msk.f32.mxu0 %vm399_vm3, %v19997_v54  ;;  %v20011_v33 = vadd.f32 %v14837_v62, %v14787_v5  ;;  %v20143_v5 = vld [vmem:[#allocation3 + $0x1c9] sm:$0xff]  ;;  %v20149_v62 = vld [vmem:[#allocation3 + $0x1d1] sm:$0xff] }
 0x4f4   : > { %14941 = vmatprep.mubr.msk.f32.mxu1 %vm399_vm3, %v19728_v36  ;;  %v20017_v36 = vld [vmem:[#allocation3 + $0x71] sm:$0xff] }
 0x4f5   : > { %22083 = vst [vmem:[#allocation112_spill] sm:$0xff] %v20011_v33  ;;  %v20155_v33 = vld [vmem:[#allocation3 + $0x1e9] sm:$0xff] }
 0x4f6   : > { %14892 = vmatmul.mubr.msk.f32.gmra.mxu0 %vm399_vm3, %v20003_v2 }
 0x4f7   : > { %14942 = vmatmul.mubr.msk.f32.gmra.mxu1 %vm399_vm3, %v19730_v37  ;;  %14894 = vmatprep.mubr.msk.f32.mxu0 %vm399_vm3, %v20009_v10  ;;  %v20029_v37 = vld [vmem:[#allocation3 + $0x91] sm:$0xff] }
 0x4f8   : > { %14944 = vmatprep.mubr.msk.f32.mxu1 %vm399_vm3, %v19747_v60  ;;  %v20035_v60 = vld [vmem:[#allocation3 + $0xa9] sm:$0xff] }
 0x4fa   : > { %14895 = vmatmul.mubr.msk.f32.gmra.mxu0 %vm399_vm3, %v20017_v36 }
 0x4fb   : > { %14945 = vmatmul.mubr.msk.f32.gmra.mxu1 %vm399_vm3, %v19749_v31  ;;  %14897 = vmatprep.mubr.msk.f32.mxu0 %vm399_vm3, %v20023_v16  ;;  %v20041_v31 = vld [vmem:[#allocation3 + $0xb1] sm:$0xff] }
 0x4fc   : > { %14947 = vmatprep.mubr.msk.f32.mxu1 %vm399_vm3, %v19765_v21  ;;  %v20047_v21 = vld [vmem:[#allocation3 + $0xc9] sm:$0xff] }
 0x4fe   : > { %14898 = vmatmul.mubr.msk.f32.gmra.mxu0 %vm399_vm3, %v20029_v37 }
 0x4ff   : > { %14948 = vmatmul.mubr.msk.f32.gmra.mxu1 %vm399_vm3, %v19767_v7  ;;  %14900 = vmatprep.mubr.msk.f32.mxu0 %vm399_vm3, %v20035_v60  ;;  %v20053_v7 = vld [vmem:[#allocation3 + $0xd1] sm:$0xff] }
 0x500   : > { %14950 = vmatprep.mubr.msk.f32.mxu1 %vm399_vm3, %v19783_v42  ;;  %v20059_v42 = vld [vmem:[#allocation3 + $0xe9] sm:$0xff] }
 0x502   : > { %14901 = vmatmul.mubr.msk.f32.gmra.mxu0 %vm399_vm3, %v20041_v31 }
 0x503   : > { %14951 = vmatmul.mubr.msk.f32.gmra.mxu1 %vm399_vm3, %v19785_v18  ;;  %14903 = vmatprep.mubr.msk.f32.mxu0 %vm399_vm3, %v20047_v21  ;;  %v20065_v18 = vld [vmem:[#allocation3 + $0xf1] sm:$0xff] }
 0x504   : > { %14953 = vmatprep.mubr.msk.f32.mxu1 %vm399_vm3, %v19807_v55  ;;  %v20071_v55 = vld [vmem:[#allocation3 + $0x109] sm:$0xff] }
 0x506   : > { %14904 = vmatmul.mubr.msk.f32.gmra.mxu0 %vm399_vm3, %v20053_v7 }
 0x507   : > { %14954 = vmatmul.mubr.msk.f32.gmra.mxu1 %vm399_vm3, %v19809_v57  ;;  %14906 = vmatprep.mubr.msk.f32.mxu0 %vm399_vm3, %v20059_v42  ;;  %v20077_v57 = vld [vmem:[#allocation3 + $0x111] sm:$0xff] }
 0x508   : > { %14956 = vmatprep.mubr.msk.f32.mxu1 %vm399_vm3, %v19825_v1  ;;  %v20083_v1 = vld [vmem:[#allocation3 + $0x129] sm:$0xff] }
 0x50a   : > { %14907 = vmatmul.mubr.msk.f32.gmra.mxu0 %vm399_vm3, %v20065_v18 }
 0x50b   : > { %14957 = vmatmul.mubr.msk.f32.gmra.mxu1 %vm399_vm3, %v19827_v4  ;;  %14909 = vmatprep.mubr.msk.f32.mxu0 %vm399_vm3, %v20071_v55  ;;  %v20089_v4 = vld [vmem:[#allocation3 + $0x131] sm:$0xff] }
 0x50c   : > { %14959 = vmatprep.mubr.msk.f32.mxu1 %vm399_vm3, %v19842_v25  ;;  %v20095_v25 = vld [vmem:[#allocation3 + $0x149] sm:$0xff] }
 0x50e   : > { %14910 = vmatmul.mubr.msk.f32.gmra.mxu0 %vm399_vm3, %v20077_v57 }
 0x50f   : > { %14960 = vmatmul.mubr.msk.f32.gmra.mxu1 %vm399_vm3, %v19844_v13  ;;  %14912 = vmatprep.mubr.msk.f32.mxu0 %vm399_vm3, %v20083_v1  ;;  %v20101_v13 = vld [vmem:[#allocation3 + $0x151] sm:$0xff] }
 0x510   : > { %14962 = vmatprep.mubr.msk.f32.mxu1 %vm399_vm3, %v19860_v34  ;;  %v20107_v34 = vld [vmem:[#allocation3 + $0x169] sm:$0xff] }
 0x512   : > { %14913 = vmatmul.mubr.msk.f32.gmra.mxu0 %vm399_vm3, %v20089_v4 }
 0x513   : > { %14963 = vmatmul.mubr.msk.f32.gmra.mxu1 %vm399_vm3, %v19862_v8  ;;  %14915 = vmatprep.mubr.msk.f32.mxu0 %vm399_vm3, %v20095_v25  ;;  %v20113_v8 = vld [vmem:[#allocation3 + $0x171] sm:$0xff] }
 0x514   : > { %14965 = vmatprep.mubr.msk.f32.mxu1 %vm399_vm3, %v19878_v59  ;;  %v20119_v59 = vld [vmem:[#allocation3 + $0x189] sm:$0xff] }
 0x515   : > { %22084 = vst [vmem:[#allocation55_spill] sm:$0xff] %v20119_v59 }
 0x516   : > { %14916 = vmatmul.mubr.msk.f32.gmra.mxu0 %vm399_vm3, %v20101_v13 }
 0x517   : > { %14966 = vmatmul.mubr.msk.f32.gmra.mxu1 %vm399_vm3, %v19880_v19  ;;  %14918 = vmatprep.mubr.msk.f32.mxu0 %vm399_vm3, %v20107_v34  ;;  %v20125_v19 = vld [vmem:[#allocation3 + $0x191] sm:$0xff] }
 0x518   : > { %14968 = vmatprep.mubr.msk.f32.mxu1 %vm399_vm3, %v19896_v14  ;;  %v20131_v14 = vld [vmem:[#allocation3 + $0x1a9] sm:$0xff] }
 0x51a   : > { %14919 = vmatmul.mubr.msk.f32.gmra.mxu0 %vm399_vm3, %v20113_v8 }
 0x51b   : > { %14969 = vmatmul.mubr.msk.f32.gmra.mxu1 %vm399_vm3, %v19898_v51  ;;  %14921 = vmatprep.mubr.msk.f32.mxu0 %vm399_vm3, %v20119_v59  ;;  %v20137_v51 = vld [vmem:[#allocation3 + $0x1b1] sm:$0xff] }
 0x51c   : > { %14971 = vmatprep.mubr.msk.f32.mxu1 %vm399_vm3, %v19914_v3 }
 0x51e   : > { %14922 = vmatmul.mubr.msk.f32.gmra.mxu0 %vm399_vm3, %v20125_v19 }
 0x51f   : > { %14972 = vmatmul.mubr.msk.f32.gmra.mxu1 %vm399_vm3, %v19916_v28  ;;  %14924 = vmatprep.mubr.msk.f32.mxu0 %vm399_vm3, %v20131_v14  ;;  %v9681_v28 = vld [vmem:[#allocation3 + $0x30] sm:$0xff] }
 0x520   : > { %14974 = vmatprep.mubr.msk.f32.mxu1 %vm399_vm3, %v19932_v12  ;;  %v20157_v12 = vld [vmem:[#allocation3 + $0x207] sm:$0xff] }
 0x521   : > { %22085 = vst [vmem:[#allocation114_spill] sm:$0xff] %v20157_v12 }
 0x522   : > { %14925 = vmatmul.mubr.msk.f32.gmra.mxu0 %vm399_vm3, %v20137_v51 }
 0x523   : > { %14975 = vmatmul.mubr.msk.f32.gmra.mxu1 %vm399_vm3, %v19934_v61  ;;  %14927 = vmatprep.mubr.msk.f32.mxu0 %vm399_vm3, %v20143_v5  ;;  %v20163_v61 = vld [vmem:[#allocation3 + $0x1f1] sm:$0xff] }
 0x524   : > { %14977 = vmatprep.mubr.msk.f32.mxu1 %vm399_vm3, %v19949_v43  ;;  %v20165_v43 = vld [vmem:[#allocation3 + $0x20f] sm:$0xff] }
 0x526   : > { %14928 = vmatmul.mubr.msk.f32.gmra.mxu0 %vm399_vm3, %v20149_v62 }
 0x527   : > { %14978 = vmatmul.mubr.msk.f32.gmra.mxu1 %vm399_vm3, %v19958_v46  ;;  %14930 = vmatprep.mubr.msk.f32.mxu0 %vm399_vm3, %v20155_v33  ;;  %v9680_v46 = vld [vmem:[#allocation3 + $0x28] sm:$0xff] }
 0x528   : > { %14980 = vmatprep.mubr.msk.f32.mxu1 %vm399_vm3, %v20157_v12  ;;  %v20180_v12 = vld [vmem:[%s21348_s5 + $0x40] sm:$0xff] }
 0x52a   : > { %14931 = vmatmul.mubr.msk.f32.gmra.mxu0 %vm399_vm3, %v20163_v61 }
 0x52b   : > { %14981 = vmatmul.mubr.msk.f32.gmra.mxu1 %vm399_vm3, %v20165_v43  ;;  %14985 = vmatprep.mubr.msk.f32.mxu0 %vm399_vm3, %v9680_v46 }
 0x52c   : > { %15035 = vmatprep.mubr.msk.f32.mxu1 %vm399_vm3, %v19971_v29 }
 0x52e   : > { %14986 = vmatmul.mubr.msk.f32.vlgmr.msra.gmra.mxu0 %vm399_vm3, %v9681_v28 }
 0x52f   : > { %15036 = vmatmul.mubr.msk.f32.vlgmr.msra.gmra.mxu1 %vm399_vm3, %v19989_v22  ;;  %15084 = vmatpush3.msra.mxu0 %v19976_v41 }
 0x530   : > { %14988 = vmatprep.mubr.msk.f32.mxu0 %vm399_vm3, %v19708_v15  ;;  %15038 = vmatprep.mubr.msk.f32.mxu1 %vm399_vm3, %v19997_v54  ;;  %v20213_v15 = vpop.f32.mrf.mxu0 }
 0x531   : > { %15134 = vmatpush3.msra.mxu1 %v19981_v50  ;;  %15183 = vmatprep.subr.mxu0 %v20180_v12 }
 0x532   : > { %14989 = vmatmul.mubr.msk.f32.gmra.mxu0 %vm399_vm3, %v19719_v0  ;;  %v20215_v0 = vpop.f32.mrf.mxu1 }
 0x533   : > { %15039 = vmatmul.mubr.msk.f32.gmra.mxu1 %vm399_vm3, %v20003_v2  ;;  %14991 = vmatprep.mubr.msk.f32.mxu0 %vm399_vm3, %v19726_v63 }
 0x534   : > { %15041 = vmatprep.mubr.msk.f32.mxu1 %vm399_vm3, %v20009_v10 }
 0x536   : > { %14992 = vmatmul.mubr.msk.f32.gmra.mxu0 %vm399_vm3, %v19737_v53 }
 0x537   : > { %15042 = vmatmul.mubr.msk.f32.gmra.mxu1 %vm399_vm3, %v20017_v36  ;;  %14994 = vmatprep.mubr.msk.f32.mxu0 %vm399_vm3, %v19745_v58 }
 0x538   : > { %15044 = vmatprep.mubr.msk.f32.mxu1 %vm399_vm3, %v20023_v16 }
 0x53a   : > { %14995 = vmatmul.mubr.msk.f32.gmra.mxu0 %vm399_vm3, %v19756_v56 }
 0x53b   : > { %15045 = vmatmul.mubr.msk.f32.gmra.mxu1 %vm399_vm3, %v20029_v37  ;;  %14997 = vmatprep.mubr.msk.f32.mxu0 %vm399_vm3, %v19763_v40 }
 0x53c   : > { %15047 = vmatprep.mubr.msk.f32.mxu1 %vm399_vm3, %v20035_v60 }
 0x53e   : > { %14998 = vmatmul.mubr.msk.f32.gmra.mxu0 %vm399_vm3, %v19774_v32 }
 0x53f   : > { %15048 = vmatmul.mubr.msk.f32.gmra.mxu1 %vm399_vm3, %v20041_v31  ;;  %v14790_v63 = vpop.f32.mrf.mxu0  ;;  %15000 = vmatprep.mubr.msk.f32.mxu0 %vm399_vm3, %v19781_v49 }
 0x540   : > { %v14840_v53 = vpop.f32.mrf.mxu1  ;;  %15050 = vmatprep.mubr.msk.f32.mxu1 %vm399_vm3, %v20047_v21 }
 0x541   : > { %v20225_v58 = vadd.f32 %v14840_v53, %v14790_v63  ;;  %v20235_v56 = vpop.f32.mrf.mxu0  ;;  %v20339_v53 = vld [vmem:[#allocation3 + $0x210] sm:$0xff] }
 0x542   : > { %15001 = vmatmul.mubr.msk.f32.gmra.mxu0 %vm399_vm3, %v19792_v24  ;;  %v20237_v40 = vpop.f32.mrf.mxu1 }
 0x543   : > { %15051 = vmatmul.mubr.msk.f32.gmra.mxu1 %vm399_vm3, %v20053_v7  ;;  %15003 = vmatprep.mubr.msk.f32.mxu0 %vm399_vm3, %v19805_v47 }
 0x544   : > { %15053 = vmatprep.mubr.msk.f32.mxu1 %vm399_vm3, %v20059_v42 }
 0x546   : > { %15004 = vmatmul.mubr.msk.f32.gmra.mxu0 %vm399_vm3, %v19816_v38 }
 0x547   : > { %15054 = vmatmul.mubr.msk.f32.gmra.mxu1 %vm399_vm3, %v20065_v18  ;;  %v14793_v32 = vpop.f32.mrf.mxu0  ;;  %15006 = vmatprep.mubr.msk.f32.mxu0 %vm399_vm3, %v19823_v20 }
 0x548   : > { %v14843_v49 = vpop.f32.mrf.mxu1  ;;  %15056 = vmatprep.mubr.msk.f32.mxu1 %vm399_vm3, %v20071_v55 }
 0x549   : > { %v20247_v24 = vadd.f32 %v14843_v49, %v14793_v32  ;;  %v20257_v47 = vpop.f32.mrf.mxu0  ;;  %v20341_v32 = vld [vmem:[#allocation3 + $0x211] sm:$0xff]  ;;  %v10453_v49 = vld [vmem:[#allocation3 + $0x47] sm:$0xff] }
 0x54a   : > { %15007 = vmatmul.mubr.msk.f32.gmra.mxu0 %vm399_vm3, %v19834_v26  ;;  %v20259_v38 = vpop.f32.mrf.mxu1  ;;  %22088 = vst [vmem:[#allocation46_spill] sm:$0xff] %v20341_v32 }
 0x54b   : > { %15057 = vmatmul.mubr.msk.f32.gmra.mxu1 %vm399_vm3, %v20077_v57  ;;  %15009 = vmatprep.mubr.msk.f32.mxu0 %vm399_vm3, %v19840_v11 }
 0x54c   : > { %15059 = vmatprep.mubr.msk.f32.mxu1 %vm399_vm3, %v20083_v1 }
 0x54e   : > { %15010 = vmatmul.mubr.msk.f32.gmra.mxu0 %vm399_vm3, %v19851_v45 }
 0x54f   : > { %15060 = vmatmul.mubr.msk.f32.gmra.mxu1 %vm399_vm3, %v20089_v4  ;;  %v14796_v20 = vpop.f32.mrf.mxu0  ;;  %15012 = vmatprep.mubr.msk.f32.mxu0 %vm399_vm3, %v19858_v48 }
 0x550   : > { %v14846_v26 = vpop.f32.mrf.mxu1  ;;  %15062 = vmatprep.mubr.msk.f32.mxu1 %vm399_vm3, %v20095_v25 }
 0x551   : > { %v20269_v11 = vadd.f32 %v14846_v26, %v14796_v20  ;;  %v20279_v45 = vpop.f32.mrf.mxu0  ;;  %v10839_v20 = vld [vmem:[#allocation3 + $0x48] sm:$0xff] }
 0x552   : > { %15013 = vmatmul.mubr.msk.f32.gmra.mxu0 %vm399_vm3, %v19869_v44  ;;  %v20281_v48 = vpop.f32.mrf.mxu1  ;;  %v10454_v26 = vld [vmem:[#allocation3 + $0x4f] sm:$0xff] }
 0x553   : > { %15063 = vmatmul.mubr.msk.f32.gmra.mxu1 %vm399_vm3, %v20101_v13  ;;  %15015 = vmatprep.mubr.msk.f32.mxu0 %vm399_vm3, %v19876_v35 }
 0x554   : > { %15065 = vmatprep.mubr.msk.f32.mxu1 %vm399_vm3, %v20107_v34 }
 0x556   : > { %15016 = vmatmul.mubr.msk.f32.gmra.mxu0 %vm399_vm3, %v19887_v23 }
 0x557   : > { %15066 = vmatmul.mubr.msk.f32.gmra.mxu1 %vm399_vm3, %v20113_v8  ;;  %v14799_v44 = vpop.f32.mrf.mxu0  ;;  %15018 = vmatprep.mubr.msk.f32.mxu0 %vm399_vm3, %v19894_v39  ;;  %v22086_v8 = vld [vmem:[#allocation53_spill] sm:$0xff] }
 0x558   : > { %v14849_v28 = vpop.f32.mrf.mxu1  ;;  %15068 = vmatprep.mubr.msk.f32.mxu1 %vm399_vm3, %v20119_v59  ;;  %v10848_v59 = vld [vmem:[#allocation3 + $0xd0] sm:$0xff] }
 0x559   : > { %v20291_v35 = vadd.f32 %v14849_v28, %v14799_v44  ;;  %v20301_v23 = vpop.f32.mrf.mxu0  ;;  %v10840_v44 = vld [vmem:[#allocation3 + $0x50] sm:$0xff]  ;;  %v10455_v28 = vld [vmem:[#allocation3 + $0x67] sm:$0xff] }
 0x55a   : > { %15019 = vmatmul.mubr.msk.f32.gmra.mxu0 %vm399_vm3, %v19905_v52  ;;  %v20303_v39 = vpop.f32.mrf.mxu1 }
 0x55b   : > { %15069 = vmatmul.mubr.msk.f32.gmra.mxu1 %vm399_vm3, %v20125_v19  ;;  %15021 = vmatprep.mubr.msk.f32.mxu0 %vm399_vm3, %v19912_v17  ;;  %v20329_v19 = vld [vmem:[#allocation3 + $0x208] sm:$0xff] }
 0x55c   : > { %15071 = vmatprep.mubr.msk.f32.mxu1 %vm399_vm3, %v20131_v14  ;;  %v20331_v14 = vld [vmem:[#allocation3 + $0x209] sm:$0xff] }
 0x55d   : > { %22087 = vst [vmem:[#allocation83_spill] sm:$0xff] %v20331_v14 }
 0x55e   : > { %15022 = vmatmul.mubr.msk.f32.gmra.mxu0 %vm399_vm3, %v19923_v9 }
 0x55f   : > { %15072 = vmatmul.mubr.msk.f32.gmra.mxu1 %vm399_vm3, %v20137_v51  ;;  %v14802_v52 = vpop.f32.mrf.mxu0  ;;  %15024 = vmatprep.mubr.msk.f32.mxu0 %vm399_vm3, %v19930_v27 }
 0x560   : > { %v14852_v50 = vpop.f32.mrf.mxu1  ;;  %15074 = vmatprep.mubr.msk.f32.mxu1 %vm399_vm3, %v20143_v5 }
 0x561   : > { %v20313_v46 = vadd.f32 %v14852_v50, %v14802_v52  ;;  %v8478_v29 = vpop.f32.mrf.mxu0 }
 0x562   : > { %v8799_v41 = vpop.f32.mrf.mxu1  ;;  %15025 = vmatmul.mubr.msk.f32.gmra.mxu0 %vm399_vm3, %v19941_v6 }
 0x563   : > { %v20315_v22 = vadd.f32 %v8799_v41, %v8478_v29  ;;  %15075 = vmatmul.mubr.msk.f32.gmra.mxu1 %vm399_vm3, %v20149_v62  ;;  %15027 = vmatprep.mubr.msk.f32.mxu0 %vm399_vm3, %v19947_v30  ;;  %v10841_v29 = vld [vmem:[#allocation3 + $0x68] sm:$0xff] }
 0x564   : > { %15077 = vmatprep.mubr.msk.f32.mxu1 %vm399_vm3, %v20155_v33 }
 0x566   : > { %15028 = vmatmul.mubr.msk.f32.gmra.mxu0 %vm399_vm3, %v22086_v8 }
 0x567   : > { %15078 = vmatmul.mubr.msk.f32.gmra.mxu1 %vm399_vm3, %v20163_v61  ;;  %v14805_v51 = vpop.f32.mrf.mxu0  ;;  %15030 = vmatprep.mubr.msk.f32.mxu0 %vm399_vm3, %v20329_v19 }
 0x568   : > { %v14855_v5 = vpop.f32.mrf.mxu1  ;;  %15080 = vmatprep.mubr.msk.f32.mxu1 %vm399_vm3, %v20331_v14 }
 0x569   : > { %v20337_v62 = vadd.f32 %v14855_v5, %v14805_v51  ;;  %v8488_v33 = vpop.f32.mrf.mxu0 }
 0x56a   : > { %v8809_v63 = vpop.f32.mrf.mxu1  ;;  %15031 = vmatmul.mubr.msk.f32.gmra.mxu0 %vm399_vm3, %v20339_v53 }
 0x56b   : > { %v20343_v61 = vadd.f32 %v8809_v63, %v8488_v33  ;;  %15081 = vmatmul.mubr.msk.f32.gmra.mxu1 %vm399_vm3, %v20341_v32  ;;  %15085 = vmatprep.mubr.msk.f32.mxu0 %vm399_vm3, %v10453_v49  ;;  %v10456_v33 = vld [vmem:[#allocation3 + $0x6f] sm:$0xff] }
 0x56c   : > { %15135 = vmatprep.mubr.msk.f32.mxu1 %vm399_vm3, %v10839_v20  ;;  %v10842_v63 = vld [vmem:[#allocation3 + $0x70] sm:$0xff]  ;;  %v10843_v20 = vld [vmem:[#allocation3 + $0x88] sm:$0xff] }
 0x56e   : > { %15086 = vmatmul.mubr.msk.f32.vlgmr.msra.gmra.mxu0 %vm399_vm3, %v10454_v26  ;;  %v10458_v26 = vld [vmem:[#allocation3 + $0x8f] sm:$0xff] }
 0x56f   : > { %15136 = vmatmul.mubr.msk.f32.vlgmr.msra.gmra.mxu1 %vm399_vm3, %v10840_v44  ;;  %15184 = vmatpush3.msra.mxu0 %v20180_v12  ;;  %v14808_v52 = vpop.f32.mrf.mxu0  ;;  %v10457_v12 = vld [vmem:[#allocation3 + $0x87] sm:$0xff]  ;;  %v10844_v44 = vld [vmem:[#allocation3 + $0x90] sm:$0xff] }
 0x570   : > { %v14858_v50 = vpop.f32.mrf.mxu1  ;;  %15088 = vmatprep.mubr.msk.f32.mxu0 %vm399_vm3, %v10455_v28  ;;  %15138 = vmatprep.mubr.msk.f32.mxu1 %vm399_vm3, %v10841_v29  ;;  %v10459_v28 = vld [vmem:[#allocation3 + $0xa7] sm:$0xff] }
 0x571   : > { %v20355_v41 = vadd.f32 %v14858_v50, %v14808_v52  ;;  %v8498_v51 = vpop.f32.mrf.mxu0  ;;  %v10845_v52 = vld [vmem:[#allocation3 + $0xa8] sm:$0xff] }
 0x572   : > { %v8819_v5 = vpop.f32.mrf.mxu1  ;;  %15089 = vmatmul.mubr.msk.f32.gmra.mxu0 %vm399_vm3, %v10456_v33 }
 0x573   : > { %v20358_v49 = vadd.f32 %v8819_v5, %v8498_v51  ;;  %15139 = vmatmul.mubr.msk.f32.gmra.mxu1 %vm399_vm3, %v10842_v63  ;;  %15091 = vmatprep.mubr.msk.f32.mxu0 %vm399_vm3, %v10457_v12  ;;  %v10460_v63 = vld [vmem:[#allocation3 + $0xaf] sm:$0xff] }
 0x574   : > { %15141 = vmatprep.mubr.msk.f32.mxu1 %vm399_vm3, %v10843_v20  ;;  %v10846_v12 = vld [vmem:[#allocation3 + $0xb0] sm:$0xff] }
 0x576   : > { %15092 = vmatmul.mubr.msk.f32.gmra.mxu0 %vm399_vm3, %v10458_v26  ;;  %v10461_v26 = vld [vmem:[#allocation3 + $0xc7] sm:$0xff] }
 0x577   : > { %15142 = vmatmul.mubr.msk.f32.gmra.mxu1 %vm399_vm3, %v10844_v44  ;;  %v14811_v50 = vpop.f32.mrf.mxu0  ;;  %15094 = vmatprep.mubr.msk.f32.mxu0 %vm399_vm3, %v10459_v28  ;;  %v10847_v44 = vld [vmem:[#allocation3 + $0xc8] sm:$0xff] }
 0x578   : > { %v14861_v29 = vpop.f32.mrf.mxu1  ;;  %15144 = vmatprep.mubr.msk.f32.mxu1 %vm399_vm3, %v10845_v52 }
 0x579   : > { %v20368_v51 = vadd.f32 %v14861_v29, %v14811_v50  ;;  %v8508_v5 = vpop.f32.mrf.mxu0  ;;  %v10462_v29 = vld [vmem:[#allocation3 + $0xcf] sm:$0xff] }
 0x57a   : > { %v8829_v33 = vpop.f32.mrf.mxu1  ;;  %15095 = vmatmul.mubr.msk.f32.gmra.mxu0 %vm399_vm3, %v10460_v63  ;;  %v10849_v63 = vld [vmem:[#allocation3 + $0xe8] sm:$0xff] }
 0x57b   : > { %v20370_v20 = vadd.f32 %v8829_v33, %v8508_v5  ;;  %15145 = vmatmul.mubr.msk.f32.gmra.mxu1 %vm399_vm3, %v10846_v12  ;;  %v14814_v32 = vpop.f32.mrf.mxu0  ;;  %15097 = vmatprep.mubr.msk.f32.mxu0 %vm399_vm3, %v10461_v26  ;;  %v10463_v33 = vld [vmem:[#allocation3 + $0xe7] sm:$0xff]  ;;  %v10464_v12 = vld [vmem:[#allocation3 + $0xef] sm:$0xff] }
 0x57c   : > { %v14864_v14 = vpop.f32.mrf.mxu1  ;;  %15147 = vmatprep.mubr.msk.f32.mxu1 %vm399_vm3, %v10847_v44  ;;  %v10850_v26 = vld [vmem:[#allocation3 + $0xf0] sm:$0xff] }
 0x57d   : > { %v20376_v28 = vadd.f32 %v14864_v14, %v14814_v32  ;;  %v8518_v52 = vpop.f32.mrf.mxu0  ;;  %v10465_v14 = vld [vmem:[#allocation3 + $0x107] sm:$0xff] }
 0x57e   : > { %v8839_v50 = vpop.f32.mrf.mxu1  ;;  %15098 = vmatmul.mubr.msk.f32.gmra.mxu0 %vm399_vm3, %v10462_v29  ;;  %v10851_v32 = vld [vmem:[#allocation3 + $0x108] sm:$0xff] }
 0x57f   : > { %v20378_v5 = vadd.f32 %v8839_v50, %v8518_v52  ;;  %15148 = vmatmul.mubr.msk.f32.gmra.mxu1 %vm399_vm3, %v10848_v59  ;;  %15100 = vmatprep.mubr.msk.f32.mxu0 %vm399_vm3, %v10463_v33  ;;  %v10466_v33 = vld [vmem:[#allocation3 + $0x10f] sm:$0xff] }
 0x580   : > { %15150 = vmatprep.mubr.msk.f32.mxu1 %vm399_vm3, %v10849_v63  ;;  %v10852_v63 = vld [vmem:[#allocation3 + $0x110] sm:$0xff] }
 0x581   : > { %22089 = vst [vmem:[#allocation116_spill] sm:$0xff] %v20378_v5 }
 0x582   : > { %15101 = vmatmul.mubr.msk.f32.gmra.mxu0 %vm399_vm3, %v10464_v12  ;;  %v10467_v12 = vld [vmem:[#allocation3 + $0x127] sm:$0xff] }
 0x583   : > { %15151 = vmatmul.mubr.msk.f32.gmra.mxu1 %vm399_vm3, %v10850_v26  ;;  %v14817_v44 = vpop.f32.mrf.mxu0  ;;  %15103 = vmatprep.mubr.msk.f32.mxu0 %vm399_vm3, %v10465_v14  ;;  %v10853_v26 = vld [vmem:[#allocation3 + $0x128] sm:$0xff] }
 0x584   : > { %v14867_v52 = vpop.f32.mrf.mxu1  ;;  %15153 = vmatprep.mubr.msk.f32.mxu1 %vm399_vm3, %v10851_v32  ;;  %v10468_v14 = vld [vmem:[#allocation3 + $0x12f] sm:$0xff] }
 0x585   : > { %v20388_v59 = vadd.f32 %v14867_v52, %v14817_v44  ;;  %v8528_v50 = vpop.f32.mrf.mxu0  ;;  %v10854_v32 = vld [vmem:[#allocation3 + $0x130] sm:$0xff]  ;;  %v10469_v44 = vld [vmem:[#allocation3 + $0x147] sm:$0xff] }
 0x586   : > { %v8849_v29 = vpop.f32.mrf.mxu1  ;;  %15104 = vmatmul.mubr.msk.f32.gmra.mxu0 %vm399_vm3, %v10466_v33  ;;  %v10855_v52 = vld [vmem:[#allocation3 + $0x148] sm:$0xff] }
 0x587   : > { %22090 = vst [vmem:[#allocation107_spill] sm:$0xff] %v20388_v59  ;;  %v20390_v5 = vadd.f32 %v8849_v29, %v8528_v50  ;;  %15154 = vmatmul.mubr.msk.f32.gmra.mxu1 %vm399_vm3, %v10852_v63  ;;  %15106 = vmatprep.mubr.msk.f32.mxu0 %vm399_vm3, %v10467_v12 }
 0x588   : > { %15156 = vmatprep.mubr.msk.f32.mxu1 %vm399_vm3, %v10853_v26  ;;  %v10856_v26 = vld [vmem:[#allocation3 + $0x150] sm:$0xff] }
 0x589   : > { %22091 = vst [vmem:[#allocation117_spill] sm:$0xff] %v20390_v5  ;;  %v10470_v5 = vld [vmem:[#allocation3 + $0x14f] sm:$0xff] }
 0x58a   : > { %15107 = vmatmul.mubr.msk.f32.gmra.mxu0 %vm399_vm3, %v10468_v14  ;;  %v10471_v14 = vld [vmem:[#allocation3 + $0x167] sm:$0xff] }
 0x58b   : > { %15157 = vmatmul.mubr.msk.f32.gmra.mxu1 %vm399_vm3, %v10854_v32  ;;  %v14820_v50 = vpop.f32.mrf.mxu0  ;;  %15109 = vmatprep.mubr.msk.f32.mxu0 %vm399_vm3, %v10469_v44  ;;  %v10857_v32 = vld [vmem:[#allocation3 + $0x168] sm:$0xff] }
 0x58c   : > { %v14870_v29 = vpop.f32.mrf.mxu1  ;;  %15159 = vmatprep.mubr.msk.f32.mxu1 %vm399_vm3, %v10855_v52  ;;  %v10472_v44 = vld [vmem:[#allocation3 + $0x16f] sm:$0xff] }
 0x58d   : > { %v20400_v33 = vadd.f32 %v14870_v29, %v14820_v50  ;;  %v8538_v63 = vpop.f32.mrf.mxu0  ;;  %v10858_v52 = vld [vmem:[#allocation3 + $0x170] sm:$0xff]  ;;  %v10473_v50 = vld [vmem:[#allocation3 + $0x187] sm:$0xff] }
 0x58e   : > { %v8859_v12 = vpop.f32.mrf.mxu1  ;;  %15110 = vmatmul.mubr.msk.f32.gmra.mxu0 %vm399_vm3, %v10470_v5  ;;  %v10859_v29 = vld [vmem:[#allocation3 + $0x188] sm:$0xff] }
 0x58f   : > { %22092 = vst [vmem:[#allocation57_spill] sm:$0xff] %v20400_v33  ;;  %v20402_v59 = vadd.f32 %v8859_v12, %v8538_v63  ;;  %15160 = vmatmul.mubr.msk.f32.gmra.mxu1 %vm399_vm3, %v10856_v26  ;;  %15112 = vmatprep.mubr.msk.f32.mxu0 %vm399_vm3, %v10471_v14 }
 0x590   : > { %15162 = vmatprep.mubr.msk.f32.mxu1 %vm399_vm3, %v10857_v32  ;;  %v10860_v32 = vld [vmem:[#allocation3 + $0x190] sm:$0xff] }
 0x591   : > { %22093 = vst [vmem:[#allocation99_spill] sm:$0xff] %v20402_v59  ;;  %v10474_v59 = vld [vmem:[#allocation3 + $0x18f] sm:$0xff] }
 0x592   : > { %15113 = vmatmul.mubr.msk.f32.gmra.mxu0 %vm399_vm3, %v10472_v44  ;;  %v22094_v44 = vld [vmem:[#allocation80_spill] sm:$0xff] }
 0x593   : > { %15163 = vmatmul.mubr.msk.f32.gmra.mxu1 %vm399_vm3, %v10858_v52  ;;  %v14823_v63 = vpop.f32.mrf.mxu0  ;;  %15115 = vmatprep.mubr.msk.f32.mxu0 %vm399_vm3, %v10473_v50 }
 0x594   : > { %v14873_v12 = vpop.f32.mrf.mxu1  ;;  %15165 = vmatprep.mubr.msk.f32.mxu1 %vm399_vm3, %v10859_v29  ;;  %v22095_v29 = vld [vmem:[#allocation44_spill] sm:$0xff] }
 0x595   : > { %v20412_v5 = vadd.f32 %v14873_v12, %v14823_v63  ;;  %v8548_v26 = vpop.f32.mrf.mxu0 }
 0x596   : > { %v8869_v14 = vpop.f32.mrf.mxu1  ;;  %15116 = vmatmul.mubr.msk.f32.gmra.mxu0 %vm399_vm3, %v10474_v59 }
 0x597   : > { %v20414_v33 = vadd.f32 %v8869_v14, %v8548_v26  ;;  %15166 = vmatmul.mubr.msk.f32.gmra.mxu1 %vm399_vm3, %v10860_v32  ;;  %15118 = vmatprep.mubr.msk.f32.mxu0 %vm399_vm3, %v19914_v3  ;;  %v22098_v26 = vld [vmem:[#allocation95_spill] sm:$0xff]  ;;  %v22099_v32 = vld [vmem:[#allocation114_spill] sm:$0xff] }
 0x598   : > { %15168 = vmatprep.mubr.msk.f32.mxu1 %vm399_vm3, %v19912_v17  ;;  %v22096_v17 = vld [vmem:[#allocation108_spill] sm:$0xff] }
 0x59a   : > { %15119 = vmatmul.mubr.msk.f32.gmra.mxu0 %vm399_vm3, %v22094_v44  ;;  %v10483_v44 = vld [vmem:[#allocation3 + $0x227] sm:$0xff] }
 0x59b   : > { %15169 = vmatmul.mubr.msk.f32.gmra.mxu1 %vm399_vm3, %v19923_v9  ;;  %v14826_v52 = vpop.f32.mrf.mxu0  ;;  %15121 = vmatprep.mubr.msk.f32.mxu0 %vm399_vm3, %v22095_v29  ;;  %v22097_v9 = vld [vmem:[#allocation81_spill] sm:$0xff] }
 0x59c   : > { %v14876_v50 = vpop.f32.mrf.mxu1  ;;  %15171 = vmatprep.mubr.msk.f32.mxu1 %vm399_vm3, %v19930_v27 }
 0x59d   : > { %v20430_v59 = vadd.f32 %v14876_v50, %v14826_v52  ;;  %v8558_v3 = vpop.f32.mrf.mxu0  ;;  %v10869_v52 = vld [vmem:[#allocation3 + $0x228] sm:$0xff] }
 0x59e   : > { %v8879_v63 = vpop.f32.mrf.mxu1  ;;  %15122 = vmatmul.mubr.msk.f32.gmra.mxu0 %vm399_vm3, %v22096_v17 }
 0x59f   : > { %v20432_v12 = vadd.f32 %v8879_v63, %v8558_v3  ;;  %15172 = vmatmul.mubr.msk.f32.gmra.mxu1 %vm399_vm3, %v19941_v6  ;;  %15124 = vmatprep.mubr.msk.f32.mxu0 %vm399_vm3, %v22097_v9 }
 0x5a0   : > { %15174 = vmatprep.mubr.msk.f32.mxu1 %vm399_vm3, %v19947_v30 }
 0x5a2   : > { %15125 = vmatmul.mubr.msk.f32.gmra.mxu0 %vm399_vm3, %v22098_v26 }
 0x5a3   : > { %15175 = vmatmul.mubr.msk.f32.gmra.mxu1 %vm399_vm3, %v22086_v8  ;;  %v14829_v27 = vpop.f32.mrf.mxu0  ;;  %15127 = vmatprep.mubr.msk.f32.mxu0 %vm399_vm3, %v22099_v32  ;;  %v10484_v8 = vld [vmem:[#allocation3 + $0x22f] sm:$0xff]  ;;  %v22100_v32 = vld [vmem:[#allocation112_spill] sm:$0xff] }
 0x5a4   : > { %v14879_v14 = vpop.f32.mrf.mxu1  ;;  %15177 = vmatprep.mubr.msk.f32.mxu1 %vm399_vm3, %v20329_v19  ;;  %v10870_v19 = vld [vmem:[#allocation3 + $0x230] sm:$0xff] }
 0x5a5   : > { %v20450_v6 = vadd.f32 %v14879_v14, %v14829_v27  ;;  %v8568_v50 = vpop.f32.mrf.mxu0  ;;  %v8750_v14 = vadd.f32 %v20215_v0, %v20213_v15 }
 0x5a6   : > { %v8889_v30 = vpop.f32.mrf.mxu1  ;;  %15128 = vmatmul.mubr.msk.f32.gmra.mxu0 %vm399_vm3, %v20165_v43 }
 0x5a7   : > { %v20452_v29 = vadd.f32 %v8889_v30, %v8568_v50  ;;  %15178 = vmatmul.mubr.msk.f32.gmra.mxu1 %vm399_vm3, %v20339_v53  ;;  %15130 = vmatprep.mubr.msk.f32.mxu0 %vm399_vm3, %v10483_v44 }
 0x5a8   : > { %15180 = vmatprep.mubr.msk.f32.mxu1 %vm399_vm3, %v10869_v52 }
 0x5aa   : > { %v14832_v3 = vpop.f32.mrf.mxu0  ;;  %15131 = vmatmul.mubr.msk.f32.gmra.mxu0 %vm399_vm3, %v10484_v8 }
 0x5ab   : > { %v14882_v63 = vpop.f32.mrf.mxu1  ;;  %15181 = vmatmul.mubr.msk.f32.gmra.mxu1 %vm399_vm3, %v10870_v19  ;;  %15185 = vmatprep.mubr.msk.f32.mxu0 %vm399_vm3, %v19997_v54 }
 0x5ac   : > { %v20462_v17 = vadd.f32 %v14882_v63, %v14832_v3  ;;  %v8578_v43 = vpop.f32.mrf.mxu0 }
 0x5ad   : > { %v8899_v9 = vpop.f32.mrf.mxu1 }
 0x5ae   : > { %v20466_v53 = vadd.f32 %v8899_v9, %v8578_v43  ;;  %v14887_v26 = vpop.f32.mrf.mxu0  ;;  %15186 = vmatmul.mubr.msk.f32.vlgmr.msra.gmra.mxu0 %vm399_vm3, %v20003_v2  ;;  %v8760_v2 = vadd.f32 %v20237_v40, %v20235_v56 }
 0x5af   : > { %v14937_v27 = vpop.f32.mrf.mxu1  ;;  %v9263_v44 = vadd.f32 %v14887_v26, %v22100_v32  ;;  %15188 = vmatprep.mubr.msk.f32.mxu0 %vm399_vm3, %v20009_v10 }
 0x5b0   : > { %v9103_v52 = vpop.f32.mrf.mxu0 }
 0x5b1   : > { %v9489_v50 = vpop.f32.mrf.mxu1  ;;  %v20475_v54 = vadd.f32 %v14937_v27, %v9263_v44  ;;  %v9262_v30 = vadd.f32 %v9103_v52, %v8750_v14 }
 0x5b2   : > { %v14890_v8 = vpop.f32.mrf.mxu0  ;;  %15189 = vmatmul.mubr.msk.f32.gmra.mxu0 %vm399_vm3, %v20017_v36  ;;  %v8770_v36 = vadd.f32 %v20259_v38, %v20257_v47 }
 0x5b3   : > { %v14940_v19 = vpop.f32.mrf.mxu1  ;;  %v20481_v3 = vadd.f32 %v9489_v50, %v9262_v30  ;;  %v9265_v15 = vadd.f32 %v14890_v8, %v20225_v58  ;;  %15191 = vmatprep.mubr.msk.f32.mxu0 %vm399_vm3, %v20023_v16 }
 0x5b4   : > { %v9113_v10 = vpop.f32.mrf.mxu0 }
 0x5b5   : > { %v9499_v0 = vpop.f32.mrf.mxu1  ;;  %v20486_v63 = vadd.f32 %v14940_v19, %v9265_v15  ;;  %v9264_v43 = vadd.f32 %v9113_v10, %v8760_v2 }
 0x5b6   : > { %v14893_v9 = vpop.f32.mrf.mxu0  ;;  %15192 = vmatmul.mubr.msk.f32.gmra.mxu0 %vm399_vm3, %v20029_v37  ;;  %v8780_v37 = vadd.f32 %v20281_v48, %v20279_v45 }
 0x5b7   : > { %v14943_v26 = vpop.f32.mrf.mxu1  ;;  %v20492_v56 = vadd.f32 %v9499_v0, %v9264_v43  ;;  %v9267_v58 = vadd.f32 %v14893_v9, %v20247_v24  ;;  %15194 = vmatprep.mubr.msk.f32.mxu0 %vm399_vm3, %v20035_v60 }
 0x5b8   : > { %v9123_v16 = vpop.f32.mrf.mxu0 }
 0x5b9   : > { %v9509_v40 = vpop.f32.mrf.mxu1  ;;  %v20497_v27 = vadd.f32 %v14943_v26, %v9267_v58  ;;  %v9266_v14 = vadd.f32 %v9123_v16, %v8770_v36 }
 0x5ba   : > { %v14896_v32 = vpop.f32.mrf.mxu0  ;;  %15195 = vmatmul.mubr.msk.f32.gmra.mxu0 %vm399_vm3, %v20041_v31  ;;  %v8790_v31 = vadd.f32 %v20303_v39, %v20301_v23 }
 0x5bb   : > { %v14946_v44 = vpop.f32.mrf.mxu1  ;;  %v20503_v47 = vadd.f32 %v9509_v40, %v9266_v14  ;;  %v9269_v24 = vadd.f32 %v14896_v32, %v20269_v11  ;;  %15197 = vmatprep.mubr.msk.f32.mxu0 %vm399_vm3, %v20047_v21 }
 0x5bc   : > { %v9133_v60 = vpop.f32.mrf.mxu0 }
 0x5bd   : > { %v9519_v38 = vpop.f32.mrf.mxu1  ;;  %v20508_v52 = vadd.f32 %v14946_v44, %v9269_v24  ;;  %v9268_v50 = vadd.f32 %v9133_v60, %v8780_v37 }
 0x5be   : > { %v14899_v30 = vpop.f32.mrf.mxu0  ;;  %15198 = vmatmul.mubr.msk.f32.gmra.mxu0 %vm399_vm3, %v20053_v7 }
 0x5bf   : > { %v14949_v8 = vpop.f32.mrf.mxu1  ;;  %v20514_v45 = vadd.f32 %v9519_v38, %v9268_v50  ;;  %v9271_v11 = vadd.f32 %v14899_v30, %v20291_v35  ;;  %15200 = vmatprep.mubr.msk.f32.mxu0 %vm399_vm3, %v20059_v42  ;;  %v11244_v38 = vld [vmem:[#allocation3 + $0x171] sm:$0xff] }
 0x5c0   : > { %v9143_v21 = vpop.f32.mrf.mxu0 }
 0x5c1   : > { %v9529_v48 = vpop.f32.mrf.mxu1  ;;  %v20519_v19 = vadd.f32 %v14949_v8, %v9271_v11  ;;  %v9270_v2 = vadd.f32 %v9143_v21, %v8790_v31  ;;  %v22101_v8 = vld [vmem:[#allocation55_spill] sm:$0xff]  ;;  %v22102_v11 = vld [vmem:[#allocation116_spill] sm:$0xff] }
 0x5c2   : > { %v14902_v15 = vpop.f32.mrf.mxu0  ;;  %15201 = vmatmul.mubr.msk.f32.gmra.mxu0 %vm399_vm3, %v20065_v18 }
 0x5c3   : > { %v14952_v10 = vpop.f32.mrf.mxu1  ;;  %v20523_v7 = vadd.f32 %v9529_v48, %v9270_v2  ;;  %v9273_v23 = vadd.f32 %v14902_v15, %v20313_v46  ;;  %15203 = vmatprep.mubr.msk.f32.mxu0 %vm399_vm3, %v20071_v55  ;;  %v11246_v48 = vld [vmem:[#allocation3 + $0x191] sm:$0xff]  ;;  %v11247_v15 = vld [vmem:[#allocation3 + $0x1a9] sm:$0xff] }
 0x5c4   : > { %v9153_v35 = vpop.f32.mrf.mxu0 }
 0x5c5   : > { %v9539_v39 = vpop.f32.mrf.mxu1  ;;  %v20528_v42 = vadd.f32 %v14952_v10, %v9273_v23  ;;  %v9272_v0 = vadd.f32 %v9153_v35, %v20315_v22  ;;  %v22103_v23 = vld [vmem:[#allocation107_spill] sm:$0xff] }
 0x5c6   : > { %v14905_v43 = vpop.f32.mrf.mxu0  ;;  %15204 = vmatmul.mubr.msk.f32.gmra.mxu0 %vm399_vm3, %v20077_v57 }
 0x5c7   : > { %v14955_v9 = vpop.f32.mrf.mxu1  ;;  %v20533_v26 = vadd.f32 %v9539_v39, %v9272_v0  ;;  %v9275_v18 = vadd.f32 %v14905_v43, %v20337_v62  ;;  %15206 = vmatprep.mubr.msk.f32.mxu0 %vm399_vm3, %v20083_v1  ;;  %v22104_v43 = vld [vmem:[#allocation117_spill] sm:$0xff] }
 0x5c8   : > { %v9163_v46 = vpop.f32.mrf.mxu0 }
 0x5c9   : > { %v9549_v55 = vpop.f32.mrf.mxu1  ;;  %v20538_v36 = vadd.f32 %v14955_v9, %v9275_v18  ;;  %v9274_v58 = vadd.f32 %v9163_v46, %v20343_v61  ;;  %v11248_v18 = vld [vmem:[#allocation3 + $0x1b1] sm:$0xff] }
 0x5ca   : > { %v14908_v16 = vpop.f32.mrf.mxu0  ;;  %15207 = vmatmul.mubr.msk.f32.gmra.mxu0 %vm399_vm3, %v20089_v4 }
 0x5cb   : > { %v14958_v22 = vpop.f32.mrf.mxu1  ;;  %v20543_v40 = vadd.f32 %v9549_v55, %v9274_v58  ;;  %v9277_v57 = vadd.f32 %v14908_v16, %v20355_v41  ;;  %15209 = vmatprep.mubr.msk.f32.mxu0 %vm399_vm3, %v20095_v25  ;;  %v11249_v58 = vld [vmem:[#allocation3 + $0x1c9] sm:$0xff] }
 0x5cc   : > { %v9173_v62 = vpop.f32.mrf.mxu0 }
 0x5cd   : > { %v9559_v1 = vpop.f32.mrf.mxu1  ;;  %v20548_v14 = vadd.f32 %v14958_v22, %v9277_v57  ;;  %v9276_v32 = vadd.f32 %v9173_v62, %v20358_v49  ;;  %v22105_v22 = vld [vmem:[#allocation57_spill] sm:$0xff] }
 0x5ce   : > { %v14911_v44 = vpop.f32.mrf.mxu0  ;;  %15210 = vmatmul.mubr.msk.f32.gmra.mxu0 %vm399_vm3, %v20101_v13 }
 0x5cf   : > { %v14961_v61 = vpop.f32.mrf.mxu1  ;;  %v20553_v37 = vadd.f32 %v9559_v1, %v9276_v32  ;;  %v9279_v4 = vadd.f32 %v14911_v44, %v20368_v51  ;;  %15212 = vmatprep.mubr.msk.f32.mxu0 %vm399_vm3, %v20107_v34  ;;  %v22106_v44 = vld [vmem:[#allocation99_spill] sm:$0xff] }
 0x5d0   : > { %v9183_v41 = vpop.f32.mrf.mxu0 }
 0x5d1   : > { %v9569_v25 = vpop.f32.mrf.mxu1  ;;  %v20558_v24 = vadd.f32 %v14961_v61, %v9279_v4  ;;  %v9278_v60 = vadd.f32 %v9183_v41, %v20370_v20  ;;  %v11250_v4 = vld [vmem:[#allocation3 + $0x1d1] sm:$0xff] }
 0x5d2   : > { %v14914_v49 = vpop.f32.mrf.mxu0  ;;  %15213 = vmatmul.mubr.msk.f32.gmra.mxu0 %vm399_vm3, %v11244_v38 }
 0x5d3   : > { %v14964_v50 = vpop.f32.mrf.mxu1  ;;  %v20562_v30 = vadd.f32 %v9569_v25, %v9278_v60  ;;  %v9281_v13 = vadd.f32 %v14914_v49, %v20376_v28  ;;  %15215 = vmatprep.mubr.msk.f32.mxu0 %vm399_vm3, %v22101_v8  ;;  %v11251_v60 = vld [vmem:[#allocation3 + $0x1e9] sm:$0xff] }
 0x5d4   : > { %v9193_v51 = vpop.f32.mrf.mxu0 }
 0x5d5   : > { %v9579_v34 = vpop.f32.mrf.mxu1  ;;  %v20567_v31 = vadd.f32 %v14964_v50, %v9281_v13  ;;  %v9280_v21 = vadd.f32 %v9193_v51, %v22102_v11 }
 0x5d6   : > { %v14917_v20 = vpop.f32.mrf.mxu0  ;;  %15216 = vmatmul.mubr.msk.f32.gmra.mxu0 %vm399_vm3, %v11246_v48 }
 0x5d7   : > { %v14967_v2 = vpop.f32.mrf.mxu1  ;;  %v20571_v10 = vadd.f32 %v9579_v34, %v9280_v21  ;;  %v9283_v35 = vadd.f32 %v14917_v20, %v22103_v23  ;;  %15218 = vmatprep.mubr.msk.f32.mxu0 %vm399_vm3, %v11247_v15  ;;  %v11252_v34 = vld [vmem:[#allocation3 + $0x1f1] sm:$0xff]  ;;  %v11255_v23 = vld [vmem:[#allocation3 + $0x229] sm:$0xff] }
 0x5d8   : > { %v9203_v28 = vpop.f32.mrf.mxu0 }
 0x5d9   : > { %v9589_v39 = vpop.f32.mrf.mxu1  ;;  %v20575_v0 = vadd.f32 %v14967_v2, %v9283_v35  ;;  %v9282_v9 = vadd.f32 %v9203_v28, %v22104_v43  ;;  %v22107_v2 = vld [vmem:[#allocation83_spill] sm:$0xff]  ;;  %v22108_v43 = vld [vmem:[#allocation46_spill] sm:$0xff] }
 0x5da   : > { %v14920_v46 = vpop.f32.mrf.mxu0  ;;  %15219 = vmatmul.mubr.msk.f32.gmra.mxu0 %vm399_vm3, %v11248_v18 }
 0x5db   : > { %v14970_v55 = vpop.f32.mrf.mxu1  ;;  %v20579_v16 = vadd.f32 %v9589_v39, %v9282_v9  ;;  %v9285_v57 = vadd.f32 %v14920_v46, %v22105_v22  ;;  %15221 = vmatprep.mubr.msk.f32.mxu0 %vm399_vm3, %v11249_v58 }
 0x5dc   : > { %v9213_v62 = vpop.f32.mrf.mxu0 }
 0x5dd   : > { %v9599_v1 = vpop.f32.mrf.mxu1  ;;  %v20583_v32 = vadd.f32 %v14970_v55, %v9285_v57  ;;  %v9284_v61 = vadd.f32 %v9213_v62, %v22106_v44 }
 0x5de   : > { %v14923_v41 = vpop.f32.mrf.mxu0  ;;  %15222 = vmatmul.mubr.msk.f32.gmra.mxu0 %vm399_vm3, %v11250_v4 }
 0x5df   : > { %v14973_v25 = vpop.f32.mrf.mxu1  ;;  %v20587_v38 = vadd.f32 %v9599_v1, %v9284_v61  ;;  %v9287_v49 = vadd.f32 %v14923_v41, %v20412_v5  ;;  %15224 = vmatprep.mubr.msk.f32.mxu0 %vm399_vm3, %v11251_v60 }
 0x5e0   : > { %v9223_v50 = vpop.f32.mrf.mxu0 }
 0x5e1   : > { %v9609_v13 = vpop.f32.mrf.mxu1  ;;  %v20591_v8 = vadd.f32 %v14973_v25, %v9287_v49  ;;  %v9286_v51 = vadd.f32 %v9223_v50, %v20414_v33 }
 0x5e2   : > { %v14926_v11 = vpop.f32.mrf.mxu0  ;;  %15225 = vmatmul.mubr.msk.f32.gmra.mxu0 %vm399_vm3, %v11252_v34 }
 0x5e3   : > { %v14976_v21 = vpop.f32.mrf.mxu1  ;;  %v20595_v48 = vadd.f32 %v9609_v13, %v9286_v51  ;;  %v9289_v20 = vadd.f32 %v14926_v11, %v20430_v59  ;;  %15227 = vmatprep.mubr.msk.f32.mxu0 %vm399_vm3, %v22107_v2  ;;  %v11256_v59 = vld [vmem:[#allocation3 + $0x231] sm:$0xff] }
 0x5e4   : > { %v9233_v5 = vpop.f32.mrf.mxu0 }
 0x5e5   : > { %v9619_v15 = vpop.f32.mrf.mxu1  ;;  %v20600_v35 = vadd.f32 %v14976_v21, %v9289_v20  ;;  %v9288_v28 = vadd.f32 %v9233_v5, %v20432_v12 }
 0x5e6   : > { %v14929_v33 = vpop.f32.mrf.mxu0  ;;  %15228 = vmatmul.mubr.msk.f32.gmra.mxu0 %vm399_vm3, %v22108_v43 }
 0x5e7   : > { %v14979_v39 = vpop.f32.mrf.mxu1  ;;  %v20605_v9 = vadd.f32 %v9619_v15, %v9288_v28  ;;  %v9291_v18 = vadd.f32 %v14929_v33, %v20450_v6  ;;  %15230 = vmatprep.mubr.msk.f32.mxu0 %vm399_vm3, %v11255_v23 }
 0x5e8   : > { %v9243_v46 = vpop.f32.mrf.mxu0 }
 0x5e9   : > { %v9629_v55 = vpop.f32.mrf.mxu1  ;;  %v20609_v58 = vadd.f32 %v14979_v39, %v9291_v18  ;;  %v9290_v22 = vadd.f32 %v9243_v46, %v20452_v29 }
 0x5ea   : > { %v14932_v57 = vpop.f32.mrf.mxu0  ;;  %15231 = vmatmul.mubr.msk.f32.gmra.mxu0 %vm399_vm3, %v11256_v59 }
 0x5eb   : > { %v14982_v12 = vpop.f32.mrf.mxu1  ;;  %v20613_v62 = vadd.f32 %v9629_v55, %v9290_v22  ;;  %v9293_v1 = vadd.f32 %v14932_v57, %v20462_v17 }
 0x5ec   : > { %v9253_v44 = vpop.f32.mrf.mxu0 }
 0x5ed   : > { %v9639_v61 = vpop.f32.mrf.mxu1  ;;  %v20616_v6 = vadd.f32 %v14982_v12, %v9293_v1  ;;  %v9292_v4 = vadd.f32 %v9253_v44, %v20466_v53 }
 0x5ee   : > { %v14987_v41 = vpop.f32.mrf.mxu0 }
 0x5ef   : > { %v15037_v25 = vpop.f32.mrf.mxu1  ;;  %v20619_v60 = vadd.f32 %v9639_v61, %v9292_v4  ;;  %v10035_v29 = vadd.f32 %v14987_v41, %v20475_v54 }
 0x5f0   : > { %v9875_v49 = vpop.f32.mrf.mxu0 }
 0x5f1   : > { %v10261_v50 = vpop.f32.mrf.mxu1  ;;  %v20622_v13 = vadd.f32 %v15037_v25, %v10035_v29  ;;  %v10034_v51 = vadd.f32 %v9875_v49, %v20481_v3 }
 0x5f2   : > { %v14990_v34 = vpop.f32.mrf.mxu0 }
 0x5f3   : > { %v15040_v17 = vpop.f32.mrf.mxu1  ;;  %v20625_v11 = vadd.f32 %v10261_v50, %v10034_v51  ;;  %v10037_v21 = vadd.f32 %v14990_v34, %v20486_v63 }
 0x5f4   : > { %v9885_v20 = vpop.f32.mrf.mxu0 }
 0x5f5   : > { %v10271_v53 = vpop.f32.mrf.mxu1  ;;  %v20628_v2 = vadd.f32 %v15040_v17, %v10037_v21  ;;  %v10036_v5 = vadd.f32 %v9885_v20, %v20492_v56 }
 0x5f6   : > { %v14993_v15 = vpop.f32.mrf.mxu0 }
 0x5f7   : > { %v15043_v54 = vpop.f32.mrf.mxu1  ;;  %v20631_v23 = vadd.f32 %v10271_v53, %v10036_v5  ;;  %v10039_v28 = vadd.f32 %v14993_v15, %v20497_v27 }
 0x5f8   : > { %v9895_v33 = vpop.f32.mrf.mxu0 }
 0x5f9   : > { %v10281_v3 = vpop.f32.mrf.mxu1  ;;  %v20634_v39 = vadd.f32 %v15043_v54, %v10039_v28  ;;  %v10038_v43 = vadd.f32 %v9895_v33, %v20503_v47 }
 0x5fa   : > { %v14996_v18 = vpop.f32.mrf.mxu0 }
 0x5fb   : > { %v15046_v63 = vpop.f32.mrf.mxu1  ;;  %v20637_v59 = vadd.f32 %v10281_v3, %v10038_v43  ;;  %v10041_v46 = vadd.f32 %v14996_v18, %v20508_v52 }
 0x5fc   : > { %v9905_v55 = vpop.f32.mrf.mxu0 }
 0x5fd   : > { %v10291_v56 = vpop.f32.mrf.mxu1  ;;  %v20640_v22 = vadd.f32 %v15046_v63, %v10041_v46  ;;  %v10040_v57 = vadd.f32 %v9905_v55, %v20514_v45 }
 0x5fe   : > { %v14999_v12 = vpop.f32.mrf.mxu0 }
 0x5ff   : > { %v15049_v27 = vpop.f32.mrf.mxu1  ;;  %v20643_v1 = vadd.f32 %v10291_v56, %v10040_v57  ;;  %v10043_v44 = vadd.f32 %v14999_v12, %v20519_v19 }
 0x600   : > { %v9915_v61 = vpop.f32.mrf.mxu0 }
 0x601   : > { %v10301_v47 = vpop.f32.mrf.mxu1  ;;  %v20646_v4 = vadd.f32 %v15049_v27, %v10043_v44  ;;  %v10042_v41 = vadd.f32 %v9915_v61, %v20523_v7 }
 0x602   : > { %v15002_v25 = vpop.f32.mrf.mxu0 }
 0x603   : > { %v15052_v52 = vpop.f32.mrf.mxu1  ;;  %v20649_v29 = vadd.f32 %v10301_v47, %v10042_v41  ;;  %v10045_v49 = vadd.f32 %v15002_v25, %v20528_v42 }
 0x604   : > { %v9925_v50 = vpop.f32.mrf.mxu0 }
 0x605   : > { %v10311_v45 = vpop.f32.mrf.mxu1  ;;  %v20652_v51 = vadd.f32 %v15052_v52, %v10045_v49  ;;  %v10044_v34 = vadd.f32 %v9925_v50, %v20533_v26 }
 0x606   : > { %v15005_v17 = vpop.f32.mrf.mxu0 }
 0x607   : > { %v15055_v19 = vpop.f32.mrf.mxu1  ;;  %v20655_v21 = vadd.f32 %v10311_v45, %v10044_v34  ;;  %v10047_v20 = vadd.f32 %v15005_v17, %v20538_v36 }
 0x608   : > { %v9935_v53 = vpop.f32.mrf.mxu0 }
 0x609   : > { %v10321_v7 = vpop.f32.mrf.mxu1  ;;  %v20658_v5 = vadd.f32 %v15055_v19, %v10047_v20  ;;  %v10046_v15 = vadd.f32 %v9935_v53, %v20543_v40 }
 0x60a   : > { %v15008_v54 = vpop.f32.mrf.mxu0 }
 0x60b   : > { %v15058_v42 = vpop.f32.mrf.mxu1  ;;  %v20661_v28 = vadd.f32 %v10321_v7, %v10046_v15  ;;  %v10049_v33 = vadd.f32 %v15008_v54, %v20548_v14 }
 0x60c   : > { %v9945_v3 = vpop.f32.mrf.mxu0 }
 0x60d   : > { %v10331_v26 = vpop.f32.mrf.mxu1  ;;  %v20664_v43 = vadd.f32 %v15058_v42, %v10049_v33  ;;  %v10048_v18 = vadd.f32 %v9945_v3, %v20553_v37 }
 0x60e   : > { %v15011_v63 = vpop.f32.mrf.mxu0 }
 0x60f   : > { %v15061_v36 = vpop.f32.mrf.mxu1  ;;  %v20667_v46 = vadd.f32 %v10331_v26, %v10048_v18  ;;  %v10051_v55 = vadd.f32 %v15011_v63, %v20558_v24 }
 0x610   : > { %v9955_v56 = vpop.f32.mrf.mxu0 }
 0x611   : > { %v20670_v40 = vpop.f32.mrf.mxu1  ;;  %v20672_v57 = vadd.f32 %v15061_v36, %v10051_v55  ;;  %v20675_v12 = vadd.f32 %v9955_v56, %v20562_v30 }
 0x612   : > { %v15014_v14 = vpop.f32.mrf.mxu0 }
 0x613   : > { %v15064_v27 = vpop.f32.mrf.mxu1  ;;  %v10053_v44 = vadd.f32 %v15014_v14, %v20567_v31 }
 0x614   : > { %v9965_v61 = vpop.f32.mrf.mxu0 }
 0x615   : > { %v10351_v37 = vpop.f32.mrf.mxu1  ;;  %v20678_v47 = vadd.f32 %v15064_v27, %v10053_v44  ;;  %v10052_v41 = vadd.f32 %v9965_v61, %v20571_v10 }
 0x616   : > { %v15017_v25 = vpop.f32.mrf.mxu0 }
 0x617   : > { %v15067_v24 = vpop.f32.mrf.mxu1  ;;  %v20681_v52 = vadd.f32 %v10351_v37, %v10052_v41  ;;  %v10055_v49 = vadd.f32 %v15017_v25, %v20575_v0 }
 0x618   : > { %v9975_v50 = vpop.f32.mrf.mxu0 }
 0x619   : > { %v10361_v45 = vpop.f32.mrf.mxu1  ;;  %v20684_v30 = vadd.f32 %v15067_v24, %v10055_v49  ;;  %v10054_v34 = vadd.f32 %v9975_v50, %v20579_v16 }
 0x61a   : > { %v15020_v17 = vpop.f32.mrf.mxu0 }
 0x61b   : > { %v15070_v31 = vpop.f32.mrf.mxu1  ;;  %v20687_v19 = vadd.f32 %v10361_v45, %v10054_v34  ;;  %v10057_v20 = vadd.f32 %v15020_v17, %v20583_v32 }
 0x61c   : > { %v9985_v53 = vpop.f32.mrf.mxu0 }
 0x61d   : > { %v10371_v10 = vpop.f32.mrf.mxu1  ;;  %v20690_v7 = vadd.f32 %v15070_v31, %v10057_v20  ;;  %v10056_v15 = vadd.f32 %v9985_v53, %v20587_v38 }
 0x61e   : > { %v15023_v54 = vpop.f32.mrf.mxu0 }
 0x61f   : > { %v15073_v0 = vpop.f32.mrf.mxu1  ;;  %v20693_v42 = vadd.f32 %v10371_v10, %v10056_v15  ;;  %v10059_v33 = vadd.f32 %v15023_v54, %v20591_v8 }
 0x620   : > { %v9995_v3 = vpop.f32.mrf.mxu0 }
 0x621   : > { %v10381_v16 = vpop.f32.mrf.mxu1  ;;  %v20696_v26 = vadd.f32 %v15073_v0, %v10059_v33  ;;  %v10058_v18 = vadd.f32 %v9995_v3, %v20595_v48 }
 0x622   : > { %v15026_v63 = vpop.f32.mrf.mxu0 }
 0x623   : > { %v15076_v32 = vpop.f32.mrf.mxu1  ;;  %v20699_v36 = vadd.f32 %v10381_v16, %v10058_v18  ;;  %v10061_v55 = vadd.f32 %v15026_v63, %v20600_v35 }
 0x624   : > { %v10005_v56 = vpop.f32.mrf.mxu0 }
 0x625   : > { %v10391_v38 = vpop.f32.mrf.mxu1  ;;  %v20702_v14 = vadd.f32 %v15076_v32, %v10061_v55  ;;  %v10060_v27 = vadd.f32 %v10005_v56, %v20605_v9 }
 0x626   : > { %v15029_v44 = vpop.f32.mrf.mxu0 }
 0x627   : > { %v15079_v8 = vpop.f32.mrf.mxu1  ;;  %v20705_v61 = vadd.f32 %v10391_v38, %v10060_v27  ;;  %v10063_v37 = vadd.f32 %v15029_v44, %v20609_v58 }
 0x628   : > { %v10015_v41 = vpop.f32.mrf.mxu0 }
 0x629   : > { %v10401_v48 = vpop.f32.mrf.mxu1  ;;  %v20708_v25 = vadd.f32 %v15079_v8, %v10063_v37  ;;  %v10062_v24 = vadd.f32 %v10015_v41, %v20613_v62 }
 0x62a   : > { %v15032_v49 = vpop.f32.mrf.mxu0 }
 0x62b   : > { %v15082_v35 = vpop.f32.mrf.mxu1  ;;  %v20711_v50 = vadd.f32 %v10401_v48, %v10062_v24  ;;  %v10065_v45 = vadd.f32 %v15032_v49, %v20616_v6 }
 0x62c   : > { %v10025_v34 = vpop.f32.mrf.mxu0 }
 0x62d   : > { %v10411_v9 = vpop.f32.mrf.mxu1  ;;  %v20714_v17 = vadd.f32 %v15082_v35, %v10065_v45  ;;  %v10064_v31 = vadd.f32 %v10025_v34, %v20619_v60 }
 0x62e   : > { %v15087_v20 = vpop.f32.mrf.mxu0 }
 0x62f   : > { %v20717_v58 = vpop.f32.mrf.mxu1  ;;  %v20719_v53 = vadd.f32 %v10411_v9, %v10064_v31  ;;  %v20722_v10 = vadd.f32 %v15087_v20, %v20622_v13 }
 0x630   : > { %v10648_v62 = vpop.f32.mrf.mxu0 }
 0x631   : > { %v20724_v15 = vpop.f32.mrf.mxu1  ;;  %v20727_v54 = vadd.f32 %v10648_v62, %v20625_v11 }
 0x632   : > { %v15090_v6 = vpop.f32.mrf.mxu0 }
 0x633   : > { %v20729_v0 = vpop.f32.mrf.mxu1  ;;  %v20732_v33 = vadd.f32 %v15090_v6, %v20628_v2 }
 0x634   : > { %v10658_v60 = vpop.f32.mrf.mxu0 }
 0x635   : > { %v20734_v3 = vpop.f32.mrf.mxu1  ;;  %v20737_v16 = vadd.f32 %v10658_v60, %v20631_v23 }
 0x636   : > { %v15093_v13 = vpop.f32.mrf.mxu0 }
 0x637   : > { %v20739_v18 = vpop.f32.mrf.mxu1  ;;  %v20742_v63 = vadd.f32 %v15093_v13, %v20634_v39 }
 0x638   : > { %v10668_v11 = vpop.f32.mrf.mxu0 }
 0x639   : > { %v20744_v32 = vpop.f32.mrf.mxu1  ;;  %v20747_v55 = vadd.f32 %v10668_v11, %v20637_v59 }
 0x63a   : > { %v15096_v2 = vpop.f32.mrf.mxu0 }
 0x63b   : > { %v20749_v56 = vpop.f32.mrf.mxu1  ;;  %v20752_v38 = vadd.f32 %v15096_v2, %v20640_v22 }
 0x63c   : > { %v10678_v23 = vpop.f32.mrf.mxu0 }
 0x63d   : > { %v20754_v27 = vpop.f32.mrf.mxu1  ;;  %v20757_v44 = vadd.f32 %v10678_v23, %v20643_v1 }
 0x63e   : > { %v15099_v39 = vpop.f32.mrf.mxu0 }
 0x63f   : > { %v20759_v8 = vpop.f32.mrf.mxu1  ;;  %v20762_v37 = vadd.f32 %v15099_v39, %v20646_v4 }
 0x640   : > { %v10688_v59 = vpop.f32.mrf.mxu0 }
 0x641   : > { %v20764_v41 = vpop.f32.mrf.mxu1  ;;  %v20767_v48 = vadd.f32 %v10688_v59, %v20649_v29 }
 0x642   : > { %v15102_v22 = vpop.f32.mrf.mxu0 }
 0x643   : > { %v20769_v24 = vpop.f32.mrf.mxu1  ;;  %v20772_v49 = vadd.f32 %v15102_v22, %v20652_v51 }
 0x644   : > { %v10698_v1 = vpop.f32.mrf.mxu0 }
 0x645   : > { %v20774_v35 = vpop.f32.mrf.mxu1  ;;  %v20777_v45 = vadd.f32 %v10698_v1, %v20655_v21 }
 0x646   : > { %v15105_v4 = vpop.f32.mrf.mxu0 }
 0x647   : > { %v20779_v34 = vpop.f32.mrf.mxu1  ;;  %v20782_v9 = vadd.f32 %v15105_v4, %v20658_v5 }
 0x648   : > { %v10708_v29 = vpop.f32.mrf.mxu0 }
 0x649   : > { %v20784_v31 = vpop.f32.mrf.mxu1  ;;  %v20787_v20 = vadd.f32 %v10708_v29, %v20661_v28 }
 0x64a   : > { %v15108_v51 = vpop.f32.mrf.mxu0 }
 0x64b   : > { %v10822_v62 = vadd.f32 %v15108_v51, %v20664_v43  ;;  %v15158_v6 = vpop.f32.mrf.mxu1 }
 0x64c   : > { %v10718_v60 = vpop.f32.mrf.mxu0 }
 0x64d   : > { %v20790_v13 = vadd.f32 %v15158_v6, %v10822_v62  ;;  %v20793_v21 = vadd.f32 %v10718_v60, %v20667_v46 }
 0x64e   : > { %v15111_v11 = vpop.f32.mrf.mxu0 }
 0x64f   : > { %v20796_v5 = vadd.f32 %v15111_v11, %v20672_v57 }
 0x650   : > { %v20798_v2 = vpop.f32.mrf.mxu0 }
 0x652   : > { %v15114_v23 = vpop.f32.mrf.mxu0 }
 0x653   : > { %v20801_v28 = vadd.f32 %v15114_v23, %v20678_v47 }
 0x654   : > { %v10738_v39 = vpop.f32.mrf.mxu0 }
 0x655   : > { %v20804_v43 = vadd.f32 %v10738_v39, %v20681_v52 }
 0x656   : > { %v15117_v59 = vpop.f32.mrf.mxu0 }
 0x657   : > { %v20807_v22 = vadd.f32 %v15117_v59, %v20684_v30  ;;  %v20836_v59 = vpop.f32.mrf.mxu1 }
 0x658   : > { %v10748_v46 = vpop.f32.mrf.mxu0 }
 0x659   : > { %v20810_v1 = vadd.f32 %v10748_v46, %v20687_v19 }
 0x65a   : > { %v15120_v57 = vpop.f32.mrf.mxu0 }
 0x65b   : > { %v20813_v4 = vadd.f32 %v15120_v57, %v20690_v7  ;;  %v20844_v57 = vpop.f32.mrf.mxu1 }
 0x65c   : > { %v10758_v29 = vpop.f32.mrf.mxu0 }
 0x65d   : > { %v20816_v47 = vadd.f32 %v10758_v29, %v20693_v42 }
 0x65e   : > { %v15123_v51 = vpop.f32.mrf.mxu0 }
 0x65f   : > { %v20819_v52 = vadd.f32 %v15123_v51, %v20696_v26  ;;  %v11194_v51 = vadd.f32 %v20717_v58, %v20722_v10 }
 0x660   : > { %v10768_v62 = vpop.f32.mrf.mxu0 }
 0x661   : > { %v20822_v30 = vadd.f32 %v10768_v62, %v20699_v36 }
 0x662   : > { %v15126_v6 = vpop.f32.mrf.mxu0 }
 0x663   : > { %v20825_v19 = vadd.f32 %v15126_v6, %v20702_v14 }
 0x664   : > { %v10778_v60 = vpop.f32.mrf.mxu0 }
 0x665   : > { %22109 = vst [vmem:[#allocation122_spill] sm:$0xff] %v20825_v19  ;;  %v20828_v7 = vadd.f32 %v10778_v60, %v20705_v61 }
 0x666   : > { %v15129_v11 = vpop.f32.mrf.mxu0 }
 0x667   : > { %22110 = vst [vmem:[#allocation49_spill] sm:$0xff] %v20828_v7  ;;  %v20831_v42 = vadd.f32 %v15129_v11, %v20708_v25 }
 0x668   : > { %v10788_v23 = vpop.f32.mrf.mxu0 }
 0x669   : > { %22111 = vst [vmem:[#allocation85_spill] sm:$0xff] %v20831_v42  ;;  %v20834_v26 = vadd.f32 %v10788_v23, %v20711_v50  ;;  %v20848_v50 = vpop.f32.mrf.mxu1  ;;  %v11196_v23 = vadd.f32 %v20729_v0, %v20732_v33 }
 0x66a   : > { %v15132_v39 = vpop.f32.mrf.mxu0 }
 0x66b   : > { %22112 = vst [vmem:[#allocation120_spill] sm:$0xff] %v20834_v26  ;;  %v20839_v36 = vadd.f32 %v15132_v39, %v20714_v17  ;;  %v20853_v17 = vld [vmem:[%s21349_s6] ss:$0 sm:$0xff] }
 0x66c   : > { %v10798_v14 = vpop.f32.mrf.mxu0 }
 0x66d   : > { %22113 = vst [vmem:[#allocation103_spill] sm:$0xff] %v20839_v36  ;;  %v20842_v46 = vadd.f32 %v10798_v14, %v20719_v53  ;;  %v20855_v53 = vpop.f32.mrf.mxu1  ;;  %v11195_v36 = vadd.f32 %v20734_v3, %v20737_v16 }
 0x66e   : > { %v15187_v61 = vpop.f32.mrf.mxu0 }
 0x66f   : > { %22114 = vst [vmem:[#allocation51_spill] sm:$0xff] %v20842_v46  ;;  %v11580_v6 = vadd.f32 %v15187_v61, %v11194_v51  ;;  %v20862_v10 = vpop.f32.mrf.mxu1  ;;  %v11193_v51 = vadd.f32 %v20724_v15, %v20727_v54  ;;  %v11197_v15 = vadd.f32 %v20744_v32, %v20747_v55  ;;  %v11199_v32 = vadd.f32 %v20754_v27, %v20757_v44 }
 0x670   : > { %v11420_v29 = vpop.f32.mrf.mxu0  ;;  %v10436_v27 = vadd.f32 %v20670_v40, %v20675_v12  ;;  %v11201_v40 = vadd.f32 %v20764_v41, %v20767_v48  ;;  %v11204_v12 = vadd.f32 %v20769_v24, %v20772_v49  ;;  %v20937_v41 = vadd.f32 %v20836_v59, %v20793_v21 }
 0x671   : > { %v20860_v39 = vadd.f32 %v20853_v17, %v11580_v6  ;;  %v20869_v42 = vpop.f32.mrf.mxu1  ;;  %v11579_v0 = vadd.f32 %v11420_v29, %v11193_v51 }
 0x672   : > { %v15190_v25 = vpop.f32.mrf.mxu0 }
 0x673   : > { %v11582_v14 = vadd.f32 %v15190_v25, %v11196_v23  ;;  %v11651_v46 = vmin.f32 %v20860_v39, 20.0  ;;  %v11198_v25 = vadd.f32 %v20739_v18, %v20742_v63  ;;  %v11134_v54 = vpop.f32.mrf.mxu1  ;;  %v20881_v3 = vadd.f32 %v20853_v17, %v11579_v0 }
 0x674   : > { %v11430_v62 = vpop.f32.mrf.mxu0  ;;  %v11200_v18 = vadd.f32 %v20749_v56, %v20752_v38 }
 0x675   : > { %v20872_v33 = vadd.f32 %v20853_v17, %v11582_v14  ;;  %v11581_v6 = vadd.f32 %v11430_v62, %v11195_v36  ;;  %v11684_v23 = vmul.f32 1.442695, %v11651_v46  ;;  %v15170_v46 = vpop.f32.mrf.mxu1  ;;  %v11650_v62 = vmin.f32 %v20881_v3, 20.0 }
 0x676   : > { %v15193_v60 = vpop.f32.mrf.mxu0 }
 0x677   : > { %v11653_v16 = vmin.f32 %v20872_v33, 20.0  ;;  %v11584_v29 = vadd.f32 %v15193_v60, %v11198_v25  ;;  %v20885_v14 = vadd.f32 %v20853_v17, %v11581_v6  ;;  %15502 = vpow2.f32 %v11684_v23 }
 0x678   : > { %v11440_v11 = vpop.f32.mrf.mxu0  ;;  %v11682_v23 = vmul.f32 1.442695, %v11650_v62 }
 0x679   : > { %v11583_v63 = vadd.f32 %v11440_v11, %v11197_v15  ;;  %v11688_v51 = vmul.f32 1.442695, %v11653_v16  ;;  %v20897_v60 = vadd.f32 %v20853_v17, %v11584_v29  ;;  %v11652_v6 = vmin.f32 %v20885_v14, 20.0  ;;  %v11144_v11 = vpop.f32.mrf.mxu1 }
 0x67a   : > { %v15196_v58 = vpop.f32.mrf.mxu0  ;;  %v10823_v29 = vadd.f32 %v20798_v2, %v10436_v27 }
 0x67b   : > { %v11586_v0 = vadd.f32 %v15196_v58, %v11200_v18  ;;  %v20903_v56 = vadd.f32 %v20853_v17, %v11583_v63  ;;  %15504 = vpow2.f32 %v11688_v51  ;;  %v11655_v15 = vmin.f32 %v20897_v60, 20.0  ;;  %v15173_v24 = vpop.f32.mrf.mxu1 }
 0x67c   : > { %v11450_v61 = vpop.f32.mrf.mxu0  ;;  %v11202_v58 = vadd.f32 %v20759_v8, %v20762_v37  ;;  %v11686_v18 = vmul.f32 1.442695, %v11652_v6  ;;  %v11203_v8 = vadd.f32 %v20774_v35, %v20777_v45  ;;  %v11206_v37 = vadd.f32 %v20779_v34, %v20782_v9 }
 0x67d   : > { %v11585_v38 = vadd.f32 %v11450_v61, %v11199_v32  ;;  %v20909_v16 = vadd.f32 %v20853_v17, %v11586_v0  ;;  %v11654_v32 = vmin.f32 %v20903_v56, 20.0  ;;  %15506 = vpow2.f32 %v11682_v23  ;;  %v11154_v6 = vpop.f32.mrf.mxu1 }
 0x67e   : > { %v15199_v26 = vpop.f32.mrf.mxu0  ;;  %v11692_v49 = vmul.f32 1.442695, %v11655_v15  ;;  %v11210_v35 = vadd.f32 %v20844_v57, %v20796_v5  ;;  %v11209_v45 = vadd.f32 %v20848_v50, %v10823_v29  ;;  %15508 = vpow2.f32 %v11686_v18 }
 0x67f   : > { %22115 = vst [vmem:[#allocation125_spill] sm:$0xff] %v20909_v16  ;;  %v20925_v62 = vadd.f32 %v20853_v17, %v11585_v38  ;;  %v11657_v2 = vmin.f32 %v20909_v16, 20.0  ;;  %v11588_v51 = vadd.f32 %v15199_v26, %v11202_v58  ;;  %v11690_v21 = vmul.f32 1.442695, %v11654_v32  ;;  %v15176_v29 = vpop.f32.mrf.mxu1 }
 0x680   : > { %v11460_v7 = vpop.f32.mrf.mxu0  ;;  %v11214_v26 = vadd.f32 %v20869_v42, %v20807_v22  ;;  %v20951_v5 = vadd.f32 %v11134_v54, %v20810_v1  ;;  %v20954_v57 = vadd.f32 %v15170_v46, %v20813_v4  ;;  %15510 = vpow2.f32 %v11692_v49 }
 0x681   : > { %22116 = vst [vmem:[#allocation54_spill] sm:$0xff] %v20925_v62  ;;  %v11587_v34 = vadd.f32 %v11460_v7, %v11201_v40  ;;  %v11656_v59 = vmin.f32 %v20925_v62, 20.0  ;;  %v20967_v54 = vadd.f32 %v11144_v11, %v20816_v47  ;;  %15512 = vpow2.f32 %v11690_v21  ;;  %v22121_v21 = vld [vmem:[#allocation122_spill] sm:$0xff] }
 0x682   : > { %v20876_v19 = vpop.f32.mrf.mxu0  ;;  %v20978_v58 = vadd.f32 %v15173_v24, %v20819_v52 }
 0x683   : > { %v11694_v38 = vmul.f32 1.442695, %v11656_v59  ;;  %v21000_v59 = vadd.f32 %v15176_v29, %v22121_v21 }
 0x684   : > { %v20887_v36 = vpop.f32.mrf.mxu0  ;;  %v15503_v0 = vpop.eup %15502 }
 0x685   : > { %v11747_v46 = vadd.f32 2.0, %v15503_v0  ;;  %v11589_v27 = vadd.f32 %v20887_v36, %v11203_v8 }
 0x686   : > { %v20893_v55 = vpop.f32.mrf.mxu0 }
 0x687   : > { %v20989_v52 = vmul.f32 %v15503_v0, %v11747_v46  ;;  %v20993_v49 = vadd.f32 %v20853_v17, %v11589_v27 }
 0x688   : > { %v20900_v25 = vpop.f32.mrf.mxu0  ;;  %v15505_v18 = vpop.eup %15504 }
 0x689   : > { %22120 = vst [vmem:[#allocation60_spill] sm:$0xff] %v20993_v49 }
 0x68a   : > { %v15208_v44 = vpop.f32.mrf.mxu0 }
 0x68b   : > { %v20915_v61 = vadd.f32 %v15208_v44, %v20790_v13  ;;  %v20933_v13 = vadd.f32 %v20784_v31, %v20787_v20  ;;  %v11212_v31 = vadd.f32 %v20855_v53, %v20801_v28  ;;  %v11211_v20 = vadd.f32 %v20862_v10, %v20804_v43 }
 0x68c   : > { %v20917_v63 = vpop.f32.mrf.mxu0  ;;  %v11696_v28 = vmul.f32 1.442695, %v11657_v2  ;;  %v20957_v43 = vadd.f32 %v20853_v17, %v11588_v51  ;;  %v11590_v53 = vadd.f32 %v20876_v19, %v11204_v12  ;;  %v20961_v10 = vadd.f32 %v20853_v17, %v11587_v34 }
 0x68d   : > { %v11592_v2 = vadd.f32 %v20893_v55, %v11206_v37  ;;  %v11749_v34 = vadd.f32 2.0, %v15505_v18  ;;  %v22122_v55 = vld [vmem:[#allocation49_spill] sm:$0xff]  ;;  %v11591_v46 = vadd.f32 %v20900_v25, %v20933_v13 }
 0x68e   : > { %v15211_v48 = vpop.f32.mrf.mxu0  ;;  %22117 = vst [vmem:[#allocation87_spill] sm:$0xff] %v20957_v43  ;;  %22118 = vst [vmem:[#allocation90_spill] sm:$0xff] %v20961_v10  ;;  %15514 = vpow2.f32 %v11696_v28  ;;  %v11659_v47 = vmin.f32 %v20957_v43, 20.0  ;;  %v11658_v36 = vmin.f32 %v20961_v10, 20.0  ;;  %v20983_v40 = vadd.f32 %v20853_v17, %v11590_v53  ;;  %v22138_v10 = vld [vmem:[#allocation51_spill] sm:$0xff] }
 0x68f   : > { %v11596_v7 = vadd.f32 %v15211_v48, %v11210_v35  ;;  %v20987_v48 = vadd.f32 %v11154_v6, %v20822_v30  ;;  %15516 = vpow2.f32 %v11694_v38  ;;  %v21014_v27 = vmul.f32 %v15505_v18, %v11749_v34 }
 0x690   : > { %v11500_v9 = vpop.f32.mrf.mxu0  ;;  %22119 = vst [vmem:[#allocation111_spill] sm:$0xff] %v20983_v40  ;;  %v11698_v0 = vmul.f32 1.442695, %v11658_v36  ;;  %v22124_v36 = vld [vmem:[#allocation85_spill] sm:$0xff] }
 0x691   : > { %v20964_v22 = vadd.f32 %v20853_v17, %v11596_v7  ;;  %v11595_v1 = vadd.f32 %v11500_v9, %v11209_v45  ;;  %v11164_v45 = vpop.f32.mrf.mxu1  ;;  %v11700_v9 = vmul.f32 1.442695, %v11659_v47  ;;  %v11661_v7 = vmin.f32 %v20983_v40, 20.0 }
 0x692   : > { %v15214_v50 = vpop.f32.mrf.mxu0  ;;  %v21004_v37 = vadd.f32 %v11164_v45, %v22122_v55  ;;  %v11813_v34 = vadd.f32 2.0, %v21014_v27 }
 0x693   : > { %v11598_v42 = vadd.f32 %v15214_v50, %v11212_v31  ;;  %v11667_v44 = vmin.f32 %v20964_v22, 20.0  ;;  %v20972_v19 = vadd.f32 %v20853_v17, %v11595_v1  ;;  %v11811_v1 = vadd.f32 2.0, %v20989_v52  ;;  %v15179_v38 = vpop.f32.mrf.mxu1 }
 0x694   : > { %v11510_v4 = vpop.f32.mrf.mxu0  ;;  %v11704_v47 = vmul.f32 1.442695, %v11661_v7 }
 0x695   : > { %v20975_v23 = vadd.f32 %v20853_v17, %v11598_v42  ;;  %v11597_v11 = vadd.f32 %v11510_v4, %v11211_v20  ;;  %v11716_v12 = vmul.f32 1.442695, %v11667_v44  ;;  %v11666_v32 = vmin.f32 %v20972_v19, 20.0  ;;  %v15507_v20 = vpop.eup %15506  ;;  %v11174_v45 = vpop.f32.mrf.mxu1 }
 0x696   : > { %v15217_v15 = vpop.f32.mrf.mxu0  ;;  %v15509_v50 = vpop.eup %15508  ;;  %v11660_v42 = vmin.f32 %v20993_v49, 20.0  ;;  %v21010_v4 = vadd.f32 %v20853_v17, %v11592_v2 }
 0x697   : > { %v11669_v24 = vmin.f32 %v20975_v23, 20.0  ;;  %15518 = vpow2.f32 %v11716_v12  ;;  %v11714_v51 = vmul.f32 1.442695, %v11666_v32  ;;  %v20997_v30 = vadd.f32 %v20853_v17, %v11597_v11 }
 0x698   : > { %v11520_v8 = vpop.f32.mrf.mxu0  ;;  %v11600_v28 = vadd.f32 %v15217_v15, %v11214_v26  ;;  %22123 = vst [vmem:[#allocation56_spill] sm:$0xff] %v21010_v4  ;;  %v15511_v26 = vpop.eup %15510  ;;  %v11748_v15 = vadd.f32 2.0, %v15509_v50  ;;  %v11746_v11 = vadd.f32 2.0, %v15507_v20  ;;  %v21020_v12 = vadd.f32 %v15179_v38, %v22124_v36 }
 0x699   : > { %v11720_v31 = vmul.f32 1.442695, %v11669_v24  ;;  %15520 = vpow2.f32 %v11714_v51  ;;  %v11668_v6 = vmin.f32 %v20997_v30, 20.0  ;;  %v11599_v25 = vadd.f32 %v11520_v8, %v20951_v5  ;;  %v15513_v18 = vpop.eup %15512  ;;  %v22126_v5 = vld [vmem:[#allocation120_spill] sm:$0xff] }
 0x69a   : > { %v15220_v35 = vpop.f32.mrf.mxu0  ;;  %v21017_v29 = vadd.f32 %v20853_v17, %v11600_v28  ;;  %v11702_v24 = vmul.f32 1.442695, %v11660_v42  ;;  %v11663_v2 = vmin.f32 %v21010_v4, 20.0  ;;  %v21026_v51 = vadd.f32 %v20853_v17, %v11591_v46 }
 0x69b   : > { %15522 = vpow2.f32 %v11720_v31  ;;  %v11718_v44 = vmul.f32 1.442695, %v11668_v6  ;;  %v21030_v31 = vadd.f32 %v20853_v17, %v11599_v25  ;;  %v11602_v21 = vadd.f32 %v15220_v35, %v20954_v57 }
 0x69c   : > { %v11530_v53 = vpop.f32.mrf.mxu0  ;;  %15524 = vpow2.f32 %v11700_v9  ;;  %v11671_v32 = vmin.f32 %v21017_v29, 20.0  ;;  %22125 = vst [vmem:[#allocation128_spill] sm:$0xff] %v21026_v51  ;;  %v21034_v8 = vadd.f32 %v11174_v45, %v22126_v5  ;;  %v21036_v7 = vmul.f32 %v15509_v50, %v11748_v15 }
 0x69d   : > { %15526 = vpow2.f32 %v11698_v0  ;;  %v15515_v0 = vpop.eup %15514  ;;  %v21038_v55 = vmul.f32 %v15507_v20, %v11746_v11  ;;  %v11751_v6 = vadd.f32 2.0, %v15511_v26  ;;  %v11593_v28 = vadd.f32 %v20917_v63, %v20937_v41 }
 0x69e   : > { %15528 = vpow2.f32 %v11718_v44  ;;  %v15223_v13 = vpop.f32.mrf.mxu0  ;;  %v11724_v9 = vmul.f32 1.442695, %v11671_v32  ;;  %v21043_v46 = vpop.eup %15516  ;;  %v11708_v57 = vmul.f32 1.442695, %v11663_v2  ;;  %v11662_v35 = vmin.f32 %v21026_v51, 20.0 }
 0x69f   : > { %15530 = vrcp.f32 %v11811_v1  ;;  %v11670_v1 = vmin.f32 %v21030_v31, 20.0  ;;  %v21047_v50 = vadd.f32 %v20853_v17, %v11602_v21  ;;  %v21051_v20 = vadd.f32 %v20853_v17, %v20915_v61 }
 0x6a0   : > { %15532 = vpow2.f32 %v11704_v47  ;;  %v11540_v42 = vpop.f32.mrf.mxu0  ;;  %v11601_v41 = vadd.f32 %v11530_v53, %v20967_v54  ;;  %v11812_v44 = vadd.f32 2.0, %v21036_v7  ;;  %v11750_v15 = vadd.f32 2.0, %v15513_v18 }
 0x6a1   : > { %15534 = vpow2.f32 %v11724_v9  ;;  %22127 = vst [vmem:[#allocation62_spill] sm:$0xff] %v21047_v50  ;;  %22128 = vst [vmem:[#allocation138_spill] sm:$0xff] %v21051_v20  ;;  %v11722_v63 = vmul.f32 1.442695, %v11670_v1  ;;  %v11673_v11 = vmin.f32 %v21047_v50, 20.0  ;;  %v21056_v32 = vmul.f32 %v15511_v26, %v11751_v6 }
 0x6a2   : > { %15536 = vpow2.f32 %v11702_v24  ;;  %v21059_v25 = vadd.f32 %v20853_v17, %v11593_v28  ;;  %v21062_v24 = vadd.f32 %v20853_v17, %v11601_v41  ;;  %v15226_v61 = vpop.f32.mrf.mxu0  ;;  %v11706_v54 = vmul.f32 1.442695, %v11662_v35 }
 0x6a3   : > { %15538 = vrcp.f32 %v11813_v34  ;;  %v11665_v34 = vmin.f32 %v21051_v20, 20.0  ;;  %v11728_v21 = vmul.f32 1.442695, %v11673_v11  ;;  %v21070_v6 = vmul.f32 %v15513_v18, %v11750_v15 }
 0x6a4   : > { %v15519_v38 = vpop.eup %15518  ;;  %22129 = vst [vmem:[#allocation119_spill] sm:$0xff] %v21059_v25  ;;  %15540 = vpow2.f32 %v11722_v63  ;;  %22130 = vst [vmem:[#allocation136_spill] sm:$0xff] %v21062_v24  ;;  %v11672_v26 = vmin.f32 %v21062_v24, 20.0  ;;  %v11753_v28 = vadd.f32 2.0, %v15515_v0  ;;  %v11550_v41 = vpop.f32.mrf.mxu0  ;;  %v11664_v11 = vmin.f32 %v21059_v25, 20.0 }
 0x6a5   : > { %v11763_v47 = vadd.f32 2.0, %v15519_v38  ;;  %15542 = vpow2.f32 %v11708_v57  ;;  %v11815_v57 = vadd.f32 2.0, %v21056_v32 }
 0x6a6   : > { %v15521_v36 = vpop.eup %15520  ;;  %15544 = vrcp.f32 %v11812_v44  ;;  %v11726_v35 = vmul.f32 1.442695, %v11672_v26  ;;  %v11710_v51 = vmul.f32 1.442695, %v11664_v11  ;;  %v15182_v11 = vpop.f32.mrf.mxu1 }
 0x6a7   : > { %v21064_v53 = vmul.f32 %v15519_v38, %v11763_v47  ;;  %v11762_v45 = vadd.f32 2.0, %v15521_v36  ;;  %15546 = vpow2.f32 %v11728_v21  ;;  %v11604_v38 = vadd.f32 %v15223_v13, %v20978_v58 }
 0x6a8   : > { %v15523_v2 = vpop.eup %15522  ;;  %15548 = vpow2.f32 %v11706_v54  ;;  %v11814_v58 = vadd.f32 2.0, %v21070_v6  ;;  %v21089_v13 = vmul.f32 %v15515_v0, %v11753_v28  ;;  %v11603_v54 = vadd.f32 %v11540_v42, %v20987_v48 }
 0x6a9   : > { %v11765_v9 = vadd.f32 2.0, %v15523_v2  ;;  %v21068_v5 = vpop.eup %15524  ;;  %v21072_v1 = vmul.f32 %v15521_v36, %v11762_v45  ;;  %v11827_v44 = vadd.f32 2.0, %v21064_v53  ;;  %15550 = vpow2.f32 %v11726_v35  ;;  %v15229_v35 = vpop.f32.mrf.mxu0 }
 0x6aa   : > { %v21074_v63 = vpop.eup %15526  ;;  %v21086_v21 = vadd.f32 %v20853_v17, %v11604_v38  ;;  %v11752_v38 = vadd.f32 2.0, %v21043_v46  ;;  %v21100_v0 = vadd.f32 %v20853_v17, %v11603_v54  ;;  %v11606_v28 = vadd.f32 %v15226_v61, %v21000_v59 }
 0x6ab   : > { %v15529_v47 = vpop.eup %15528  ;;  %v11826_v18 = vadd.f32 2.0, %v21072_v1  ;;  %v21083_v36 = vmul.f32 %v15523_v2, %v11765_v9  ;;  %v11810_v9 = vadd.f32 2.0, %v21038_v55  ;;  %v11712_v54 = vmul.f32 1.442695, %v11665_v34  ;;  %v11560_v61 = vpop.f32.mrf.mxu0 }
 0x6ac   : > { %v21081_v15 = vpop.eup %15530  ;;  %v11764_v45 = vadd.f32 2.0, %v15529_v47  ;;  %22131 = vst [vmem:[#allocation65_spill] sm:$0xff] %v21086_v21  ;;  %v11675_v2 = vmin.f32 %v21086_v21, 20.0  ;;  %22132 = vst [vmem:[#allocation141_spill] sm:$0xff] %v21100_v0  ;;  %v11674_v4 = vmin.f32 %v21100_v0, 20.0  ;;  %v11605_v59 = vadd.f32 %v11550_v41, %v21004_v37 }
 0x6ad   : > { %15552 = vrcp.f32 %v11826_v18  ;;  %v21092_v26 = vpop.eup %15532  ;;  %v11829_v42 = vadd.f32 2.0, %v21083_v36  ;;  %v11817_v49 = vadd.f32 2.0, %v21089_v13  ;;  %v11608_v34 = vadd.f32 %v15229_v35, %v21020_v12  ;;  %v15232_v35 = vpop.f32.mrf.mxu0 }
 0x6ae   : > { %15554 = vrcp.f32 %v11815_v57  ;;  %v21094_v20 = vmul.f32 %v15529_v47, %v11764_v45  ;;  %v15535_v25 = vpop.eup %15534  ;;  %v11732_v47 = vmul.f32 1.442695, %v11675_v2  ;;  %v11730_v2 = vmul.f32 1.442695, %v11674_v4 }
 0x6af   : > { %15556 = vrcp.f32 %v11827_v44  ;;  %v21103_v48 = vpop.eup %15536  ;;  %v11767_v45 = vadd.f32 2.0, %v15535_v25  ;;  %v21111_v44 = vadd.f32 %v20853_v17, %v11606_v28  ;;  %v21119_v28 = vadd.f32 %v20853_v17, %v11605_v59 }
 0x6b0   : > { %v11828_v57 = vadd.f32 2.0, %v21094_v20  ;;  %15558 = vrcp.f32 %v11810_v9  ;;  %v21107_v18 = vpop.eup %15538  ;;  %v21123_v37 = vmul.f32 %v21043_v46, %v11752_v38  ;;  %v11607_v4 = vadd.f32 %v11560_v61, %v21034_v8 }
 0x6b1   : > { %15560 = vrcp.f32 %v11814_v58  ;;  %22133 = vst [vmem:[#allocation102_spill] sm:$0xff] %v21111_v44  ;;  %v15541_v40 = vpop.eup %15540  ;;  %v11677_v9 = vmin.f32 %v21111_v44, 20.0  ;;  %22134 = vst [vmem:[#allocation140_spill] sm:$0xff] %v21119_v28  ;;  %v21125_v41 = vmul.f32 %v15535_v25, %v11767_v45  ;;  %v21132_v59 = vadd.f32 %v20853_v17, %v11608_v34 }
 0x6b2   : > { %15562 = vrcp.f32 %v11828_v57  ;;  %v21116_v58 = vpop.eup %15542  ;;  %v11766_v21 = vadd.f32 2.0, %v15541_v40  ;;  %v21135_v12 = vadd.f32 %v20853_v17, %v11607_v4  ;;  %v11816_v38 = vadd.f32 2.0, %v21123_v37  ;;  %v22137_v4 = vld [vmem:[#allocation103_spill] sm:$0xff] }
 0x6b3   : > { %15564 = vpow2.f32 %v11732_v47  ;;  %v15545_v57 = vpop.eup %15544  ;;  %v11736_v44 = vmul.f32 1.442695, %v11677_v9  ;;  %22135 = vst [vmem:[#allocation64_spill] sm:$0xff] %v21132_v59  ;;  %v11831_v45 = vadd.f32 2.0, %v21125_v41  ;;  %v11679_v34 = vmin.f32 %v21132_v59, 20.0 }
 0x6b4   : > { %15566 = vrcp.f32 %v11829_v42  ;;  %v21128_v47 = vmul.f32 %v15541_v40, %v11766_v21  ;;  %v11676_v42 = vmin.f32 %v21119_v28, 20.0  ;;  %v15547_v43 = vpop.eup %15546  ;;  %22136 = vst [vmem:[#allocation67_spill] sm:$0xff] %v21135_v12  ;;  %v11184_v21 = vpop.f32.mrf.mxu1  ;;  %v11678_v61 = vmin.f32 %v21135_v12, 20.0 }
 0x6b5   : > { %15568 = vpow2.f32 %v11730_v2  ;;  %v21137_v46 = vpop.eup %15548  ;;  %v11769_v2 = vadd.f32 2.0, %v15547_v43  ;;  %v11223_v50 = vadd.f32 %v11184_v21, %v22138_v10  ;;  %v11570_v12 = vpop.f32.mrf.mxu0  ;;  %v11754_v59 = vadd.f32 2.0, %v21074_v63 }
 0x6b6   : > { %15570 = vpow2.f32 %v11712_v54  ;;  %v11830_v25 = vadd.f32 2.0, %v21128_v47  ;;  %v11734_v8 = vmul.f32 1.442695, %v11676_v42  ;;  %v15551_v40 = vpop.eup %15550  ;;  %v11224_v42 = vadd.f32 %v15182_v11, %v22137_v4 }
 0x6b7   : > { %15572 = vrcp.f32 %v11817_v49  ;;  %v11768_v9 = vadd.f32 2.0, %v15551_v40  ;;  %v11738_v28 = vmul.f32 1.442695, %v11678_v61  ;;  %v11756_v4 = vadd.f32 2.0, %v21103_v48 }
 0x6b8   : > { %15574 = vpow2.f32 %v11710_v51  ;;  %v11610_v62 = vadd.f32 %v15232_v35, %v11224_v42 }
 0x6b9   : > { %15576 = vpow2.f32 %v11736_v44  ;;  %v21149_v16 = vmul.f32 %v15551_v40, %v11768_v9  ;;  %v11845_v44 = vmul.f32 %v21081_v15, %v20989_v52  ;;  %v11755_v40 = vadd.f32 2.0, %v21068_v5 }
 0x6ba   : > { %v15553_v54 = vpop.eup %15552  ;;  %15578 = vpow2.f32 %v11734_v8  ;;  %v21156_v8 = vmul.f32 %v15547_v43, %v11769_v2  ;;  %v21161_v21 = vadd.f32 %v20853_v17, %v11610_v62  ;;  %v11609_v52 = vadd.f32 %v11570_v12, %v11223_v50 }
 0x6bb   : > { %v21144_v49 = vpop.eup %15554  ;;  %v11875_v51 = vmul.f32 %v15553_v54, %v21072_v1  ;;  %15580 = vrcp.f32 %v11830_v25  ;;  %v11740_v1 = vmul.f32 1.442695, %v11679_v34  ;;  %v11849_v9 = vmul.f32 %v21107_v18, %v21014_v27 }
 0x6bc   : > { %v15557_v0 = vpop.eup %15556  ;;  %15582 = vrcp.f32 %v11816_v38  ;;  %v21173_v62 = vadd.f32 %v20853_v17, %v11609_v52 }
 0x6bd   : > { %v15559_v24 = vpop.eup %15558  ;;  %15584 = vrcp.f32 %v11831_v45  ;;  %v11877_v38 = vmul.f32 %v15557_v0, %v21064_v53  ;;  %v11922_v35 = vmul.f32 %v11875_v51, %v20972_v19  ;;  %v11832_v45 = vadd.f32 2.0, %v21149_v16  ;;  %v22139_v0 = vld [vmem:[#allocation4_spill] sm:$0xff] }
 0x6be   : > { %v21154_v11 = vpop.eup %15560  ;;  %v11843_v10 = vmul.f32 %v15559_v24, %v21038_v55  ;;  %15586 = vpow2.f32 %v11738_v28  ;;  %v11907_v55 = vmul.f32 %v11845_v44, %v20860_v39  ;;  %v11847_v24 = vmul.f32 %v15545_v57, %v21036_v7  ;;  %v22141_v44 = vld [vmem:[#allocation5_spill] sm:$0xff] }
 0x6bf   : > { %v15563_v25 = vpop.eup %15562  ;;  %v21170_v28 = vmul.f32 %v21074_v63, %v11754_v59  ;;  %v11833_v19 = vadd.f32 2.0, %v21156_v8  ;;  %15588 = vpow2.f32 %v11740_v1  ;;  %v11681_v39 = vmin.f32 %v21161_v21, 20.0 }
 0x6c0   : > { %v15565_v15 = vpop.eup %15564  ;;  %v11906_v43 = vmul.f32 %v11843_v10, %v20881_v3  ;;  %v11879_v53 = vmul.f32 %v15563_v25, %v21094_v20  ;;  %v11680_v7 = vmin.f32 %v21173_v62, 20.0  ;;  %v21183_v63 = vmul.f32 %v21068_v5, %v11755_v40  ;;  %v22140_v20 = vld [vmem:[#allocation20_spill] sm:$0xff] }
 0x6c1   : > { %v15567_v61 = vpop.eup %15566  ;;  %v11771_v3 = vadd.f32 2.0, %v15565_v15  ;;  %v11923_v17 = vmul.f32 %v11877_v38, %v20964_v22  ;;  %15590 = vrcp.f32 %v11832_v45  ;;  %v11954_v59 = vadd.f32 %v11922_v35, %v22140_v20  ;;  %v22142_v38 = vld [vmem:[#allocation21_spill] sm:$0xff] }
 0x6c2   : > { %v15569_v50 = vpop.eup %15568  ;;  %v11938_v12 = vadd.f32 %v11906_v43, %v22139_v0  ;;  %v11818_v34 = vadd.f32 2.0, %v21170_v28  ;;  %v11908_v5 = vmul.f32 %v11847_v24, %v20885_v14  ;;  %v11881_v22 = vmul.f32 %v15567_v61, %v21083_v36 }
 0x6c3   : > { %v11770_v54 = vadd.f32 2.0, %v15569_v50  ;;  %v21180_v57 = vpop.eup %15570  ;;  %v11939_v10 = vadd.f32 %v11907_v55, %v22141_v44  ;;  %v11742_v1 = vmul.f32 1.442695, %v11680_v7  ;;  %12002 = vxpose.xlu0.b32.start [1/16] (narrow) %v11954_v59, 8  ;;  %v11924_v40 = vmul.f32 %v11879_v53, %v20997_v30  ;;  %v22145_v59 = vld [vmem:[#allocation7_spill] sm:$0xff] }
 0x6c4   : > { %11970 = vxpose.xlu1.b32.start [1/16] (narrow) %v11938_v12, 8  ;;  %v21187_v2 = vpop.eup %15572  ;;  %15592 = vrcp.f32 %v11833_v19  ;;  %v21201_v27 = vmul.f32 %v15565_v15, %v11771_v3  ;;  %v11744_v18 = vmul.f32 1.442695, %v11681_v39  ;;  %v11955_v35 = vadd.f32 %v11923_v17, %v22142_v38  ;;  %v22144_v12 = vld [vmem:[#allocation22_spill] sm:$0xff] }
 0x6c5   : > { %v21193_v42 = vmul.f32 %v15569_v50, %v11770_v54  ;;  %v21195_v51 = vpop.eup %15574  ;;  %15594 = vpow2.f32 %v11742_v1  ;;  %v11819_v36 = vadd.f32 2.0, %v21183_v63  ;;  %v11757_v43 = vadd.f32 2.0, %v21092_v26  ;;  %v22143_v50 = vld [vmem:[#allocation6_spill] sm:$0xff] }
 0x6c6   : > { %v15577_v25 = vpop.eup %15576  ;;  %15596 = vrcp.f32 %v11818_v34  ;;  %v11909_v30 = vmul.f32 %v11849_v9, %v20872_v33  ;;  %v11851_v15 = vmul.f32 %v21154_v11, %v21070_v6  ;;  %v21211_v24 = vmul.f32 %v21103_v48, %v11756_v4 }
 0x6c7   : > { %v15579_v52 = vpop.eup %15578  ;;  %v11834_v45 = vadd.f32 2.0, %v21193_v42  ;;  %v11940_v53 = vadd.f32 %v11908_v5, %v22143_v50  ;;  %12003 = vxpose.xlu0.b32.cont [2/16] (narrow) %v11955_v35, 8  ;;  %v11925_v0 = vmul.f32 %v11881_v22, %v20975_v23  ;;  %v11956_v3 = vadd.f32 %v11924_v40, %v22144_v12  ;;  %v22146_v5 = vld [vmem:[#allocation23_spill] sm:$0xff]  ;;  %v22151_v12 = vld [vmem:[#allocation25_spill] sm:$0xff] }
 0x6c8   : > { %11971 = vxpose.xlu1.b32.cont [2/16] (narrow) %v11939_v10, 8  ;;  %v15581_v14 = vpop.eup %15580  ;;  %v11772_v61 = vadd.f32 2.0, %v15579_v52  ;;  %v11835_v54 = vadd.f32 2.0, %v21201_v27  ;;  %15598 = vpow2.f32 %v11744_v18  ;;  %v11773_v7 = vadd.f32 2.0, %v15577_v25  ;;  %v22147_v18 = vld [vmem:[#allocation8_spill] sm:$0xff] }
 0x6c9   : > { %v15583_v55 = vpop.eup %15582  ;;  %v11883_v33 = vmul.f32 %v15581_v14, %v21128_v47  ;;  %15600 = vrcp.f32 %v11834_v45  ;;  %v21221_v48 = vmul.f32 %v21092_v26, %v11757_v43  ;;  %v11758_v11 = vadd.f32 2.0, %v21137_v46  ;;  %v22148_v45 = vld [vmem:[#allocation24_spill] sm:$0xff] }
 0x6ca   : > { %v15585_v19 = vpop.eup %15584  ;;  %v21218_v6 = vmul.f32 %v15579_v52, %v11772_v61  ;;  %15602 = vrcp.f32 %v11819_v36  ;;  %v11853_v23 = vmul.f32 %v21144_v49, %v21056_v32  ;;  %v11910_v17 = vmul.f32 %v11851_v15, %v20903_v56 }
 0x6cb   : > { %v15587_v39 = vpop.eup %15586  ;;  %v11820_v20 = vadd.f32 2.0, %v21211_v24  ;;  %v11941_v47 = vadd.f32 %v11909_v30, %v22145_v59  ;;  %12004 = vxpose.xlu0.b32.cont [3/16] (narrow) %v11956_v3, 8  ;;  %v11885_v34 = vmul.f32 %v15585_v19, %v21125_v41  ;;  %15604 = vrcp.f32 %v11835_v54  ;;  %v22152_v54 = vld [vmem:[#allocation136_spill] sm:$0xff]  ;;  %v22154_v59 = vld [vmem:[#allocation10_spill] sm:$0xff] }
 0x6cc   : > { %11972 = vxpose.xlu1.b32.cont [3/16] (narrow) %v11940_v53, 8  ;;  %v15589_v9 = vpop.eup %15588  ;;  %v11774_v4 = vadd.f32 2.0, %v15587_v39  ;;  %v11957_v26 = vadd.f32 %v11925_v0, %v22146_v5  ;;  %v11926_v22 = vmul.f32 %v11883_v33, %v21030_v31  ;;  %v21232_v44 = vmul.f32 %v15577_v25, %v11773_v7 }
 0x6cd   : > { %v11836_v32 = vadd.f32 2.0, %v21218_v6  ;;  %v11821_v49 = vadd.f32 2.0, %v21221_v48  ;;  %v11759_v10 = vadd.f32 2.0, %v21116_v58  ;;  %v21238_v1 = vmul.f32 %v21137_v46, %v11758_v11 }
 0x6ce   : > { %v15591_v56 = vpop.eup %15590  ;;  %v11911_v41 = vmul.f32 %v11853_v23, %v20897_v60  ;;  %v11855_v40 = vmul.f32 %v15583_v55, %v21123_v37  ;;  %15606 = vrcp.f32 %v11820_v20  ;;  %v11942_v31 = vadd.f32 %v11910_v17, %v22147_v18  ;;  %v22149_v55 = vld [vmem:[#allocation54_spill] sm:$0xff]  ;;  %v22158_v18 = vld [vmem:[#allocation11_spill] sm:$0xff] }
 0x6cf   : > { %12005 = vxpose.xlu0.b32.cont [4/16] (narrow) %v11957_v26, 8  ;;  %v11927_v25 = vmul.f32 %v11885_v34, %v21017_v29  ;;  %v11775_v52 = vadd.f32 2.0, %v15589_v9  ;;  %v21244_v38 = vmul.f32 %v15587_v39, %v11774_v4  ;;  %v11958_v14 = vadd.f32 %v11926_v22, %v22148_v45  ;;  %v22156_v26 = vld [vmem:[#allocation26_spill] sm:$0xff]  ;;  %v22160_v45 = vld [vmem:[#allocation141_spill] sm:$0xff] }
 0x6d0   : > { %11973 = vxpose.xlu1.b32.cont [4/16] (narrow) %v11941_v47, 8  ;;  %v11887_v36 = vmul.f32 %v15591_v56, %v21149_v16  ;;  %v11837_v46 = vadd.f32 2.0, %v21232_v44  ;;  %15608 = vrcp.f32 %v11836_v32  ;;  %v21250_v37 = vmul.f32 %v21116_v58, %v11759_v10  ;;  %v22150_v16 = vld [vmem:[#allocation9_spill] sm:$0xff]  ;;  %v22157_v10 = vld [vmem:[#allocation90_spill] sm:$0xff] }
 0x6d1   : > { %v15593_v35 = vpop.eup %15592  ;;  %15610 = vrcp.f32 %v11821_v49  ;;  %v11822_v43 = vadd.f32 2.0, %v21238_v1  ;;  %v11857_v61 = vmul.f32 %v21187_v2, %v21089_v13  ;;  %v11912_v30 = vmul.f32 %v11855_v40, %v22149_v55  ;;  %v22162_v55 = vld [vmem:[#allocation12_spill] sm:$0xff] }
 0x6d2   : > { %v15595_v60 = vpop.eup %15594  ;;  %v11760_v15 = vadd.f32 2.0, %v21195_v51  ;;  %v11943_v50 = vadd.f32 %v11911_v41, %v22150_v16  ;;  %v11889_v53 = vmul.f32 %v15593_v35, %v21156_v8  ;;  %v21259_v19 = vmul.f32 %v15589_v9, %v11775_v52  ;;  %v22153_v8 = vld [vmem:[#allocation125_spill] sm:$0xff]  ;;  %v22155_v9 = vld [vmem:[#allocation62_spill] sm:$0xff]  ;;  %v22159_v52 = vld [vmem:[#allocation27_spill] sm:$0xff] }
 0x6d3   : > { %v15597_v29 = vpop.eup %15596  ;;  %12006 = vxpose.xlu0.b32.cont [5/16] (narrow) %v11958_v14, 8  ;;  %v11838_v58 = vadd.f32 2.0, %v21244_v38  ;;  %v11959_v3 = vadd.f32 %v11927_v25, %v22151_v12  ;;  %v11928_v39 = vmul.f32 %v11887_v36, %v22152_v54  ;;  %15612 = vrcp.f32 %v11837_v46  ;;  %v22164_v16 = vld [vmem:[#allocation28_spill] sm:$0xff] }
 0x6d4   : > { %11974 = vxpose.xlu1.b32.cont [5/16] (narrow) %v11942_v31, 8  ;;  %v11776_v13 = vadd.f32 2.0, %v15595_v60  ;;  %v11823_v33 = vadd.f32 2.0, %v21250_v37  ;;  %15614 = vrcp.f32 %v11822_v43  ;;  %v11761_v7 = vadd.f32 2.0, %v21180_v57  ;;  %v22161_v43 = vld [vmem:[#allocation87_spill] sm:$0xff]  ;;  %v22165_v54 = vld [vmem:[#allocation60_spill] sm:$0xff] }
 0x6d5   : > { %v15599_v0 = vpop.eup %15598  ;;  %v11913_v23 = vmul.f32 %v11857_v61, %v22153_v8  ;;  %v11859_v17 = vmul.f32 %v15597_v29, %v21170_v28  ;;  %v21269_v20 = vmul.f32 %v21195_v51, %v11760_v15  ;;  %v11944_v47 = vadd.f32 %v11912_v30, %v22154_v59 }
 0x6d6   : > { %v15601_v2 = vpop.eup %15600  ;;  %v11929_v34 = vmul.f32 %v11889_v53, %v22155_v9  ;;  %v11839_v4 = vadd.f32 2.0, %v21259_v19  ;;  %15616 = vrcp.f32 %v11838_v58  ;;  %v11960_v22 = vadd.f32 %v11928_v39, %v22156_v26  ;;  %v22166_v39 = vld [vmem:[#allocation13_spill] sm:$0xff] }
 0x6d7   : > { %v15603_v11 = vpop.eup %15602  ;;  %12007 = vxpose.xlu0.b32.cont [6/16] (narrow) %v11959_v3, 8  ;;  %v11891_v32 = vmul.f32 %v15601_v2, %v21193_v42  ;;  %v11777_v56 = vadd.f32 2.0, %v15599_v0  ;;  %v21276_v49 = vmul.f32 %v15595_v60, %v11776_v13  ;;  %15618 = vrcp.f32 %v11823_v33  ;;  %v22167_v33 = vld [vmem:[#allocation29_spill] sm:$0xff] }
 0x6d8   : > { %11975 = vxpose.xlu1.b32.cont [6/16] (narrow) %v11943_v50, 8  ;;  %v15605_v5 = vpop.eup %15604  ;;  %v21279_v28 = vmul.f32 %v21180_v57, %v11761_v7  ;;  %v11861_v51 = vmul.f32 %v15603_v11, %v21183_v63  ;;  %v11914_v41 = vmul.f32 %v11859_v17, %v22157_v10  ;;  %v11824_v40 = vadd.f32 2.0, %v21269_v20  ;;  %v22169_v17 = vld [vmem:[#allocation111_spill] sm:$0xff] }
 0x6d9   : > { %v11945_v31 = vadd.f32 %v11913_v23, %v22158_v18  ;;  %v11961_v42 = vadd.f32 %v11929_v34, %v22159_v52  ;;  %v11893_v35 = vmul.f32 %v15605_v5, %v21201_v27  ;;  %v11930_v14 = vmul.f32 %v11891_v32, %v22160_v45  ;;  %v22163_v27 = vld [vmem:[#allocation65_spill] sm:$0xff]  ;;  %v22171_v34 = vld [vmem:[#allocation102_spill] sm:$0xff]  ;;  %v22174_v10 = vld [vmem:[#allocation15_spill] sm:$0xff] }
 0x6da   : > { %15620 = vrcp.f32 %v11839_v4  ;;  %v21288_v36 = vmul.f32 %v15599_v0, %v11777_v56  ;;  %v11840_v57 = vadd.f32 2.0, %v21276_v49  ;;  %v11825_v46 = vadd.f32 2.0, %v21279_v28  ;;  %v22172_v5 = vld [vmem:[#allocation30_spill] sm:$0xff]  ;;  %v22173_v56 = vld [vmem:[#allocation128_spill] sm:$0xff] }
 0x6db   : > { %12008 = vxpose.xlu0.b32.cont [7/16] (narrow) %v11960_v22, 8  ;;  %v15607_v25 = vpop.eup %15606  ;;  %v11915_v29 = vmul.f32 %v11861_v51, %v22161_v43  ;;  %15622 = vrcp.f32 %v11824_v40  ;;  %v11946_v30 = vadd.f32 %v11914_v41, %v22162_v55  ;;  %v11931_v15 = vmul.f32 %v11893_v35, %v22163_v27  ;;  %v22177_v35 = vld [vmem:[#allocation56_spill] sm:$0xff]  ;;  %v22181_v55 = vld [vmem:[#allocation119_spill] sm:$0xff]  ;;  %v22182_v27 = vld [vmem:[#allocation17_spill] sm:$0xff] }
 0x6dc   : > { %11976 = vxpose.xlu1.b32.cont [7/16] (narrow) %v11944_v47, 8  ;;  %v11863_v61 = vmul.f32 %v15607_v25, %v21211_v24  ;;  %v11962_v50 = vadd.f32 %v11930_v14, %v22164_v16  ;;  %v11841_v58 = vadd.f32 2.0, %v21288_v36  ;;  %15624 = vrcp.f32 %v11840_v57  ;;  %v22170_v47 = vld [vmem:[#allocation14_spill] sm:$0xff]  ;;  %v22176_v25 = vld [vmem:[#allocation67_spill] sm:$0xff]  ;;  %v22178_v14 = vld [vmem:[#allocation16_spill] sm:$0xff] }
 0x6dd   : > { %v15609_v63 = vpop.eup %15608  ;;  %15626 = vrcp.f32 %v11825_v46  ;;  %v11947_v13 = vadd.f32 %v11915_v29, %v22166_v39  ;;  %v11963_v7 = vadd.f32 %v11931_v15, %v22167_v33 }
 0x6de   : > { %v15611_v60 = vpop.eup %15610  ;;  %v11895_v53 = vmul.f32 %v15609_v63, %v21218_v6  ;;  %v11916_v24 = vmul.f32 %v11863_v61, %v22165_v54  ;;  %v22168_v6 = vld [vmem:[#allocation140_spill] sm:$0xff]  ;;  %15628 = vrcp.f32 %v11841_v58  ;;  %v22184_v58 = vld [vmem:[#allocation138_spill] sm:$0xff] }
 0x6df   : > { %12009 = vxpose.xlu0.b32.cont [8/16] (narrow) %v11961_v42, 8  ;;  %v11865_v3 = vmul.f32 %v15611_v60, %v21221_v48  ;;  %v22179_v63 = vld [vmem:[#allocation64_spill] sm:$0xff] }
 0x6e0   : > { %11977 = vxpose.xlu1.b32.cont [8/16] (narrow) %v11945_v31, 8  ;;  %v15613_v0 = vpop.eup %15612  ;;  %v11932_v8 = vmul.f32 %v11895_v53, %v22168_v6  ;;  %v11948_v9 = vadd.f32 %v11916_v24, %v22170_v47  ;;  %v22180_v60 = vld [vmem:[#allocation32_spill] sm:$0xff]  ;;  %v22187_v24 = vld [vmem:[#allocation19_spill] sm:$0xff] }
 0x6e1   : > { %v15615_v12 = vpop.eup %15614  ;;  %v11897_v11 = vmul.f32 %v15613_v0, %v21232_v44  ;;  %v11917_v59 = vmul.f32 %v11865_v3, %v22169_v17  ;;  %v22186_v3 = vld [vmem:[#allocation36_spill] sm:$0xff] }
 0x6e2   : > { %v11867_v48 = vmul.f32 %v15615_v12, %v21238_v1  ;;  %v11964_v26 = vadd.f32 %v11932_v8, %v22172_v5  ;;  %v22175_v1 = vld [vmem:[#allocation31_spill] sm:$0xff] }
 0x6e3   : > { %12010 = vxpose.xlu0.b32.cont [9/16] (narrow) %v11962_v50, 8  ;;  %v15617_v2 = vpop.eup %15616  ;;  %v11933_v4 = vmul.f32 %v11897_v11, %v22171_v34  ;;  %v11949_v41 = vadd.f32 %v11917_v59, %v22174_v10 }
 0x6e4   : > { %11978 = vxpose.xlu1.b32.cont [9/16] (narrow) %v11946_v30, 8  ;;  %v15619_v23 = vpop.eup %15618  ;;  %v11899_v22 = vmul.f32 %v15617_v2, %v21244_v38  ;;  %v11918_v51 = vmul.f32 %v11867_v48, %v22173_v56 }
 0x6e5   : > { %v11869_v32 = vmul.f32 %v15619_v23, %v21250_v37  ;;  %v11965_v18 = vadd.f32 %v11933_v4, %v22175_v1 }
 0x6e6   : > { %v11934_v52 = vmul.f32 %v11899_v22, %v22176_v25  ;;  %v11950_v37 = vadd.f32 %v11918_v51, %v22178_v14 }
 0x6e7   : > { %12011 = vxpose.xlu0.b32.cont [10/16] (narrow) %v11963_v7, 8  ;;  %v15621_v44 = vpop.eup %15620  ;;  %v11919_v38 = vmul.f32 %v11869_v32, %v22177_v35 }
 0x6e8   : > { %11979 = vxpose.xlu1.b32.cont [10/16] (narrow) %v11947_v13, 8  ;;  %v15623_v40 = vpop.eup %15622  ;;  %v11901_v31 = vmul.f32 %v15621_v44, %v21259_v19  ;;  %v11966_v43 = vadd.f32 %v11934_v52, %v22180_v60  ;;  %v22188_v13 = vld [vmem:[#allocation38_spill] sm:$0xff] }
 0x6e9   : > { %v15625_v42 = vpop.eup %15624  ;;  %v11871_v45 = vmul.f32 %v15623_v40, %v21269_v20  ;;  %v11951_v15 = vadd.f32 %v11919_v38, %v22182_v27  ;;  %v22183_v20 = vld [vmem:[#allocation33_spill] sm:$0xff] }
 0x6ea   : > { %v15627_v57 = vpop.eup %15626  ;;  %v11935_v46 = vmul.f32 %v11901_v31, %v22179_v63  ;;  %v11903_v29 = vmul.f32 %v15625_v42, %v21276_v49  ;;  %v22185_v49 = vld [vmem:[#allocation18_spill] sm:$0xff] }
 0x6eb   : > { %12012 = vxpose.xlu0.b32.cont [11/16] (narrow) %v11964_v26, 8  ;;  %v15629_v19 = vpop.eup %15628  ;;  %v11873_v61 = vmul.f32 %v15627_v57, %v21279_v28  ;;  %v11920_v30 = vmul.f32 %v11871_v45, %v22181_v55 }
 0x6ec   : > { %11980 = vxpose.xlu1.b32.cont [11/16] (narrow) %v11948_v9, 8  ;;  %v11967_v16 = vadd.f32 %v11935_v46, %v22183_v20  ;;  %v11905_v50 = vmul.f32 %v15629_v19, %v21288_v36  ;;  %v11936_v53 = vmul.f32 %v11903_v29, %v21173_v62 }
 0x6ed   : > { %v11921_v0 = vmul.f32 %v11873_v61, %v22184_v58  ;;  %v11952_v12 = vadd.f32 %v11920_v30, %v22185_v49 }
 0x6ee   : > { %v11937_v28 = vmul.f32 %v11905_v50, %v21161_v21  ;;  %v11968_v54 = vadd.f32 %v11936_v53, %v22186_v3 }
 0x6ef   : > { %12013 = vxpose.xlu0.b32.cont [12/16] (narrow) %v11965_v18, 8  ;;  %v11953_v39 = vadd.f32 %v11921_v0, %v22187_v24 }
 0x6f0   : > { %11981 = vxpose.xlu1.b32.cont [12/16] (narrow) %v11949_v41, 8  ;;  %v11969_v2 = vadd.f32 %v11937_v28, %v22188_v13 }
 0x6f3   : > { %12014 = vxpose.xlu0.b32.cont [13/16] (narrow) %v11966_v43, 8 }
 0x6f4   : > { %11982 = vxpose.xlu1.b32.cont [13/16] (narrow) %v11950_v37, 8 }
 0x6f7   : > { %12015 = vxpose.xlu0.b32.cont [14/16] (narrow) %v11967_v16, 8 }
 0x6f8   : > { %11983 = vxpose.xlu1.b32.cont [14/16] (narrow) %v11951_v15, 8 }
 0x6fb   : > { %12016 = vxpose.xlu0.b32.cont [15/16] (narrow) %v11968_v54, 8 }
 0x6fc   : > { %11984 = vxpose.xlu1.b32.cont [15/16] (narrow) %v11952_v12, 8 }
 0x6ff   : > { %12017 = vxpose.xlu0.b32.end [16/16] (narrow) %v11969_v2, 8 }
 0x700   : > { %11985 = vxpose.xlu1.b32.end [16/16] (narrow) %v11953_v39, 8 }
 0x73f   : > { %v12018_v62 = vpop.trf.xlu0 }
 0x740   : > { %v11986_v36 = vpop.trf.xlu1 }
 0x741   : > { %v12036_v33 = vcombine.low %v11986_v36, %v12018_v62 }
 0x743   : > { %12038 = vst [vmem:[%s278_s10] sm:$0xff] %v12036_v33 }
 0x744 PF: > { %s17_s24 = sadd.s32 1, %s15636_s24  }
 0x745   : > { %p14_p4 = scmp.ge.s32.totalorder %s17_s24, 4  }
 0x747   :  { %16 = sbr.rel (!%p14_p4) target bundleno = 1 (0x1), region = 86 }

</bundles_post_ra>
